<compile_context>
chip_gen: v6e
topology: v6e:2x2x1
jax: 0.10.0
libtpu: 0.0.40
codegen_flags: <defaults>
</compile_context>

<pallas_src>
import functools

import jax
import jax.numpy as jnp
from jax.experimental import pallas as pl
from jax.experimental.pallas import tpu as pltpu

COMPUTE_DTYPE = jnp.bfloat16   # MXU-native on v5e/v6e/v7x; accumulation is f32.


def _vmem_spec():
    return pl.BlockSpec(memory_space=pltpu.MemorySpace.VMEM)


# ----------------------------- kernel bodies ------------------------------ #

def _mm_bias_act_kernel(x_ref, w_ref, b_ref, o_ref, *, relu):
    """o = relu(x @ w + b); bf16 operands, f32 accumulate, f32 epilogue."""
    acc = jnp.dot(x_ref[...], w_ref[...], preferred_element_type=jnp.float32)
    acc = acc + b_ref[...]
    if relu:
        acc = jnp.maximum(acc, 0.0)
    o_ref[...] = acc.astype(o_ref.dtype)


def _tail_kernel(p3_ref, w3_ref, b3_ref, wl_ref, bl_ref, wpi_ref, bpi_ref,
                 o_ref, *, batch):
    """Fused conv3 + flatten + linear + ReLU + pi head, all VMEM-resident.

    p3_ref : (49*B, 3*3*64) conv3 im2col patches, rows ordered (h, w, b).
    wl_ref : (49, 64, 512) linear weight with wl[p, c, n] == lin_w[n, c*49+p],
             i.e. pre-permuted to match PyTorch's NCHW .view flatten order.
    """
    # conv3: (49*B, 576) @ (576, 64) + bias, ReLU.
    h3 = jnp.dot(p3_ref[...], w3_ref[...], preferred_element_type=jnp.float32)
    h3 = jnp.maximum(h3 + b3_ref[...], 0.0).astype(w3_ref.dtype)   # (49*B, 64)

    # flatten + linear, decomposed per spatial position p: rows [p*B, (p+1)*B)
    # of h3 are position p for all batch entries, so each term only needs a
    # contiguous static slice -- no in-kernel reshape/transpose of minor dims.
    n_pos, _, hidden = wl_ref.shape
    acc = jnp.zeros((batch, hidden), jnp.float32)
    for p in range(n_pos):
        acc = acc + jnp.dot(h3[p * batch:(p + 1) * batch, :], wl_ref[p],
                            preferred_element_type=jnp.float32)
    hl = jnp.maximum(acc + bl_ref[...], 0.0).astype(wpi_ref.dtype)  # (B, 512)

    # pi head: (B, 512) @ (512, 4) + bias.
    o_ref[...] = (jnp.dot(hl, wpi_ref[...], preferred_element_type=jnp.float32)
                  + bpi_ref[...])


# ----------------------------- kernel wrappers ----------------------------- #

def matmul_bias_act(x, w, b, *, relu, out_dtype):
    """Single-block fused (x @ w + b) (+ ReLU) with all operands in VMEM."""
    m, k = x.shape
    k2, n = w.shape
    assert k == k2, (k, k2)
    return pl.pallas_call(
        functools.partial(_mm_bias_act_kernel, relu=relu),
        out_shape=jax.ShapeDtypeStruct((m, n), out_dtype),
        in_specs=[_vmem_spec(), _vmem_spec(), _vmem_spec()],
        out_specs=_vmem_spec(),
    )(x, w, b)


def tail_fused(p3, prep, *, batch):
    """Fused conv3 + flatten + linear + ReLU + pi in a single pallas_call."""
    n_act = prep["wpi"].shape[1]
    assert p3.shape[0] == prep["wl"].shape[0] * batch
    return pl.pallas_call(
        functools.partial(_tail_kernel, batch=batch),
        out_shape=jax.ShapeDtypeStruct((batch, n_act), jnp.float32),
        in_specs=[_vmem_spec()] * 7,
        out_specs=_vmem_spec(),
    )(p3, prep["w3"], prep["b3"], prep["wl"], prep["bl"],
      prep["wpi"], prep["bpi"])


# ------------------------------ conv glue ---------------------------------- #

def extract_patches_hwbc(x, k, s):
    """im2col via static strided slices (no gather).

    x: (H, W, B, C) -> (OH, OW, B, k*k*C); columns ordered (kh, kw, c), which
    matches the weight layout produced by prepare_params.
    """
    h, w, b, c = x.shape
    oh = (h - k) // s + 1
    ow = (w - k) // s + 1
    pieces = []
    for kh in range(k):
        for kw in range(k):
            pieces.append(jax.lax.slice(
                x, (kh, kw, 0, 0),
                (kh + (oh - 1) * s + 1, kw + (ow - 1) * s + 1, b, c),
                (s, s, 1, 1)))
    return jnp.concatenate(pieces, axis=-1), oh, ow


# ------------------------------ parameters --------------------------------- #

def init_params(key):
    """PyTorch-default-style init, PyTorch layouts (OIHW conv, (out,in) linear)."""
    def uinit(k, shape, fan_in):
        bound = 1.0 / jnp.sqrt(jnp.float32(fan_in))
        return jax.random.uniform(k, shape, jnp.float32, -bound, bound)

    ks = jax.random.split(key, 10)
    return {
        "conv1_w": uinit(ks[0], (32, 4, 8, 8), 4 * 8 * 8),
        "conv1_b": uinit(ks[1], (32,), 4 * 8 * 8),
        "conv2_w": uinit(ks[2], (64, 32, 4, 4), 32 * 4 * 4),
        "conv2_b": uinit(ks[3], (64,), 32 * 4 * 4),
        "conv3_w": uinit(ks[4], (64, 64, 3, 3), 64 * 3 * 3),
        "conv3_b": uinit(ks[5], (64,), 64 * 3 * 3),
        "lin_w":   uinit(ks[6], (512, 7 * 7 * 64), 7 * 7 * 64),
        "lin_b":   uinit(ks[7], (512,), 7 * 7 * 64),
        "pi_w":    uinit(ks[8], (4, 512), 512),
        "pi_b":    uinit(ks[9], (4,), 512),
    }


def prepare_params(params, compute_dtype=COMPUTE_DTYPE):
    """One-time re-layout of PyTorch-layout params into kernel-ready form."""
    def conv_w(w):              # (O, C, k, k) -> (k*k*C, O), rows ordered (kh,kw,c)
        o, c, k, _ = w.shape
        return w.transpose(2, 3, 1, 0).reshape(k * k * c, o).astype(compute_dtype)

    # lin_w: (512, 3136), column index f = c*49 + h*7 + w  (PyTorch NCHW .view).
    lin_w = params["lin_w"]
    wl = lin_w.reshape(512, 64, 49).transpose(2, 1, 0).astype(compute_dtype)

    return {
        "w1": conv_w(params["conv1_w"]), "b1": params["conv1_b"].reshape(1, -1),
        "w2": conv_w(params["conv2_w"]), "b2": params["conv2_b"].reshape(1, -1),
        "w3": conv_w(params["conv3_w"]), "b3": params["conv3_b"].reshape(1, -1),
        "wl": wl,                        "bl": params["lin_b"].reshape(1, -1),
        "wpi": params["pi_w"].T.astype(compute_dtype),   # (512, 4)
        "bpi": params["pi_b"].reshape(1, -1),
    }


# ------------------------------- forward ----------------------------------- #

def actor_forward(prep, x):
    """x: (B, 4, 84, 84) float32 (NCHW, PyTorch layout) -> (B, 4) logits."""
    bsz = x.shape[0]
    assert x.shape[2] == 84 and x.shape[3] == 84, x.shape

    # One-time input re-layout: NCHW -> (H, W, B, C).  All subsequent layers
    # stay in this spatial-major layout, so no activation transposes occur.
    h = jnp.transpose(x, (2, 3, 0, 1)).astype(COMPUTE_DTYPE)     # (84, 84, B, 4)

    p, oh, ow = extract_patches_hwbc(h, 8, 4)                    # (20, 20, B, 256)
    h = matmul_bias_act(p.reshape(oh * ow * bsz, -1), prep["w1"], prep["b1"],
                        relu=True, out_dtype=COMPUTE_DTYPE)      # (800, 32)
    h = h.reshape(oh, ow, bsz, -1)

    p, oh, ow = extract_patches_hwbc(h, 4, 2)                    # (9, 9, B, 512)
    h = matmul_bias_act(p.reshape(oh * ow * bsz, -1), prep["w2"], prep["b2"],
                        relu=True, out_dtype=COMPUTE_DTYPE)      # (162, 64)
    h = h.reshape(oh, ow, bsz, -1)

    p, oh, ow = extract_patches_hwbc(h, 3, 1)                    # (7, 7, B, 576)
    return tail_fused(p.reshape(oh * ow * bsz, -1), prep, batch=bsz)


# --------------------------- pure-JAX reference ----------------------------- #

def actor_reference(params, x):
    def conv(x, w, b, s):
        y = jax.lax.conv_general_dilated(
            x, w, window_strides=(s, s), padding="VALID",
            dimension_numbers=("NCHW", "OIHW", "NCHW"),
            precision=jax.lax.Precision.HIGHEST)
        return jax.nn.relu(y + b[None, :, None, None])

    x = conv(x, params["conv1_w"], params["conv1_b"], 4)
    x = conv(x, params["conv2_w"], params["conv2_b"], 2)
    x = conv(x, params["conv3_w"], params["conv3_b"], 1)
    x = x.reshape(x.shape[0], 7 * 7 * 64)
    x = jax.nn.relu(x @ params["lin_w"].T + params["lin_b"])
    return x @ params["pi_w"].T + params["pi_b"]


# ---------------------------------- main ------------------------------------ #

if __name__ == "__main__":
    key = jax.random.PRNGKey(0)
    pkey, xkey = jax.random.split(key)
    params = init_params(pkey)
    prep = prepare_params(params)        # one-time weight re-layout (not per-call)

    # Architecture fixes spatial size to 84x84 (the flatten assumes 7*7*64);
    # batch is kept small.
    x = jax.random.normal(xkey, (2, 4, 84, 84), dtype=jnp.float32)

    fwd = jax.jit(actor_forward)
    out = jax.block_until_ready(fwd(prep, x))
    assert out.shape == (2, 4), out.shape
    assert bool(jnp.all(jnp.isfinite(out)))

    ref = jax.block_until_ready(actor_reference(params, x))
    assert bool(jnp.allclose(out, ref, rtol=5e-2, atol=5e-2)), (
        "mismatch vs reference", out, ref)

    print("KERNEL_OK")
</pallas_src>

<mosaic_0001>
module attributes {stable_mosaic.version = 11 : i64} {
  func.func @_mm_bias_act_kernel(%arg0: memref<800x256xbf16, #tpu.memory_space<vmem>>, %arg1: memref<256x32xbf16, #tpu.memory_space<vmem>>, %arg2: memref<1x32xf32, #tpu.memory_space<vmem>>, %arg3: memref<800x32xbf16, #tpu.memory_space<vmem>>) attributes {dimension_semantics = [], scalar_prefetch = 0 : i64, scratch_operands = 0 : i64, tpu.core_type = #tpu.core_type<tc>} {
    %c0 = arith.constant 0 : index
    %c0_0 = arith.constant 0 : index
    %0 = vector.load %arg0[%c0, %c0_0] : memref<800x256xbf16, #tpu.memory_space<vmem>>, vector<800x256xbf16>
    %c0_1 = arith.constant 0 : index
    %c0_2 = arith.constant 0 : index
    %1 = vector.load %arg1[%c0_1, %c0_2] : memref<256x32xbf16, #tpu.memory_space<vmem>>, vector<256x32xbf16>
    %cst = arith.constant dense<0.000000e+00> : vector<800x32xf32>
    %2 = tpu.matmul %0, %1, %cst {dimension_numbers = #tpu.dot_dimension_numbers<[1], [0], [0], [1], [0, 0, 1, 1], [], []>} : vector<800x256xbf16>, vector<256x32xbf16>, vector<800x32xf32> -> vector<800x32xf32>
    %c0_3 = arith.constant 0 : index
    %c0_4 = arith.constant 0 : index
    %3 = vector.load %arg2[%c0_3, %c0_4] : memref<1x32xf32, #tpu.memory_space<vmem>>, vector<1x32xf32>
    %4 = vector.broadcast %3 : vector<1x32xf32> to vector<800x32xf32>
    %5 = arith.addf %2, %4 : vector<800x32xf32>
    %cst_5 = arith.constant 0.000000e+00 : f32
    %6 = vector.broadcast %cst_5 : f32 to vector<800x32xf32>
    %7 = arith.maximumf %5, %6 : vector<800x32xf32>
    %8 = arith.truncf %7 : vector<800x32xf32> to vector<800x32xbf16>
    %c0_6 = arith.constant 0 : index
    %c0_7 = arith.constant 0 : index
    %9 = vector.load %arg3[%c0_6, %c0_7] : memref<800x32xbf16, #tpu.memory_space<vmem>>, vector<800x32xbf16>
    tpu.vector_store %arg3[%c0_6, %c0_7], %8 {strides = array<i32>} : memref<800x32xbf16, #tpu.memory_space<vmem>>, vector<800x32xbf16>,
    return
  }
}

module attributes {stable_mosaic.version = 11 : i64} {
  func.func @_mm_bias_act_kernel(%arg0: memref<162x512xbf16, #tpu.memory_space<vmem>>, %arg1: memref<512x64xbf16, #tpu.memory_space<vmem>>, %arg2: memref<1x64xf32, #tpu.memory_space<vmem>>, %arg3: memref<162x64xbf16, #tpu.memory_space<vmem>>) attributes {dimension_semantics = [], scalar_prefetch = 0 : i64, scratch_operands = 0 : i64, tpu.core_type = #tpu.core_type<tc>} {
    %c0 = arith.constant 0 : index
    %c0_0 = arith.constant 0 : index
    %0 = vector.load %arg0[%c0, %c0_0] : memref<162x512xbf16, #tpu.memory_space<vmem>>, vector<162x512xbf16>
    %c0_1 = arith.constant 0 : index
    %c0_2 = arith.constant 0 : index
    %1 = vector.load %arg1[%c0_1, %c0_2] : memref<512x64xbf16, #tpu.memory_space<vmem>>, vector<512x64xbf16>
    %cst = arith.constant dense<0.000000e+00> : vector<162x64xf32>
    %2 = tpu.matmul %0, %1, %cst {dimension_numbers = #tpu.dot_dimension_numbers<[1], [0], [0], [1], [0, 0, 1, 1], [], []>} : vector<162x512xbf16>, vector<512x64xbf16>, vector<162x64xf32> -> vector<162x64xf32>
    %c0_3 = arith.constant 0 : index
    %c0_4 = arith.constant 0 : index
    %3 = vector.load %arg2[%c0_3, %c0_4] : memref<1x64xf32, #tpu.memory_space<vmem>>, vector<1x64xf32>
    %4 = vector.broadcast %3 : vector<1x64xf32> to vector<162x64xf32>
    %5 = arith.addf %2, %4 : vector<162x64xf32>
    %cst_5 = arith.constant 0.000000e+00 : f32
    %6 = vector.broadcast %cst_5 : f32 to vector<162x64xf32>
    %7 = arith.maximumf %5, %6 : vector<162x64xf32>
    %8 = arith.truncf %7 : vector<162x64xf32> to vector<162x64xbf16>
    %c0_6 = arith.constant 0 : index
    %c0_7 = arith.constant 0 : index
    %9 = vector.load %arg3[%c0_6, %c0_7] : memref<162x64xbf16, #tpu.memory_space<vmem>>, vector<162x64xbf16>
    tpu.vector_store %arg3[%c0_6, %c0_7], %8 {strides = array<i32>} : memref<162x64xbf16, #tpu.memory_space<vmem>>, vector<162x64xbf16>,
    return
  }
}

module attributes {stable_mosaic.version = 11 : i64} {
  func.func @_tail_kernel(%arg0: memref<98x576xbf16, #tpu.memory_space<vmem>>, %arg1: memref<576x64xbf16, #tpu.memory_space<vmem>>, %arg2: memref<1x64xf32, #tpu.memory_space<vmem>>, %arg3: memref<49x64x512xbf16, #tpu.memory_space<vmem>>, %arg4: memref<1x512xf32, #tpu.memory_space<vmem>>, %arg5: memref<512x4xbf16, #tpu.memory_space<vmem>>, %arg6: memref<1x4xf32, #tpu.memory_space<vmem>>, %arg7: memref<2x4xf32, #tpu.memory_space<vmem>>) attributes {dimension_semantics = [], scalar_prefetch = 0 : i64, scratch_operands = 0 : i64, tpu.core_type = #tpu.core_type<tc>} {
    %c0 = arith.constant 0 : index
    %c0_0 = arith.constant 0 : index
    %0 = vector.load %arg0[%c0, %c0_0] : memref<98x576xbf16, #tpu.memory_space<vmem>>, vector<98x576xbf16>
    %c0_1 = arith.constant 0 : index
    %c0_2 = arith.constant 0 : index
    %1 = vector.load %arg1[%c0_1, %c0_2] : memref<576x64xbf16, #tpu.memory_space<vmem>>, vector<576x64xbf16>
    %cst = arith.constant dense<0.000000e+00> : vector<98x64xf32>
    %2 = tpu.matmul %0, %1, %cst {dimension_numbers = #tpu.dot_dimension_numbers<[1], [0], [0], [1], [0, 0, 1, 1], [], []>} : vector<98x576xbf16>, vector<576x64xbf16>, vector<98x64xf32> -> vector<98x64xf32>
    %c0_3 = arith.constant 0 : index
    %c0_4 = arith.constant 0 : index
    %3 = vector.load %arg2[%c0_3, %c0_4] : memref<1x64xf32, #tpu.memory_space<vmem>>, vector<1x64xf32>
    %4 = vector.broadcast %3 : vector<1x64xf32> to vector<98x64xf32>
    %5 = arith.addf %2, %4 : vector<98x64xf32>
    %cst_5 = arith.constant 0.000000e+00 : f32
    %6 = vector.broadcast %cst_5 : f32 to vector<98x64xf32>
    %7 = arith.maximumf %5, %6 : vector<98x64xf32>
    %8 = arith.truncf %7 : vector<98x64xf32> to vector<98x64xbf16>
    %cst_6 = arith.constant 0.000000e+00 : f32
    %9 = vector.broadcast %cst_6 : f32 to vector<2x512xf32>
    %10 = vector.extract_strided_slice %8 {offsets = [0, 0], sizes = [2, 64], strides = [1, 1]} : vector<98x64xbf16> to vector<2x64xbf16>
    %c0_7 = arith.constant 0 : index
    %c0_8 = arith.constant 0 : index
    %c0_9 = arith.constant 0 : index
    %11 = vector.load %arg3[%c0_7, %c0_8, %c0_9] : memref<49x64x512xbf16, #tpu.memory_space<vmem>>, vector<1x64x512xbf16>
    %12 = vector.shape_cast %11 : vector<1x64x512xbf16> to vector<64x512xbf16>
    %cst_10 = arith.constant dense<0.000000e+00> : vector<2x512xf32>
    %13 = tpu.matmul %10, %12, %cst_10 {dimension_numbers = #tpu.dot_dimension_numbers<[1], [0], [0], [1], [0, 0, 1, 1], [], []>} : vector<2x64xbf16>, vector<64x512xbf16>, vector<2x512xf32> -> vector<2x512xf32>
    %14 = arith.addf %9, %13 : vector<2x512xf32>
    %15 = vector.extract_strided_slice %8 {offsets = [2, 0], sizes = [2, 64], strides = [1, 1]} : vector<98x64xbf16> to vector<2x64xbf16>
    %c1 = arith.constant 1 : index
    %c0_11 = arith.constant 0 : index
    %c0_12 = arith.constant 0 : index
    %16 = vector.load %arg3[%c1, %c0_11, %c0_12] : memref<49x64x512xbf16, #tpu.memory_space<vmem>>, vector<1x64x512xbf16>
    %17 = vector.shape_cast %16 : vector<1x64x512xbf16> to vector<64x512xbf16>
    %cst_13 = arith.constant dense<0.000000e+00> : vector<2x512xf32>
    %18 = tpu.matmul %15, %17, %cst_13 {dimension_numbers = #tpu.dot_dimension_numbers<[1], [0], [0], [1], [0, 0, 1, 1], [], []>} : vector<2x64xbf16>, vector<64x512xbf16>, vector<2x512xf32> -> vector<2x512xf32>
    %19 = arith.addf %14, %18 : vector<2x512xf32>
    %20 = vector.extract_strided_slice %8 {offsets = [4, 0], sizes = [2, 64], strides = [1, 1]} : vector<98x64xbf16> to vector<2x64xbf16>
    %c2 = arith.constant 2 : index
    %c0_14 = arith.constant 0 : index
    %c0_15 = arith.constant 0 : index
    %21 = vector.load %arg3[%c2, %c0_14, %c0_15] : memref<49x64x512xbf16, #tpu.memory_space<vmem>>, vector<1x64x512xbf16>
    %22 = vector.shape_cast %21 : vector<1x64x512xbf16> to vector<64x512xbf16>
    %cst_16 = arith.constant dense<0.000000e+00> : vector<2x512xf32>
    %23 = tpu.matmul %20, %22, %cst_16 {dimension_numbers = #tpu.dot_dimension_numbers<[1], [0], [0], [1], [0, 0, 1, 1], [], []>} : vector<2x64xbf16>, vector<64x512xbf16>, vector<2x512xf32> -> vector<2x512xf32>
    %24 = arith.addf %19, %23 : vector<2x512xf32>
    %25 = vector.extract_strided_slice %8 {offsets = [6, 0], sizes = [2, 64], strides = [1, 1]} : vector<98x64xbf16> to vector<2x64xbf16>
    %c3 = arith.constant 3 : index
    %c0_17 = arith.constant 0 : index
    %c0_18 = arith.constant 0 : index
    %26 = vector.load %arg3[%c3, %c0_17, %c0_18] : memref<49x64x512xbf16, #tpu.memory_space<vmem>>, vector<1x64x512xbf16>
    %27 = vector.shape_cast %26 : vector<1x64x512xbf16> to vector<64x512xbf16>
    %cst_19 = arith.constant dense<0.000000e+00> : vector<2x512xf32>
    %28 = tpu.matmul %25, %27, %cst_19 {dimension_numbers = #tpu.dot_dimension_numbers<[1], [0], [0], [1], [0, 0, 1, 1], [], []>} : vector<2x64xbf16>, vector<64x512xbf16>, vector<2x512xf32> -> vector<2x512xf32>
    %29 = arith.addf %24, %28 : vector<2x512xf32>
    %30 = vector.extract_strided_slice %8 {offsets = [8, 0], sizes = [2, 64], strides = [1, 1]} : vector<98x64xbf16> to vector<2x64xbf16>
    %c4 = arith.constant 4 : index
    %c0_20 = arith.constant 0 : index
    %c0_21 = arith.constant 0 : index
    %31 = vector.load %arg3[%c4, %c0_20, %c0_21] : memref<49x64x512xbf16, #tpu.memory_space<vmem>>, vector<1x64x512xbf16>
    %32 = vector.shape_cast %31 : vector<1x64x512xbf16> to vector<64x512xbf16>
    %cst_22 = arith.constant dense<0.000000e+00> : vector<2x512xf32>
    %33 = tpu.matmul %30, %32, %cst_22 {dimension_numbers = #tpu.dot_dimension_numbers<[1], [0], [0], [1], [0, 0, 1, 1], [], []>} : vector<2x64xbf16>, vector<64x512xbf16>, vector<2x512xf32> -> vector<2x512xf32>
    %34 = arith.addf %29, %33 : vector<2x512xf32>
    %35 = vector.extract_strided_slice %8 {offsets = [10, 0], sizes = [2, 64], strides = [1, 1]} : vector<98x64xbf16> to vector<2x64xbf16>
    %c5 = arith.constant 5 : index
    %c0_23 = arith.constant 0 : index
    %c0_24 = arith.constant 0 : index
    %36 = vector.load %arg3[%c5, %c0_23, %c0_24] : memref<49x64x512xbf16, #tpu.memory_space<vmem>>, vector<1x64x512xbf16>
    %37 = vector.shape_cast %36 : vector<1x64x512xbf16> to vector<64x512xbf16>
    %cst_25 = arith.constant dense<0.000000e+00> : vector<2x512xf32>
    %38 = tpu.matmul %35, %37, %cst_25 {dimension_numbers = #tpu.dot_dimension_numbers<[1], [0], [0], [1], [0, 0, 1, 1], [], []>} : vector<2x64xbf16>, vector<64x512xbf16>, vector<2x512xf32> -> vector<2x512xf32>
    %39 = arith.addf %34, %38 : vector<2x512xf32>
    %40 = vector.extract_strided_slice %8 {offsets = [12, 0], sizes = [2, 64], strides = [1, 1]} : vector<98x64xbf16> to vector<2x64xbf16>
    %c6 = arith.constant 6 : index
    %c0_26 = arith.constant 0 : index
    %c0_27 = arith.constant 0 : index
    %41 = vector.load %arg3[%c6, %c0_26, %c0_27] : memref<49x64x512xbf16, #tpu.memory_space<vmem>>, vector<1x64x512xbf16>
    %42 = vector.shape_cast %41 : vector<1x64x512xbf16> to vector<64x512xbf16>
    %cst_28 = arith.constant dense<0.000000e+00> : vector<2x512xf32>
    %43 = tpu.matmul %40, %42, %cst_28 {dimension_numbers = #tpu.dot_dimension_numbers<[1], [0], [0], [1], [0, 0, 1, 1], [], []>} : vector<2x64xbf16>, vector<64x512xbf16>, vector<2x512xf32> -> vector<2x512xf32>
    %44 = arith.addf %39, %43 : vector<2x512xf32>
    %45 = vector.extract_strided_slice %8 {offsets = [14, 0], sizes = [2, 64], strides = [1, 1]} : vector<98x64xbf16> to vector<2x64xbf16>
    %c7 = arith.constant 7 : index
    %c0_29 = arith.constant 0 : index
    %c0_30 = arith.constant 0 : index
    %46 = vector.load %arg3[%c7, %c0_29, %c0_30] : memref<49x64x512xbf16, #tpu.memory_space<vmem>>, vector<1x64x512xbf16>
    %47 = vector.shape_cast %46 : vector<1x64x512xbf16> to vector<64x512xbf16>
    %cst_31 = arith.constant dense<0.000000e+00> : vector<2x512xf32>
    %48 = tpu.matmul %45, %47, %cst_31 {dimension_numbers = #tpu.dot_dimension_numbers<[1], [0], [0], [1], [0, 0, 1, 1], [], []>} : vector<2x64xbf16>, vector<64x512xbf16>, vector<2x512xf32> -> vector<2x512xf32>
    %49 = arith.addf %44, %48 : vector<2x512xf32>
    %50 = vector.extract_strided_slice %8 {offsets = [16, 0], sizes = [2, 64], strides = [1, 1]} : vector<98x64xbf16> to vector<2x64xbf16>
    %c8 = arith.constant 8 : index
    %c0_32 = arith.constant 0 : index
    %c0_33 = arith.constant 0 : index
    %51 = vector.load %arg3[%c8, %c0_32, %c0_33] : memref<49x64x512xbf16, #tpu.memory_space<vmem>>, vector<1x64x512xbf16>
    %52 = vector.shape_cast %51 : vector<1x64x512xbf16> to vector<64x512xbf16>
    %cst_34 = arith.constant dense<0.000000e+00> : vector<2x512xf32>
    %53 = tpu.matmul %50, %52, %cst_34 {dimension_numbers = #tpu.dot_dimension_numbers<[1], [0], [0], [1], [0, 0, 1, 1], [], []>} : vector<2x64xbf16>, vector<64x512xbf16>, vector<2x512xf32> -> vector<2x512xf32>
    %54 = arith.addf %49, %53 : vector<2x512xf32>
    %55 = vector.extract_strided_slice %8 {offsets = [18, 0], sizes = [2, 64], strides = [1, 1]} : vector<98x64xbf16> to vector<2x64xbf16>
    %c9 = arith.constant 9 : index
    %c0_35 = arith.constant 0 : index
    %c0_36 = arith.constant 0 : index
    %56 = vector.load %arg3[%c9, %c0_35, %c0_36] : memref<49x64x512xbf16, #tpu.memory_space<vmem>>, vector<1x64x512xbf16>
    %57 = vector.shape_cast %56 : vector<1x64x512xbf16> to vector<64x512xbf16>
    %cst_37 = arith.constant dense<0.000000e+00> : vector<2x512xf32>
    %58 = tpu.matmul %55, %57, %cst_37 {dimension_numbers = #tpu.dot_dimension_numbers<[1], [0], [0], [1], [0, 0, 1, 1], [], []>} : vector<2x64xbf16>, vector<64x512xbf16>, vector<2x512xf32> -> vector<2x512xf32>
    %59 = arith.addf %54, %58 : vector<2x512xf32>
    %60 = vector.extract_strided_slice %8 {offsets = [20, 0], sizes = [2, 64], strides = [1, 1]} : vector<98x64xbf16> to vector<2x64xbf16>
    %c10 = arith.constant 10 : index
    %c0_38 = arith.constant 0 : index
    %c0_39 = arith.constant 0 : index
    %61 = vector.load %arg3[%c10, %c0_38, %c0_39] : memref<49x64x512xbf16, #tpu.memory_space<vmem>>, vector<1x64x512xbf16>
    %62 = vector.shape_cast %61 : vector<1x64x512xbf16> to vector<64x512xbf16>
    %cst_40 = arith.constant dense<0.000000e+00> : vector<2x512xf32>
    %63 = tpu.matmul %60, %62, %cst_40 {dimension_numbers = #tpu.dot_dimension_numbers<[1], [0], [0], [1], [0, 0, 1, 1], [], []>} : vector<2x64xbf16>, vector<64x512xbf16>, vector<2x512xf32> -> vector<2x512xf32>
    %64 = arith.addf %59, %63 : vector<2x512xf32>
    %65 = vector.extract_strided_slice %8 {offsets = [22, 0], sizes = [2, 64], strides = [1, 1]} : vector<98x64xbf16> to vector<2x64xbf16>
    %c11 = arith.constant 11 : index
    %c0_41 = arith.constant 0 : index
    %c0_42 = arith.constant 0 : index
    %66 = vector.load %arg3[%c11, %c0_41, %c0_42] : memref<49x64x512xbf16, #tpu.memory_space<vmem>>, vector<1x64x512xbf16>
    %67 = vector.shape_cast %66 : vector<1x64x512xbf16> to vector<64x512xbf16>
    %cst_43 = arith.constant dense<0.000000e+00> : vector<2x512xf32>
    %68 = tpu.matmul %65, %67, %cst_43 {dimension_numbers = #tpu.dot_dimension_numbers<[1], [0], [0], [1], [0, 0, 1, 1], [], []>} : vector<2x64xbf16>, vector<64x512xbf16>, vector<2x512xf32> -> vector<2x512xf32>
    %69 = arith.addf %64, %68 : vector<2x512xf32>
    %70 = vector.extract_strided_slice %8 {offsets = [24, 0], sizes = [2, 64], strides = [1, 1]} : vector<98x64xbf16> to vector<2x64xbf16>
    %c12 = arith.constant 12 : index
    %c0_44 = arith.constant 0 : index
    %c0_45 = arith.constant 0 : index
    %71 = vector.load %arg3[%c12, %c0_44, %c0_45] : memref<49x64x512xbf16, #tpu.memory_space<vmem>>, vector<1x64x512xbf16>
    %72 = vector.shape_cast %71 : vector<1x64x512xbf16> to vector<64x512xbf16>
    %cst_46 = arith.constant dense<0.000000e+00> : vector<2x512xf32>
    %73 = tpu.matmul %70, %72, %cst_46 {dimension_numbers = #tpu.dot_dimension_numbers<[1], [0], [0], [1], [0, 0, 1, 1], [], []>} : vector<2x64xbf16>, vector<64x512xbf16>, vector<2x512xf32> -> vector<2x512xf32>
    %74 = arith.addf %69, %73 : vector<2x512xf32>
    %75 = vector.extract_strided_slice %8 {offsets = [26, 0], sizes = [2, 64], strides = [1, 1]} : vector<98x64xbf16> to vector<2x64xbf16>
    %c13 = arith.constant 13 : index
    %c0_47 = arith.constant 0 : index
    %c0_48 = arith.constant 0 : index
    %76 = vector.load %arg3[%c13, %c0_47, %c0_48] : memref<49x64x512xbf16, #tpu.memory_space<vmem>>, vector<1x64x512xbf16>
    %77 = vector.shape_cast %76 : vector<1x64x512xbf16> to vector<64x512xbf16>
    %cst_49 = arith.constant dense<0.000000e+00> : vector<2x512xf32>
    %78 = tpu.matmul %75, %77, %cst_49 {dimension_numbers = #tpu.dot_dimension_numbers<[1], [0], [0], [1], [0, 0, 1, 1], [], []>} : vector<2x64xbf16>, vector<64x512xbf16>, vector<2x512xf32> -> vector<2x512xf32>
    %79 = arith.addf %74, %78 : vector<2x512xf32>
    %80 = vector.extract_strided_slice %8 {offsets = [28, 0], sizes = [2, 64], strides = [1, 1]} : vector<98x64xbf16> to vector<2x64xbf16>
    %c14 = arith.constant 14 : index
    %c0_50 = arith.constant 0 : index
    %c0_51 = arith.constant 0 : index
    %81 = vector.load %arg3[%c14, %c0_50, %c0_51] : memref<49x64x512xbf16, #tpu.memory_space<vmem>>, vector<1x64x512xbf16>
    %82 = vector.shape_cast %81 : vector<1x64x512xbf16> to vector<64x512xbf16>
    %cst_52 = arith.constant dense<0.000000e+00> : vector<2x512xf32>
    %83 = tpu.matmul %80, %82, %cst_52 {dimension_numbers = #tpu.dot_dimension_numbers<[1], [0], [0], [1], [0, 0, 1, 1], [], []>} : vector<2x64xbf16>, vector<64x512xbf16>, vector<2x512xf32> -> vector<2x512xf32>
    %84 = arith.addf %79, %83 : vector<2x512xf32>
    %85 = vector.extract_strided_slice %8 {offsets = [30, 0], sizes = [2, 64], strides = [1, 1]} : vector<98x64xbf16> to vector<2x64xbf16>
    %c15 = arith.constant 15 : index
    %c0_53 = arith.constant 0 : index
    %c0_54 = arith.constant 0 : index
    %86 = vector.load %arg3[%c15, %c0_53, %c0_54] : memref<49x64x512xbf16, #tpu.memory_space<vmem>>, vector<1x64x512xbf16>
    %87 = vector.shape_cast %86 : vector<1x64x512xbf16> to vector<64x512xbf16>
    %cst_55 = arith.constant dense<0.000000e+00> : vector<2x512xf32>
    %88 = tpu.matmul %85, %87, %cst_55 {dimension_numbers = #tpu.dot_dimension_numbers<[1], [0], [0], [1], [0, 0, 1, 1], [], []>} : vector<2x64xbf16>, vector<64x512xbf16>, vector<2x512xf32> -> vector<2x512xf32>
    %89 = arith.addf %84, %88 : vector<2x512xf32>
    %90 = vector.extract_strided_slice %8 {offsets = [32, 0], sizes = [2, 64], strides = [1, 1]} : vector<98x64xbf16> to vector<2x64xbf16>
    %c16 = arith.constant 16 : index
    %c0_56 = arith.constant 0 : index
    %c0_57 = arith.constant 0 : index
    %91 = vector.load %arg3[%c16, %c0_56, %c0_57] : memref<49x64x512xbf16, #tpu.memory_space<vmem>>, vector<1x64x512xbf16>
    %92 = vector.shape_cast %91 : vector<1x64x512xbf16> to vector<64x512xbf16>
    %cst_58 = arith.constant dense<0.000000e+00> : vector<2x512xf32>
    %93 = tpu.matmul %90, %92, %cst_58 {dimension_numbers = #tpu.dot_dimension_numbers<[1], [0], [0], [1], [0, 0, 1, 1], [], []>} : vector<2x64xbf16>, vector<64x512xbf16>, vector<2x512xf32> -> vector<2x512xf32>
    %94 = arith.addf %89, %93 : vector<2x512xf32>
    %95 = vector.extract_strided_slice %8 {offsets = [34, 0], sizes = [2, 64], strides = [1, 1]} : vector<98x64xbf16> to vector<2x64xbf16>
    %c17 = arith.constant 17 : index
    %c0_59 = arith.constant 0 : index
    %c0_60 = arith.constant 0 : index
    %96 = vector.load %arg3[%c17, %c0_59, %c0_60] : memref<49x64x512xbf16, #tpu.memory_space<vmem>>, vector<1x64x512xbf16>
    %97 = vector.shape_cast %96 : vector<1x64x512xbf16> to vector<64x512xbf16>
    %cst_61 = arith.constant dense<0.000000e+00> : vector<2x512xf32>
    %98 = tpu.matmul %95, %97, %cst_61 {dimension_numbers = #tpu.dot_dimension_numbers<[1], [0], [0], [1], [0, 0, 1, 1], [], []>} : vector<2x64xbf16>, vector<64x512xbf16>, vector<2x512xf32> -> vector<2x512xf32>
    %99 = arith.addf %94, %98 : vector<2x512xf32>
    %100 = vector.extract_strided_slice %8 {offsets = [36, 0], sizes = [2, 64], strides = [1, 1]} : vector<98x64xbf16> to vector<2x64xbf16>
    %c18 = arith.constant 18 : index
    %c0_62 = arith.constant 0 : index
    %c0_63 = arith.constant 0 : index
    %101 = vector.load %arg3[%c18, %c0_62, %c0_63] : memref<49x64x512xbf16, #tpu.memory_space<vmem>>, vector<1x64x512xbf16>
    %102 = vector.shape_cast %101 : vector<1x64x512xbf16> to vector<64x512xbf16>
    %cst_64 = arith.constant dense<0.000000e+00> : vector<2x512xf32>
    %103 = tpu.matmul %100, %102, %cst_64 {dimension_numbers = #tpu.dot_dimension_numbers<[1], [0], [0], [1], [0, 0, 1, 1], [], []>} : vector<2x64xbf16>, vector<64x512xbf16>, vector<2x512xf32> -> vector<2x512xf32>
    %104 = arith.addf %99, %103 : vector<2x512xf32>
    %105 = vector.extract_strided_slice %8 {offsets = [38, 0], sizes = [2, 64], strides = [1, 1]} : vector<98x64xbf16> to vector<2x64xbf16>
    %c19 = arith.constant 19 : index
    %c0_65 = arith.constant 0 : index
    %c0_66 = arith.constant 0 : index
    %106 = vector.load %arg3[%c19, %c0_65, %c0_66] : memref<49x64x512xbf16, #tpu.memory_space<vmem>>, vector<1x64x512xbf16>
    %107 = vector.shape_cast %106 : vector<1x64x512xbf16> to vector<64x512xbf16>
    %cst_67 = arith.constant dense<0.000000e+00> : vector<2x512xf32>
    %108 = tpu.matmul %105, %107, %cst_67 {dimension_numbers = #tpu.dot_dimension_numbers<[1], [0], [0], [1], [0, 0, 1, 1], [], []>} : vector<2x64xbf16>, vector<64x512xbf16>, vector<2x512xf32> -> vector<2x512xf32>
    %109 = arith.addf %104, %108 : vector<2x512xf32>
    %110 = vector.extract_strided_slice %8 {offsets = [40, 0], sizes = [2, 64], strides = [1, 1]} : vector<98x64xbf16> to vector<2x64xbf16>
    %c20 = arith.constant 20 : index
    %c0_68 = arith.constant 0 : index
    %c0_69 = arith.constant 0 : index
    %111 = vector.load %arg3[%c20, %c0_68, %c0_69] : memref<49x64x512xbf16, #tpu.memory_space<vmem>>, vector<1x64x512xbf16>
    %112 = vector.shape_cast %111 : vector<1x64x512xbf16> to vector<64x512xbf16>
    %cst_70 = arith.constant dense<0.000000e+00> : vector<2x512xf32>
    %113 = tpu.matmul %110, %112, %cst_70 {dimension_numbers = #tpu.dot_dimension_numbers<[1], [0], [0], [1], [0, 0, 1, 1], [], []>} : vector<2x64xbf16>, vector<64x512xbf16>, vector<2x512xf32> -> vector<2x512xf32>
    %114 = arith.addf %109, %113 : vector<2x512xf32>
    %115 = vector.extract_strided_slice %8 {offsets = [42, 0], sizes = [2, 64], strides = [1, 1]} : vector<98x64xbf16> to vector<2x64xbf16>
    %c21 = arith.constant 21 : index
    %c0_71 = arith.constant 0 : index
    %c0_72 = arith.constant 0 : index
    %116 = vector.load %arg3[%c21, %c0_71, %c0_72] : memref<49x64x512xbf16, #tpu.memory_space<vmem>>, vector<1x64x512xbf16>
    %117 = vector.shape_cast %116 : vector<1x64x512xbf16> to vector<64x512xbf16>
    %cst_73 = arith.constant dense<0.000000e+00> : vector<2x512xf32>
    %118 = tpu.matmul %115, %117, %cst_73 {dimension_numbers = #tpu.dot_dimension_numbers<[1], [0], [0], [1], [0, 0, 1, 1], [], []>} : vector<2x64xbf16>, vector<64x512xbf16>, vector<2x512xf32> -> vector<2x512xf32>
    %119 = arith.addf %114, %118 : vector<2x512xf32>
    %120 = vector.extract_strided_slice %8 {offsets = [44, 0], sizes = [2, 64], strides = [1, 1]} : vector<98x64xbf16> to vector<2x64xbf16>
    %c22 = arith.constant 22 : index
    %c0_74 = arith.constant 0 : index
    %c0_75 = arith.constant 0 : index
    %121 = vector.load %arg3[%c22, %c0_74, %c0_75] : memref<49x64x512xbf16, #tpu.memory_space<vmem>>, vector<1x64x512xbf16>
    %122 = vector.shape_cast %121 : vector<1x64x512xbf16> to vector<64x512xbf16>
    %cst_76 = arith.constant dense<0.000000e+00> : vector<2x512xf32>
    %123 = tpu.matmul %120, %122, %cst_76 {dimension_numbers = #tpu.dot_dimension_numbers<[1], [0], [0], [1], [0, 0, 1, 1], [], []>} : vector<2x64xbf16>, vector<64x512xbf16>, vector<2x512xf32> -> vector<2x512xf32>
    %124 = arith.addf %119, %123 : vector<2x512xf32>
    %125 = vector.extract_strided_slice %8 {offsets = [46, 0], sizes = [2, 64], strides = [1, 1]} : vector<98x64xbf16> to vector<2x64xbf16>
    %c23 = arith.constant 23 : index
    %c0_77 = arith.constant 0 : index
    %c0_78 = arith.constant 0 : index
    %126 = vector.load %arg3[%c23, %c0_77, %c0_78] : memref<49x64x512xbf16, #tpu.memory_space<vmem>>, vector<1x64x512xbf16>
    %127 = vector.shape_cast %126 : vector<1x64x512xbf16> to vector<64x512xbf16>
    %cst_79 = arith.constant dense<0.000000e+00> : vector<2x512xf32>
    %128 = tpu.matmul %125, %127, %cst_79 {dimension_numbers = #tpu.dot_dimension_numbers<[1], [0], [0], [1], [0, 0, 1, 1], [], []>} : vector<2x64xbf16>, vector<64x512xbf16>, vector<2x512xf32> -> vector<2x512xf32>
    %129 = arith.addf %124, %128 : vector<2x512xf32>
    %130 = vector.extract_strided_slice %8 {offsets = [48, 0], sizes = [2, 64], strides = [1, 1]} : vector<98x64xbf16> to vector<2x64xbf16>
    %c24 = arith.constant 24 : index
    %c0_80 = arith.constant 0 : index
    %c0_81 = arith.constant 0 : index
    %131 = vector.load %arg3[%c24, %c0_80, %c0_81] : memref<49x64x512xbf16, #tpu.memory_space<vmem>>, vector<1x64x512xbf16>
    %132 = vector.shape_cast %131 : vector<1x64x512xbf16> to vector<64x512xbf16>
    %cst_82 = arith.constant dense<0.000000e+00> : vector<2x512xf32>
    %133 = tpu.matmul %130, %132, %cst_82 {dimension_numbers = #tpu.dot_dimension_numbers<[1], [0], [0], [1], [0, 0, 1, 1], [], []>} : vector<2x64xbf16>, vector<64x512xbf16>, vector<2x512xf32> -> vector<2x512xf32>
    %134 = arith.addf %129, %133 : vector<2x512xf32>
    %135 = vector.extract_strided_slice %8 {offsets = [50, 0], sizes = [2, 64], strides = [1, 1]} : vector<98x64xbf16> to vector<2x64xbf16>
    %c25 = arith.constant 25 : index
    %c0_83 = arith.constant 0 : index
    %c0_84 = arith.constant 0 : index
    %136 = vector.load %arg3[%c25, %c0_83, %c0_84] : memref<49x64x512xbf16, #tpu.memory_space<vmem>>, vector<1x64x512xbf16>
    %137 = vector.shape_cast %136 : vector<1x64x512xbf16> to vector<64x512xbf16>
    %cst_85 = arith.constant dense<0.000000e+00> : vector<2x512xf32>
    %138 = tpu.matmul %135, %137, %cst_85 {dimension_numbers = #tpu.dot_dimension_numbers<[1], [0], [0], [1], [0, 0, 1, 1], [], []>} : vector<2x64xbf16>, vector<64x512xbf16>, vector<2x512xf32> -> vector<2x512xf32>
    %139 = arith.addf %134, %138 : vector<2x512xf32>
    %140 = vector.extract_strided_slice %8 {offsets = [52, 0], sizes = [2, 64], strides = [1, 1]} : vector<98x64xbf16> to vector<2x64xbf16>
    %c26 = arith.constant 26 : index
    %c0_86 = arith.constant 0 : index
    %c0_87 = arith.constant 0 : index
    %141 = vector.load %arg3[%c26, %c0_86, %c0_87] : memref<49x64x512xbf16, #tpu.memory_space<vmem>>, vector<1x64x512xbf16>
    %142 = vector.shape_cast %141 : vector<1x64x512xbf16> to vector<64x512xbf16>
    %cst_88 = arith.constant dense<0.000000e+00> : vector<2x512xf32>
    %143 = tpu.matmul %140, %142, %cst_88 {dimension_numbers = #tpu.dot_dimension_numbers<[1], [0], [0], [1], [0, 0, 1, 1], [], []>} : vector<2x64xbf16>, vector<64x512xbf16>, vector<2x512xf32> -> vector<2x512xf32>
    %144 = arith.addf %139, %143 : vector<2x512xf32>
    %145 = vector.extract_strided_slice %8 {offsets = [54, 0], sizes = [2, 64], strides = [1, 1]} : vector<98x64xbf16> to vector<2x64xbf16>
    %c27 = arith.constant 27 : index
    %c0_89 = arith.constant 0 : index
    %c0_90 = arith.constant 0 : index
    %146 = vector.load %arg3[%c27, %c0_89, %c0_90] : memref<49x64x512xbf16, #tpu.memory_space<vmem>>, vector<1x64x512xbf16>
    %147 = vector.shape_cast %146 : vector<1x64x512xbf16> to vector<64x512xbf16>
    %cst_91 = arith.constant dense<0.000000e+00> : vector<2x512xf32>
    %148 = tpu.matmul %145, %147, %cst_91 {dimension_numbers = #tpu.dot_dimension_numbers<[1], [0], [0], [1], [0, 0, 1, 1], [], []>} : vector<2x64xbf16>, vector<64x512xbf16>, vector<2x512xf32> -> vector<2x512xf32>
    %149 = arith.addf %144, %148 : vector<2x512xf32>
    %150 = vector.extract_strided_slice %8 {offsets = [56, 0], sizes = [2, 64], strides = [1, 1]} : vector<98x64xbf16> to vector<2x64xbf16>
    %c28 = arith.constant 28 : index
    %c0_92 = arith.constant 0 : index
    %c0_93 = arith.constant 0 : index
    %151 = vector.load %arg3[%c28, %c0_92, %c0_93] : memref<49x64x512xbf16, #tpu.memory_space<vmem>>, vector<1x64x512xbf16>
    %152 = vector.shape_cast %151 : vector<1x64x512xbf16> to vector<64x512xbf16>
    %cst_94 = arith.constant dense<0.000000e+00> : vector<2x512xf32>
    %153 = tpu.matmul %150, %152, %cst_94 {dimension_numbers = #tpu.dot_dimension_numbers<[1], [0], [0], [1], [0, 0, 1, 1], [], []>} : vector<2x64xbf16>, vector<64x512xbf16>, vector<2x512xf32> -> vector<2x512xf32>
    %154 = arith.addf %149, %153 : vector<2x512xf32>
    %155 = vector.extract_strided_slice %8 {offsets = [58, 0], sizes = [2, 64], strides = [1, 1]} : vector<98x64xbf16> to vector<2x64xbf16>
    %c29 = arith.constant 29 : index
    %c0_95 = arith.constant 0 : index
    %c0_96 = arith.constant 0 : index
    %156 = vector.load %arg3[%c29, %c0_95, %c0_96] : memref<49x64x512xbf16, #tpu.memory_space<vmem>>, vector<1x64x512xbf16>
    %157 = vector.shape_cast %156 : vector<1x64x512xbf16> to vector<64x512xbf16>
    %cst_97 = arith.constant dense<0.000000e+00> : vector<2x512xf32>
    %158 = tpu.matmul %155, %157, %cst_97 {dimension_numbers = #tpu.dot_dimension_numbers<[1], [0], [0], [1], [0, 0, 1, 1], [], []>} : vector<2x64xbf16>, vector<64x512xbf16>, vector<2x512xf32> -> vector<2x512xf32>
    %159 = arith.addf %154, %158 : vector<2x512xf32>
    %160 = vector.extract_strided_slice %8 {offsets = [60, 0], sizes = [2, 64], strides = [1, 1]} : vector<98x64xbf16> to vector<2x64xbf16>
    %c30 = arith.constant 30 : index
    %c0_98 = arith.constant 0 : index
    %c0_99 = arith.constant 0 : index
    %161 = vector.load %arg3[%c30, %c0_98, %c0_99] : memref<49x64x512xbf16, #tpu.memory_space<vmem>>, vector<1x64x512xbf16>
    %162 = vector.shape_cast %161 : vector<1x64x512xbf16> to vector<64x512xbf16>
    %cst_100 = arith.constant dense<0.000000e+00> : vector<2x512xf32>
    %163 = tpu.matmul %160, %162, %cst_100 {dimension_numbers = #tpu.dot_dimension_numbers<[1], [0], [0], [1], [0, 0, 1, 1], [], []>} : vector<2x64xbf16>, vector<64x512xbf16>, vector<2x512xf32> -> vector<2x512xf32>
    %164 = arith.addf %159, %163 : vector<2x512xf32>
    %165 = vector.extract_strided_slice %8 {offsets = [62, 0], sizes = [2, 64], strides = [1, 1]} : vector<98x64xbf16> to vector<2x64xbf16>
    %c31 = arith.constant 31 : index
    %c0_101 = arith.constant 0 : index
    %c0_102 = arith.constant 0 : index
    %166 = vector.load %arg3[%c31, %c0_101, %c0_102] : memref<49x64x512xbf16, #tpu.memory_space<vmem>>, vector<1x64x512xbf16>
    %167 = vector.shape_cast %166 : vector<1x64x512xbf16> to vector<64x512xbf16>
    %cst_103 = arith.constant dense<0.000000e+00> : vector<2x512xf32>
    %168 = tpu.matmul %165, %167, %cst_103 {dimension_numbers = #tpu.dot_dimension_numbers<[1], [0], [0], [1], [0, 0, 1, 1], [], []>} : vector<2x64xbf16>, vector<64x512xbf16>, vector<2x512xf32> -> vector<2x512xf32>
    %169 = arith.addf %164, %168 : vector<2x512xf32>
    %170 = vector.extract_strided_slice %8 {offsets = [64, 0], sizes = [2, 64], strides = [1, 1]} : vector<98x64xbf16> to vector<2x64xbf16>
    %c32 = arith.constant 32 : index
    %c0_104 = arith.constant 0 : index
    %c0_105 = arith.constant 0 : index
    %171 = vector.load %arg3[%c32, %c0_104, %c0_105] : memref<49x64x512xbf16, #tpu.memory_space<vmem>>, vector<1x64x512xbf16>
    %172 = vector.shape_cast %171 : vector<1x64x512xbf16> to vector<64x512xbf16>
    %cst_106 = arith.constant dense<0.000000e+00> : vector<2x512xf32>
    %173 = tpu.matmul %170, %172, %cst_106 {dimension_numbers = #tpu.dot_dimension_numbers<[1], [0], [0], [1], [0, 0, 1, 1], [], []>} : vector<2x64xbf16>, vector<64x512xbf16>, vector<2x512xf32> -> vector<2x512xf32>
    %174 = arith.addf %169, %173 : vector<2x512xf32>
    %175 = vector.extract_strided_slice %8 {offsets = [66, 0], sizes = [2, 64], strides = [1, 1]} : vector<98x64xbf16> to vector<2x64xbf16>
    %c33 = arith.constant 33 : index
    %c0_107 = arith.constant 0 : index
    %c0_108 = arith.constant 0 : index
    %176 = vector.load %arg3[%c33, %c0_107, %c0_108] : memref<49x64x512xbf16, #tpu.memory_space<vmem>>, vector<1x64x512xbf16>
    %177 = vector.shape_cast %176 : vector<1x64x512xbf16> to vector<64x512xbf16>
    %cst_109 = arith.constant dense<0.000000e+00> : vector<2x512xf32>
    %178 = tpu.matmul %175, %177, %cst_109 {dimension_numbers = #tpu.dot_dimension_numbers<[1], [0], [0], [1], [0, 0, 1, 1], [], []>} : vector<2x64xbf16>, vector<64x512xbf16>, vector<2x512xf32> -> vector<2x512xf32>
    %179 = arith.addf %174, %178 : vector<2x512xf32>
    %180 = vector.extract_strided_slice %8 {offsets = [68, 0], sizes = [2, 64], strides = [1, 1]} : vector<98x64xbf16> to vector<2x64xbf16>
    %c34 = arith.constant 34 : index
    %c0_110 = arith.constant 0 : index
    %c0_111 = arith.constant 0 : index
    %181 = vector.load %arg3[%c34, %c0_110, %c0_111] : memref<49x64x512xbf16, #tpu.memory_space<vmem>>, vector<1x64x512xbf16>
    %182 = vector.shape_cast %181 : vector<1x64x512xbf16> to vector<64x512xbf16>
    %cst_112 = arith.constant dense<0.000000e+00> : vector<2x512xf32>
    %183 = tpu.matmul %180, %182, %cst_112 {dimension_numbers = #tpu.dot_dimension_numbers<[1], [0], [0], [1], [0, 0, 1, 1], [], []>} : vector<2x64xbf16>, vector<64x512xbf16>, vector<2x512xf32> -> vector<2x512xf32>
    %184 = arith.addf %179, %183 : vector<2x512xf32>
    %185 = vector.extract_strided_slice %8 {offsets = [70, 0], sizes = [2, 64], strides = [1, 1]} : vector<98x64xbf16> to vector<2x64xbf16>
    %c35 = arith.constant 35 : index
    %c0_113 = arith.constant 0 : index
    %c0_114 = arith.constant 0 : index
    %186 = vector.load %arg3[%c35, %c0_113, %c0_114] : memref<49x64x512xbf16, #tpu.memory_space<vmem>>, vector<1x64x512xbf16>
    %187 = vector.shape_cast %186 : vector<1x64x512xbf16> to vector<64x512xbf16>
    %cst_115 = arith.constant dense<0.000000e+00> : vector<2x512xf32>
    %188 = tpu.matmul %185, %187, %cst_115 {dimension_numbers = #tpu.dot_dimension_numbers<[1], [0], [0], [1], [0, 0, 1, 1], [], []>} : vector<2x64xbf16>, vector<64x512xbf16>, vector<2x512xf32> -> vector<2x512xf32>
    %189 = arith.addf %184, %188 : vector<2x512xf32>
    %190 = vector.extract_strided_slice %8 {offsets = [72, 0], sizes = [2, 64], strides = [1, 1]} : vector<98x64xbf16> to vector<2x64xbf16>
    %c36 = arith.constant 36 : index
    %c0_116 = arith.constant 0 : index
    %c0_117 = arith.constant 0 : index
    %191 = vector.load %arg3[%c36, %c0_116, %c0_117] : memref<49x64x512xbf16, #tpu.memory_space<vmem>>, vector<1x64x512xbf16>
    %192 = vector.shape_cast %191 : vector<1x64x512xbf16> to vector<64x512xbf16>
    %cst_118 = arith.constant dense<0.000000e+00> : vector<2x512xf32>
    %193 = tpu.matmul %190, %192, %cst_118 {dimension_numbers = #tpu.dot_dimension_numbers<[1], [0], [0], [1], [0, 0, 1, 1], [], []>} : vector<2x64xbf16>, vector<64x512xbf16>, vector<2x512xf32> -> vector<2x512xf32>
    %194 = arith.addf %189, %193 : vector<2x512xf32>
    %195 = vector.extract_strided_slice %8 {offsets = [74, 0], sizes = [2, 64], strides = [1, 1]} : vector<98x64xbf16> to vector<2x64xbf16>
    %c37 = arith.constant 37 : index
    %c0_119 = arith.constant 0 : index
    %c0_120 = arith.constant 0 : index
    %196 = vector.load %arg3[%c37, %c0_119, %c0_120] : memref<49x64x512xbf16, #tpu.memory_space<vmem>>, vector<1x64x512xbf16>
    %197 = vector.shape_cast %196 : vector<1x64x512xbf16> to vector<64x512xbf16>
    %cst_121 = arith.constant dense<0.000000e+00> : vector<2x512xf32>
    %198 = tpu.matmul %195, %197, %cst_121 {dimension_numbers = #tpu.dot_dimension_numbers<[1], [0], [0], [1], [0, 0, 1, 1], [], []>} : vector<2x64xbf16>, vector<64x512xbf16>, vector<2x512xf32> -> vector<2x512xf32>
    %199 = arith.addf %194, %198 : vector<2x512xf32>
    %200 = vector.extract_strided_slice %8 {offsets = [76, 0], sizes = [2, 64], strides = [1, 1]} : vector<98x64xbf16> to vector<2x64xbf16>
    %c38 = arith.constant 38 : index
    %c0_122 = arith.constant 0 : index
    %c0_123 = arith.constant 0 : index
    %201 = vector.load %arg3[%c38, %c0_122, %c0_123] : memref<49x64x512xbf16, #tpu.memory_space<vmem>>, vector<1x64x512xbf16>
    %202 = vector.shape_cast %201 : vector<1x64x512xbf16> to vector<64x512xbf16>
    %cst_124 = arith.constant dense<0.000000e+00> : vector<2x512xf32>
    %203 = tpu.matmul %200, %202, %cst_124 {dimension_numbers = #tpu.dot_dimension_numbers<[1], [0], [0], [1], [0, 0, 1, 1], [], []>} : vector<2x64xbf16>, vector<64x512xbf16>, vector<2x512xf32> -> vector<2x512xf32>
    %204 = arith.addf %199, %203 : vector<2x512xf32>
    %205 = vector.extract_strided_slice %8 {offsets = [78, 0], sizes = [2, 64], strides = [1, 1]} : vector<98x64xbf16> to vector<2x64xbf16>
    %c39 = arith.constant 39 : index
    %c0_125 = arith.constant 0 : index
    %c0_126 = arith.constant 0 : index
    %206 = vector.load %arg3[%c39, %c0_125, %c0_126] : memref<49x64x512xbf16, #tpu.memory_space<vmem>>, vector<1x64x512xbf16>
    %207 = vector.shape_cast %206 : vector<1x64x512xbf16> to vector<64x512xbf16>
    %cst_127 = arith.constant dense<0.000000e+00> : vector<2x512xf32>
    %208 = tpu.matmul %205, %207, %cst_127 {dimension_numbers = #tpu.dot_dimension_numbers<[1], [0], [0], [1], [0, 0, 1, 1], [], []>} : vector<2x64xbf16>, vector<64x512xbf16>, vector<2x512xf32> -> vector<2x512xf32>
    %209 = arith.addf %204, %208 : vector<2x512xf32>
    %210 = vector.extract_strided_slice %8 {offsets = [80, 0], sizes = [2, 64], strides = [1, 1]} : vector<98x64xbf16> to vector<2x64xbf16>
    %c40 = arith.constant 40 : index
    %c0_128 = arith.constant 0 : index
    %c0_129 = arith.constant 0 : index
    %211 = vector.load %arg3[%c40, %c0_128, %c0_129] : memref<49x64x512xbf16, #tpu.memory_space<vmem>>, vector<1x64x512xbf16>
    %212 = vector.shape_cast %211 : vector<1x64x512xbf16> to vector<64x512xbf16>
    %cst_130 = arith.constant dense<0.000000e+00> : vector<2x512xf32>
    %213 = tpu.matmul %210, %212, %cst_130 {dimension_numbers = #tpu.dot_dimension_numbers<[1], [0], [0], [1], [0, 0, 1, 1], [], []>} : vector<2x64xbf16>, vector<64x512xbf16>, vector<2x512xf32> -> vector<2x512xf32>
    %214 = arith.addf %209, %213 : vector<2x512xf32>
    %215 = vector.extract_strided_slice %8 {offsets = [82, 0], sizes = [2, 64], strides = [1, 1]} : vector<98x64xbf16> to vector<2x64xbf16>
    %c41 = arith.constant 41 : index
    %c0_131 = arith.constant 0 : index
    %c0_132 = arith.constant 0 : index
    %216 = vector.load %arg3[%c41, %c0_131, %c0_132] : memref<49x64x512xbf16, #tpu.memory_space<vmem>>, vector<1x64x512xbf16>
    %217 = vector.shape_cast %216 : vector<1x64x512xbf16> to vector<64x512xbf16>
    %cst_133 = arith.constant dense<0.000000e+00> : vector<2x512xf32>
    %218 = tpu.matmul %215, %217, %cst_133 {dimension_numbers = #tpu.dot_dimension_numbers<[1], [0], [0], [1], [0, 0, 1, 1], [], []>} : vector<2x64xbf16>, vector<64x512xbf16>, vector<2x512xf32> -> vector<2x512xf32>
    %219 = arith.addf %214, %218 : vector<2x512xf32>
    %220 = vector.extract_strided_slice %8 {offsets = [84, 0], sizes = [2, 64], strides = [1, 1]} : vector<98x64xbf16> to vector<2x64xbf16>
    %c42 = arith.constant 42 : index
    %c0_134 = arith.constant 0 : index
    %c0_135 = arith.constant 0 : index
    %221 = vector.load %arg3[%c42, %c0_134, %c0_135] : memref<49x64x512xbf16, #tpu.memory_space<vmem>>, vector<1x64x512xbf16>
    %222 = vector.shape_cast %221 : vector<1x64x512xbf16> to vector<64x512xbf16>
    %cst_136 = arith.constant dense<0.000000e+00> : vector<2x512xf32>
    %223 = tpu.matmul %220, %222, %cst_136 {dimension_numbers = #tpu.dot_dimension_numbers<[1], [0], [0], [1], [0, 0, 1, 1], [], []>} : vector<2x64xbf16>, vector<64x512xbf16>, vector<2x512xf32> -> vector<2x512xf32>
    %224 = arith.addf %219, %223 : vector<2x512xf32>
    %225 = vector.extract_strided_slice %8 {offsets = [86, 0], sizes = [2, 64], strides = [1, 1]} : vector<98x64xbf16> to vector<2x64xbf16>
    %c43 = arith.constant 43 : index
    %c0_137 = arith.constant 0 : index
    %c0_138 = arith.constant 0 : index
    %226 = vector.load %arg3[%c43, %c0_137, %c0_138] : memref<49x64x512xbf16, #tpu.memory_space<vmem>>, vector<1x64x512xbf16>
    %227 = vector.shape_cast %226 : vector<1x64x512xbf16> to vector<64x512xbf16>
    %cst_139 = arith.constant dense<0.000000e+00> : vector<2x512xf32>
    %228 = tpu.matmul %225, %227, %cst_139 {dimension_numbers = #tpu.dot_dimension_numbers<[1], [0], [0], [1], [0, 0, 1, 1], [], []>} : vector<2x64xbf16>, vector<64x512xbf16>, vector<2x512xf32> -> vector<2x512xf32>
    %229 = arith.addf %224, %228 : vector<2x512xf32>
    %230 = vector.extract_strided_slice %8 {offsets = [88, 0], sizes = [2, 64], strides = [1, 1]} : vector<98x64xbf16> to vector<2x64xbf16>
    %c44 = arith.constant 44 : index
    %c0_140 = arith.constant 0 : index
    %c0_141 = arith.constant 0 : index
    %231 = vector.load %arg3[%c44, %c0_140, %c0_141] : memref<49x64x512xbf16, #tpu.memory_space<vmem>>, vector<1x64x512xbf16>
    %232 = vector.shape_cast %231 : vector<1x64x512xbf16> to vector<64x512xbf16>
    %cst_142 = arith.constant dense<0.000000e+00> : vector<2x512xf32>
    %233 = tpu.matmul %230, %232, %cst_142 {dimension_numbers = #tpu.dot_dimension_numbers<[1], [0], [0], [1], [0, 0, 1, 1], [], []>} : vector<2x64xbf16>, vector<64x512xbf16>, vector<2x512xf32> -> vector<2x512xf32>
    %234 = arith.addf %229, %233 : vector<2x512xf32>
    %235 = vector.extract_strided_slice %8 {offsets = [90, 0], sizes = [2, 64], strides = [1, 1]} : vector<98x64xbf16> to vector<2x64xbf16>
    %c45 = arith.constant 45 : index
    %c0_143 = arith.constant 0 : index
    %c0_144 = arith.constant 0 : index
    %236 = vector.load %arg3[%c45, %c0_143, %c0_144] : memref<49x64x512xbf16, #tpu.memory_space<vmem>>, vector<1x64x512xbf16>
    %237 = vector.shape_cast %236 : vector<1x64x512xbf16> to vector<64x512xbf16>
    %cst_145 = arith.constant dense<0.000000e+00> : vector<2x512xf32>
    %238 = tpu.matmul %235, %237, %cst_145 {dimension_numbers = #tpu.dot_dimension_numbers<[1], [0], [0], [1], [0, 0, 1, 1], [], []>} : vector<2x64xbf16>, vector<64x512xbf16>, vector<2x512xf32> -> vector<2x512xf32>
    %239 = arith.addf %234, %238 : vector<2x512xf32>
    %240 = vector.extract_strided_slice %8 {offsets = [92, 0], sizes = [2, 64], strides = [1, 1]} : vector<98x64xbf16> to vector<2x64xbf16>
    %c46 = arith.constant 46 : index
    %c0_146 = arith.constant 0 : index
    %c0_147 = arith.constant 0 : index
    %241 = vector.load %arg3[%c46, %c0_146, %c0_147] : memref<49x64x512xbf16, #tpu.memory_space<vmem>>, vector<1x64x512xbf16>
    %242 = vector.shape_cast %241 : vector<1x64x512xbf16> to vector<64x512xbf16>
    %cst_148 = arith.constant dense<0.000000e+00> : vector<2x512xf32>
    %243 = tpu.matmul %240, %242, %cst_148 {dimension_numbers = #tpu.dot_dimension_numbers<[1], [0], [0], [1], [0, 0, 1, 1], [], []>} : vector<2x64xbf16>, vector<64x512xbf16>, vector<2x512xf32> -> vector<2x512xf32>
    %244 = arith.addf %239, %243 : vector<2x512xf32>
    %245 = vector.extract_strided_slice %8 {offsets = [94, 0], sizes = [2, 64], strides = [1, 1]} : vector<98x64xbf16> to vector<2x64xbf16>
    %c47 = arith.constant 47 : index
    %c0_149 = arith.constant 0 : index
    %c0_150 = arith.constant 0 : index
    %246 = vector.load %arg3[%c47, %c0_149, %c0_150] : memref<49x64x512xbf16, #tpu.memory_space<vmem>>, vector<1x64x512xbf16>
    %247 = vector.shape_cast %246 : vector<1x64x512xbf16> to vector<64x512xbf16>
    %cst_151 = arith.constant dense<0.000000e+00> : vector<2x512xf32>
    %248 = tpu.matmul %245, %247, %cst_151 {dimension_numbers = #tpu.dot_dimension_numbers<[1], [0], [0], [1], [0, 0, 1, 1], [], []>} : vector<2x64xbf16>, vector<64x512xbf16>, vector<2x512xf32> -> vector<2x512xf32>
    %249 = arith.addf %244, %248 : vector<2x512xf32>
    %250 = vector.extract_strided_slice %8 {offsets = [96, 0], sizes = [2, 64], strides = [1, 1]} : vector<98x64xbf16> to vector<2x64xbf16>
    %c48 = arith.constant 48 : index
    %c0_152 = arith.constant 0 : index
    %c0_153 = arith.constant 0 : index
    %251 = vector.load %arg3[%c48, %c0_152, %c0_153] : memref<49x64x512xbf16, #tpu.memory_space<vmem>>, vector<1x64x512xbf16>
    %252 = vector.shape_cast %251 : vector<1x64x512xbf16> to vector<64x512xbf16>
    %cst_154 = arith.constant dense<0.000000e+00> : vector<2x512xf32>
    %253 = tpu.matmul %250, %252, %cst_154 {dimension_numbers = #tpu.dot_dimension_numbers<[1], [0], [0], [1], [0, 0, 1, 1], [], []>} : vector<2x64xbf16>, vector<64x512xbf16>, vector<2x512xf32> -> vector<2x512xf32>
    %254 = arith.addf %249, %253 : vector<2x512xf32>
    %c0_155 = arith.constant 0 : index
    %c0_156 = arith.constant 0 : index
    %255 = vector.load %arg4[%c0_155, %c0_156] : memref<1x512xf32, #tpu.memory_space<vmem>>, vector<1x512xf32>
    %256 = vector.broadcast %255 : vector<1x512xf32> to vector<2x512xf32>
    %257 = arith.addf %254, %256 : vector<2x512xf32>
    %cst_157 = arith.constant 0.000000e+00 : f32
    %258 = vector.broadcast %cst_157 : f32 to vector<2x512xf32>
    %259 = arith.maximumf %257, %258 : vector<2x512xf32>
    %260 = arith.truncf %259 : vector<2x512xf32> to vector<2x512xbf16>
    %c0_158 = arith.constant 0 : index
    %c0_159 = arith.constant 0 : index
    %261 = vector.load %arg5[%c0_158, %c0_159] : memref<512x4xbf16, #tpu.memory_space<vmem>>, vector<512x4xbf16>
    %cst_160 = arith.constant dense<0.000000e+00> : vector<2x4xf32>
    %262 = tpu.matmul %260, %261, %cst_160 {dimension_numbers = #tpu.dot_dimension_numbers<[1], [0], [0], [1], [0, 0, 1, 1], [], []>} : vector<2x512xbf16>, vector<512x4xbf16>, vector<2x4xf32> -> vector<2x4xf32>
    %c0_161 = arith.constant 0 : index
    %c0_162 = arith.constant 0 : index
    %263 = vector.load %arg6[%c0_161, %c0_162] : memref<1x4xf32, #tpu.memory_space<vmem>>, vector<1x4xf32>
    %264 = vector.broadcast %263 : vector<1x4xf32> to vector<2x4xf32>
    %265 = arith.addf %262, %264 : vector<2x4xf32>
    %c0_163 = arith.constant 0 : index
    %c0_164 = arith.constant 0 : index
    %266 = vector.load %arg7[%c0_163, %c0_164] : memref<2x4xf32, #tpu.memory_space<vmem>>, vector<2x4xf32>
    tpu.vector_store %arg7[%c0_163, %c0_164], %265 {strides = array<i32>} : memref<2x4xf32, #tpu.memory_space<vmem>>, vector<2x4xf32>,
    return
  }
}

</mosaic_0001>

<bundles_post_ra>
// kernel: actor_forward.3
= control target key start
LH: loop header
LB: loop body
LE: loop exit
PB: predicated region body
PF: predicated region fallthrough
CT: control target
= control target key end

     0   :  { %v2303_v0 = vmov 0   ;;  %vm1683_vm0 = vcmask 257024   ;;  %s3220_s1 = inlined_call_operand.vmem [shape: bf16[256,32], index: 1, kind: input, shape index: {}]   ;;  %s3221_s0 = inlined_call_operand.vmem [shape: bf16[800,256], index: 0, kind: input, shape index: {}]   ;;  %s3222_s2 = inlined_call_operand.vmem [shape: f32[1,32], index: 2, kind: input, shape index: {}]   ;;  %s3223_s3 = inlined_call_operand.vmem [shape: bf16[800,32], index: 3, kind: output, shape index: {}]  }
   0x1   :  { %750 = vmatprep.subr.bf16.mxu0 %v2303_v0  ;;  %2105 = vmatprep.subr.bf16.mxu1 %v2303_v0  ;;  %v2138_v1 = vld [vmem:[%s3220_s1 + $0x38] sm:$0xff]   ;;  %v2139_v2 = vld [vmem:[%s3220_s1 + $0x30] sm:$0xff]   ;;  %v2140_v3 = vld [vmem:[%s3220_s1 + $0x28] sm:$0xff]  }
   0x2   :  { %751 = vmatpush1.bf16.msra.mxu0 %v2138_v1  ;;  %2121 = vmatpush1.bf16.msra.mxu1 %v2138_v1  ;;  %v2141_v4 = vld [vmem:[%s3220_s1 + $0x20] sm:$0xff]   ;;  %v2142_v5 = vld [vmem:[%s3220_s1 + $0x18] sm:$0xff]   ;;  %v2143_v7 = vld [vmem:[%s3220_s1 + $0x10] sm:$0xff]  }
   0x3   :  { %752 = vmatprep.subr.bf16.mxu0 %v2303_v0  ;;  %2106 = vmatprep.subr.bf16.mxu1 %v2303_v0  ;;  %v2156_v6 = vld [vmem:[%s3221_s0 + $0x4] ss:$8 sps:$4 sm:$0xff]   ;;  %v2159_v8 = vld [vmem:[%s3221_s0 + $0x194] ss:$8 sps:$4 sm:$0xff]   ;;  %v2154_v19 = vld [vmem:[%s3221_s0] ss:$8 sps:$4 sm:$0xff]  }
   0x4   :  { %782 = vmatprep.mubr.bf16.mxu0 %v2156_v6  ;;  %982 = vmatprep.mubr.bf16.mxu1 %v2159_v8  ;;  %v2144_v9 = vld [vmem:[%s3220_s1 + $0x8] sm:$0xff]   ;;  %v2145_v10 = vld [vmem:[%s3220_s1] sm:$0xff]   ;;  %v2146_v11 = vld [vmem:[%s3220_s1 + $0x78] sm:$0xff]  }
   0x5   :  { %v2147_v12 = vld [vmem:[%s3220_s1 + $0x70] sm:$0xff]   ;;  %v2148_v13 = vld [vmem:[%s3220_s1 + $0x68] sm:$0xff]   ;;  %v2149_v14 = vld [vmem:[%s3220_s1 + $0x60] sm:$0xff]  }
   0x6   :  { %753 = vmatpush1.bf16.msra.mxu0 %v2139_v2  ;;  %2122 = vmatpush1.bf16.msra.mxu1 %v2139_v2  ;;  %v2150_v15 = vld [vmem:[%s3220_s1 + $0x58] sm:$0xff]   ;;  %v2151_v16 = vld [vmem:[%s3220_s1 + $0x50] sm:$0xff]   ;;  %v2152_v17 = vld [vmem:[%s3220_s1 + $0x48] sm:$0xff]  }
   0x7   :  { %754 = vmatprep.subr.bf16.mxu0 %v2303_v0  ;;  %2107 = vmatprep.subr.bf16.mxu1 %v2303_v0  ;;  %v2153_v18 = vld [vmem:[%s3220_s1 + $0x40] sm:$0xff]   ;;  %v2157_v20 = vld [vmem:[%s3221_s0 + $0x190] ss:$8 sps:$4 sm:$0xff]   ;;  %v2160_v21 = vld [vmem:[%s3221_s0 + $0x14] ss:$8 sps:$4 sm:$0xff]  }
   0x8   :  { %v2162_v22 = vld [vmem:[%s3221_s0 + $0x1a4] ss:$8 sps:$4 sm:$0xff]   ;;  %v2164_v23 = vld [vmem:[%s3221_s0 + $0x10] ss:$8 sps:$4 sm:$0xff]   ;;  %v2165_v24 = vld [vmem:[%s3221_s0 + $0x1a0] ss:$8 sps:$4 sm:$0xff]  }
   0x9   :  { %v2166_v25 = vld [vmem:[%s3221_s0 + $0x24] ss:$8 sps:$4 sm:$0xff]   ;;  %v2168_v26 = vld [vmem:[%s3221_s0 + $0x1b4] ss:$8 sps:$4 sm:$0xff]   ;;  %v2170_v27 = vld [vmem:[%s3221_s0 + $0x20] ss:$8 sps:$4 sm:$0xff]  }
   0xa   :  { %755 = vmatpush1.bf16.msra.mxu0 %v2140_v3  ;;  %2123 = vmatpush1.bf16.msra.mxu1 %v2140_v3  ;;  %v2171_v28 = vld [vmem:[%s3221_s0 + $0x1b0] ss:$8 sps:$4 sm:$0xff]   ;;  %v2172_v29 = vld [vmem:[%s3221_s0 + $0x34] ss:$8 sps:$4 sm:$0xff]   ;;  %v2174_v30 = vld [vmem:[%s3221_s0 + $0x1c4] ss:$8 sps:$4 sm:$0xff]  }
   0xb   :  { %756 = vmatprep.subr.bf16.mxu0 %v2303_v0  ;;  %2108 = vmatprep.subr.bf16.mxu1 %v2303_v0  ;;  %v2176_v31 = vld [vmem:[%s3221_s0 + $0x30] ss:$8 sps:$4 sm:$0xff]   ;;  %v2177_v32 = vld [vmem:[%s3221_s0 + $0x1c0] ss:$8 sps:$4 sm:$0xff]   ;;  %v2178_v33 = vld [vmem:[%s3221_s0 + $0x44] ss:$8 sps:$4 sm:$0xff]  }
   0xc   :  { %v2180_v34 = vld [vmem:[%s3221_s0 + $0x1d4] ss:$8 sps:$4 sm:$0xff]   ;;  %v2182_v35 = vld [vmem:[%s3221_s0 + $0x40] ss:$8 sps:$4 sm:$0xff]   ;;  %v2183_v36 = vld [vmem:[%s3221_s0 + $0x1d0] ss:$8 sps:$4 sm:$0xff]  }
   0xd   :  { %v2184_v37 = vld [vmem:[%s3221_s0 + $0x54] ss:$8 sps:$4 sm:$0xff]   ;;  %v2186_v38 = vld [vmem:[%s3221_s0 + $0x1e4] ss:$8 sps:$4 sm:$0xff]   ;;  %v2188_v39 = vld [vmem:[%s3221_s0 + $0x50] ss:$8 sps:$4 sm:$0xff]  }
   0xe   :  { %757 = vmatpush1.bf16.msra.mxu0 %v2141_v4  ;;  %2124 = vmatpush1.bf16.msra.mxu1 %v2141_v4  ;;  %v2189_v40 = vld [vmem:[%s3221_s0 + $0x1e0] ss:$8 sps:$4 sm:$0xff]   ;;  %v2190_v41 = vld [vmem:[%s3221_s0 + $0x64] ss:$8 sps:$4 sm:$0xff]   ;;  %v2192_v42 = vld [vmem:[%s3221_s0 + $0x1f4] ss:$8 sps:$4 sm:$0xff]  }
   0xf   :  { %758 = vmatprep.subr.bf16.mxu0 %v2303_v0  ;;  %2109 = vmatprep.subr.bf16.mxu1 %v2303_v0  ;;  %v2194_v43 = vld [vmem:[%s3221_s0 + $0x60] ss:$8 sps:$4 sm:$0xff]   ;;  %v2195_v44 = vld [vmem:[%s3221_s0 + $0x1f0] ss:$8 sps:$4 sm:$0xff]   ;;  %v2196_v45 = vld [vmem:[%s3221_s0 + $0x74] ss:$8 sps:$4 sm:$0xff]  }
  0x10   :  { %v2198_v46 = vld [vmem:[%s3221_s0 + $0x204] ss:$8 sps:$4 sm:$0xff]   ;;  %v2200_v47 = vld [vmem:[%s3221_s0 + $0x70] ss:$8 sps:$4 sm:$0xff]   ;;  %v2201_v48 = vld [vmem:[%s3221_s0 + $0x200] ss:$8 sps:$4 sm:$0xff]  }
  0x11   :  { %v2202_v49 = vld [vmem:[%s3221_s0 + $0x84] ss:$8 sps:$4 sm:$0xff]   ;;  %v2204_v50 = vld [vmem:[%s3221_s0 + $0x214] ss:$8 sps:$4 sm:$0xff]   ;;  %v2206_v51 = vld [vmem:[%s3221_s0 + $0x80] ss:$8 sps:$4 sm:$0xff]  }
  0x12   :  { %759 = vmatpush1.bf16.msra.mxu0 %v2142_v5  ;;  %2125 = vmatpush1.bf16.msra.mxu1 %v2142_v5  ;;  %v2207_v52 = vld [vmem:[%s3221_s0 + $0x210] ss:$8 sps:$4 sm:$0xff]   ;;  %v2208_v53 = vld [vmem:[%s3221_s0 + $0x94] ss:$8 sps:$4 sm:$0xff]   ;;  %v2210_v54 = vld [vmem:[%s3221_s0 + $0x224] ss:$8 sps:$4 sm:$0xff]  }
  0x13   :  { %760 = vmatprep.subr.bf16.mxu0 %v2303_v0  ;;  %2110 = vmatprep.subr.bf16.mxu1 %v2303_v0  ;;  %v2212_v55 = vld [vmem:[%s3221_s0 + $0x90] ss:$8 sps:$4 sm:$0xff]   ;;  %v2213_v56 = vld [vmem:[%s3221_s0 + $0x220] ss:$8 sps:$4 sm:$0xff]   ;;  %v2214_v57 = vld [vmem:[%s3221_s0 + $0xa4] ss:$8 sps:$4 sm:$0xff]  }
  0x14   :  { %v2216_v58 = vld [vmem:[%s3221_s0 + $0x234] ss:$8 sps:$4 sm:$0xff]   ;;  %v2218_v59 = vld [vmem:[%s3221_s0 + $0xa0] ss:$8 sps:$4 sm:$0xff]   ;;  %v2219_v60 = vld [vmem:[%s3221_s0 + $0x230] ss:$8 sps:$4 sm:$0xff]  }
  0x15   :  { %v2220_v61 = vld [vmem:[%s3221_s0 + $0xb4] ss:$8 sps:$4 sm:$0xff]   ;;  %v2222_v62 = vld [vmem:[%s3221_s0 + $0x244] ss:$8 sps:$4 sm:$0xff]   ;;  %v2224_v63 = vld [vmem:[%s3221_s0 + $0xb0] ss:$8 sps:$4 sm:$0xff]  }
  0x16   :  { %761 = vmatpush1.bf16.msra.mxu0 %v2143_v7  ;;  %2126 = vmatpush1.bf16.msra.mxu1 %v2143_v7  ;;  %v2226_v1 = vld [vmem:[%s3221_s0 + $0xc4] ss:$8 sps:$4 sm:$0xff]   ;;  %v2228_v2 = vld [vmem:[%s3221_s0 + $0x254] ss:$8 sps:$4 sm:$0xff]   ;;  %v2230_v3 = vld [vmem:[%s3221_s0 + $0xc0] ss:$8 sps:$4 sm:$0xff]  }
  0x17   :  { %762 = vmatprep.subr.bf16.mxu0 %v2303_v0  ;;  %2111 = vmatprep.subr.bf16.mxu1 %v2303_v0  ;;  %v2231_v4 = vld [vmem:[%s3221_s0 + $0x250] ss:$8 sps:$4 sm:$0xff]   ;;  %v2232_v5 = vld [vmem:[%s3221_s0 + $0xd4] ss:$8 sps:$4 sm:$0xff]   ;;  %v2234_v6 = vld [vmem:[%s3221_s0 + $0x264] ss:$8 sps:$4 sm:$0xff]  }
  0x18   :  { %v2236_v7 = vld [vmem:[%s3221_s0 + $0xd0] ss:$8 sps:$4 sm:$0xff]   ;;  %v2237_v8 = vld [vmem:[%s3221_s0 + $0x260] ss:$8 sps:$4 sm:$0xff]  }
  0x1a   :  { %763 = vmatpush1.bf16.msra.mxu0 %v2144_v9  ;;  %2127 = vmatpush1.bf16.msra.mxu1 %v2144_v9  ;;  %v2238_v9 = vld [vmem:[%s3221_s0 + $0xe4] ss:$8 sps:$4 sm:$0xff]  }
  0x1b   :  { %764 = vmatprep.subr.bf16.mxu0 %v2303_v0  ;;  %2112 = vmatprep.subr.bf16.mxu1 %v2303_v0 }
  0x1e   :  { %765 = vmatpush1.bf16.msra.mxu0 %v2145_v10  ;;  %2128 = vmatpush1.bf16.msra.mxu1 %v2145_v10  ;;  %v2240_v10 = vld [vmem:[%s3221_s0 + $0x274] ss:$8 sps:$4 sm:$0xff]  }
  0x1f   :  { %766 = vmatprep.subr.bf16.mxu0 %v2303_v0  ;;  %2113 = vmatprep.subr.bf16.mxu1 %v2303_v0 }
  0x22   :  { %767 = vmatpush2.bf16.msra.mxu0 %v2146_v11  ;;  %2129 = vmatpush2.bf16.msra.mxu1 %v2146_v11  ;;  %v2242_v11 = vld [vmem:[%s3221_s0 + $0xe0] ss:$8 sps:$4 sm:$0xff]  }
  0x23   :  { %768 = vmatprep.subr.bf16.mxu0 %v2303_v0  ;;  %2114 = vmatprep.subr.bf16.mxu1 %v2303_v0 }
  0x26   :  { %769 = vmatpush2.bf16.msra.mxu0 %v2147_v12  ;;  %2130 = vmatpush2.bf16.msra.mxu1 %v2147_v12  ;;  %v2243_v12 = vld [vmem:[%s3221_s0 + $0x270] ss:$8 sps:$4 sm:$0xff]  }
  0x27   :  { %770 = vmatprep.subr.bf16.mxu0 %v2303_v0  ;;  %2115 = vmatprep.subr.bf16.mxu1 %v2303_v0 }
  0x2a   :  { %771 = vmatpush2.bf16.msra.mxu0 %v2148_v13  ;;  %2131 = vmatpush2.bf16.msra.mxu1 %v2148_v13  ;;  %v2244_v13 = vld [vmem:[%s3221_s0 + $0xf4] ss:$8 sps:$4 sm:$0xff]  }
  0x2b   :  { %772 = vmatprep.subr.bf16.mxu0 %v2303_v0  ;;  %2116 = vmatprep.subr.bf16.mxu1 %v2303_v0 }
  0x2e   :  { %773 = vmatpush2.bf16.msra.mxu0 %v2149_v14  ;;  %2132 = vmatpush2.bf16.msra.mxu1 %v2149_v14  ;;  %v2246_v14 = vld [vmem:[%s3221_s0 + $0x284] ss:$8 sps:$4 sm:$0xff]  }
  0x2f   :  { %774 = vmatprep.subr.bf16.mxu0 %v2303_v0  ;;  %2117 = vmatprep.subr.bf16.mxu1 %v2303_v0 }
  0x32   :  { %775 = vmatpush2.bf16.msra.mxu0 %v2150_v15  ;;  %2133 = vmatpush2.bf16.msra.mxu1 %v2150_v15  ;;  %v2248_v15 = vld [vmem:[%s3221_s0 + $0xf0] ss:$8 sps:$4 sm:$0xff]  }
  0x33   :  { %776 = vmatprep.subr.bf16.mxu0 %v2303_v0  ;;  %2118 = vmatprep.subr.bf16.mxu1 %v2303_v0 }
  0x36   :  { %777 = vmatpush2.bf16.msra.mxu0 %v2151_v16  ;;  %2134 = vmatpush2.bf16.msra.mxu1 %v2151_v16  ;;  %v2249_v16 = vld [vmem:[%s3221_s0 + $0x280] ss:$8 sps:$4 sm:$0xff]  }
  0x37   :  { %778 = vmatprep.subr.bf16.mxu0 %v2303_v0  ;;  %2119 = vmatprep.subr.bf16.mxu1 %v2303_v0 }
  0x3a   :  { %779 = vmatpush2.bf16.msra.mxu0 %v2152_v17  ;;  %2135 = vmatpush2.bf16.msra.mxu1 %v2152_v17  ;;  %v2250_v17 = vld [vmem:[%s3221_s0 + $0x104] ss:$8 sps:$4 sm:$0xff]  }
  0x3b   :  { %780 = vmatprep.subr.bf16.mxu0 %v2303_v0  ;;  %2120 = vmatprep.subr.bf16.mxu1 %v2303_v0  ;;  %v2225_v0 = vld [vmem:[%s3221_s0 + $0x240] ss:$8 sps:$4 sm:$0xff]  }
  0x3e   :  { %781 = vmatpush2.bf16.msra.mxu0 %v2153_v18  ;;  %2136 = vmatpush2.bf16.msra.mxu1 %v2153_v18  ;;  %v2252_v18 = vld [vmem:[%s3221_s0 + $0x294] ss:$8 sps:$4 sm:$0xff]  }
  0x41   :  { %783 = vmatmul.mubr.bf16.vlgmr.msra.gmra.mxu0 %v2154_v19  ;;  %983 = vmatmul.mubr.bf16.vlgmr.msra.gmra.mxu1 %v2157_v20  ;;  %v2254_v19 = vld [vmem:[%s3221_s0 + $0x100] ss:$8 sps:$4 sm:$0xff]   ;;  %v2255_v20 = vld [vmem:[%s3221_s0 + $0x290] ss:$8 sps:$4 sm:$0xff]  }
  0x42   :  { %790 = vmatprep.mubr.bf16.mxu0 %v2160_v21  ;;  %990 = vmatprep.mubr.bf16.mxu1 %v2162_v22  ;;  %v2256_v21 = vld [vmem:[%s3221_s0 + $0x114] ss:$8 sps:$4 sm:$0xff]   ;;  %v2258_v22 = vld [vmem:[%s3221_s0 + $0x2a4] ss:$8 sps:$4 sm:$0xff]  }
  0x49   :  { %791 = vmatmul.mubr.bf16.gmra.mxu0 %v2164_v23  ;;  %991 = vmatmul.mubr.bf16.gmra.mxu1 %v2165_v24  ;;  %v2260_v23 = vld [vmem:[%s3221_s0 + $0x110] ss:$8 sps:$4 sm:$0xff]   ;;  %v2261_v24 = vld [vmem:[%s3221_s0 + $0x2a0] ss:$8 sps:$4 sm:$0xff]  }
  0x4a   :  { %798 = vmatprep.mubr.bf16.mxu0 %v2166_v25  ;;  %998 = vmatprep.mubr.bf16.mxu1 %v2168_v26  ;;  %v2262_v25 = vld [vmem:[%s3221_s0 + $0x124] ss:$8 sps:$4 sm:$0xff]   ;;  %v2264_v26 = vld [vmem:[%s3221_s0 + $0x2b4] ss:$8 sps:$4 sm:$0xff]  }
  0x51   :  { %799 = vmatmul.mubr.bf16.gmra.mxu0 %v2170_v27  ;;  %999 = vmatmul.mubr.bf16.gmra.mxu1 %v2171_v28  ;;  %v2266_v27 = vld [vmem:[%s3221_s0 + $0x120] ss:$8 sps:$4 sm:$0xff]   ;;  %v2267_v28 = vld [vmem:[%s3221_s0 + $0x2b0] ss:$8 sps:$4 sm:$0xff]  }
  0x52   :  { %806 = vmatprep.mubr.bf16.mxu0 %v2172_v29  ;;  %1006 = vmatprep.mubr.bf16.mxu1 %v2174_v30  ;;  %v2268_v29 = vld [vmem:[%s3221_s0 + $0x134] ss:$8 sps:$4 sm:$0xff]   ;;  %v2270_v30 = vld [vmem:[%s3221_s0 + $0x2c4] ss:$8 sps:$4 sm:$0xff]  }
  0x59   :  { %807 = vmatmul.mubr.bf16.gmra.mxu0 %v2176_v31  ;;  %1007 = vmatmul.mubr.bf16.gmra.mxu1 %v2177_v32  ;;  %v2272_v31 = vld [vmem:[%s3221_s0 + $0x130] ss:$8 sps:$4 sm:$0xff]   ;;  %v2273_v32 = vld [vmem:[%s3221_s0 + $0x2c0] ss:$8 sps:$4 sm:$0xff]  }
  0x5a   :  { %814 = vmatprep.mubr.bf16.mxu0 %v2178_v33  ;;  %1014 = vmatprep.mubr.bf16.mxu1 %v2180_v34  ;;  %v2274_v33 = vld [vmem:[%s3221_s0 + $0x144] ss:$8 sps:$4 sm:$0xff]   ;;  %v2276_v34 = vld [vmem:[%s3221_s0 + $0x2d4] ss:$8 sps:$4 sm:$0xff]  }
  0x61   :  { %815 = vmatmul.mubr.bf16.gmra.mxu0 %v2182_v35  ;;  %1015 = vmatmul.mubr.bf16.gmra.mxu1 %v2183_v36  ;;  %v2278_v35 = vld [vmem:[%s3221_s0 + $0x140] ss:$8 sps:$4 sm:$0xff]   ;;  %v2279_v36 = vld [vmem:[%s3221_s0 + $0x2d0] ss:$8 sps:$4 sm:$0xff]  }
  0x62   :  { %822 = vmatprep.mubr.bf16.mxu0 %v2184_v37  ;;  %1022 = vmatprep.mubr.bf16.mxu1 %v2186_v38  ;;  %v2280_v37 = vld [vmem:[%s3221_s0 + $0x154] ss:$8 sps:$4 sm:$0xff]   ;;  %v2282_v38 = vld [vmem:[%s3221_s0 + $0x2e4] ss:$8 sps:$4 sm:$0xff]  }
  0x69   :  { %823 = vmatmul.mubr.bf16.gmra.mxu0 %v2188_v39  ;;  %1023 = vmatmul.mubr.bf16.gmra.mxu1 %v2189_v40  ;;  %v2284_v39 = vld [vmem:[%s3221_s0 + $0x150] ss:$8 sps:$4 sm:$0xff]   ;;  %v2285_v40 = vld [vmem:[%s3221_s0 + $0x2e0] ss:$8 sps:$4 sm:$0xff]  }
  0x6a   :  { %830 = vmatprep.mubr.bf16.mxu0 %v2190_v41  ;;  %1030 = vmatprep.mubr.bf16.mxu1 %v2192_v42  ;;  %v2286_v41 = vld [vmem:[%s3221_s0 + $0x164] ss:$8 sps:$4 sm:$0xff]   ;;  %v2288_v42 = vld [vmem:[%s3221_s0 + $0x2f4] ss:$8 sps:$4 sm:$0xff]  }
  0x71   :  { %831 = vmatmul.mubr.bf16.gmra.mxu0 %v2194_v43  ;;  %1031 = vmatmul.mubr.bf16.gmra.mxu1 %v2195_v44  ;;  %v2290_v43 = vld [vmem:[%s3221_s0 + $0x160] ss:$8 sps:$4 sm:$0xff]   ;;  %v2291_v44 = vld [vmem:[%s3221_s0 + $0x2f0] ss:$8 sps:$4 sm:$0xff]  }
  0x72   :  { %838 = vmatprep.mubr.bf16.mxu0 %v2196_v45  ;;  %1038 = vmatprep.mubr.bf16.mxu1 %v2198_v46  ;;  %v2292_v45 = vld [vmem:[%s3221_s0 + $0x174] ss:$8 sps:$4 sm:$0xff]   ;;  %v2294_v46 = vld [vmem:[%s3221_s0 + $0x304] ss:$8 sps:$4 sm:$0xff]  }
  0x79   :  { %839 = vmatmul.mubr.bf16.gmra.mxu0 %v2200_v47  ;;  %1039 = vmatmul.mubr.bf16.gmra.mxu1 %v2201_v48  ;;  %v2296_v47 = vld [vmem:[%s3221_s0 + $0x170] ss:$8 sps:$4 sm:$0xff]   ;;  %v2297_v48 = vld [vmem:[%s3221_s0 + $0x300] ss:$8 sps:$4 sm:$0xff]  }
  0x7a   :  { %846 = vmatprep.mubr.bf16.mxu0 %v2202_v49  ;;  %1046 = vmatprep.mubr.bf16.mxu1 %v2204_v50  ;;  %v2298_v49 = vld [vmem:[%s3221_s0 + $0x184] ss:$8 sps:$4 sm:$0xff]   ;;  %v2300_v50 = vld [vmem:[%s3221_s0 + $0x314] ss:$8 sps:$4 sm:$0xff]  }
  0x81   :  { %847 = vmatmul.mubr.bf16.gmra.mxu0 %v2206_v51  ;;  %1047 = vmatmul.mubr.bf16.gmra.mxu1 %v2207_v52  ;;  %v63_v51 = vld [vmem:[%s3221_s0 + $0x180] sm:$0xff]  ;;  %v64_v52 = vld [vmem:[%s3221_s0 + $0x188] sm:$0xff] }
  0x82   :  { %854 = vmatprep.mubr.bf16.mxu0 %v2208_v53  ;;  %1054 = vmatprep.mubr.bf16.mxu1 %v2210_v54  ;;  %v113_v53 = vld [vmem:[%s3221_s0 + $0x310] sm:$0xff]  ;;  %v114_v54 = vld [vmem:[%s3221_s0 + $0x318] sm:$0xff] }
  0x89   :  { %855 = vmatmul.mubr.bf16.gmra.mxu0 %v2212_v55  ;;  %1055 = vmatmul.mubr.bf16.gmra.mxu1 %v2213_v56  ;;  %v1837_v55 = vcombine.low %v63_v51, %v64_v52  ;;  %v1887_v56 = vcombine.low %v113_v53, %v114_v54 }
  0x8a   :  { %862 = vmatprep.mubr.bf16.mxu0 %v2214_v57  ;;  %1062 = vmatprep.mubr.bf16.mxu1 %v2216_v58  ;;  %v2713_v57 = vld [vmem:[%s3222_s2] ss:$0 sm:$0xff] }
  0x91   :  { %863 = vmatmul.mubr.bf16.gmra.mxu0 %v2218_v59  ;;  %1063 = vmatmul.mubr.bf16.gmra.mxu1 %v2219_v60 }
  0x92   :  { %870 = vmatprep.mubr.bf16.mxu0 %v2220_v61  ;;  %1070 = vmatprep.mubr.bf16.mxu1 %v2222_v62 }
  0x99   :  { %871 = vmatmul.mubr.bf16.gmra.mxu0 %v2224_v63  ;;  %1071 = vmatmul.mubr.bf16.gmra.mxu1 %v2225_v0 }
  0x9a   :  { %878 = vmatprep.mubr.bf16.mxu0 %v2226_v1  ;;  %1078 = vmatprep.mubr.bf16.mxu1 %v2228_v2 }
  0xa1   :  { %879 = vmatmul.mubr.bf16.gmra.mxu0 %v2230_v3  ;;  %1079 = vmatmul.mubr.bf16.gmra.mxu1 %v2231_v4 }
  0xa2   :  { %886 = vmatprep.mubr.bf16.mxu0 %v2232_v5  ;;  %1086 = vmatprep.mubr.bf16.mxu1 %v2234_v6 }
  0xa9   :  { %887 = vmatmul.mubr.bf16.gmra.mxu0 %v2236_v7  ;;  %1087 = vmatmul.mubr.bf16.gmra.mxu1 %v2237_v8 }
  0xaa   :  { %894 = vmatprep.mubr.bf16.mxu0 %v2238_v9  ;;  %1094 = vmatprep.mubr.bf16.mxu1 %v2240_v10 }
  0xb1   :  { %895 = vmatmul.mubr.bf16.gmra.mxu0 %v2242_v11  ;;  %1095 = vmatmul.mubr.bf16.gmra.mxu1 %v2243_v12 }
  0xb2   :  { %902 = vmatprep.mubr.bf16.mxu0 %v2244_v13  ;;  %1102 = vmatprep.mubr.bf16.mxu1 %v2246_v14 }
  0xb9   :  { %903 = vmatmul.mubr.bf16.gmra.mxu0 %v2248_v15  ;;  %1103 = vmatmul.mubr.bf16.gmra.mxu1 %v2249_v16 }
  0xba   :  { %910 = vmatprep.mubr.bf16.mxu0 %v2250_v17  ;;  %1110 = vmatprep.mubr.bf16.mxu1 %v2252_v18 }
  0xc1   :  { %911 = vmatmul.mubr.bf16.gmra.mxu0 %v2254_v19  ;;  %1111 = vmatmul.mubr.bf16.gmra.mxu1 %v2255_v20 }
  0xc2   :  { %918 = vmatprep.mubr.bf16.mxu0 %v2256_v21  ;;  %1118 = vmatprep.mubr.bf16.mxu1 %v2258_v22 }
  0xc9   :  { %919 = vmatmul.mubr.bf16.gmra.mxu0 %v2260_v23  ;;  %1119 = vmatmul.mubr.bf16.gmra.mxu1 %v2261_v24 }
  0xca   :  { %926 = vmatprep.mubr.bf16.mxu0 %v2262_v25  ;;  %1126 = vmatprep.mubr.bf16.mxu1 %v2264_v26 }
  0xd1   :  { %927 = vmatmul.mubr.bf16.gmra.mxu0 %v2266_v27  ;;  %1127 = vmatmul.mubr.bf16.gmra.mxu1 %v2267_v28 }
  0xd2   :  { %934 = vmatprep.mubr.bf16.mxu0 %v2268_v29  ;;  %1134 = vmatprep.mubr.bf16.mxu1 %v2270_v30 }
  0xd9   :  { %935 = vmatmul.mubr.bf16.gmra.mxu0 %v2272_v31  ;;  %1135 = vmatmul.mubr.bf16.gmra.mxu1 %v2273_v32 }
  0xda   :  { %942 = vmatprep.mubr.bf16.mxu0 %v2274_v33  ;;  %1142 = vmatprep.mubr.bf16.mxu1 %v2276_v34 }
  0xe1   :  { %943 = vmatmul.mubr.bf16.gmra.mxu0 %v2278_v35  ;;  %1143 = vmatmul.mubr.bf16.gmra.mxu1 %v2279_v36 }
  0xe2   :  { %950 = vmatprep.mubr.bf16.mxu0 %v2280_v37  ;;  %1150 = vmatprep.mubr.bf16.mxu1 %v2282_v38 }
  0xe9   :  { %951 = vmatmul.mubr.bf16.gmra.mxu0 %v2284_v39  ;;  %1151 = vmatmul.mubr.bf16.gmra.mxu1 %v2285_v40 }
  0xea   :  { %958 = vmatprep.mubr.bf16.mxu0 %v2286_v41  ;;  %1158 = vmatprep.mubr.bf16.mxu1 %v2288_v42 }
  0xf1   :  { %959 = vmatmul.mubr.bf16.gmra.mxu0 %v2290_v43  ;;  %1159 = vmatmul.mubr.bf16.gmra.mxu1 %v2291_v44 }
  0xf2   :  { %966 = vmatprep.mubr.bf16.mxu0 %v2292_v45  ;;  %1166 = vmatprep.mubr.bf16.mxu1 %v2294_v46 }
  0xf9   :  { %967 = vmatmul.mubr.bf16.gmra.mxu0 %v2296_v47  ;;  %1167 = vmatmul.mubr.bf16.gmra.mxu1 %v2297_v48 }
  0xfa   :  { %974 = vmatprep.mubr.bf16.mxu0 %v2298_v49  ;;  %1174 = vmatprep.mubr.bf16.mxu1 %v2300_v50 }
 0x101   :  { %v784_v58 = vpop.f32.mrf.mxu0  ;;  %975 = vmatmul.mubr.bf16.gmra.mxu0 %v1837_v55  ;;  %v984_v59 = vpop.f32.mrf.mxu1  ;;  %1175 = vmatmul.mubr.bf16.gmra.mxu1 %v1887_v56 }
 0x102   :  { %v785_v60 = vadd.f32 %v2713_v57, %v784_v58  ;;  %v985_v61 = vadd.f32 %v2713_v57, %v984_v59 }
 0x103   :  { %v786_v62 = vpop.f32.mrf.mxu0  ;;  %v986_v63 = vpop.f32.mrf.mxu1 }
 0x104   :  { %v1183_v0 = vmax.f32 %v785_v60, 0.0  ;;  %v1233_v1 = vmax.f32 %v985_v61, 0.0 }
 0x105   :  { %v787_v2 = vpop.f32.mrf.mxu0  ;;  %v987_v3 = vpop.f32.mrf.mxu1 }
 0x106   :  { %v2005_v4 = vpack.c.bf16 %v1183_v0, %v1183_v0  ;;  %v2055_v5 = vpack.c.bf16 %v1233_v1, %v1233_v1  ;;  %v788_v6 = vadd.f32 %v2713_v57, %v787_v2  ;;  %v988_v7 = vadd.f32 %v2713_v57, %v987_v3 }
 0x107   :  { %v789_v8 = vpop.f32.mrf.mxu0  ;;  %v989_v9 = vpop.f32.mrf.mxu1 }
 0x108   :  { %1684 = vst.msk [vmem:[%s3223_s3] sm:$0xf] %vm1683_vm0, %v2005_v4  ;;  %1734 = vst.msk [vmem:[%s3223_s3 + $0xc8] sm:$0xf] %vm1683_vm0, %v2055_v5  ;;  %v1184_v10 = vmax.f32 %v788_v6, 0.0  ;;  %v1234_v11 = vmax.f32 %v988_v7, 0.0 }
 0x109   :  { %v792_v12 = vpop.f32.mrf.mxu0  ;;  %v992_v13 = vpop.f32.mrf.mxu1 }
 0x10a   :  { %v2006_v14 = vpack.c.bf16 %v1184_v10, %v1184_v10  ;;  %v2056_v15 = vpack.c.bf16 %v1234_v11, %v1234_v11  ;;  %v793_v16 = vadd.f32 %v2713_v57, %v792_v12  ;;  %v993_v17 = vadd.f32 %v2713_v57, %v992_v13 }
 0x10b   :  { %v794_v18 = vpop.f32.mrf.mxu0  ;;  %v994_v19 = vpop.f32.mrf.mxu1 }
 0x10c   :  { %1685 = vst.msk [vmem:[%s3223_s3 + $0x4] sm:$0xf] %vm1683_vm0, %v2006_v14  ;;  %1735 = vst.msk [vmem:[%s3223_s3 + $0xcc] sm:$0xf] %vm1683_vm0, %v2056_v15  ;;  %v1185_v20 = vmax.f32 %v793_v16, 0.0  ;;  %v1235_v21 = vmax.f32 %v993_v17, 0.0 }
 0x10d   :  { %v795_v22 = vpop.f32.mrf.mxu0  ;;  %v995_v23 = vpop.f32.mrf.mxu1 }
 0x10e   :  { %v2007_v24 = vpack.c.bf16 %v1185_v20, %v1185_v20  ;;  %v2057_v25 = vpack.c.bf16 %v1235_v21, %v1235_v21  ;;  %v796_v26 = vadd.f32 %v2713_v57, %v795_v22  ;;  %v996_v27 = vadd.f32 %v2713_v57, %v995_v23 }
 0x10f   :  { %v797_v28 = vpop.f32.mrf.mxu0  ;;  %v997_v29 = vpop.f32.mrf.mxu1 }
 0x110   :  { %1686 = vst.msk [vmem:[%s3223_s3 + $0x8] sm:$0xf] %vm1683_vm0, %v2007_v24  ;;  %1736 = vst.msk [vmem:[%s3223_s3 + $0xd0] sm:$0xf] %vm1683_vm0, %v2057_v25  ;;  %v1186_v30 = vmax.f32 %v796_v26, 0.0  ;;  %v1236_v31 = vmax.f32 %v996_v27, 0.0 }
 0x111   :  { %v800_v32 = vpop.f32.mrf.mxu0  ;;  %v1000_v33 = vpop.f32.mrf.mxu1 }
 0x112   :  { %v2008_v34 = vpack.c.bf16 %v1186_v30, %v1186_v30  ;;  %v2058_v35 = vpack.c.bf16 %v1236_v31, %v1236_v31  ;;  %v801_v36 = vadd.f32 %v2713_v57, %v800_v32  ;;  %v1001_v37 = vadd.f32 %v2713_v57, %v1000_v33 }
 0x113   :  { %v802_v38 = vpop.f32.mrf.mxu0  ;;  %v1002_v39 = vpop.f32.mrf.mxu1 }
 0x114   :  { %1687 = vst.msk [vmem:[%s3223_s3 + $0xc] sm:$0xf] %vm1683_vm0, %v2008_v34  ;;  %1737 = vst.msk [vmem:[%s3223_s3 + $0xd4] sm:$0xf] %vm1683_vm0, %v2058_v35  ;;  %v1187_v40 = vmax.f32 %v801_v36, 0.0  ;;  %v1237_v41 = vmax.f32 %v1001_v37, 0.0 }
 0x115   :  { %v803_v42 = vpop.f32.mrf.mxu0  ;;  %v1003_v43 = vpop.f32.mrf.mxu1 }
 0x116   :  { %v2009_v44 = vpack.c.bf16 %v1187_v40, %v1187_v40  ;;  %v2059_v45 = vpack.c.bf16 %v1237_v41, %v1237_v41  ;;  %v804_v46 = vadd.f32 %v2713_v57, %v803_v42  ;;  %v1004_v47 = vadd.f32 %v2713_v57, %v1003_v43 }
 0x117   :  { %v805_v48 = vpop.f32.mrf.mxu0  ;;  %v1005_v49 = vpop.f32.mrf.mxu1 }
 0x118   :  { %1688 = vst.msk [vmem:[%s3223_s3 + $0x10] sm:$0xf] %vm1683_vm0, %v2009_v44  ;;  %1738 = vst.msk [vmem:[%s3223_s3 + $0xd8] sm:$0xf] %vm1683_vm0, %v2059_v45  ;;  %v1188_v50 = vmax.f32 %v804_v46, 0.0  ;;  %v1238_v51 = vmax.f32 %v1004_v47, 0.0 }
 0x119   :  { %v808_v52 = vpop.f32.mrf.mxu0  ;;  %v1008_v53 = vpop.f32.mrf.mxu1 }
 0x11a   :  { %v2010_v54 = vpack.c.bf16 %v1188_v50, %v1188_v50  ;;  %v2060_v55 = vpack.c.bf16 %v1238_v51, %v1238_v51  ;;  %v809_v56 = vadd.f32 %v2713_v57, %v808_v52  ;;  %v1009_v58 = vadd.f32 %v2713_v57, %v1008_v53 }
 0x11b   :  { %v810_v59 = vpop.f32.mrf.mxu0  ;;  %v1010_v60 = vpop.f32.mrf.mxu1 }
 0x11c   :  { %1689 = vst.msk [vmem:[%s3223_s3 + $0x14] sm:$0xf] %vm1683_vm0, %v2010_v54  ;;  %1739 = vst.msk [vmem:[%s3223_s3 + $0xdc] sm:$0xf] %vm1683_vm0, %v2060_v55  ;;  %v1189_v61 = vmax.f32 %v809_v56, 0.0  ;;  %v1239_v62 = vmax.f32 %v1009_v58, 0.0 }
 0x11d   :  { %v811_v63 = vpop.f32.mrf.mxu0  ;;  %v1011_v0 = vpop.f32.mrf.mxu1 }
 0x11e   :  { %v2011_v1 = vpack.c.bf16 %v1189_v61, %v1189_v61  ;;  %v2061_v2 = vpack.c.bf16 %v1239_v62, %v1239_v62  ;;  %v812_v3 = vadd.f32 %v2713_v57, %v811_v63  ;;  %v1012_v4 = vadd.f32 %v2713_v57, %v1011_v0 }
 0x11f   :  { %v813_v5 = vpop.f32.mrf.mxu0  ;;  %v1013_v6 = vpop.f32.mrf.mxu1 }
 0x120   :  { %1690 = vst.msk [vmem:[%s3223_s3 + $0x18] sm:$0xf] %vm1683_vm0, %v2011_v1  ;;  %1740 = vst.msk [vmem:[%s3223_s3 + $0xe0] sm:$0xf] %vm1683_vm0, %v2061_v2  ;;  %v1190_v7 = vmax.f32 %v812_v3, 0.0  ;;  %v1240_v8 = vmax.f32 %v1012_v4, 0.0 }
 0x121   :  { %v816_v9 = vpop.f32.mrf.mxu0  ;;  %v1016_v10 = vpop.f32.mrf.mxu1 }
 0x122   :  { %v2012_v11 = vpack.c.bf16 %v1190_v7, %v1190_v7  ;;  %v2062_v12 = vpack.c.bf16 %v1240_v8, %v1240_v8  ;;  %v817_v13 = vadd.f32 %v2713_v57, %v816_v9  ;;  %v1017_v14 = vadd.f32 %v2713_v57, %v1016_v10 }
 0x123   :  { %v818_v15 = vpop.f32.mrf.mxu0  ;;  %v1018_v16 = vpop.f32.mrf.mxu1 }
 0x124   :  { %1691 = vst.msk [vmem:[%s3223_s3 + $0x1c] sm:$0xf] %vm1683_vm0, %v2012_v11  ;;  %1741 = vst.msk [vmem:[%s3223_s3 + $0xe4] sm:$0xf] %vm1683_vm0, %v2062_v12  ;;  %v1191_v17 = vmax.f32 %v817_v13, 0.0  ;;  %v1241_v18 = vmax.f32 %v1017_v14, 0.0 }
 0x125   :  { %v819_v19 = vpop.f32.mrf.mxu0  ;;  %v1019_v20 = vpop.f32.mrf.mxu1 }
 0x126   :  { %v2013_v21 = vpack.c.bf16 %v1191_v17, %v1191_v17  ;;  %v2063_v22 = vpack.c.bf16 %v1241_v18, %v1241_v18  ;;  %v820_v23 = vadd.f32 %v2713_v57, %v819_v19  ;;  %v1020_v24 = vadd.f32 %v2713_v57, %v1019_v20 }
 0x127   :  { %v821_v25 = vpop.f32.mrf.mxu0  ;;  %v1021_v26 = vpop.f32.mrf.mxu1 }
 0x128   :  { %1692 = vst.msk [vmem:[%s3223_s3 + $0x20] sm:$0xf] %vm1683_vm0, %v2013_v21  ;;  %1742 = vst.msk [vmem:[%s3223_s3 + $0xe8] sm:$0xf] %vm1683_vm0, %v2063_v22  ;;  %v1192_v27 = vmax.f32 %v820_v23, 0.0  ;;  %v1242_v28 = vmax.f32 %v1020_v24, 0.0 }
 0x129   :  { %v824_v29 = vpop.f32.mrf.mxu0  ;;  %v1024_v30 = vpop.f32.mrf.mxu1 }
 0x12a   :  { %v2014_v31 = vpack.c.bf16 %v1192_v27, %v1192_v27  ;;  %v2064_v32 = vpack.c.bf16 %v1242_v28, %v1242_v28  ;;  %v825_v33 = vadd.f32 %v2713_v57, %v824_v29  ;;  %v1025_v34 = vadd.f32 %v2713_v57, %v1024_v30 }
 0x12b   :  { %v826_v35 = vpop.f32.mrf.mxu0  ;;  %v1026_v36 = vpop.f32.mrf.mxu1 }
 0x12c   :  { %1693 = vst.msk [vmem:[%s3223_s3 + $0x24] sm:$0xf] %vm1683_vm0, %v2014_v31  ;;  %1743 = vst.msk [vmem:[%s3223_s3 + $0xec] sm:$0xf] %vm1683_vm0, %v2064_v32  ;;  %v1193_v37 = vmax.f32 %v825_v33, 0.0  ;;  %v1243_v38 = vmax.f32 %v1025_v34, 0.0 }
 0x12d   :  { %v827_v39 = vpop.f32.mrf.mxu0  ;;  %v1027_v40 = vpop.f32.mrf.mxu1 }
 0x12e   :  { %v2015_v41 = vpack.c.bf16 %v1193_v37, %v1193_v37  ;;  %v2065_v42 = vpack.c.bf16 %v1243_v38, %v1243_v38  ;;  %v828_v43 = vadd.f32 %v2713_v57, %v827_v39  ;;  %v1028_v44 = vadd.f32 %v2713_v57, %v1027_v40 }
 0x12f   :  { %v829_v45 = vpop.f32.mrf.mxu0  ;;  %v1029_v46 = vpop.f32.mrf.mxu1 }
 0x130   :  { %1694 = vst.msk [vmem:[%s3223_s3 + $0x28] sm:$0xf] %vm1683_vm0, %v2015_v41  ;;  %1744 = vst.msk [vmem:[%s3223_s3 + $0xf0] sm:$0xf] %vm1683_vm0, %v2065_v42  ;;  %v1194_v47 = vmax.f32 %v828_v43, 0.0  ;;  %v1244_v48 = vmax.f32 %v1028_v44, 0.0 }
 0x131   :  { %v832_v49 = vpop.f32.mrf.mxu0  ;;  %v1032_v50 = vpop.f32.mrf.mxu1 }
 0x132   :  { %v2016_v51 = vpack.c.bf16 %v1194_v47, %v1194_v47  ;;  %v2066_v52 = vpack.c.bf16 %v1244_v48, %v1244_v48  ;;  %v833_v53 = vadd.f32 %v2713_v57, %v832_v49  ;;  %v1033_v54 = vadd.f32 %v2713_v57, %v1032_v50 }
 0x133   :  { %v834_v55 = vpop.f32.mrf.mxu0  ;;  %v1034_v56 = vpop.f32.mrf.mxu1 }
 0x134   :  { %1695 = vst.msk [vmem:[%s3223_s3 + $0x2c] sm:$0xf] %vm1683_vm0, %v2016_v51  ;;  %1745 = vst.msk [vmem:[%s3223_s3 + $0xf4] sm:$0xf] %vm1683_vm0, %v2066_v52  ;;  %v1195_v58 = vmax.f32 %v833_v53, 0.0  ;;  %v1245_v59 = vmax.f32 %v1033_v54, 0.0 }
 0x135   :  { %v835_v60 = vpop.f32.mrf.mxu0  ;;  %v1035_v61 = vpop.f32.mrf.mxu1 }
 0x136   :  { %v2017_v62 = vpack.c.bf16 %v1195_v58, %v1195_v58  ;;  %v2067_v63 = vpack.c.bf16 %v1245_v59, %v1245_v59  ;;  %v836_v0 = vadd.f32 %v2713_v57, %v835_v60  ;;  %v1036_v1 = vadd.f32 %v2713_v57, %v1035_v61 }
 0x137   :  { %v837_v2 = vpop.f32.mrf.mxu0  ;;  %v1037_v3 = vpop.f32.mrf.mxu1 }
 0x138   :  { %1696 = vst.msk [vmem:[%s3223_s3 + $0x30] sm:$0xf] %vm1683_vm0, %v2017_v62  ;;  %1746 = vst.msk [vmem:[%s3223_s3 + $0xf8] sm:$0xf] %vm1683_vm0, %v2067_v63  ;;  %v1196_v4 = vmax.f32 %v836_v0, 0.0  ;;  %v1246_v5 = vmax.f32 %v1036_v1, 0.0 }
 0x139   :  { %v840_v6 = vpop.f32.mrf.mxu0  ;;  %v1040_v7 = vpop.f32.mrf.mxu1 }
 0x13a   :  { %v2018_v8 = vpack.c.bf16 %v1196_v4, %v1196_v4  ;;  %v2068_v9 = vpack.c.bf16 %v1246_v5, %v1246_v5  ;;  %v841_v10 = vadd.f32 %v2713_v57, %v840_v6  ;;  %v1041_v11 = vadd.f32 %v2713_v57, %v1040_v7 }
 0x13b   :  { %v842_v12 = vpop.f32.mrf.mxu0  ;;  %v1042_v13 = vpop.f32.mrf.mxu1 }
 0x13c   :  { %1697 = vst.msk [vmem:[%s3223_s3 + $0x34] sm:$0xf] %vm1683_vm0, %v2018_v8  ;;  %1747 = vst.msk [vmem:[%s3223_s3 + $0xfc] sm:$0xf] %vm1683_vm0, %v2068_v9  ;;  %v1197_v14 = vmax.f32 %v841_v10, 0.0  ;;  %v1247_v15 = vmax.f32 %v1041_v11, 0.0 }
 0x13d   :  { %v843_v16 = vpop.f32.mrf.mxu0  ;;  %v1043_v17 = vpop.f32.mrf.mxu1 }
 0x13e   :  { %v2019_v18 = vpack.c.bf16 %v1197_v14, %v1197_v14  ;;  %v2069_v19 = vpack.c.bf16 %v1247_v15, %v1247_v15  ;;  %v844_v20 = vadd.f32 %v2713_v57, %v843_v16  ;;  %v1044_v21 = vadd.f32 %v2713_v57, %v1043_v17 }
 0x13f   :  { %v845_v22 = vpop.f32.mrf.mxu0  ;;  %v1045_v23 = vpop.f32.mrf.mxu1 }
 0x140   :  { %1698 = vst.msk [vmem:[%s3223_s3 + $0x38] sm:$0xf] %vm1683_vm0, %v2019_v18  ;;  %1748 = vst.msk [vmem:[%s3223_s3 + $0x100] sm:$0xf] %vm1683_vm0, %v2069_v19  ;;  %v1198_v24 = vmax.f32 %v844_v20, 0.0  ;;  %v1248_v25 = vmax.f32 %v1044_v21, 0.0 }
 0x141   :  { %v848_v26 = vpop.f32.mrf.mxu0  ;;  %v1048_v27 = vpop.f32.mrf.mxu1 }
 0x142   :  { %v2020_v28 = vpack.c.bf16 %v1198_v24, %v1198_v24  ;;  %v2070_v29 = vpack.c.bf16 %v1248_v25, %v1248_v25  ;;  %v849_v30 = vadd.f32 %v2713_v57, %v848_v26  ;;  %v1049_v31 = vadd.f32 %v2713_v57, %v1048_v27 }
 0x143   :  { %v850_v32 = vpop.f32.mrf.mxu0  ;;  %v1050_v33 = vpop.f32.mrf.mxu1 }
 0x144   :  { %1699 = vst.msk [vmem:[%s3223_s3 + $0x3c] sm:$0xf] %vm1683_vm0, %v2020_v28  ;;  %1749 = vst.msk [vmem:[%s3223_s3 + $0x104] sm:$0xf] %vm1683_vm0, %v2070_v29  ;;  %v1199_v34 = vmax.f32 %v849_v30, 0.0  ;;  %v1249_v35 = vmax.f32 %v1049_v31, 0.0 }
 0x145   :  { %v851_v36 = vpop.f32.mrf.mxu0  ;;  %v1051_v37 = vpop.f32.mrf.mxu1 }
 0x146   :  { %v2021_v38 = vpack.c.bf16 %v1199_v34, %v1199_v34  ;;  %v2071_v39 = vpack.c.bf16 %v1249_v35, %v1249_v35  ;;  %v852_v40 = vadd.f32 %v2713_v57, %v851_v36  ;;  %v1052_v41 = vadd.f32 %v2713_v57, %v1051_v37 }
 0x147   :  { %v853_v42 = vpop.f32.mrf.mxu0  ;;  %v1053_v43 = vpop.f32.mrf.mxu1 }
 0x148   :  { %1700 = vst.msk [vmem:[%s3223_s3 + $0x40] sm:$0xf] %vm1683_vm0, %v2021_v38  ;;  %1750 = vst.msk [vmem:[%s3223_s3 + $0x108] sm:$0xf] %vm1683_vm0, %v2071_v39  ;;  %v1200_v44 = vmax.f32 %v852_v40, 0.0  ;;  %v1250_v45 = vmax.f32 %v1052_v41, 0.0 }
 0x149   :  { %v856_v46 = vpop.f32.mrf.mxu0  ;;  %v1056_v47 = vpop.f32.mrf.mxu1 }
 0x14a   :  { %v2022_v48 = vpack.c.bf16 %v1200_v44, %v1200_v44  ;;  %v2072_v49 = vpack.c.bf16 %v1250_v45, %v1250_v45  ;;  %v857_v50 = vadd.f32 %v2713_v57, %v856_v46  ;;  %v1057_v51 = vadd.f32 %v2713_v57, %v1056_v47 }
 0x14b   :  { %v858_v52 = vpop.f32.mrf.mxu0  ;;  %v1058_v53 = vpop.f32.mrf.mxu1 }
 0x14c   :  { %1701 = vst.msk [vmem:[%s3223_s3 + $0x44] sm:$0xf] %vm1683_vm0, %v2022_v48  ;;  %1751 = vst.msk [vmem:[%s3223_s3 + $0x10c] sm:$0xf] %vm1683_vm0, %v2072_v49  ;;  %v1201_v54 = vmax.f32 %v857_v50, 0.0  ;;  %v1251_v55 = vmax.f32 %v1057_v51, 0.0 }
 0x14d   :  { %v859_v56 = vpop.f32.mrf.mxu0  ;;  %v1059_v58 = vpop.f32.mrf.mxu1 }
 0x14e   :  { %v2023_v59 = vpack.c.bf16 %v1201_v54, %v1201_v54  ;;  %v2073_v60 = vpack.c.bf16 %v1251_v55, %v1251_v55  ;;  %v860_v61 = vadd.f32 %v2713_v57, %v859_v56  ;;  %v1060_v62 = vadd.f32 %v2713_v57, %v1059_v58 }
 0x14f   :  { %v861_v63 = vpop.f32.mrf.mxu0  ;;  %v1061_v0 = vpop.f32.mrf.mxu1 }
 0x150   :  { %1702 = vst.msk [vmem:[%s3223_s3 + $0x48] sm:$0xf] %vm1683_vm0, %v2023_v59  ;;  %1752 = vst.msk [vmem:[%s3223_s3 + $0x110] sm:$0xf] %vm1683_vm0, %v2073_v60  ;;  %v1202_v1 = vmax.f32 %v860_v61, 0.0  ;;  %v1252_v2 = vmax.f32 %v1060_v62, 0.0 }
 0x151   :  { %v864_v3 = vpop.f32.mrf.mxu0  ;;  %v1064_v4 = vpop.f32.mrf.mxu1 }
 0x152   :  { %v2024_v5 = vpack.c.bf16 %v1202_v1, %v1202_v1  ;;  %v2074_v6 = vpack.c.bf16 %v1252_v2, %v1252_v2  ;;  %v865_v7 = vadd.f32 %v2713_v57, %v864_v3  ;;  %v1065_v8 = vadd.f32 %v2713_v57, %v1064_v4 }
 0x153   :  { %v866_v9 = vpop.f32.mrf.mxu0  ;;  %v1066_v10 = vpop.f32.mrf.mxu1 }
 0x154   :  { %1703 = vst.msk [vmem:[%s3223_s3 + $0x4c] sm:$0xf] %vm1683_vm0, %v2024_v5  ;;  %1753 = vst.msk [vmem:[%s3223_s3 + $0x114] sm:$0xf] %vm1683_vm0, %v2074_v6  ;;  %v1203_v11 = vmax.f32 %v865_v7, 0.0  ;;  %v1253_v12 = vmax.f32 %v1065_v8, 0.0 }
 0x155   :  { %v867_v13 = vpop.f32.mrf.mxu0  ;;  %v1067_v14 = vpop.f32.mrf.mxu1 }
 0x156   :  { %v2025_v15 = vpack.c.bf16 %v1203_v11, %v1203_v11  ;;  %v2075_v16 = vpack.c.bf16 %v1253_v12, %v1253_v12  ;;  %v868_v17 = vadd.f32 %v2713_v57, %v867_v13  ;;  %v1068_v18 = vadd.f32 %v2713_v57, %v1067_v14 }
 0x157   :  { %v869_v19 = vpop.f32.mrf.mxu0  ;;  %v1069_v20 = vpop.f32.mrf.mxu1 }
 0x158   :  { %1704 = vst.msk [vmem:[%s3223_s3 + $0x50] sm:$0xf] %vm1683_vm0, %v2025_v15  ;;  %1754 = vst.msk [vmem:[%s3223_s3 + $0x118] sm:$0xf] %vm1683_vm0, %v2075_v16  ;;  %v1204_v21 = vmax.f32 %v868_v17, 0.0  ;;  %v1254_v22 = vmax.f32 %v1068_v18, 0.0 }
 0x159   :  { %v872_v23 = vpop.f32.mrf.mxu0  ;;  %v1072_v24 = vpop.f32.mrf.mxu1 }
 0x15a   :  { %v2026_v25 = vpack.c.bf16 %v1204_v21, %v1204_v21  ;;  %v2076_v26 = vpack.c.bf16 %v1254_v22, %v1254_v22  ;;  %v873_v27 = vadd.f32 %v2713_v57, %v872_v23  ;;  %v1073_v28 = vadd.f32 %v2713_v57, %v1072_v24 }
 0x15b   :  { %v874_v29 = vpop.f32.mrf.mxu0  ;;  %v1074_v30 = vpop.f32.mrf.mxu1 }
 0x15c   :  { %1705 = vst.msk [vmem:[%s3223_s3 + $0x54] sm:$0xf] %vm1683_vm0, %v2026_v25  ;;  %1755 = vst.msk [vmem:[%s3223_s3 + $0x11c] sm:$0xf] %vm1683_vm0, %v2076_v26  ;;  %v1205_v31 = vmax.f32 %v873_v27, 0.0  ;;  %v1255_v32 = vmax.f32 %v1073_v28, 0.0 }
 0x15d   :  { %v875_v33 = vpop.f32.mrf.mxu0  ;;  %v1075_v34 = vpop.f32.mrf.mxu1 }
 0x15e   :  { %v2027_v35 = vpack.c.bf16 %v1205_v31, %v1205_v31  ;;  %v2077_v36 = vpack.c.bf16 %v1255_v32, %v1255_v32  ;;  %v876_v37 = vadd.f32 %v2713_v57, %v875_v33  ;;  %v1076_v38 = vadd.f32 %v2713_v57, %v1075_v34 }
 0x15f   :  { %v877_v39 = vpop.f32.mrf.mxu0  ;;  %v1077_v40 = vpop.f32.mrf.mxu1 }
 0x160   :  { %1706 = vst.msk [vmem:[%s3223_s3 + $0x58] sm:$0xf] %vm1683_vm0, %v2027_v35  ;;  %1756 = vst.msk [vmem:[%s3223_s3 + $0x120] sm:$0xf] %vm1683_vm0, %v2077_v36  ;;  %v1206_v41 = vmax.f32 %v876_v37, 0.0  ;;  %v1256_v42 = vmax.f32 %v1076_v38, 0.0 }
 0x161   :  { %v880_v43 = vpop.f32.mrf.mxu0  ;;  %v1080_v44 = vpop.f32.mrf.mxu1 }
 0x162   :  { %v2028_v45 = vpack.c.bf16 %v1206_v41, %v1206_v41  ;;  %v2078_v46 = vpack.c.bf16 %v1256_v42, %v1256_v42  ;;  %v881_v47 = vadd.f32 %v2713_v57, %v880_v43  ;;  %v1081_v48 = vadd.f32 %v2713_v57, %v1080_v44 }
 0x163   :  { %v882_v49 = vpop.f32.mrf.mxu0  ;;  %v1082_v50 = vpop.f32.mrf.mxu1 }
 0x164   :  { %1707 = vst.msk [vmem:[%s3223_s3 + $0x5c] sm:$0xf] %vm1683_vm0, %v2028_v45  ;;  %1757 = vst.msk [vmem:[%s3223_s3 + $0x124] sm:$0xf] %vm1683_vm0, %v2078_v46  ;;  %v1207_v51 = vmax.f32 %v881_v47, 0.0  ;;  %v1257_v52 = vmax.f32 %v1081_v48, 0.0 }
 0x165   :  { %v883_v53 = vpop.f32.mrf.mxu0  ;;  %v1083_v54 = vpop.f32.mrf.mxu1 }
 0x166   :  { %v2029_v55 = vpack.c.bf16 %v1207_v51, %v1207_v51  ;;  %v2079_v56 = vpack.c.bf16 %v1257_v52, %v1257_v52  ;;  %v884_v58 = vadd.f32 %v2713_v57, %v883_v53  ;;  %v1084_v59 = vadd.f32 %v2713_v57, %v1083_v54 }
 0x167   :  { %v885_v60 = vpop.f32.mrf.mxu0  ;;  %v1085_v61 = vpop.f32.mrf.mxu1 }
 0x168   :  { %1708 = vst.msk [vmem:[%s3223_s3 + $0x60] sm:$0xf] %vm1683_vm0, %v2029_v55  ;;  %1758 = vst.msk [vmem:[%s3223_s3 + $0x128] sm:$0xf] %vm1683_vm0, %v2079_v56  ;;  %v1208_v62 = vmax.f32 %v884_v58, 0.0  ;;  %v1258_v63 = vmax.f32 %v1084_v59, 0.0 }
 0x169   :  { %v888_v0 = vpop.f32.mrf.mxu0  ;;  %v1088_v1 = vpop.f32.mrf.mxu1 }
 0x16a   :  { %v2030_v2 = vpack.c.bf16 %v1208_v62, %v1208_v62  ;;  %v2080_v3 = vpack.c.bf16 %v1258_v63, %v1258_v63  ;;  %v889_v4 = vadd.f32 %v2713_v57, %v888_v0  ;;  %v1089_v5 = vadd.f32 %v2713_v57, %v1088_v1 }
 0x16b   :  { %v890_v6 = vpop.f32.mrf.mxu0  ;;  %v1090_v7 = vpop.f32.mrf.mxu1 }
 0x16c   :  { %1709 = vst.msk [vmem:[%s3223_s3 + $0x64] sm:$0xf] %vm1683_vm0, %v2030_v2  ;;  %1759 = vst.msk [vmem:[%s3223_s3 + $0x12c] sm:$0xf] %vm1683_vm0, %v2080_v3  ;;  %v1209_v8 = vmax.f32 %v889_v4, 0.0  ;;  %v1259_v9 = vmax.f32 %v1089_v5, 0.0 }
 0x16d   :  { %v891_v10 = vpop.f32.mrf.mxu0  ;;  %v1091_v11 = vpop.f32.mrf.mxu1 }
 0x16e   :  { %v2031_v12 = vpack.c.bf16 %v1209_v8, %v1209_v8  ;;  %v2081_v13 = vpack.c.bf16 %v1259_v9, %v1259_v9  ;;  %v892_v14 = vadd.f32 %v2713_v57, %v891_v10  ;;  %v1092_v15 = vadd.f32 %v2713_v57, %v1091_v11 }
 0x16f   :  { %v893_v16 = vpop.f32.mrf.mxu0  ;;  %v1093_v17 = vpop.f32.mrf.mxu1 }
 0x170   :  { %1710 = vst.msk [vmem:[%s3223_s3 + $0x68] sm:$0xf] %vm1683_vm0, %v2031_v12  ;;  %1760 = vst.msk [vmem:[%s3223_s3 + $0x130] sm:$0xf] %vm1683_vm0, %v2081_v13  ;;  %v1210_v18 = vmax.f32 %v892_v14, 0.0  ;;  %v1260_v19 = vmax.f32 %v1092_v15, 0.0 }
 0x171   :  { %v896_v20 = vpop.f32.mrf.mxu0  ;;  %v1096_v21 = vpop.f32.mrf.mxu1 }
 0x172   :  { %v2032_v22 = vpack.c.bf16 %v1210_v18, %v1210_v18  ;;  %v2082_v23 = vpack.c.bf16 %v1260_v19, %v1260_v19  ;;  %v897_v24 = vadd.f32 %v2713_v57, %v896_v20  ;;  %v1097_v25 = vadd.f32 %v2713_v57, %v1096_v21 }
 0x173   :  { %v898_v26 = vpop.f32.mrf.mxu0  ;;  %v1098_v27 = vpop.f32.mrf.mxu1 }
 0x174   :  { %1711 = vst.msk [vmem:[%s3223_s3 + $0x6c] sm:$0xf] %vm1683_vm0, %v2032_v22  ;;  %1761 = vst.msk [vmem:[%s3223_s3 + $0x134] sm:$0xf] %vm1683_vm0, %v2082_v23  ;;  %v1211_v28 = vmax.f32 %v897_v24, 0.0  ;;  %v1261_v29 = vmax.f32 %v1097_v25, 0.0 }
 0x175   :  { %v899_v30 = vpop.f32.mrf.mxu0  ;;  %v1099_v31 = vpop.f32.mrf.mxu1 }
 0x176   :  { %v2033_v32 = vpack.c.bf16 %v1211_v28, %v1211_v28  ;;  %v2083_v33 = vpack.c.bf16 %v1261_v29, %v1261_v29  ;;  %v900_v34 = vadd.f32 %v2713_v57, %v899_v30  ;;  %v1100_v35 = vadd.f32 %v2713_v57, %v1099_v31 }
 0x177   :  { %v901_v36 = vpop.f32.mrf.mxu0  ;;  %v1101_v37 = vpop.f32.mrf.mxu1 }
 0x178   :  { %1712 = vst.msk [vmem:[%s3223_s3 + $0x70] sm:$0xf] %vm1683_vm0, %v2033_v32  ;;  %1762 = vst.msk [vmem:[%s3223_s3 + $0x138] sm:$0xf] %vm1683_vm0, %v2083_v33  ;;  %v1212_v38 = vmax.f32 %v900_v34, 0.0  ;;  %v1262_v39 = vmax.f32 %v1100_v35, 0.0 }
 0x179   :  { %v904_v40 = vpop.f32.mrf.mxu0  ;;  %v1104_v41 = vpop.f32.mrf.mxu1 }
 0x17a   :  { %v2034_v42 = vpack.c.bf16 %v1212_v38, %v1212_v38  ;;  %v2084_v43 = vpack.c.bf16 %v1262_v39, %v1262_v39  ;;  %v905_v44 = vadd.f32 %v2713_v57, %v904_v40  ;;  %v1105_v45 = vadd.f32 %v2713_v57, %v1104_v41 }
 0x17b   :  { %v906_v46 = vpop.f32.mrf.mxu0  ;;  %v1106_v47 = vpop.f32.mrf.mxu1 }
 0x17c   :  { %1713 = vst.msk [vmem:[%s3223_s3 + $0x74] sm:$0xf] %vm1683_vm0, %v2034_v42  ;;  %1763 = vst.msk [vmem:[%s3223_s3 + $0x13c] sm:$0xf] %vm1683_vm0, %v2084_v43  ;;  %v1213_v48 = vmax.f32 %v905_v44, 0.0  ;;  %v1263_v49 = vmax.f32 %v1105_v45, 0.0 }
 0x17d   :  { %v907_v50 = vpop.f32.mrf.mxu0  ;;  %v1107_v51 = vpop.f32.mrf.mxu1 }
 0x17e   :  { %v2035_v52 = vpack.c.bf16 %v1213_v48, %v1213_v48  ;;  %v2085_v53 = vpack.c.bf16 %v1263_v49, %v1263_v49  ;;  %v908_v54 = vadd.f32 %v2713_v57, %v907_v50  ;;  %v1108_v55 = vadd.f32 %v2713_v57, %v1107_v51 }
 0x17f   :  { %v909_v56 = vpop.f32.mrf.mxu0  ;;  %v1109_v58 = vpop.f32.mrf.mxu1 }
 0x180   :  { %1714 = vst.msk [vmem:[%s3223_s3 + $0x78] sm:$0xf] %vm1683_vm0, %v2035_v52  ;;  %1764 = vst.msk [vmem:[%s3223_s3 + $0x140] sm:$0xf] %vm1683_vm0, %v2085_v53  ;;  %v1214_v59 = vmax.f32 %v908_v54, 0.0  ;;  %v1264_v60 = vmax.f32 %v1108_v55, 0.0 }
 0x181   :  { %v912_v61 = vpop.f32.mrf.mxu0  ;;  %v1112_v62 = vpop.f32.mrf.mxu1 }
 0x182   :  { %v2036_v63 = vpack.c.bf16 %v1214_v59, %v1214_v59  ;;  %v2086_v0 = vpack.c.bf16 %v1264_v60, %v1264_v60  ;;  %v913_v1 = vadd.f32 %v2713_v57, %v912_v61  ;;  %v1113_v2 = vadd.f32 %v2713_v57, %v1112_v62 }
 0x183   :  { %v914_v3 = vpop.f32.mrf.mxu0  ;;  %v1114_v4 = vpop.f32.mrf.mxu1 }
 0x184   :  { %1715 = vst.msk [vmem:[%s3223_s3 + $0x7c] sm:$0xf] %vm1683_vm0, %v2036_v63  ;;  %1765 = vst.msk [vmem:[%s3223_s3 + $0x144] sm:$0xf] %vm1683_vm0, %v2086_v0  ;;  %v1215_v5 = vmax.f32 %v913_v1, 0.0  ;;  %v1265_v6 = vmax.f32 %v1113_v2, 0.0 }
 0x185   :  { %v915_v7 = vpop.f32.mrf.mxu0  ;;  %v1115_v8 = vpop.f32.mrf.mxu1 }
 0x186   :  { %v2037_v9 = vpack.c.bf16 %v1215_v5, %v1215_v5  ;;  %v2087_v10 = vpack.c.bf16 %v1265_v6, %v1265_v6  ;;  %v916_v11 = vadd.f32 %v2713_v57, %v915_v7  ;;  %v1116_v12 = vadd.f32 %v2713_v57, %v1115_v8 }
 0x187   :  { %v917_v13 = vpop.f32.mrf.mxu0  ;;  %v1117_v14 = vpop.f32.mrf.mxu1 }
 0x188   :  { %1716 = vst.msk [vmem:[%s3223_s3 + $0x80] sm:$0xf] %vm1683_vm0, %v2037_v9  ;;  %1766 = vst.msk [vmem:[%s3223_s3 + $0x148] sm:$0xf] %vm1683_vm0, %v2087_v10  ;;  %v1216_v15 = vmax.f32 %v916_v11, 0.0  ;;  %v1266_v16 = vmax.f32 %v1116_v12, 0.0 }
 0x189   :  { %v920_v17 = vpop.f32.mrf.mxu0  ;;  %v1120_v18 = vpop.f32.mrf.mxu1 }
 0x18a   :  { %v2038_v19 = vpack.c.bf16 %v1216_v15, %v1216_v15  ;;  %v2088_v20 = vpack.c.bf16 %v1266_v16, %v1266_v16  ;;  %v921_v21 = vadd.f32 %v2713_v57, %v920_v17  ;;  %v1121_v22 = vadd.f32 %v2713_v57, %v1120_v18 }
 0x18b   :  { %v922_v23 = vpop.f32.mrf.mxu0  ;;  %v1122_v24 = vpop.f32.mrf.mxu1 }
 0x18c   :  { %1717 = vst.msk [vmem:[%s3223_s3 + $0x84] sm:$0xf] %vm1683_vm0, %v2038_v19  ;;  %1767 = vst.msk [vmem:[%s3223_s3 + $0x14c] sm:$0xf] %vm1683_vm0, %v2088_v20  ;;  %v1217_v25 = vmax.f32 %v921_v21, 0.0  ;;  %v1267_v26 = vmax.f32 %v1121_v22, 0.0 }
 0x18d   :  { %v923_v27 = vpop.f32.mrf.mxu0  ;;  %v1123_v28 = vpop.f32.mrf.mxu1 }
 0x18e   :  { %v2039_v29 = vpack.c.bf16 %v1217_v25, %v1217_v25  ;;  %v2089_v30 = vpack.c.bf16 %v1267_v26, %v1267_v26  ;;  %v924_v31 = vadd.f32 %v2713_v57, %v923_v27  ;;  %v1124_v32 = vadd.f32 %v2713_v57, %v1123_v28 }
 0x18f   :  { %v925_v33 = vpop.f32.mrf.mxu0  ;;  %v1125_v34 = vpop.f32.mrf.mxu1 }
 0x190   :  { %1718 = vst.msk [vmem:[%s3223_s3 + $0x88] sm:$0xf] %vm1683_vm0, %v2039_v29  ;;  %1768 = vst.msk [vmem:[%s3223_s3 + $0x150] sm:$0xf] %vm1683_vm0, %v2089_v30  ;;  %v1218_v35 = vmax.f32 %v924_v31, 0.0  ;;  %v1268_v36 = vmax.f32 %v1124_v32, 0.0 }
 0x191   :  { %v928_v37 = vpop.f32.mrf.mxu0  ;;  %v1128_v38 = vpop.f32.mrf.mxu1 }
 0x192   :  { %v2040_v39 = vpack.c.bf16 %v1218_v35, %v1218_v35  ;;  %v2090_v40 = vpack.c.bf16 %v1268_v36, %v1268_v36  ;;  %v929_v41 = vadd.f32 %v2713_v57, %v928_v37  ;;  %v1129_v42 = vadd.f32 %v2713_v57, %v1128_v38 }
 0x193   :  { %v930_v43 = vpop.f32.mrf.mxu0  ;;  %v1130_v44 = vpop.f32.mrf.mxu1 }
 0x194   :  { %1719 = vst.msk [vmem:[%s3223_s3 + $0x8c] sm:$0xf] %vm1683_vm0, %v2040_v39  ;;  %1769 = vst.msk [vmem:[%s3223_s3 + $0x154] sm:$0xf] %vm1683_vm0, %v2090_v40  ;;  %v1219_v45 = vmax.f32 %v929_v41, 0.0  ;;  %v1269_v46 = vmax.f32 %v1129_v42, 0.0 }
 0x195   :  { %v931_v47 = vpop.f32.mrf.mxu0  ;;  %v1131_v48 = vpop.f32.mrf.mxu1 }
 0x196   :  { %v2041_v49 = vpack.c.bf16 %v1219_v45, %v1219_v45  ;;  %v2091_v50 = vpack.c.bf16 %v1269_v46, %v1269_v46  ;;  %v932_v51 = vadd.f32 %v2713_v57, %v931_v47  ;;  %v1132_v52 = vadd.f32 %v2713_v57, %v1131_v48 }
 0x197   :  { %v933_v53 = vpop.f32.mrf.mxu0  ;;  %v1133_v54 = vpop.f32.mrf.mxu1 }
 0x198   :  { %1720 = vst.msk [vmem:[%s3223_s3 + $0x90] sm:$0xf] %vm1683_vm0, %v2041_v49  ;;  %1770 = vst.msk [vmem:[%s3223_s3 + $0x158] sm:$0xf] %vm1683_vm0, %v2091_v50  ;;  %v1220_v55 = vmax.f32 %v932_v51, 0.0  ;;  %v1270_v56 = vmax.f32 %v1132_v52, 0.0 }
 0x199   :  { %v936_v58 = vpop.f32.mrf.mxu0  ;;  %v1136_v59 = vpop.f32.mrf.mxu1 }
 0x19a   :  { %v2042_v60 = vpack.c.bf16 %v1220_v55, %v1220_v55  ;;  %v2092_v61 = vpack.c.bf16 %v1270_v56, %v1270_v56  ;;  %v937_v62 = vadd.f32 %v2713_v57, %v936_v58  ;;  %v1137_v63 = vadd.f32 %v2713_v57, %v1136_v59 }
 0x19b   :  { %v938_v0 = vpop.f32.mrf.mxu0  ;;  %v1138_v1 = vpop.f32.mrf.mxu1 }
 0x19c   :  { %1721 = vst.msk [vmem:[%s3223_s3 + $0x94] sm:$0xf] %vm1683_vm0, %v2042_v60  ;;  %1771 = vst.msk [vmem:[%s3223_s3 + $0x15c] sm:$0xf] %vm1683_vm0, %v2092_v61  ;;  %v1221_v2 = vmax.f32 %v937_v62, 0.0  ;;  %v1271_v3 = vmax.f32 %v1137_v63, 0.0 }
 0x19d   :  { %v939_v4 = vpop.f32.mrf.mxu0  ;;  %v1139_v5 = vpop.f32.mrf.mxu1 }
 0x19e   :  { %v2043_v6 = vpack.c.bf16 %v1221_v2, %v1221_v2  ;;  %v2093_v7 = vpack.c.bf16 %v1271_v3, %v1271_v3  ;;  %v940_v8 = vadd.f32 %v2713_v57, %v939_v4  ;;  %v1140_v9 = vadd.f32 %v2713_v57, %v1139_v5 }
 0x19f   :  { %v941_v10 = vpop.f32.mrf.mxu0  ;;  %v1141_v11 = vpop.f32.mrf.mxu1 }
 0x1a0   :  { %1722 = vst.msk [vmem:[%s3223_s3 + $0x98] sm:$0xf] %vm1683_vm0, %v2043_v6  ;;  %1772 = vst.msk [vmem:[%s3223_s3 + $0x160] sm:$0xf] %vm1683_vm0, %v2093_v7  ;;  %v1222_v12 = vmax.f32 %v940_v8, 0.0  ;;  %v1272_v13 = vmax.f32 %v1140_v9, 0.0 }
 0x1a1   :  { %v944_v14 = vpop.f32.mrf.mxu0  ;;  %v1144_v15 = vpop.f32.mrf.mxu1 }
 0x1a2   :  { %v2044_v16 = vpack.c.bf16 %v1222_v12, %v1222_v12  ;;  %v2094_v17 = vpack.c.bf16 %v1272_v13, %v1272_v13  ;;  %v945_v18 = vadd.f32 %v2713_v57, %v944_v14  ;;  %v1145_v19 = vadd.f32 %v2713_v57, %v1144_v15 }
 0x1a3   :  { %v946_v20 = vpop.f32.mrf.mxu0  ;;  %v1146_v21 = vpop.f32.mrf.mxu1 }
 0x1a4   :  { %1723 = vst.msk [vmem:[%s3223_s3 + $0x9c] sm:$0xf] %vm1683_vm0, %v2044_v16  ;;  %1773 = vst.msk [vmem:[%s3223_s3 + $0x164] sm:$0xf] %vm1683_vm0, %v2094_v17  ;;  %v1223_v22 = vmax.f32 %v945_v18, 0.0  ;;  %v1273_v23 = vmax.f32 %v1145_v19, 0.0 }
 0x1a5   :  { %v947_v24 = vpop.f32.mrf.mxu0  ;;  %v1147_v25 = vpop.f32.mrf.mxu1 }
 0x1a6   :  { %v2045_v26 = vpack.c.bf16 %v1223_v22, %v1223_v22  ;;  %v2095_v27 = vpack.c.bf16 %v1273_v23, %v1273_v23  ;;  %v948_v28 = vadd.f32 %v2713_v57, %v947_v24  ;;  %v1148_v29 = vadd.f32 %v2713_v57, %v1147_v25 }
 0x1a7   :  { %v949_v30 = vpop.f32.mrf.mxu0  ;;  %v1149_v31 = vpop.f32.mrf.mxu1 }
 0x1a8   :  { %1724 = vst.msk [vmem:[%s3223_s3 + $0xa0] sm:$0xf] %vm1683_vm0, %v2045_v26  ;;  %1774 = vst.msk [vmem:[%s3223_s3 + $0x168] sm:$0xf] %vm1683_vm0, %v2095_v27  ;;  %v1224_v32 = vmax.f32 %v948_v28, 0.0  ;;  %v1274_v33 = vmax.f32 %v1148_v29, 0.0 }
 0x1a9   :  { %v952_v34 = vpop.f32.mrf.mxu0  ;;  %v1152_v35 = vpop.f32.mrf.mxu1 }
 0x1aa   :  { %v2046_v36 = vpack.c.bf16 %v1224_v32, %v1224_v32  ;;  %v2096_v37 = vpack.c.bf16 %v1274_v33, %v1274_v33  ;;  %v953_v38 = vadd.f32 %v2713_v57, %v952_v34  ;;  %v1153_v39 = vadd.f32 %v2713_v57, %v1152_v35  ;;  %v3140_v57 = vld [vmem:[%s3222_s2] ss:$0 sm:$0xff] }
 0x1ab   :  { %v954_v40 = vpop.f32.mrf.mxu0  ;;  %v1154_v41 = vpop.f32.mrf.mxu1 }
 0x1ac   :  { %1725 = vst.msk [vmem:[%s3223_s3 + $0xa4] sm:$0xf] %vm1683_vm0, %v2046_v36  ;;  %1775 = vst.msk [vmem:[%s3223_s3 + $0x16c] sm:$0xf] %vm1683_vm0, %v2096_v37  ;;  %v1225_v42 = vmax.f32 %v953_v38, 0.0  ;;  %v1275_v43 = vmax.f32 %v1153_v39, 0.0 }
 0x1ad   :  { %v955_v44 = vpop.f32.mrf.mxu0  ;;  %v1155_v45 = vpop.f32.mrf.mxu1 }
 0x1ae   :  { %v2047_v46 = vpack.c.bf16 %v1225_v42, %v1225_v42  ;;  %v2097_v47 = vpack.c.bf16 %v1275_v43, %v1275_v43  ;;  %v956_v48 = vadd.f32 %v3140_v57, %v955_v44  ;;  %v1156_v49 = vadd.f32 %v3140_v57, %v1155_v45 }
 0x1af   :  { %v957_v50 = vpop.f32.mrf.mxu0  ;;  %v1157_v51 = vpop.f32.mrf.mxu1 }
 0x1b0   :  { %1726 = vst.msk [vmem:[%s3223_s3 + $0xa8] sm:$0xf] %vm1683_vm0, %v2047_v46  ;;  %1776 = vst.msk [vmem:[%s3223_s3 + $0x170] sm:$0xf] %vm1683_vm0, %v2097_v47  ;;  %v1226_v52 = vmax.f32 %v956_v48, 0.0  ;;  %v1276_v53 = vmax.f32 %v1156_v49, 0.0 }
 0x1b1   :  { %v960_v54 = vpop.f32.mrf.mxu0  ;;  %v1160_v55 = vpop.f32.mrf.mxu1 }
 0x1b2   :  { %v2048_v56 = vpack.c.bf16 %v1226_v52, %v1226_v52  ;;  %v2098_v58 = vpack.c.bf16 %v1276_v53, %v1276_v53  ;;  %v961_v59 = vadd.f32 %v3140_v57, %v960_v54  ;;  %v1161_v60 = vadd.f32 %v3140_v57, %v1160_v55 }
 0x1b3   :  { %v962_v61 = vpop.f32.mrf.mxu0  ;;  %v1162_v62 = vpop.f32.mrf.mxu1 }
 0x1b4   :  { %1727 = vst.msk [vmem:[%s3223_s3 + $0xac] sm:$0xf] %vm1683_vm0, %v2048_v56  ;;  %1777 = vst.msk [vmem:[%s3223_s3 + $0x174] sm:$0xf] %vm1683_vm0, %v2098_v58  ;;  %v1227_v63 = vmax.f32 %v961_v59, 0.0  ;;  %v1277_v0 = vmax.f32 %v1161_v60, 0.0 }
 0x1b5   :  { %v963_v1 = vpop.f32.mrf.mxu0  ;;  %v1163_v2 = vpop.f32.mrf.mxu1 }
 0x1b6   :  { %v2049_v3 = vpack.c.bf16 %v1227_v63, %v1227_v63  ;;  %v2099_v4 = vpack.c.bf16 %v1277_v0, %v1277_v0  ;;  %v964_v5 = vadd.f32 %v3140_v57, %v963_v1  ;;  %v1164_v6 = vadd.f32 %v3140_v57, %v1163_v2 }
 0x1b7   :  { %v965_v7 = vpop.f32.mrf.mxu0  ;;  %v1165_v8 = vpop.f32.mrf.mxu1 }
 0x1b8   :  { %1728 = vst.msk [vmem:[%s3223_s3 + $0xb0] sm:$0xf] %vm1683_vm0, %v2049_v3  ;;  %1778 = vst.msk [vmem:[%s3223_s3 + $0x178] sm:$0xf] %vm1683_vm0, %v2099_v4  ;;  %v1228_v9 = vmax.f32 %v964_v5, 0.0  ;;  %v1278_v10 = vmax.f32 %v1164_v6, 0.0 }
 0x1b9   :  { %v968_v11 = vpop.f32.mrf.mxu0  ;;  %v1168_v12 = vpop.f32.mrf.mxu1 }
 0x1ba   :  { %v2050_v13 = vpack.c.bf16 %v1228_v9, %v1228_v9  ;;  %v2100_v14 = vpack.c.bf16 %v1278_v10, %v1278_v10  ;;  %v969_v15 = vadd.f32 %v3140_v57, %v968_v11  ;;  %v1169_v16 = vadd.f32 %v3140_v57, %v1168_v12 }
 0x1bb   :  { %v970_v17 = vpop.f32.mrf.mxu0  ;;  %v1170_v18 = vpop.f32.mrf.mxu1 }
 0x1bc   :  { %1729 = vst.msk [vmem:[%s3223_s3 + $0xb4] sm:$0xf] %vm1683_vm0, %v2050_v13  ;;  %1779 = vst.msk [vmem:[%s3223_s3 + $0x17c] sm:$0xf] %vm1683_vm0, %v2100_v14  ;;  %v1229_v19 = vmax.f32 %v969_v15, 0.0  ;;  %v1279_v20 = vmax.f32 %v1169_v16, 0.0 }
 0x1bd   :  { %v971_v21 = vpop.f32.mrf.mxu0  ;;  %v1171_v22 = vpop.f32.mrf.mxu1 }
 0x1be   :  { %v2051_v23 = vpack.c.bf16 %v1229_v19, %v1229_v19  ;;  %v2101_v24 = vpack.c.bf16 %v1279_v20, %v1279_v20  ;;  %v972_v25 = vadd.f32 %v3140_v57, %v971_v21  ;;  %v1172_v26 = vadd.f32 %v3140_v57, %v1171_v22 }
 0x1bf   :  { %v973_v27 = vpop.f32.mrf.mxu0  ;;  %v1173_v28 = vpop.f32.mrf.mxu1 }
 0x1c0   :  { %1730 = vst.msk [vmem:[%s3223_s3 + $0xb8] sm:$0xf] %vm1683_vm0, %v2051_v23  ;;  %1780 = vst.msk [vmem:[%s3223_s3 + $0x180] sm:$0xf] %vm1683_vm0, %v2101_v24  ;;  %v1230_v29 = vmax.f32 %v972_v25, 0.0  ;;  %v1280_v30 = vmax.f32 %v1172_v26, 0.0 }
 0x1c1   :  { %v976_v31 = vpop.f32.mrf.mxu0  ;;  %v1176_v32 = vpop.f32.mrf.mxu1 }
 0x1c2   :  { %v2052_v33 = vpack.c.bf16 %v1230_v29, %v1230_v29  ;;  %v2102_v34 = vpack.c.bf16 %v1280_v30, %v1280_v30  ;;  %v977_v35 = vadd.f32 %v3140_v57, %v976_v31  ;;  %v1177_v36 = vadd.f32 %v3140_v57, %v1176_v32 }
 0x1c3   :  { %v978_v37 = vpop.f32.mrf.mxu0  ;;  %v1178_v38 = vpop.f32.mrf.mxu1 }
 0x1c4   :  { %1731 = vst.msk [vmem:[%s3223_s3 + $0xbc] sm:$0xf] %vm1683_vm0, %v2052_v33  ;;  %1781 = vst.msk [vmem:[%s3223_s3 + $0x184] sm:$0xf] %vm1683_vm0, %v2102_v34  ;;  %v1231_v39 = vmax.f32 %v977_v35, 0.0  ;;  %v1281_v40 = vmax.f32 %v1177_v36, 0.0 }
 0x1c5   :  { %v979_v41 = vpop.f32.mrf.mxu0  ;;  %v1179_v42 = vpop.f32.mrf.mxu1 }
 0x1c6   :  { %v2053_v43 = vpack.c.bf16 %v1231_v39, %v1231_v39  ;;  %v2103_v44 = vpack.c.bf16 %v1281_v40, %v1281_v40  ;;  %v980_v45 = vadd.f32 %v3140_v57, %v979_v41  ;;  %v1180_v46 = vadd.f32 %v3140_v57, %v1179_v42 }
 0x1c7   :  { %v981_v47 = vpop.f32.mrf.mxu0  ;;  %v1181_v48 = vpop.f32.mrf.mxu1 }
 0x1c8   :  { %1732 = vst.msk [vmem:[%s3223_s3 + $0xc0] sm:$0xf] %vm1683_vm0, %v2053_v43  ;;  %1782 = vst.msk [vmem:[%s3223_s3 + $0x188] sm:$0xf] %vm1683_vm0, %v2103_v44  ;;  %v1232_v49 = vmax.f32 %v980_v45, 0.0  ;;  %v1282_v50 = vmax.f32 %v1180_v46, 0.0 }
 0x1ca   :  { %v2054_v51 = vpack.c.bf16 %v1232_v49, %v1232_v49  ;;  %v2104_v52 = vpack.c.bf16 %v1282_v50, %v1282_v50 }
 0x1cc   :  { %1733 = vst.msk [vmem:[%s3223_s3 + $0xc4] sm:$0xf] %vm1683_vm0, %v2054_v51  ;;  %1783 = vst.msk [vmem:[%s3223_s3 + $0x18c] sm:$0xf] %vm1683_vm0, %v2104_v52 }

// kernel: actor_forward.4
= control target key start
LH: loop header
LB: loop body
LE: loop exit
PB: predicated region body
PF: predicated region fallthrough
CT: control target
= control target key end

     0   :  { %vm880_vm0 = vcmask 519168   ;;  %vm901_vm1 = vcmask 516096   ;;  %s1637_s1 = inlined_call_operand.vmem [shape: bf16[512,64], index: 1, kind: input, shape index: {}]   ;;  %s1638_s0 = inlined_call_operand.vmem [shape: bf16[162,512], index: 0, kind: input, shape index: {}]   ;;  %s1639_s2 = inlined_call_operand.vmem [shape: f32[1,64], index: 2, kind: input, shape index: {}]   ;;  %s1640_s3 = inlined_call_operand.vmem [shape: bf16[162,64], index: 3, kind: output, shape index: {}]  }
   0x1   :  { %v1190_v0 = vld [vmem:[%s1637_s1 + $0x78] sm:$0xff]   ;;  %v1194_v4 = vld [vmem:[%s1637_s1 + $0x70] sm:$0xff]   ;;  %v1198_v8 = vld [vmem:[%s1637_s1 + $0x68] sm:$0xff]  }
   0x2   :  { %v1191_v1 = vld [vmem:[%s1637_s1 + $0xf8] sm:$0xff]   ;;  %1026 = vmatprep.subr.bf16.mxu0 %v1190_v0  ;;  %v1195_v5 = vld [vmem:[%s1637_s1 + $0xf0] sm:$0xff]   ;;  %v1199_v9 = vld [vmem:[%s1637_s1 + $0xe8] sm:$0xff]  }
   0x3   :  { %v1192_v2 = vld [vmem:[%s1637_s1 + $0x38] sm:$0xff]   ;;  %1108 = vmatprep.subr.bf16.mxu1 %v1191_v1  ;;  %v1196_v6 = vld [vmem:[%s1637_s1 + $0x30] sm:$0xff]   ;;  %v1200_v10 = vld [vmem:[%s1637_s1 + $0x28] sm:$0xff]  }
   0x4   :  { %v1193_v3 = vld [vmem:[%s1637_s1 + $0xb8] sm:$0xff]   ;;  %1027 = vmatpush3.bf16.msra.mxu0 %v1192_v2  ;;  %v1197_v7 = vld [vmem:[%s1637_s1 + $0xb0] sm:$0xff]   ;;  %v1201_v11 = vld [vmem:[%s1637_s1 + $0xa8] sm:$0xff]  }
   0x5   :  { %1109 = vmatpush3.bf16.msra.mxu1 %v1193_v3  ;;  %1028 = vmatprep.subr.bf16.mxu0 %v1194_v4  ;;  %v1202_v12 = vld [vmem:[%s1637_s1 + $0x60] sm:$0xff]   ;;  %v1206_v16 = vld [vmem:[%s1637_s1 + $0x58] sm:$0xff]   ;;  %v1210_v20 = vld [vmem:[%s1637_s1 + $0x50] sm:$0xff]  }
   0x6   :  { %1110 = vmatprep.subr.bf16.mxu1 %v1195_v5  ;;  %v1203_v13 = vld [vmem:[%s1637_s1 + $0xe0] sm:$0xff]   ;;  %v1207_v17 = vld [vmem:[%s1637_s1 + $0xd8] sm:$0xff]   ;;  %v1211_v21 = vld [vmem:[%s1637_s1 + $0xd0] sm:$0xff]  }
   0x7   :  { %v1204_v14 = vld [vmem:[%s1637_s1 + $0x20] sm:$0xff]   ;;  %v1208_v18 = vld [vmem:[%s1637_s1 + $0x18] sm:$0xff]   ;;  %v1212_v22 = vld [vmem:[%s1637_s1 + $0x10] sm:$0xff]  }
   0x8   :  { %1029 = vmatpush3.bf16.msra.mxu0 %v1196_v6  ;;  %v1205_v15 = vld [vmem:[%s1637_s1 + $0xa0] sm:$0xff]   ;;  %v1209_v19 = vld [vmem:[%s1637_s1 + $0x98] sm:$0xff]   ;;  %v1213_v23 = vld [vmem:[%s1637_s1 + $0x90] sm:$0xff]  }
   0x9   :  { %1111 = vmatpush3.bf16.msra.mxu1 %v1197_v7  ;;  %1030 = vmatprep.subr.bf16.mxu0 %v1198_v8  ;;  %v1214_v24 = vld [vmem:[%s1637_s1 + $0x48] sm:$0xff]   ;;  %v1218_v28 = vld [vmem:[%s1637_s1 + $0x40] sm:$0xff]  }
   0xa   :  { %1112 = vmatprep.subr.bf16.mxu1 %v1199_v9  ;;  %v1215_v25 = vld [vmem:[%s1637_s1 + $0xc8] sm:$0xff]   ;;  %v1219_v29 = vld [vmem:[%s1637_s1 + $0xc0] sm:$0xff]  }
   0xb   :  { %v1216_v26 = vld [vmem:[%s1637_s1 + $0x8] sm:$0xff]   ;;  %v1220_v30 = vld [vmem:[%s1637_s1] sm:$0xff]  }
   0xc   :  { %1031 = vmatpush3.bf16.msra.mxu0 %v1200_v10  ;;  %v1217_v27 = vld [vmem:[%s1637_s1 + $0x88] sm:$0xff]   ;;  %v1221_v31 = vld [vmem:[%s1637_s1 + $0x80] sm:$0xff]  }
   0xd   :  { %1113 = vmatpush3.bf16.msra.mxu1 %v1201_v11  ;;  %1032 = vmatprep.subr.bf16.mxu0 %v1202_v12  ;;  %v1222_v32 = vld [vmem:[%s1638_s0] ss:$16 sps:$4 sm:$0xff]   ;;  %v1224_v33 = vld [vmem:[%s1638_s0 + $0x4] ss:$16 sps:$4 sm:$0xff]   ;;  %v1225_v34 = vld [vmem:[%s1638_s0 + $0x8] ss:$16 sps:$4 sm:$0xff]  }
   0xe   :  { %1114 = vmatprep.subr.bf16.mxu1 %v1203_v13  ;;  %v1227_v35 = vld [vmem:[%s1638_s0 + $0xc] ss:$16 sps:$4 sm:$0xff]   ;;  %566 = vmatprep.mubr.bf16.mxu0 %v1224_v33  ;;  %v1228_v36 = vld [vmem:[%s1638_s0 + $0x24] ss:$16 sps:$4 sm:$0xff]   ;;  %v1232_v38 = vld [vmem:[%s1638_s0 + $0x20] ss:$16 sps:$4 sm:$0xff]  }
   0xf   :  { %686 = vmatprep.mubr.bf16.mxu1 %v1227_v35  ;;  %v1230_v37 = vld [vmem:[%s1638_s0 + $0x2c] ss:$16 sps:$4 sm:$0xff]   ;;  %v1233_v39 = vld [vmem:[%s1638_s0 + $0x28] ss:$16 sps:$4 sm:$0xff]   ;;  %v1234_v40 = vld [vmem:[%s1638_s0 + $0x44] ss:$16 sps:$4 sm:$0xff]  }
  0x10   :  { %1033 = vmatpush3.bf16.msra.mxu0 %v1204_v14  ;;  %v1236_v41 = vld [vmem:[%s1638_s0 + $0x4c] ss:$16 sps:$4 sm:$0xff]   ;;  %v1238_v42 = vld [vmem:[%s1638_s0 + $0x40] ss:$16 sps:$4 sm:$0xff]   ;;  %v1239_v43 = vld [vmem:[%s1638_s0 + $0x48] ss:$16 sps:$4 sm:$0xff]  }
  0x11   :  { %1115 = vmatpush3.bf16.msra.mxu1 %v1205_v15  ;;  %1034 = vmatprep.subr.bf16.mxu0 %v1206_v16  ;;  %v1240_v44 = vld [vmem:[%s1638_s0 + $0x64] ss:$16 sps:$4 sm:$0xff]   ;;  %v1242_v45 = vld [vmem:[%s1638_s0 + $0x6c] ss:$16 sps:$4 sm:$0xff]   ;;  %v1244_v46 = vld [vmem:[%s1638_s0 + $0x60] ss:$16 sps:$4 sm:$0xff]  }
  0x12   :  { %1116 = vmatprep.subr.bf16.mxu1 %v1207_v17  ;;  %v1245_v47 = vld [vmem:[%s1638_s0 + $0x68] ss:$16 sps:$4 sm:$0xff]   ;;  %v1246_v48 = vld [vmem:[%s1638_s0 + $0x84] ss:$16 sps:$4 sm:$0xff]   ;;  %v1248_v49 = vld [vmem:[%s1638_s0 + $0x8c] ss:$16 sps:$4 sm:$0xff]  }
  0x13   :  { %v1250_v50 = vld [vmem:[%s1638_s0 + $0x80] ss:$16 sps:$4 sm:$0xff]   ;;  %v1251_v51 = vld [vmem:[%s1638_s0 + $0x88] ss:$16 sps:$4 sm:$0xff]   ;;  %v1252_v52 = vld [vmem:[%s1638_s0 + $0xa4] ss:$16 sps:$4 sm:$0xff]  }
  0x14   :  { %1035 = vmatpush3.bf16.msra.mxu0 %v1208_v18  ;;  %v1254_v53 = vld [vmem:[%s1638_s0 + $0xac] ss:$16 sps:$4 sm:$0xff]   ;;  %v1256_v54 = vld [vmem:[%s1638_s0 + $0xa0] ss:$16 sps:$4 sm:$0xff]   ;;  %v1257_v55 = vld [vmem:[%s1638_s0 + $0xa8] ss:$16 sps:$4 sm:$0xff]  }
  0x15   :  { %1117 = vmatpush3.bf16.msra.mxu1 %v1209_v19  ;;  %1036 = vmatprep.subr.bf16.mxu0 %v1210_v20  ;;  %v1258_v56 = vld [vmem:[%s1638_s0 + $0xc4] ss:$16 sps:$4 sm:$0xff]   ;;  %v1260_v57 = vld [vmem:[%s1638_s0 + $0xcc] ss:$16 sps:$4 sm:$0xff]   ;;  %v1262_v58 = vld [vmem:[%s1638_s0 + $0xc0] ss:$16 sps:$4 sm:$0xff]  }
  0x16   :  { %1118 = vmatprep.subr.bf16.mxu1 %v1211_v21  ;;  %v1263_v59 = vld [vmem:[%s1638_s0 + $0xc8] ss:$16 sps:$4 sm:$0xff]   ;;  %v1264_v60 = vld [vmem:[%s1638_s0 + $0xe4] ss:$16 sps:$4 sm:$0xff]   ;;  %v1266_v61 = vld [vmem:[%s1638_s0 + $0xec] ss:$16 sps:$4 sm:$0xff]  }
  0x17   :  { %v1268_v62 = vld [vmem:[%s1638_s0 + $0xe0] ss:$16 sps:$4 sm:$0xff]   ;;  %v1269_v63 = vld [vmem:[%s1638_s0 + $0xe8] ss:$16 sps:$4 sm:$0xff]   ;;  %v1270_v0 = vld [vmem:[%s1638_s0 + $0x104] ss:$16 sps:$4 sm:$0xff]  }
  0x18   :  { %1037 = vmatpush3.bf16.msra.mxu0 %v1212_v22  ;;  %v1272_v1 = vld [vmem:[%s1638_s0 + $0x10c] ss:$16 sps:$4 sm:$0xff]   ;;  %v1274_v2 = vld [vmem:[%s1638_s0 + $0x100] ss:$16 sps:$4 sm:$0xff]   ;;  %v1275_v3 = vld [vmem:[%s1638_s0 + $0x108] ss:$16 sps:$4 sm:$0xff]  }
  0x19   :  { %1119 = vmatpush3.bf16.msra.mxu1 %v1213_v23  ;;  %1038 = vmatprep.subr.bf16.mxu0 %v1214_v24  ;;  %v1276_v4 = vld [vmem:[%s1638_s0 + $0x124] ss:$16 sps:$4 sm:$0xff]   ;;  %v1278_v5 = vld [vmem:[%s1638_s0 + $0x12c] ss:$16 sps:$4 sm:$0xff]   ;;  %v1280_v8 = vld [vmem:[%s1638_s0 + $0x120] ss:$16 sps:$4 sm:$0xff]  }
  0x1a   :  { %1120 = vmatprep.subr.bf16.mxu1 %v1215_v25  ;;  %v55_v6 = vld [vmem:[%s1638_s0 + $0x140] sm:$0x11]  ;;  %v56_v7 = vld [vmem:[%s1638_s0 + $0x148] sm:$0x11] }
  0x1b   :  { %v1281_v9 = vld [vmem:[%s1638_s0 + $0x128] ss:$16 sps:$4 sm:$0xff]   ;;  %v949_v10 = vcombine.high %v55_v6, %v55_v6  ;;  %v951_v11 = vcombine.high %v56_v7, %v56_v7  ;;  %v948_v12 = vcombine.low %v55_v6, %v55_v6  ;;  %v950_v13 = vcombine.low %v56_v7, %v56_v7  ;;  %v1531_v16 = vld [vmem:[%s1639_s2] ss:$0 sm:$0xff] }
  0x1c   :  { %1039 = vmatpush3.bf16.msra.mxu0 %v1216_v26 }
  0x1d   :  { %1121 = vmatpush3.bf16.msra.mxu1 %v1217_v27  ;;  %1040 = vmatprep.subr.bf16.mxu0 %v1218_v28 }
  0x1e   :  { %1122 = vmatprep.subr.bf16.mxu1 %v1219_v29 }
  0x20   :  { %1041 = vmatpush3.bf16.msra.mxu0 %v1220_v30 }
  0x21   :  { %1123 = vmatpush3.bf16.msra.mxu1 %v1221_v31 }
  0x23   :  { %567 = vmatmul.mubr.bf16.vlgmr.msra.gmra.mxu0 %v1222_v32 }
  0x24   :  { %687 = vmatmul.mubr.bf16.vlgmr.msra.gmra.mxu1 %v1225_v34  ;;  %574 = vmatprep.mubr.bf16.mxu0 %v1228_v36 }
  0x25   :  { %694 = vmatprep.mubr.bf16.mxu1 %v1230_v37 }
  0x2b   :  { %575 = vmatmul.mubr.bf16.gmra.mxu0 %v1232_v38 }
  0x2c   :  { %695 = vmatmul.mubr.bf16.gmra.mxu1 %v1233_v39  ;;  %582 = vmatprep.mubr.bf16.mxu0 %v1234_v40 }
  0x2d   :  { %702 = vmatprep.mubr.bf16.mxu1 %v1236_v41 }
  0x33   :  { %583 = vmatmul.mubr.bf16.gmra.mxu0 %v1238_v42 }
  0x34   :  { %703 = vmatmul.mubr.bf16.gmra.mxu1 %v1239_v43  ;;  %590 = vmatprep.mubr.bf16.mxu0 %v1240_v44 }
  0x35   :  { %710 = vmatprep.mubr.bf16.mxu1 %v1242_v45 }
  0x3b   :  { %591 = vmatmul.mubr.bf16.gmra.mxu0 %v1244_v46 }
  0x3c   :  { %711 = vmatmul.mubr.bf16.gmra.mxu1 %v1245_v47  ;;  %598 = vmatprep.mubr.bf16.mxu0 %v1246_v48 }
  0x3d   :  { %718 = vmatprep.mubr.bf16.mxu1 %v1248_v49 }
  0x43   :  { %599 = vmatmul.mubr.bf16.gmra.mxu0 %v1250_v50 }
  0x44   :  { %719 = vmatmul.mubr.bf16.gmra.mxu1 %v1251_v51  ;;  %606 = vmatprep.mubr.bf16.mxu0 %v1252_v52 }
  0x45   :  { %726 = vmatprep.mubr.bf16.mxu1 %v1254_v53 }
  0x4b   :  { %607 = vmatmul.mubr.bf16.gmra.mxu0 %v1256_v54 }
  0x4c   :  { %727 = vmatmul.mubr.bf16.gmra.mxu1 %v1257_v55  ;;  %614 = vmatprep.mubr.bf16.mxu0 %v1258_v56 }
  0x4d   :  { %734 = vmatprep.mubr.bf16.mxu1 %v1260_v57 }
  0x53   :  { %615 = vmatmul.mubr.bf16.gmra.mxu0 %v1262_v58 }
  0x54   :  { %735 = vmatmul.mubr.bf16.gmra.mxu1 %v1263_v59  ;;  %622 = vmatprep.mubr.bf16.mxu0 %v1264_v60 }
  0x55   :  { %742 = vmatprep.mubr.bf16.mxu1 %v1266_v61 }
  0x5b   :  { %623 = vmatmul.mubr.bf16.gmra.mxu0 %v1268_v62 }
  0x5c   :  { %743 = vmatmul.mubr.bf16.gmra.mxu1 %v1269_v63  ;;  %630 = vmatprep.mubr.bf16.mxu0 %v1270_v0 }
  0x5d   :  { %750 = vmatprep.mubr.bf16.mxu1 %v1272_v1 }
  0x63   :  { %631 = vmatmul.mubr.bf16.gmra.mxu0 %v1274_v2 }
  0x64   :  { %751 = vmatmul.mubr.bf16.gmra.mxu1 %v1275_v3  ;;  %638 = vmatprep.mubr.bf16.mxu0 %v1276_v4 }
  0x65   :  { %758 = vmatprep.mubr.bf16.mxu1 %v1278_v5 }
  0x6b   :  { %639 = vmatmul.mubr.bf16.gmra.mxu0 %v1280_v8 }
  0x6c   :  { %759 = vmatmul.mubr.bf16.gmra.mxu1 %v1281_v9  ;;  %646 = vmatprep.mubr.bf16.mxu0 %v949_v10 }
  0x6d   :  { %766 = vmatprep.mubr.bf16.mxu1 %v951_v11 }
  0x73   :  { %647 = vmatmul.mubr.bf16.gmra.mxu0 %v948_v12 }
  0x74   :  { %767 = vmatmul.mubr.bf16.gmra.mxu1 %v950_v13 }
  0xe3   :  { %v1042_v14 = vpop.f32.mrf.mxu0 }
  0xe4   :  { %v1124_v15 = vpop.f32.mrf.mxu1 }
  0xe5   :  { %v1043_v17 = vpop.f32.mrf.mxu0 }
  0xe6   :  { %v1044_v18 = vadd.f32 %v1043_v17, %v1042_v14  ;;  %v1125_v19 = vpop.f32.mrf.mxu1 }
  0xe7   :  { %v1045_v20 = vpop.f32.mrf.mxu0  ;;  %v1126_v22 = vadd.f32 %v1125_v19, %v1124_v15 }
  0xe8   :  { %v569_v21 = vadd.f32 %v1044_v18, %v1531_v16  ;;  %v1127_v23 = vpop.f32.mrf.mxu1 }
  0xe9   :  { %v1046_v24 = vpop.f32.mrf.mxu0 }
  0xea   :  { %v689_v25 = vadd.f32 %v1126_v22, %v569_v21  ;;  %v1047_v26 = vadd.f32 %v1046_v24, %v1045_v20  ;;  %v1128_v27 = vpop.f32.mrf.mxu1 }
  0xeb   :  { %v1048_v28 = vpop.f32.mrf.mxu0  ;;  %v1129_v31 = vadd.f32 %v1128_v27, %v1127_v23 }
  0xec   :  { %v774_v29 = vmax.f32 %v689_v25, 0.0  ;;  %v572_v30 = vadd.f32 %v1047_v26, %v1531_v16  ;;  %v1130_v32 = vpop.f32.mrf.mxu1 }
  0xed   :  { %v1049_v33 = vpop.f32.mrf.mxu0 }
  0xee   :  { %v1005_v34 = vpack.c.bf16 %v774_v29, %v774_v29  ;;  %v692_v35 = vadd.f32 %v1129_v31, %v572_v30  ;;  %v1050_v36 = vadd.f32 %v1049_v33, %v1048_v28  ;;  %v1131_v37 = vpop.f32.mrf.mxu1 }
  0xef   :  { %v1051_v38 = vpop.f32.mrf.mxu0  ;;  %v1132_v41 = vadd.f32 %v1131_v37, %v1130_v32 }
  0xf0   :  { %881 = vst.msk [vmem:[%s1640_s3] sm:$0xf] %vm880_vm0, %v1005_v34  ;;  %v775_v39 = vmax.f32 %v692_v35, 0.0  ;;  %v577_v40 = vadd.f32 %v1050_v36, %v1531_v16  ;;  %v1133_v42 = vpop.f32.mrf.mxu1 }
  0xf1   :  { %v1052_v43 = vpop.f32.mrf.mxu0 }
  0xf2   :  { %v1006_v44 = vpack.c.bf16 %v775_v39, %v775_v39  ;;  %v697_v45 = vadd.f32 %v1132_v41, %v577_v40  ;;  %v1053_v46 = vadd.f32 %v1052_v43, %v1051_v38  ;;  %v1134_v47 = vpop.f32.mrf.mxu1 }
  0xf3   :  { %v1054_v48 = vpop.f32.mrf.mxu0  ;;  %v1135_v51 = vadd.f32 %v1134_v47, %v1133_v42 }
  0xf4   :  { %882 = vst.msk [vmem:[%s1640_s3 + $0x4] sm:$0xf] %vm880_vm0, %v1006_v44  ;;  %v776_v49 = vmax.f32 %v697_v45, 0.0  ;;  %v580_v50 = vadd.f32 %v1053_v46, %v1531_v16  ;;  %v1136_v52 = vpop.f32.mrf.mxu1 }
  0xf5   :  { %v1055_v53 = vpop.f32.mrf.mxu0 }
  0xf6   :  { %v1007_v54 = vpack.c.bf16 %v776_v49, %v776_v49  ;;  %v700_v55 = vadd.f32 %v1135_v51, %v580_v50  ;;  %v1056_v56 = vadd.f32 %v1055_v53, %v1054_v48  ;;  %v1137_v57 = vpop.f32.mrf.mxu1 }
  0xf7   :  { %v1057_v58 = vpop.f32.mrf.mxu0  ;;  %v1138_v61 = vadd.f32 %v1137_v57, %v1136_v52 }
  0xf8   :  { %883 = vst.msk [vmem:[%s1640_s3 + $0x8] sm:$0xf] %vm880_vm0, %v1007_v54  ;;  %v777_v59 = vmax.f32 %v700_v55, 0.0  ;;  %v585_v60 = vadd.f32 %v1056_v56, %v1531_v16  ;;  %v1139_v62 = vpop.f32.mrf.mxu1 }
  0xf9   :  { %v1058_v63 = vpop.f32.mrf.mxu0 }
  0xfa   :  { %v1008_v0 = vpack.c.bf16 %v777_v59, %v777_v59  ;;  %v705_v1 = vadd.f32 %v1138_v61, %v585_v60  ;;  %v1059_v2 = vadd.f32 %v1058_v63, %v1057_v58  ;;  %v1140_v3 = vpop.f32.mrf.mxu1 }
  0xfb   :  { %v1060_v4 = vpop.f32.mrf.mxu0  ;;  %v1141_v7 = vadd.f32 %v1140_v3, %v1139_v62 }
  0xfc   :  { %884 = vst.msk [vmem:[%s1640_s3 + $0xc] sm:$0xf] %vm880_vm0, %v1008_v0  ;;  %v778_v5 = vmax.f32 %v705_v1, 0.0  ;;  %v588_v6 = vadd.f32 %v1059_v2, %v1531_v16  ;;  %v1142_v8 = vpop.f32.mrf.mxu1 }
  0xfd   :  { %v1061_v9 = vpop.f32.mrf.mxu0 }
  0xfe   :  { %v1009_v10 = vpack.c.bf16 %v778_v5, %v778_v5  ;;  %v708_v11 = vadd.f32 %v1141_v7, %v588_v6  ;;  %v1062_v12 = vadd.f32 %v1061_v9, %v1060_v4  ;;  %v1143_v13 = vpop.f32.mrf.mxu1 }
  0xff   :  { %v1063_v14 = vpop.f32.mrf.mxu0  ;;  %v1144_v18 = vadd.f32 %v1143_v13, %v1142_v8 }
 0x100   :  { %885 = vst.msk [vmem:[%s1640_s3 + $0x10] sm:$0xf] %vm880_vm0, %v1009_v10  ;;  %v779_v15 = vmax.f32 %v708_v11, 0.0  ;;  %v593_v17 = vadd.f32 %v1062_v12, %v1531_v16  ;;  %v1145_v19 = vpop.f32.mrf.mxu1 }
 0x101   :  { %v1064_v20 = vpop.f32.mrf.mxu0 }
 0x102   :  { %v1010_v21 = vpack.c.bf16 %v779_v15, %v779_v15  ;;  %v713_v22 = vadd.f32 %v1144_v18, %v593_v17  ;;  %v1065_v23 = vadd.f32 %v1064_v20, %v1063_v14  ;;  %v1146_v24 = vpop.f32.mrf.mxu1 }
 0x103   :  { %v1066_v25 = vpop.f32.mrf.mxu0  ;;  %v1147_v28 = vadd.f32 %v1146_v24, %v1145_v19 }
 0x104   :  { %886 = vst.msk [vmem:[%s1640_s3 + $0x14] sm:$0xf] %vm880_vm0, %v1010_v21  ;;  %v780_v26 = vmax.f32 %v713_v22, 0.0  ;;  %v596_v27 = vadd.f32 %v1065_v23, %v1531_v16  ;;  %v1148_v29 = vpop.f32.mrf.mxu1 }
 0x105   :  { %v1067_v30 = vpop.f32.mrf.mxu0 }
 0x106   :  { %v1011_v31 = vpack.c.bf16 %v780_v26, %v780_v26  ;;  %v716_v32 = vadd.f32 %v1147_v28, %v596_v27  ;;  %v1068_v33 = vadd.f32 %v1067_v30, %v1066_v25  ;;  %v1149_v34 = vpop.f32.mrf.mxu1 }
 0x107   :  { %v1069_v35 = vpop.f32.mrf.mxu0  ;;  %v1150_v38 = vadd.f32 %v1149_v34, %v1148_v29 }
 0x108   :  { %887 = vst.msk [vmem:[%s1640_s3 + $0x18] sm:$0xf] %vm880_vm0, %v1011_v31  ;;  %v781_v36 = vmax.f32 %v716_v32, 0.0  ;;  %v601_v37 = vadd.f32 %v1068_v33, %v1531_v16  ;;  %v1151_v39 = vpop.f32.mrf.mxu1 }
 0x109   :  { %v1070_v40 = vpop.f32.mrf.mxu0 }
 0x10a   :  { %v1012_v41 = vpack.c.bf16 %v781_v36, %v781_v36  ;;  %v721_v42 = vadd.f32 %v1150_v38, %v601_v37  ;;  %v1071_v43 = vadd.f32 %v1070_v40, %v1069_v35  ;;  %v1152_v44 = vpop.f32.mrf.mxu1 }
 0x10b   :  { %v1072_v45 = vpop.f32.mrf.mxu0  ;;  %v1153_v48 = vadd.f32 %v1152_v44, %v1151_v39 }
 0x10c   :  { %888 = vst.msk [vmem:[%s1640_s3 + $0x1c] sm:$0xf] %vm880_vm0, %v1012_v41  ;;  %v782_v46 = vmax.f32 %v721_v42, 0.0  ;;  %v604_v47 = vadd.f32 %v1071_v43, %v1531_v16  ;;  %v1154_v49 = vpop.f32.mrf.mxu1 }
 0x10d   :  { %v1073_v50 = vpop.f32.mrf.mxu0 }
 0x10e   :  { %v1013_v51 = vpack.c.bf16 %v782_v46, %v782_v46  ;;  %v724_v52 = vadd.f32 %v1153_v48, %v604_v47  ;;  %v1074_v53 = vadd.f32 %v1073_v50, %v1072_v45  ;;  %v1155_v54 = vpop.f32.mrf.mxu1 }
 0x10f   :  { %v1075_v55 = vpop.f32.mrf.mxu0  ;;  %v1156_v58 = vadd.f32 %v1155_v54, %v1154_v49 }
 0x110   :  { %889 = vst.msk [vmem:[%s1640_s3 + $0x20] sm:$0xf] %vm880_vm0, %v1013_v51  ;;  %v783_v56 = vmax.f32 %v724_v52, 0.0  ;;  %v609_v57 = vadd.f32 %v1074_v53, %v1531_v16  ;;  %v1157_v59 = vpop.f32.mrf.mxu1 }
 0x111   :  { %v1076_v60 = vpop.f32.mrf.mxu0 }
 0x112   :  { %v1014_v61 = vpack.c.bf16 %v783_v56, %v783_v56  ;;  %v729_v62 = vadd.f32 %v1156_v58, %v609_v57  ;;  %v1077_v63 = vadd.f32 %v1076_v60, %v1075_v55  ;;  %v1158_v0 = vpop.f32.mrf.mxu1 }
 0x113   :  { %v1078_v1 = vpop.f32.mrf.mxu0  ;;  %v1159_v4 = vadd.f32 %v1158_v0, %v1157_v59 }
 0x114   :  { %890 = vst.msk [vmem:[%s1640_s3 + $0x24] sm:$0xf] %vm880_vm0, %v1014_v61  ;;  %v784_v2 = vmax.f32 %v729_v62, 0.0  ;;  %v612_v3 = vadd.f32 %v1077_v63, %v1531_v16  ;;  %v1160_v5 = vpop.f32.mrf.mxu1 }
 0x115   :  { %v1079_v6 = vpop.f32.mrf.mxu0 }
 0x116   :  { %v1015_v7 = vpack.c.bf16 %v784_v2, %v784_v2  ;;  %v732_v8 = vadd.f32 %v1159_v4, %v612_v3  ;;  %v1080_v9 = vadd.f32 %v1079_v6, %v1078_v1  ;;  %v1161_v10 = vpop.f32.mrf.mxu1 }
 0x117   :  { %v1081_v11 = vpop.f32.mrf.mxu0  ;;  %v1162_v14 = vadd.f32 %v1161_v10, %v1160_v5 }
 0x118   :  { %891 = vst.msk [vmem:[%s1640_s3 + $0x28] sm:$0xf] %vm880_vm0, %v1015_v7  ;;  %v785_v12 = vmax.f32 %v732_v8, 0.0  ;;  %v617_v13 = vadd.f32 %v1080_v9, %v1531_v16  ;;  %v1163_v15 = vpop.f32.mrf.mxu1 }
 0x119   :  { %v1082_v17 = vpop.f32.mrf.mxu0 }
 0x11a   :  { %v1016_v18 = vpack.c.bf16 %v785_v12, %v785_v12  ;;  %v737_v19 = vadd.f32 %v1162_v14, %v617_v13  ;;  %v1083_v20 = vadd.f32 %v1082_v17, %v1081_v11  ;;  %v1164_v21 = vpop.f32.mrf.mxu1 }
 0x11b   :  { %v1084_v22 = vpop.f32.mrf.mxu0  ;;  %v1165_v25 = vadd.f32 %v1164_v21, %v1163_v15 }
 0x11c   :  { %892 = vst.msk [vmem:[%s1640_s3 + $0x2c] sm:$0xf] %vm880_vm0, %v1016_v18  ;;  %v786_v23 = vmax.f32 %v737_v19, 0.0  ;;  %v620_v24 = vadd.f32 %v1083_v20, %v1531_v16  ;;  %v1166_v26 = vpop.f32.mrf.mxu1 }
 0x11d   :  { %v1085_v27 = vpop.f32.mrf.mxu0 }
 0x11e   :  { %v1017_v28 = vpack.c.bf16 %v786_v23, %v786_v23  ;;  %v740_v29 = vadd.f32 %v1165_v25, %v620_v24  ;;  %v1086_v30 = vadd.f32 %v1085_v27, %v1084_v22  ;;  %v1167_v31 = vpop.f32.mrf.mxu1 }
 0x11f   :  { %v1087_v32 = vpop.f32.mrf.mxu0  ;;  %v1168_v35 = vadd.f32 %v1167_v31, %v1166_v26 }
 0x120   :  { %893 = vst.msk [vmem:[%s1640_s3 + $0x30] sm:$0xf] %vm880_vm0, %v1017_v28  ;;  %v787_v33 = vmax.f32 %v740_v29, 0.0  ;;  %v625_v34 = vadd.f32 %v1086_v30, %v1531_v16  ;;  %v1169_v36 = vpop.f32.mrf.mxu1 }
 0x121   :  { %v1088_v37 = vpop.f32.mrf.mxu0 }
 0x122   :  { %v1018_v38 = vpack.c.bf16 %v787_v33, %v787_v33  ;;  %v745_v39 = vadd.f32 %v1168_v35, %v625_v34  ;;  %v1089_v40 = vadd.f32 %v1088_v37, %v1087_v32  ;;  %v1170_v41 = vpop.f32.mrf.mxu1 }
 0x123   :  { %v1090_v42 = vpop.f32.mrf.mxu0  ;;  %v1171_v45 = vadd.f32 %v1170_v41, %v1169_v36 }
 0x124   :  { %894 = vst.msk [vmem:[%s1640_s3 + $0x34] sm:$0xf] %vm880_vm0, %v1018_v38  ;;  %v788_v43 = vmax.f32 %v745_v39, 0.0  ;;  %v628_v44 = vadd.f32 %v1089_v40, %v1531_v16  ;;  %v1172_v46 = vpop.f32.mrf.mxu1 }
 0x125   :  { %v1091_v47 = vpop.f32.mrf.mxu0 }
 0x126   :  { %v1019_v48 = vpack.c.bf16 %v788_v43, %v788_v43  ;;  %v748_v49 = vadd.f32 %v1171_v45, %v628_v44  ;;  %v1092_v50 = vadd.f32 %v1091_v47, %v1090_v42  ;;  %v1173_v51 = vpop.f32.mrf.mxu1 }
 0x127   :  { %v1093_v52 = vpop.f32.mrf.mxu0  ;;  %v1174_v55 = vadd.f32 %v1173_v51, %v1172_v46 }
 0x128   :  { %895 = vst.msk [vmem:[%s1640_s3 + $0x38] sm:$0xf] %vm880_vm0, %v1019_v48  ;;  %v789_v53 = vmax.f32 %v748_v49, 0.0  ;;  %v633_v54 = vadd.f32 %v1092_v50, %v1531_v16  ;;  %v1175_v56 = vpop.f32.mrf.mxu1 }
 0x129   :  { %v1094_v57 = vpop.f32.mrf.mxu0 }
 0x12a   :  { %v1020_v58 = vpack.c.bf16 %v789_v53, %v789_v53  ;;  %v753_v59 = vadd.f32 %v1174_v55, %v633_v54  ;;  %v1095_v60 = vadd.f32 %v1094_v57, %v1093_v52  ;;  %v1176_v61 = vpop.f32.mrf.mxu1 }
 0x12b   :  { %v1096_v62 = vpop.f32.mrf.mxu0  ;;  %v1177_v1 = vadd.f32 %v1176_v61, %v1175_v56 }
 0x12c   :  { %896 = vst.msk [vmem:[%s1640_s3 + $0x3c] sm:$0xf] %vm880_vm0, %v1020_v58  ;;  %v790_v63 = vmax.f32 %v753_v59, 0.0  ;;  %v636_v0 = vadd.f32 %v1095_v60, %v1531_v16  ;;  %v1178_v2 = vpop.f32.mrf.mxu1 }
 0x12d   :  { %v1097_v3 = vpop.f32.mrf.mxu0 }
 0x12e   :  { %v1021_v4 = vpack.c.bf16 %v790_v63, %v790_v63  ;;  %v756_v5 = vadd.f32 %v1177_v1, %v636_v0  ;;  %v1098_v6 = vadd.f32 %v1097_v3, %v1096_v62  ;;  %v1179_v7 = vpop.f32.mrf.mxu1 }
 0x12f   :  { %v1099_v8 = vpop.f32.mrf.mxu0  ;;  %v1180_v11 = vadd.f32 %v1179_v7, %v1178_v2 }
 0x130   :  { %897 = vst.msk [vmem:[%s1640_s3 + $0x40] sm:$0xf] %vm880_vm0, %v1021_v4  ;;  %v791_v9 = vmax.f32 %v756_v5, 0.0  ;;  %v641_v10 = vadd.f32 %v1098_v6, %v1531_v16  ;;  %v1181_v12 = vpop.f32.mrf.mxu1 }
 0x131   :  { %v1100_v13 = vpop.f32.mrf.mxu0 }
 0x132   :  { %v1022_v14 = vpack.c.bf16 %v791_v9, %v791_v9  ;;  %v761_v15 = vadd.f32 %v1180_v11, %v641_v10  ;;  %v1101_v17 = vadd.f32 %v1100_v13, %v1099_v8  ;;  %v1182_v18 = vpop.f32.mrf.mxu1 }
 0x133   :  { %v1102_v19 = vpop.f32.mrf.mxu0  ;;  %v1183_v22 = vadd.f32 %v1182_v18, %v1181_v12 }
 0x134   :  { %898 = vst.msk [vmem:[%s1640_s3 + $0x44] sm:$0xf] %vm880_vm0, %v1022_v14  ;;  %v792_v20 = vmax.f32 %v761_v15, 0.0  ;;  %v644_v21 = vadd.f32 %v1101_v17, %v1531_v16  ;;  %v1184_v23 = vpop.f32.mrf.mxu1 }
 0x135   :  { %v1103_v24 = vpop.f32.mrf.mxu0 }
 0x136   :  { %v1023_v25 = vpack.c.bf16 %v792_v20, %v792_v20  ;;  %v764_v26 = vadd.f32 %v1183_v22, %v644_v21  ;;  %v1104_v27 = vadd.f32 %v1103_v24, %v1102_v19  ;;  %v1185_v28 = vpop.f32.mrf.mxu1 }
 0x137   :  { %v1105_v29 = vpop.f32.mrf.mxu0  ;;  %v1186_v32 = vadd.f32 %v1185_v28, %v1184_v23 }
 0x138   :  { %899 = vst.msk [vmem:[%s1640_s3 + $0x48] sm:$0xf] %vm880_vm0, %v1023_v25  ;;  %v793_v30 = vmax.f32 %v764_v26, 0.0  ;;  %v649_v31 = vadd.f32 %v1104_v27, %v1531_v16  ;;  %v1187_v33 = vpop.f32.mrf.mxu1 }
 0x139   :  { %v1106_v34 = vpop.f32.mrf.mxu0 }
 0x13a   :  { %v1024_v35 = vpack.c.bf16 %v793_v30, %v793_v30  ;;  %v769_v36 = vadd.f32 %v1186_v32, %v649_v31  ;;  %v1188_v37 = vpop.f32.mrf.mxu1 }
 0x13c   :  { %900 = vst.msk [vmem:[%s1640_s3 + $0x4c] sm:$0xf] %vm880_vm0, %v1024_v35  ;;  %v794_v38 = vmax.f32 %v769_v36, 0.0 }
 0x13e   :  { %v1025_v39 = vpack.c.bf16 %v794_v38, %v794_v38 }
 0x140   :  { %902 = vst.msk [vmem:[%s1640_s3 + $0x50] sm:$0x1] %vm901_vm1, %v1025_v39 }

// kernel: actor_forward.5
= control target key start
LH: loop header
LB: loop body
LE: loop exit
PB: predicated region body
PF: predicated region fallthrough
CT: control target
= control target key end

     0   :  { %v13667_v33 = vmov 0.0   ;;  %vm13668_vm0 = vmmov 0   ;;  %vm529_vm1 = vcmask 523264   ;;  %s16938_s0 = inlined_call_operand.vmem [shape: bf16[98,576], index: 0, kind: input, shape index: {}]   ;;  %s16939_s1 = inlined_call_operand.vmem [shape: bf16[576,64], index: 1, kind: input, shape index: {}]   ;;  %s16940_s2 = inlined_call_operand.vmem [shape: f32[1,64], index: 2, kind: input, shape index: {}]   ;;  %s16941_s3 = inlined_call_operand.vmem [shape: bf16[49,64,512], index: 3, kind: input, shape index: {}]   ;;  %s16942_s4 = inlined_call_operand.vmem [shape: f32[1,512], index: 4, kind: input, shape index: {}]   ;;  %s16943_s5 = inlined_call_operand.vmem [shape: bf16[512,4], index: 5, kind: input, shape index: {}]   ;;  %s16944_s6 = inlined_call_operand.vmem [shape: f32[1,4], index: 6, kind: input, shape index: {}]   ;;  %s16945_s7 = inlined_call_operand.hbm [shape: f32[2,4], index: 7, kind: output, shape index: {}]  }
   0x1   :  { %v12354_v0 = vld [vmem:[%s16939_s1 + $0x78] sm:$0xff]   ;;  %v12358_v4 = vld [vmem:[%s16939_s1 + $0x70] sm:$0xff]   ;;  %v12362_v8 = vld [vmem:[%s16939_s1 + $0x68] sm:$0xff]  }
   0x2   :  { %v12355_v1 = vld [vmem:[%s16939_s1 + $0x38] sm:$0xff]   ;;  %12143 = vmatprep.subr.bf16.mxu0 %v12354_v0  ;;  %v12359_v5 = vld [vmem:[%s16939_s1 + $0x30] sm:$0xff]   ;;  %v12363_v9 = vld [vmem:[%s16939_s1 + $0x28] sm:$0xff]  }
   0x3   :  { %v12356_v2 = vld [vmem:[%s16939_s1 + $0xf8] sm:$0xff]   ;;  %12144 = vmatpush3.bf16.msra.mxu0 %v12355_v1  ;;  %v12360_v6 = vld [vmem:[%s16939_s1 + $0xf0] sm:$0xff]   ;;  %v12364_v10 = vld [vmem:[%s16939_s1 + $0xe8] sm:$0xff]  }
   0x4   :  { %v12357_v3 = vld [vmem:[%s16939_s1 + $0xb8] sm:$0xff]   ;;  %12201 = vmatprep.subr.bf16.mxu1 %v12356_v2  ;;  %12145 = vmatprep.subr.bf16.mxu0 %v12358_v4  ;;  %v12361_v7 = vld [vmem:[%s16939_s1 + $0xb0] sm:$0xff]   ;;  %v12365_v11 = vld [vmem:[%s16939_s1 + $0xa8] sm:$0xff]  }
   0x5   :  { %12202 = vmatpush3.bf16.msra.mxu1 %v12357_v3  ;;  %v12366_v12 = vld [vmem:[%s16939_s1 + $0x60] sm:$0xff]   ;;  %v12370_v16 = vld [vmem:[%s16939_s1 + $0x58] sm:$0xff]   ;;  %v12374_v20 = vld [vmem:[%s16939_s1 + $0x50] sm:$0xff]  }
   0x6   :  { %12203 = vmatprep.subr.bf16.mxu1 %v12360_v6  ;;  %v12367_v13 = vld [vmem:[%s16939_s1 + $0x20] sm:$0xff]   ;;  %v12371_v17 = vld [vmem:[%s16939_s1 + $0x18] sm:$0xff]   ;;  %v12375_v21 = vld [vmem:[%s16939_s1 + $0x10] sm:$0xff]  }
   0x7   :  { %12146 = vmatpush3.bf16.msra.mxu0 %v12359_v5  ;;  %v12368_v14 = vld [vmem:[%s16939_s1 + $0xe0] sm:$0xff]   ;;  %v12372_v18 = vld [vmem:[%s16939_s1 + $0xd8] sm:$0xff]   ;;  %v12376_v22 = vld [vmem:[%s16939_s1 + $0xd0] sm:$0xff]  }
   0x8   :  { %12147 = vmatprep.subr.bf16.mxu0 %v12362_v8  ;;  %v12369_v15 = vld [vmem:[%s16939_s1 + $0xa0] sm:$0xff]   ;;  %v12373_v19 = vld [vmem:[%s16939_s1 + $0x98] sm:$0xff]   ;;  %v12377_v23 = vld [vmem:[%s16939_s1 + $0x90] sm:$0xff]  }
   0x9   :  { %12204 = vmatpush3.bf16.msra.mxu1 %v12361_v7  ;;  %v12378_v24 = vld [vmem:[%s16939_s1 + $0x48] sm:$0xff]   ;;  %v12382_v28 = vld [vmem:[%s16939_s1 + $0x40] sm:$0xff]   ;;  %v12392_v37 = vld [vmem:[%s16939_s1 + $0x118] sm:$0xff]  }
   0xa   :  { %12205 = vmatprep.subr.bf16.mxu1 %v12364_v10  ;;  %v12379_v25 = vld [vmem:[%s16939_s1 + $0x8] sm:$0xff]   ;;  %v12383_v29 = vld [vmem:[%s16939_s1] sm:$0xff]   ;;  %v12401_v42 = vld [vmem:[%s16939_s1 + $0x110] sm:$0xff]  }
   0xb   :  { %12148 = vmatpush3.bf16.msra.mxu0 %v12363_v9  ;;  %v12380_v26 = vld [vmem:[%s16939_s1 + $0xc8] sm:$0xff]   ;;  %v12384_v30 = vld [vmem:[%s16939_s1 + $0xc0] sm:$0xff]   ;;  %v12403_v44 = vld [vmem:[%s16938_s0 + $0x5c] ss:$20 sps:$4 sm:$0xff]  }
   0xc   :  { %12149 = vmatprep.subr.bf16.mxu0 %v12366_v12  ;;  %v12381_v27 = vld [vmem:[%s16939_s1 + $0x88] sm:$0xff]   ;;  %v12385_v31 = vld [vmem:[%s16938_s0] ss:$20 sps:$4 sm:$0xff]   ;;  %v12387_v32 = vld [vmem:[%s16938_s0 + $0x4] ss:$20 sps:$4 sm:$0xff]  }
   0xd   :  { %12206 = vmatpush3.bf16.msra.mxu1 %v12365_v11  ;;  %v12388_v34 = vld [vmem:[%s16939_s1 + $0x80] sm:$0xff]   ;;  %583 = vmatprep.mubr.bf16.mxu0 %v12387_v32  ;;  %v12389_v35 = vld [vmem:[%s16938_s0 + $0x8] ss:$20 sps:$4 sm:$0xff]   ;;  %v12405_v48 = vld [vmem:[%s16938_s0 + $0x58] ss:$20 sps:$4 sm:$0xff]  }
   0xe   :  { %12207 = vmatprep.subr.bf16.mxu1 %v12368_v14  ;;  %v12391_v36 = vld [vmem:[%s16938_s0 + $0xc] ss:$20 sps:$4 sm:$0xff]   ;;  %v12396_v39 = vld [vmem:[%s16938_s0 + $0x34] ss:$20 sps:$4 sm:$0xff]   ;;  %v12398_v43 = vld [vmem:[%s16938_s0 + $0x30] ss:$20 sps:$4 sm:$0xff]  }
   0xf   :  { %12150 = vmatpush3.bf16.msra.mxu0 %v12367_v13  ;;  %671 = vmatprep.mubr.bf16.mxu1 %v12391_v36  ;;  %v12393_v38 = vld [vmem:[%s16938_s0 + $0x2c] ss:$20 sps:$4 sm:$0xff]   ;;  %v12395_v40 = vld [vmem:[%s16938_s0 + $0x28] ss:$20 sps:$4 sm:$0xff]   ;;  %v12402_v46 = vld [vmem:[%s16938_s0 + $0x50] ss:$20 sps:$4 sm:$0xff]  }
  0x10   :  { %12151 = vmatprep.subr.bf16.mxu0 %v12370_v16  ;;  %v12399_v41 = vld [vmem:[%s16938_s0 + $0x54] ss:$20 sps:$4 sm:$0xff]   ;;  %v12406_v47 = vld [vmem:[%s16938_s0 + $0x7c] ss:$20 sps:$4 sm:$0xff]   ;;  %v12409_v49 = vld [vmem:[%s16938_s0 + $0x84] ss:$20 sps:$4 sm:$0xff]  }
  0x11   :  { %12208 = vmatpush3.bf16.msra.mxu1 %v12369_v15  ;;  %v12412_v45 = vld [vmem:[%s16939_s1 + $0x108] sm:$0xff]   ;;  %v12425_v50 = vld [vmem:[%s16939_s1 + $0x100] sm:$0xff]   ;;  %v64_v59 = vld [vmem:[%s16938_s0 + $0xf0] sm:$0x11] }
  0x12   :  { %12209 = vmatprep.subr.bf16.mxu1 %v12372_v18  ;;  %v12408_v51 = vld [vmem:[%s16938_s0 + $0x78] ss:$20 sps:$4 sm:$0xff]   ;;  %v12411_v53 = vld [vmem:[%s16938_s0 + $0x80] ss:$20 sps:$4 sm:$0xff]   ;;  %v12418_v57 = vld [vmem:[%s16938_s0 + $0xa8] ss:$20 sps:$4 sm:$0xff]   ;;  %v10413_v63 = vcombine.high %v64_v59, %v64_v59  ;;  %v10412_v1 = vcombine.low %v64_v59, %v64_v59 }
  0x13   :  { %12152 = vmatpush3.bf16.msra.mxu0 %v12371_v17  ;;  %v12413_v52 = vld [vmem:[%s16938_s0 + $0xa4] ss:$20 sps:$4 sm:$0xff]   ;;  %v12416_v54 = vld [vmem:[%s16938_s0 + $0xac] ss:$20 sps:$4 sm:$0xff]   ;;  %v12422_v58 = vld [vmem:[%s16938_s0 + $0xd4] ss:$20 sps:$4 sm:$0xff]  }
  0x14   :  { %12153 = vmatprep.subr.bf16.mxu0 %v12374_v20  ;;  %v12415_v55 = vld [vmem:[%s16938_s0 + $0xa0] ss:$20 sps:$4 sm:$0xff]   ;;  %v12421_v60 = vld [vmem:[%s16938_s0 + $0xc8] ss:$20 sps:$4 sm:$0xff]   ;;  %v12424_v62 = vld [vmem:[%s16938_s0 + $0xd0] ss:$20 sps:$4 sm:$0xff]  }
  0x15   :  { %12210 = vmatpush3.bf16.msra.mxu1 %v12373_v19  ;;  %v12419_v56 = vld [vmem:[%s16938_s0 + $0xcc] ss:$20 sps:$4 sm:$0xff]   ;;  %v65_v61 = vld [vmem:[%s16938_s0 + $0xf8] sm:$0x11]  ;;  %v12430_v3 = vld [vmem:[%s16938_s0 + $0x10] ss:$20 sps:$4 sm:$0xff]  }
  0x16   :  { %12211 = vmatprep.subr.bf16.mxu1 %v12376_v22  ;;  %v10415_v0 = vcombine.high %v65_v61, %v65_v61  ;;  %v10414_v2 = vcombine.low %v65_v61, %v65_v61  ;;  %v12431_v4 = vld [vmem:[%s16938_s0 + $0x38] ss:$20 sps:$4 sm:$0xff]   ;;  %v12432_v5 = vld [vmem:[%s16938_s0 + $0x60] ss:$20 sps:$4 sm:$0xff]   ;;  %v12433_v6 = vld [vmem:[%s16938_s0 + $0x88] ss:$20 sps:$4 sm:$0xff]  }
  0x17   :  { %12154 = vmatpush3.bf16.msra.mxu0 %v12375_v21  ;;  %v12437_v7 = vld [vmem:[%s16941_s3 + $0xe0] ss:$16 sps:$4 sm:$0xff]   ;;  %v12439_v8 = vld [vmem:[%s16941_s3 + $0xe4] ss:$16 sps:$4 sm:$0xff]   ;;  %v12435_v10 = vld [vmem:[%s16938_s0 + $0xd8] ss:$20 sps:$4 sm:$0xff]  }
  0x18   :  { %12155 = vmatprep.subr.bf16.mxu0 %v12378_v24  ;;  %v12434_v9 = vld [vmem:[%s16938_s0 + $0xb0] ss:$20 sps:$4 sm:$0xff]   ;;  %v12436_v13 = vld [vmem:[%s16938_s0 + $0x100] ss:$0 sps:$4 sm:$0x11]  }
  0x19   :  { %12212 = vmatpush3.bf16.msra.mxu1 %v12377_v23  ;;  %v12440_v11 = vld [vmem:[%s16941_s3 + $0xc0] ss:$16 sps:$4 sm:$0xff]   ;;  %v12442_v12 = vld [vmem:[%s16941_s3 + $0xc4] ss:$16 sps:$4 sm:$0xff]  }
  0x1a   :  { %12213 = vmatprep.subr.bf16.mxu1 %v12380_v26  ;;  %v12443_v14 = vld [vmem:[%s16941_s3 + $0xa0] ss:$16 sps:$4 sm:$0xff]   ;;  %v12445_v15 = vld [vmem:[%s16941_s3 + $0xa4] ss:$16 sps:$4 sm:$0xff]   ;;  %v12463_v26 = vld [vmem:[%s16941_s3 + $0xec] ss:$16 sps:$4 sm:$0xff]  }
  0x1b   :  { %12156 = vmatpush3.bf16.msra.mxu0 %v12379_v25  ;;  %v12448_v16 = vld [vmem:[%s16941_s3 + $0x164] ss:$16 sps:$4 sm:$0xff]   ;;  %v12446_v17 = vld [vmem:[%s16941_s3 + $0x160] ss:$16 sps:$4 sm:$0xff]  }
  0x1c   :  { %12157 = vmatprep.subr.bf16.mxu0 %v12382_v28  ;;  %v12449_v18 = vld [vmem:[%s16941_s3 + $0x80] ss:$16 sps:$4 sm:$0xff]   ;;  %v12451_v19 = vld [vmem:[%s16941_s3 + $0x84] ss:$16 sps:$4 sm:$0xff]   ;;  %v13669_v28 = vmov 0  }
  0x1d   :  { %12214 = vmatpush3.bf16.msra.mxu1 %v12381_v27  ;;  %v12454_v20 = vld [vmem:[%s16941_s3 + $0x144] ss:$16 sps:$4 sm:$0xff]   ;;  %v12452_v21 = vld [vmem:[%s16941_s3 + $0x140] ss:$16 sps:$4 sm:$0xff]  }
  0x1e   :  { %12215 = vmatprep.subr.bf16.mxu1 %v12384_v30  ;;  %v12457_v22 = vld [vmem:[%s16941_s3 + $0x124] ss:$16 sps:$4 sm:$0xff]   ;;  %v12455_v23 = vld [vmem:[%s16941_s3 + $0x120] ss:$16 sps:$4 sm:$0xff]  }
  0x1f   :  { %12158 = vmatpush3.bf16.msra.mxu0 %v12383_v29  ;;  %v12460_v24 = vld [vmem:[%s16941_s3 + $0x104] ss:$16 sps:$4 sm:$0xff]   ;;  %v12458_v25 = vld [vmem:[%s16941_s3 + $0x100] ss:$16 sps:$4 sm:$0xff]  }
  0x20   :  { %12314 = vmatprep.subr.bf16.mxu0 %v13667_v33  ;;  %v12466_v27 = vld [vmem:[%s16941_s3 + $0x1e4] ss:$16 sps:$4 sm:$0xff]  }
  0x21   :  { %12216 = vmatpush3.bf16.msra.mxu1 %v12388_v34 }
  0x22   :  { %584 = vmatmul.mubr.bf16.vlgmr.msra.gmra.mxu0 %v12385_v31  ;;  %961 = vmatprep.subr.bf16.mxu1 %v12439_v8 }
  0x23   :  { %12315 = vmatpush3.bf16.msra.mxu0 %v12392_v37  ;;  %591 = vmatprep.mubr.bf16.mxu0 %v12393_v38 }
  0x24   :  { %672 = vmatmul.mubr.bf16.vlgmr.msra.gmra.mxu1 %v12389_v35  ;;  %12316 = vmatprep.subr.bf16.mxu0 %v13667_v33 }
  0x25   :  { %679 = vmatprep.mubr.bf16.mxu1 %v12396_v39  ;;  %962 = vmatpush1.bf16.msra.mxu1 %v12437_v7  ;;  %v14018_v39 = vld [vmem:[%s16940_s2] ss:$0 sm:$0xff] }
  0x26   :  { %963 = vmatprep.subr.bf16.mxu1 %v12442_v12 }
  0x27   :  { %12317 = vmatpush3.bf16.msra.mxu0 %v12401_v42 }
  0x28   :  { %12318 = vmatprep.subr.bf16.mxu0 %v13667_v33 }
  0x29   :  { %964 = vmatpush1.bf16.msra.mxu1 %v12440_v11 }
  0x2a   :  { %592 = vmatmul.mubr.bf16.gmra.mxu0 %v12395_v40  ;;  %965 = vmatprep.subr.bf16.mxu1 %v12445_v15 }
  0x2b   :  { %599 = vmatprep.mubr.bf16.mxu0 %v12399_v41  ;;  %12319 = vmatpush3.bf16.msra.mxu0 %v12412_v45 }
  0x2c   :  { %680 = vmatmul.mubr.bf16.gmra.mxu1 %v12398_v43  ;;  %12320 = vmatprep.subr.bf16.mxu0 %v13667_v33 }
  0x2d   :  { %687 = vmatprep.mubr.bf16.mxu1 %v12403_v44  ;;  %966 = vmatpush1.bf16.msra.mxu1 %v12443_v14 }
  0x2e   :  { %967 = vmatprep.subr.bf16.mxu1 %v12451_v19 }
  0x2f   :  { %12321 = vmatpush3.bf16.msra.mxu0 %v12425_v50 }
  0x30   :  { %1309 = vmatprep.subr.bf16.mxu0 %v12448_v16 }
  0x31   :  { %968 = vmatpush1.bf16.msra.mxu1 %v12449_v18 }
  0x32   :  { %600 = vmatmul.mubr.bf16.gmra.mxu0 %v12402_v46  ;;  %1002 = vmatprep.subr.bf16.mxu1 %v12463_v26 }
  0x33   :  { %607 = vmatprep.mubr.bf16.mxu0 %v12406_v47 }
  0x34   :  { %688 = vmatmul.mubr.bf16.gmra.mxu1 %v12405_v48 }
  0x35   :  { %695 = vmatprep.mubr.bf16.mxu1 %v12409_v49 }
  0x3a   :  { %608 = vmatmul.mubr.bf16.gmra.mxu0 %v12408_v51 }
  0x3b   :  { %615 = vmatprep.mubr.bf16.mxu0 %v12413_v52 }
  0x3c   :  { %696 = vmatmul.mubr.bf16.gmra.mxu1 %v12411_v53 }
  0x3d   :  { %703 = vmatprep.mubr.bf16.mxu1 %v12416_v54 }
  0x42   :  { %616 = vmatmul.mubr.bf16.gmra.mxu0 %v12415_v55 }
  0x43   :  { %623 = vmatprep.mubr.bf16.mxu0 %v12419_v56 }
  0x44   :  { %704 = vmatmul.mubr.bf16.gmra.mxu1 %v12418_v57 }
  0x45   :  { %711 = vmatprep.mubr.bf16.mxu1 %v12422_v58 }
  0x4a   :  { %624 = vmatmul.mubr.bf16.gmra.mxu0 %v12421_v60 }
  0x4b   :  { %631 = vmatprep.mubr.bf16.mxu0 %v10413_v63 }
  0x4c   :  { %712 = vmatmul.mubr.bf16.gmra.mxu1 %v12424_v62 }
  0x4d   :  { %719 = vmatprep.mubr.bf16.mxu1 %v10415_v0 }
  0x52   :  { %632 = vmatmul.mubr.bf16.gmra.mxu0 %v10412_v1 }
  0x53   :  { %12322 = vmatprep.mubr.msk.bf16.mxu0 %vm13668_vm0, %v13667_v33 }
  0x54   :  { %720 = vmatmul.mubr.bf16.gmra.mxu1 %v10414_v2 }
  0x55   :  { %985 = vmatprep.mubr.bf16.mxu1 %v13669_v28 }
  0x5a   :  { %12323 = vmatmul.mubr.msk.bf16.vlgmr.msra.gmra.mxu0 %vm529_vm1, %v12430_v3 }
  0x5b   :  { %12326 = vmatprep.mubr.msk.bf16.mxu0 %vm13668_vm0, %v13667_v33  ;;  %1310 = vmatpush1.bf16.msra.mxu0 %v12446_v17 }
  0x5c   :  { %1311 = vmatprep.subr.bf16.mxu0 %v12454_v20 }
  0x5f   :  { %1312 = vmatpush1.bf16.msra.mxu0 %v12452_v21 }
  0x60   :  { %1313 = vmatprep.subr.bf16.mxu0 %v12457_v22 }
  0x62   :  { %12327 = vmatmul.mubr.msk.bf16.gmra.mxu0 %vm529_vm1, %v12431_v4 }
  0x63   :  { %12330 = vmatprep.mubr.msk.bf16.mxu0 %vm13668_vm0, %v13667_v33  ;;  %1314 = vmatpush1.bf16.msra.mxu0 %v12455_v23 }
  0x64   :  { %1315 = vmatprep.subr.bf16.mxu0 %v12460_v24 }
  0x67   :  { %1316 = vmatpush1.bf16.msra.mxu0 %v12458_v25 }
  0x68   :  { %1496 = vmatprep.subr.bf16.mxu0 %v12466_v27 }
  0x6a   :  { %12331 = vmatmul.mubr.msk.bf16.gmra.mxu0 %vm529_vm1, %v12432_v5 }
  0x6b   :  { %12334 = vmatprep.mubr.msk.bf16.mxu0 %vm13668_vm0, %v13667_v33 }
  0x72   :  { %12335 = vmatmul.mubr.msk.bf16.gmra.mxu0 %vm529_vm1, %v12433_v6 }
  0x73   :  { %12338 = vmatprep.mubr.msk.bf16.mxu0 %vm13668_vm0, %v13667_v33 }
  0x7a   :  { %12339 = vmatmul.mubr.msk.bf16.gmra.mxu0 %vm529_vm1, %v12434_v9 }
  0x7b   :  { %12342 = vmatprep.mubr.msk.bf16.mxu0 %vm13668_vm0, %v13667_v33 }
  0x82   :  { %12343 = vmatmul.mubr.msk.bf16.gmra.mxu0 %vm529_vm1, %v12435_v10 }
  0x83   :  { %12346 = vmatprep.mubr.msk.bf16.mxu0 %vm13668_vm0, %v13667_v33 }
  0x8a   :  { %12347 = vmatmul.mubr.msk.bf16.gmra.mxu0 %vm529_vm1, %v12436_v13 }
  0x8b   :  { %1333 = vmatprep.mubr.bf16.mxu0 %v13669_v28 }
  0xe2   :  { %v13999_v29 = vpop.f32.mrf.mxu0 }
  0xe4   :  { %v14001_v30 = vpop.f32.mrf.mxu0  ;;  %v14003_v31 = vpop.f32.mrf.mxu1 }
  0xe6   :  { %v14005_v32 = vpop.f32.mrf.mxu0  ;;  %v14007_v33 = vpop.f32.mrf.mxu1 }
  0xe8   :  { %v14009_v34 = vpop.f32.mrf.mxu0  ;;  %v14011_v35 = vpop.f32.mrf.mxu1 }
  0xea   :  { %v12165_v36 = vpop.f32.mrf.mxu0  ;;  %v14013_v37 = vpop.f32.mrf.mxu1 }
  0xec   :  { %v12166_v38 = vpop.f32.mrf.mxu0  ;;  %v12223_v41 = vpop.f32.mrf.mxu1 }
  0xed   :  { %v12167_v40 = vadd.f32 %v12166_v38, %v12165_v36 }
  0xee   :  { %v12168_v42 = vpop.f32.mrf.mxu0  ;;  %v12224_v44 = vpop.f32.mrf.mxu1 }
  0xef   :  { %v594_v43 = vadd.f32 %v12167_v40, %v14018_v39  ;;  %v12225_v45 = vadd.f32 %v12224_v44, %v12223_v41 }
  0xf0   :  { %v12169_v46 = vpop.f32.mrf.mxu0  ;;  %v12226_v48 = vpop.f32.mrf.mxu1 }
  0xf1   :  { %v12170_v47 = vadd.f32 %v12169_v46, %v12168_v42  ;;  %v14021_v50 = vadd.f32 %v12225_v45, %v594_v43 }
  0xf2   :  { %v12171_v49 = vpop.f32.mrf.mxu0  ;;  %v12227_v52 = vpop.f32.mrf.mxu1 }
  0xf3   :  { %v597_v51 = vadd.f32 %v12170_v47, %v14018_v39  ;;  %v12228_v53 = vadd.f32 %v12227_v52, %v12226_v48 }
  0xf4   :  { %v12172_v54 = vpop.f32.mrf.mxu0  ;;  %v12229_v56 = vpop.f32.mrf.mxu1 }
  0xf5   :  { %v12173_v55 = vadd.f32 %v12172_v54, %v12171_v49  ;;  %v14024_v58 = vadd.f32 %v12228_v53, %v597_v51 }
  0xf6   :  { %v12174_v57 = vpop.f32.mrf.mxu0  ;;  %v12230_v60 = vpop.f32.mrf.mxu1 }
  0xf7   :  { %v602_v59 = vadd.f32 %v12173_v55, %v14018_v39  ;;  %v12231_v61 = vadd.f32 %v12230_v60, %v12229_v56 }
  0xf8   :  { %v12175_v62 = vpop.f32.mrf.mxu0  ;;  %v12232_v0 = vpop.f32.mrf.mxu1 }
  0xf9   :  { %v12176_v63 = vadd.f32 %v12175_v62, %v12174_v57  ;;  %v14027_v2 = vadd.f32 %v12231_v61, %v602_v59 }
  0xfa   :  { %v12177_v1 = vpop.f32.mrf.mxu0  ;;  %v12233_v4 = vpop.f32.mrf.mxu1 }
  0xfb   :  { %v605_v3 = vadd.f32 %v12176_v63, %v14018_v39  ;;  %v12234_v5 = vadd.f32 %v12233_v4, %v12232_v0  ;;  %v12161_v63 = vadd.f32 %v14001_v30, %v13999_v29 }
  0xfc   :  { %v12178_v6 = vpop.f32.mrf.mxu0  ;;  %v12235_v8 = vpop.f32.mrf.mxu1 }
  0xfd   :  { %v12179_v7 = vadd.f32 %v12178_v6, %v12177_v1  ;;  %v14030_v10 = vadd.f32 %v12234_v5, %v605_v3  ;;  %v12164_v5 = vadd.f32 %v14009_v34, %v14005_v32  ;;  %v12222_v32 = vadd.f32 %v14013_v37, %v14011_v35  ;;  %v12464_v35 = vld [vmem:[%s16941_s3 + $0x1e0] ss:$16 sps:$4 sm:$0xff]  }
  0xfe   :  { %v12180_v9 = vpop.f32.mrf.mxu0  ;;  %v12236_v12 = vpop.f32.mrf.mxu1 }
  0xff   :  { %v610_v11 = vadd.f32 %v12179_v7, %v14018_v39  ;;  %v12237_v13 = vadd.f32 %v12236_v12, %v12235_v8  ;;  %v12219_v12 = vadd.f32 %v14007_v33, %v14003_v31 }
 0x100   :  { %v12181_v14 = vpop.f32.mrf.mxu0  ;;  %v12238_v16 = vpop.f32.mrf.mxu1 }
 0x101   :  { %v12182_v15 = vadd.f32 %v12181_v14, %v12180_v9  ;;  %v14033_v18 = vadd.f32 %v12237_v13, %v610_v11  ;;  %v586_v11 = vadd.f32 %v12161_v63, %v14018_v39  ;;  %v12481_v63 = vld [vmem:[%s16941_s3 + $0x8c] ss:$16 sps:$4 sm:$0xff]  }
 0x102   :  { %v12183_v17 = vpop.f32.mrf.mxu0  ;;  %v12239_v20 = vpop.f32.mrf.mxu1 }
 0x103   :  { %v613_v19 = vadd.f32 %v12182_v15, %v14018_v39  ;;  %v12240_v21 = vadd.f32 %v12239_v20, %v12238_v16  ;;  %v589_v15 = vadd.f32 %v12164_v5, %v14018_v39  ;;  %v12482_v5 = vld [vmem:[%s16941_s3 + $0x180] ss:$16 sps:$4 sm:$0xff]  }
 0x104   :  { %v12184_v22 = vpop.f32.mrf.mxu0  ;;  %v12241_v24 = vpop.f32.mrf.mxu1 }
 0x105   :  { %v12185_v23 = vadd.f32 %v12184_v22, %v12183_v17  ;;  %v14036_v26 = vadd.f32 %v12240_v21, %v613_v19  ;;  %v674_v19 = vadd.f32 %v12219_v12, %v586_v11  ;;  %v12490_v11 = vld [vmem:[%s16941_s3 + $0x264] ss:$16 sps:$4 sm:$0xff]   ;;  %v12485_v12 = vld [vmem:[%s16941_s3 + $0x60] ss:$16 sps:$4 sm:$0xff]  }
 0x106   :  { %v12186_v25 = vpop.f32.mrf.mxu0  ;;  %v12242_v36 = vpop.f32.mrf.mxu1 }
 0x107   :  { %v618_v27 = vadd.f32 %v12185_v23, %v14018_v39  ;;  %v12243_v38 = vadd.f32 %v12242_v36, %v12241_v24  ;;  %v677_v23 = vadd.f32 %v12222_v32, %v589_v15  ;;  %v12493_v32 = vld [vmem:[%s16941_s3 + $0x44] ss:$16 sps:$4 sm:$0xff]  }
 0x108   :  { %v12187_v40 = vpop.f32.mrf.mxu0  ;;  %v12244_v42 = vpop.f32.mrf.mxu1 }
 0x109   :  { %v12188_v41 = vadd.f32 %v12187_v40, %v12186_v25  ;;  %v14039_v44 = vadd.f32 %v12243_v38, %v618_v27 }
 0x10a   :  { %v12189_v43 = vpop.f32.mrf.mxu0  ;;  %v12245_v46 = vpop.f32.mrf.mxu1 }
 0x10b   :  { %v621_v45 = vadd.f32 %v12188_v41, %v14018_v39  ;;  %v12246_v47 = vadd.f32 %v12245_v46, %v12244_v42 }
 0x10c   :  { %v12190_v48 = vpop.f32.mrf.mxu0  ;;  %v12247_v51 = vpop.f32.mrf.mxu1 }
 0x10d   :  { %v12191_v49 = vadd.f32 %v12190_v48, %v12189_v43  ;;  %v14042_v53 = vadd.f32 %v12246_v47, %v621_v45  ;;  %v12469_v43 = vld [vmem:[%s16941_s3 + $0xcc] ss:$16 sps:$4 sm:$0xff]   ;;  %v12472_v45 = vld [vmem:[%s16941_s3 + $0x1c4] ss:$16 sps:$4 sm:$0xff]  }
 0x10e   :  { %v12192_v52 = vpop.f32.mrf.mxu0  ;;  %v12248_v55 = vpop.f32.mrf.mxu1 }
 0x10f   :  { %v626_v54 = vadd.f32 %v12191_v49, %v14018_v39  ;;  %v12249_v56 = vadd.f32 %v12248_v55, %v12247_v51  ;;  %v12470_v49 = vld [vmem:[%s16941_s3 + $0x1c0] ss:$16 sps:$4 sm:$0xff]  }
 0x110   :  { %v12193_v57 = vpop.f32.mrf.mxu0  ;;  %v12250_v60 = vpop.f32.mrf.mxu1 }
 0x111   :  { %v12194_v59 = vadd.f32 %v12193_v57, %v12192_v52  ;;  %v14045_v62 = vadd.f32 %v12249_v56, %v626_v54  ;;  %v12478_v54 = vld [vmem:[%s16941_s3 + $0x1a4] ss:$16 sps:$4 sm:$0xff]  }
 0x112   :  { %v12195_v61 = vpop.f32.mrf.mxu0  ;;  %v12251_v1 = vpop.f32.mrf.mxu1 }
 0x113   :  { %v629_v0 = vadd.f32 %v12194_v59, %v14018_v39  ;;  %v12252_v3 = vadd.f32 %v12251_v1, %v12250_v60  ;;  %v12473_v60 = vld [vmem:[%s16941_s3 + $0xa8] ss:$16 sps:$4 sm:$0xff]  }
 0x114   :  { %v12196_v4 = vpop.f32.mrf.mxu0  ;;  %v12253_v7 = vpop.f32.mrf.mxu1  ;;  %v12479_v1 = vld [vmem:[%s16941_s3 + $0x88] ss:$16 sps:$4 sm:$0xff]  }
 0x115   :  { %v12197_v6 = vadd.f32 %v12196_v4, %v12195_v61  ;;  %v14052_v9 = vadd.f32 %v12252_v3, %v629_v0  ;;  %v12476_v61 = vld [vmem:[%s16941_s3 + $0x1a0] ss:$16 sps:$4 sm:$0xff]  }
 0x116   :  { %v12198_v8 = vpop.f32.mrf.mxu0  ;;  %v12254_v30 = vpop.f32.mrf.mxu1 }
 0x117   :  { %v634_v29 = vadd.f32 %v12197_v6, %v14018_v39  ;;  %v12255_v13 = vadd.f32 %v12254_v30, %v12253_v7  ;;  %v12461_v39 = vld [vmem:[%s16941_s3 + $0xe8] ss:$16 sps:$4 sm:$0xff]   ;;  %v12487_v6 = vld [vmem:[%s16941_s3 + $0x64] ss:$16 sps:$4 sm:$0xff]  }
 0x118   :  { %v12199_v14 = vpop.f32.mrf.mxu0  ;;  %v12256_v34 = vpop.f32.mrf.mxu1 }
 0x119   :  { %v14061_v17 = vadd.f32 %v12255_v13, %v634_v29  ;;  %v12488_v29 = vld [vmem:[%s16941_s3 + $0x260] ss:$16 sps:$4 sm:$0xff]   ;;  %v12496_v34 = vld [vmem:[%s16941_s3 + $0x244] ss:$16 sps:$4 sm:$0xff]  }
 0x11a   :  { %v761_v16 = vpop.f32.mrf.mxu0  ;;  %v12257_v20 = vpop.f32.mrf.mxu1 }
 0x11b   :  { %v762_v22 = vadd.f32 %v761_v16, %v674_v19 }
 0x11c   :  { %v12324_v21 = vpop.f32.mrf.mxu0 }
 0x11d   :  { %v815_v25 = vmax.f32 %v762_v22, 0.0  ;;  %v12494_v21 = vld [vmem:[%s16941_s3 + $0x240] ss:$16 sps:$4 sm:$0xff]   ;;  %v12499_v22 = vld [vmem:[%s16941_s3 + $0x24] ss:$16 sps:$4 sm:$0xff]  }
 0x11e   :  { %v764_v31 = vpop.f32.mrf.mxu0 }
 0x11f   :  { %v765_v33 = vadd.f32 %v764_v31, %v677_v23 }
 0x120   :  { %v12325_v24 = vpop.f32.mrf.mxu0 }
 0x121   :  { %v816_v27 = vmax.f32 %v765_v33, 0.0 }
 0x122   :  { %v769_v36 = vpop.f32.mrf.mxu0 }
 0x123   :  { %v14069_v37 = vpack.c.bf16 %v816_v27, %v815_v25  ;;  %v770_v38 = vadd.f32 %v769_v36, %v14021_v50  ;;  %v12467_v50 = vld [vmem:[%s16941_s3 + $0xc8] ss:$16 sps:$4 sm:$0xff]   ;;  %v12497_v36 = vld [vmem:[%s16941_s3 + $0x20] ss:$16 sps:$4 sm:$0xff]  }
 0x124   :  { %v12328_v40 = vpop.f32.mrf.mxu0 }
 0x125   :  { %v869_v41 = vrot.slane %v14069_v37, 1  ;;  %v1217_v42 = vrot.slane %v14069_v37, 2  ;;  %v817_v51 = vmax.f32 %v770_v38, 0.0  ;;  %v1404_v15 = vrot.slane %v14069_v37, 3  ;;  %v12503_v40 = vld [vmem:[%s16941_s3] ss:$16 sps:$4 sm:$0xff]  }
 0x126   :  { %v772_v46 = vpop.f32.mrf.mxu0 }
 0x127   :  { %v773_v47 = vadd.f32 %v772_v46, %v14024_v58  ;;  %10492 = vmatmul.mubr.msk.bf16.vlgmr.msra.gmra.mxu1 %vm529_vm1, %v869_v41  ;;  %10544 = vmatmul.mubr.msk.bf16.vlgmr.msra.gmra.mxu0 %vm529_vm1, %v1217_v42  ;;  %v12475_v58 = vld [vmem:[%s16941_s3 + $0xac] ss:$16 sps:$4 sm:$0xff]  }
 0x128   :  { %1003 = vmatpush1.bf16.msra.mxu1 %v12461_v39  ;;  %1497 = vmatpush1.bf16.msra.mxu0 %v12464_v35  ;;  %v12329_v48 = vpop.f32.mrf.mxu0  ;;  %v12500_v39 = vld [vmem:[%s16941_s3 + $0x220] ss:$16 sps:$4 sm:$0xff]   ;;  %v12505_v35 = vld [vmem:[%s16941_s3 + $0x4] ss:$16 sps:$4 sm:$0xff]   ;;  %v12511_v46 = vld [vmem:[%s16941_s3 + $0x6c] ss:$16 sps:$4 sm:$0xff]  }
 0x129   :  { %v818_v52 = vmax.f32 %v773_v47, 0.0  ;;  %1004 = vmatprep.subr.bf16.mxu1 %v12469_v43  ;;  %1498 = vmatprep.subr.bf16.mxu0 %v12472_v45  ;;  %v12506_v45 = vld [vmem:[%s16941_s3 + $0x200] ss:$16 sps:$4 sm:$0xff]   ;;  %v12514_v48 = vld [vmem:[%s16941_s3 + $0x2e4] ss:$16 sps:$4 sm:$0xff]  }
 0x12a   :  { %v777_v55 = vpop.f32.mrf.mxu0  ;;  %1026 = vmatprep.mubr.bf16.mxu1 %v13669_v28  ;;  %1520 = vmatprep.mubr.bf16.mxu0 %v13669_v28 }
 0x12b   :  { %v14099_v56 = vpack.c.bf16 %v818_v52, %v817_v51  ;;  %v778_v57 = vadd.f32 %v777_v55, %v14027_v2  ;;  %v12484_v2 = vld [vmem:[%s16941_s3 + $0x184] ss:$16 sps:$4 sm:$0xff]   ;;  %v1591_v55 = vrot.slane %v14069_v37, 4 }
 0x12c   :  { %1005 = vmatpush1.bf16.msra.mxu1 %v12467_v50  ;;  %1499 = vmatpush1.bf16.msra.mxu0 %v12470_v49  ;;  %v12332_v59 = vpop.f32.mrf.mxu0  ;;  %v12509_v49 = vld [vmem:[%s16941_s3 + $0x68] ss:$16 sps:$4 sm:$0xff]  }
 0x12d   :  { %1006 = vmatprep.subr.bf16.mxu1 %v12475_v58  ;;  %1500 = vmatprep.subr.bf16.mxu0 %v12478_v54  ;;  %v819_v7 = vmax.f32 %v778_v57, 0.0  ;;  %v12512_v58 = vld [vmem:[%s16941_s3 + $0x2e0] ss:$16 sps:$4 sm:$0xff]   ;;  %v12517_v57 = vld [vmem:[%s16941_s3 + $0x4c] ss:$16 sps:$4 sm:$0xff]  }
 0x12e   :  { %v780_v0 = vpop.f32.mrf.mxu0  ;;  %v12520_v59 = vld [vmem:[%s16941_s3 + $0x2c4] ss:$16 sps:$4 sm:$0xff]  }
 0x12f   :  { %v781_v3 = vadd.f32 %v780_v0, %v14030_v10  ;;  %v12523_v0 = vld [vmem:[%s16941_s3 + $0x2c] ss:$16 sps:$4 sm:$0xff]  }
 0x130   :  { %1007 = vmatpush1.bf16.msra.mxu1 %v12473_v60  ;;  %1501 = vmatpush1.bf16.msra.mxu0 %v12476_v61  ;;  %v12333_v4 = vpop.f32.mrf.mxu0 }
 0x131   :  { %v820_v8 = vmax.f32 %v781_v3, 0.0  ;;  %1008 = vmatprep.subr.bf16.mxu1 %v12481_v63  ;;  %1502 = vmatprep.subr.bf16.mxu0 %v12484_v2  ;;  %v12518_v2 = vld [vmem:[%s16941_s3 + $0x2c0] ss:$16 sps:$4 sm:$0xff]   ;;  %v12526_v3 = vld [vmem:[%s16941_s3 + $0x2a4] ss:$16 sps:$4 sm:$0xff]  }
 0x132   :  { %v785_v10 = vpop.f32.mrf.mxu0 }
 0x133   :  { %v14133_v30 = vpack.c.bf16 %v820_v8, %v819_v7  ;;  %v786_v13 = vadd.f32 %v785_v10, %v14033_v18  ;;  %v12491_v18 = vld [vmem:[%s16941_s3 + $0x40] ss:$16 sps:$4 sm:$0xff]   ;;  %v12521_v7 = vld [vmem:[%s16941_s3 + $0x28] ss:$16 sps:$4 sm:$0xff]   ;;  %v12529_v10 = vld [vmem:[%s16941_s3 + $0xc] ss:$16 sps:$4 sm:$0xff]  }
 0x134   :  { %1009 = vmatpush1.bf16.msra.mxu1 %v12479_v1  ;;  %1503 = vmatpush1.bf16.msra.mxu0 %v12482_v5  ;;  %v12336_v14 = vpop.f32.mrf.mxu0  ;;  %v12524_v8 = vld [vmem:[%s16941_s3 + $0x2a0] ss:$16 sps:$4 sm:$0xff]  }
 0x135   :  { %1126 = vmatprep.subr.bf16.mxu1 %v12487_v6  ;;  %1683 = vmatprep.subr.bf16.mxu0 %v12490_v11  ;;  %v821_v23 = vmax.f32 %v786_v13, 0.0  ;;  %v12530_v13 = vld [vmem:[%s16941_s3 + $0x280] ss:$16 sps:$4 sm:$0xff]  }
 0x136   :  { %v788_v16 = vpop.f32.mrf.mxu0 }
 0x137   :  { %v789_v19 = vadd.f32 %v788_v16, %v14036_v26  ;;  %10493 = vmatmul.mubr.msk.bf16.vlgmr.msra.gmra.mxu1 %vm529_vm1, %v869_v41  ;;  %10578 = vmatmul.mubr.msk.bf16.vlgmr.msra.gmra.mxu0 %vm529_vm1, %v1404_v15  ;;  %v12502_v26 = vld [vmem:[%s16941_s3 + $0x224] ss:$16 sps:$4 sm:$0xff]   ;;  %v12533_v16 = vld [vmem:[%s16941_s3 + $0x168] ss:$16 sps:$4 sm:$0xff]  }
 0x138   :  { %1127 = vmatpush1.bf16.msra.mxu1 %v12485_v12  ;;  %1684 = vmatpush1.bf16.msra.mxu0 %v12488_v29  ;;  %v12337_v20 = vpop.f32.mrf.mxu0  ;;  %v12527_v29 = vld [vmem:[%s16941_s3 + $0x8] ss:$16 sps:$4 sm:$0xff]  }
 0x139   :  { %v822_v31 = vmax.f32 %v789_v19, 0.0  ;;  %1128 = vmatprep.subr.bf16.mxu1 %v12493_v32  ;;  %1685 = vmatprep.subr.bf16.mxu0 %v12496_v34  ;;  %v12535_v32 = vld [vmem:[%s16941_s3 + $0x16c] ss:$16 sps:$4 sm:$0xff]   ;;  %v12538_v34 = vld [vmem:[%s16941_s3 + $0x364] ss:$16 sps:$4 sm:$0xff]   ;;  %v1778_v19 = vrot.slane %v14069_v37, 5 }
 0x13a   :  { %v793_v33 = vpop.f32.mrf.mxu0  ;;  %1150 = vmatprep.mubr.bf16.mxu1 %v13669_v28  ;;  %1707 = vmatprep.mubr.bf16.mxu0 %v13669_v28  ;;  %v12541_v20 = vld [vmem:[%s16941_s3 + $0x14c] ss:$16 sps:$4 sm:$0xff]  }
 0x13b   :  { %v14162_v24 = vpack.c.bf16 %v822_v31, %v821_v23  ;;  %v794_v25 = vadd.f32 %v793_v33, %v14039_v44  ;;  %v12508_v44 = vld [vmem:[%s16941_s3 + $0x204] ss:$16 sps:$4 sm:$0xff]   ;;  %v12542_v23 = vld [vmem:[%s16941_s3 + $0x340] ss:$16 sps:$4 sm:$0xff]   ;;  %v12547_v31 = vld [vmem:[%s16941_s3 + $0x12c] ss:$16 sps:$4 sm:$0xff]  }
 0x13c   :  { %1129 = vmatpush1.bf16.msra.mxu1 %v12491_v18  ;;  %1686 = vmatpush1.bf16.msra.mxu0 %v12494_v21  ;;  %v12340_v27 = vpop.f32.mrf.mxu0  ;;  %v12536_v18 = vld [vmem:[%s16941_s3 + $0x360] ss:$16 sps:$4 sm:$0xff]   ;;  %v12544_v21 = vld [vmem:[%s16941_s3 + $0x344] ss:$16 sps:$4 sm:$0xff]   ;;  %v12545_v33 = vld [vmem:[%s16941_s3 + $0x128] ss:$16 sps:$4 sm:$0xff]  }
 0x13d   :  { %1130 = vmatprep.subr.bf16.mxu1 %v12499_v22  ;;  %1687 = vmatprep.subr.bf16.mxu0 %v12502_v26  ;;  %v823_v47 = vmax.f32 %v794_v25, 0.0  ;;  %v12539_v22 = vld [vmem:[%s16941_s3 + $0x148] ss:$16 sps:$4 sm:$0xff]   ;;  %v12550_v26 = vld [vmem:[%s16941_s3 + $0x324] ss:$16 sps:$4 sm:$0xff]  }
 0x13e   :  { %v796_v38 = vpop.f32.mrf.mxu0  ;;  %v12548_v25 = vld [vmem:[%s16941_s3 + $0x320] ss:$16 sps:$4 sm:$0xff]   ;;  %v12553_v27 = vld [vmem:[%s16941_s3 + $0x10c] ss:$16 sps:$4 sm:$0xff]  }
 0x13f   :  { %v797_v41 = vadd.f32 %v796_v38, %v14042_v53  ;;  %v12562_v38 = vld [vmem:[%s16941_s3 + $0x3e4] ss:$16 sps:$4 sm:$0xff]  }
 0x140   :  { %1131 = vmatpush1.bf16.msra.mxu1 %v12497_v36  ;;  %1688 = vmatpush1.bf16.msra.mxu0 %v12500_v39  ;;  %v12341_v43 = vpop.f32.mrf.mxu0  ;;  %v12556_v36 = vld [vmem:[%s16941_s3 + $0x304] ss:$16 sps:$4 sm:$0xff]   ;;  %v12551_v39 = vld [vmem:[%s16941_s3 + $0x108] ss:$16 sps:$4 sm:$0xff]  }
 0x141   :  { %v824_v50 = vmax.f32 %v797_v41, 0.0  ;;  %1132 = vmatprep.subr.bf16.mxu1 %v12505_v35  ;;  %1689 = vmatprep.subr.bf16.mxu0 %v12508_v44  ;;  %v12554_v35 = vld [vmem:[%s16941_s3 + $0x300] ss:$16 sps:$4 sm:$0xff]   ;;  %v12559_v44 = vld [vmem:[%s16941_s3 + $0x1ec] ss:$16 sps:$4 sm:$0xff]   ;;  %v1965_v43 = vrot.slane %v14069_v37, 6 }
 0x142   :  { %v801_v53 = vpop.f32.mrf.mxu0  ;;  %v12560_v41 = vld [vmem:[%s16941_s3 + $0x3e0] ss:$16 sps:$4 sm:$0xff]  }
 0x143   :  { %v14196_v51 = vpack.c.bf16 %v824_v50, %v823_v47  ;;  %v802_v52 = vadd.f32 %v801_v53, %v14045_v62  ;;  %v12515_v62 = vld [vmem:[%s16941_s3 + $0x48] ss:$16 sps:$4 sm:$0xff]   ;;  %v12566_v50 = vld [vmem:[%s16941_s3 + $0x3c0] ss:$16 sps:$4 sm:$0xff]   ;;  %v12574_v53 = vld [vmem:[%s16941_s3 + $0x3a4] ss:$16 sps:$4 sm:$0xff]  }
 0x144   :  { %1133 = vmatpush1.bf16.msra.mxu1 %v12503_v40  ;;  %1690 = vmatpush1.bf16.msra.mxu0 %v12506_v45  ;;  %v12344_v54 = vpop.f32.mrf.mxu0  ;;  %v12557_v40 = vld [vmem:[%s16941_s3 + $0x1e8] ss:$16 sps:$4 sm:$0xff]   ;;  %v12565_v45 = vld [vmem:[%s16941_s3 + $0x1cc] ss:$16 sps:$4 sm:$0xff]  }
 0x145   :  { %1167 = vmatprep.subr.bf16.mxu1 %v12511_v46  ;;  %1870 = vmatprep.subr.bf16.mxu0 %v12514_v48  ;;  %v825_v1 = vmax.f32 %v802_v52, 0.0  ;;  %v12568_v46 = vld [vmem:[%s16941_s3 + $0x3c4] ss:$16 sps:$4 sm:$0xff]   ;;  %v12563_v47 = vld [vmem:[%s16941_s3 + $0x1c8] ss:$16 sps:$4 sm:$0xff]  }
 0x146   :  { %v804_v60 = vpop.f32.mrf.mxu0  ;;  %v12571_v48 = vld [vmem:[%s16941_s3 + $0x1ac] ss:$16 sps:$4 sm:$0xff]   ;;  %v12580_v52 = vld [vmem:[%s16941_s3 + $0x384] ss:$16 sps:$4 sm:$0xff]   ;;  %v12575_v54 = vld [vmem:[%s16941_s3 + $0x188] ss:$16 sps:$4 sm:$0xff]  }
 0x147   :  { %v805_v61 = vadd.f32 %v804_v60, %v14052_v9  ;;  %10510 = vmatmul.mubr.msk.bf16.vlgmr.msra.gmra.mxu1 %vm529_vm1, %v14069_v37  ;;  %10612 = vmatmul.mubr.msk.bf16.vlgmr.msra.gmra.mxu0 %vm529_vm1, %v1591_v55  ;;  %v12586_v60 = vld [vmem:[%s16941_s3 + $0x464] ss:$16 sps:$4 sm:$0xff]  }
 0x148   :  { %1168 = vmatpush1.bf16.msra.mxu1 %v12509_v49  ;;  %1871 = vmatpush1.bf16.msra.mxu0 %v12512_v58  ;;  %v12345_v63 = vpop.f32.mrf.mxu0  ;;  %v12572_v49 = vld [vmem:[%s16941_s3 + $0x3a0] ss:$16 sps:$4 sm:$0xff]   ;;  %v12577_v58 = vld [vmem:[%s16941_s3 + $0x18c] ss:$16 sps:$4 sm:$0xff]  }
 0x149   :  { %v826_v9 = vmax.f32 %v805_v61, 0.0  ;;  %1169 = vmatprep.subr.bf16.mxu1 %v12517_v57  ;;  %1872 = vmatprep.subr.bf16.mxu0 %v12520_v59  ;;  %v12578_v57 = vld [vmem:[%s16941_s3 + $0x380] ss:$16 sps:$4 sm:$0xff]   ;;  %v12583_v59 = vld [vmem:[%s16941_s3 + $0x26c] ss:$16 sps:$4 sm:$0xff]   ;;  %v2152_v63 = vrot.slane %v14069_v37, 7 }
 0x14a   :  { %v809_v4 = vpop.f32.mrf.mxu0  ;;  %1191 = vmatprep.mubr.bf16.mxu1 %v13669_v28  ;;  %1894 = vmatprep.mubr.bf16.mxu0 %v13669_v28  ;;  %v12584_v61 = vld [vmem:[%s16941_s3 + $0x460] ss:$16 sps:$4 sm:$0xff]  }
 0x14b   :  { %v14226_v5 = vpack.c.bf16 %v826_v9, %v825_v1  ;;  %v14229_v6 = vadd.f32 %v809_v4, %v14061_v17  ;;  %v12532_v17 = vld [vmem:[%s16941_s3 + $0x284] ss:$16 sps:$4 sm:$0xff]   ;;  %v12587_v1 = vld [vmem:[%s16941_s3 + $0x248] ss:$16 sps:$4 sm:$0xff]   ;;  %v12590_v9 = vld [vmem:[%s16941_s3 + $0x440] ss:$16 sps:$4 sm:$0xff]  }
 0x14c   :  { %1170 = vmatpush1.bf16.msra.mxu1 %v12515_v62  ;;  %1873 = vmatpush1.bf16.msra.mxu0 %v12518_v2  ;;  %v12348_v11 = vpop.f32.mrf.mxu0  ;;  %v12581_v62 = vld [vmem:[%s16941_s3 + $0x268] ss:$16 sps:$4 sm:$0xff]   ;;  %v12589_v2 = vld [vmem:[%s16941_s3 + $0x24c] ss:$16 sps:$4 sm:$0xff]   ;;  %v12598_v4 = vld [vmem:[%s16941_s3 + $0x424] ss:$16 sps:$4 sm:$0xff]  }
 0x14d   :  { %1171 = vmatprep.subr.bf16.mxu1 %v12523_v0  ;;  %1874 = vmatprep.subr.bf16.mxu0 %v12526_v3  ;;  %v12592_v0 = vld [vmem:[%s16941_s3 + $0x444] ss:$16 sps:$4 sm:$0xff]   ;;  %v12595_v3 = vld [vmem:[%s16941_s3 + $0x22c] ss:$16 sps:$4 sm:$0xff]  }
 0x14e   :  { %v812_v12 = vpop.f32.mrf.mxu0  ;;  %v12604_v11 = vld [vmem:[%s16941_s3 + $0x404] ss:$16 sps:$4 sm:$0xff]  }
 0x14f   :  { %v12607_v12 = vld [vmem:[%s16941_s3 + $0x2ec] ss:$16 sps:$4 sm:$0xff]  }
 0x150   :  { %1172 = vmatpush1.bf16.msra.mxu1 %v12521_v7  ;;  %1875 = vmatpush1.bf16.msra.mxu0 %v12524_v8  ;;  %v12349_v14 = vpop.f32.mrf.mxu0  ;;  %v12596_v7 = vld [vmem:[%s16941_s3 + $0x420] ss:$16 sps:$4 sm:$0xff]   ;;  %v12601_v8 = vld [vmem:[%s16941_s3 + $0x20c] ss:$16 sps:$4 sm:$0xff]  }
 0x151   :  { %1173 = vmatprep.subr.bf16.mxu1 %v12529_v10  ;;  %1876 = vmatprep.subr.bf16.mxu0 %v12532_v17  ;;  %v12599_v10 = vld [vmem:[%s16941_s3 + $0x208] ss:$16 sps:$4 sm:$0xff]   ;;  %v12602_v17 = vld [vmem:[%s16941_s3 + $0x400] ss:$16 sps:$4 sm:$0xff]  }
 0x152   :  { %v12608_v14 = vld [vmem:[%s16941_s3 + $0x4e0] ss:$16 sps:$4 sm:$0xff]  }
 0x154   :  { %1174 = vmatpush1.bf16.msra.mxu1 %v12527_v29  ;;  %1877 = vmatpush1.bf16.msra.mxu0 %v12530_v13  ;;  %v12610_v29 = vld [vmem:[%s16941_s3 + $0x4e4] ss:$16 sps:$4 sm:$0xff]   ;;  %v12605_v13 = vld [vmem:[%s16941_s3 + $0x2e8] ss:$16 sps:$4 sm:$0xff]  }
 0x155   :  { %1350 = vmatprep.subr.bf16.mxu1 %v12535_v32  ;;  %2057 = vmatprep.subr.bf16.mxu0 %v12538_v34  ;;  %v12613_v32 = vld [vmem:[%s16941_s3 + $0x2cc] ss:$16 sps:$4 sm:$0xff]   ;;  %v12616_v34 = vld [vmem:[%s16941_s3 + $0x4c4] ss:$16 sps:$4 sm:$0xff]  }
 0x157   :  { %10511 = vmatmul.mubr.msk.bf16.vlgmr.msra.gmra.mxu1 %vm529_vm1, %v14069_v37  ;;  %10646 = vmatmul.mubr.msk.bf16.vlgmr.msra.gmra.mxu0 %vm529_vm1, %v1778_v19  ;;  %v12689_v37 = vld [vmem:[%s16941_s3 + $0x428] ss:$16 sps:$4 sm:$0xff]  }
 0x158   :  { %1351 = vmatpush1.bf16.msra.mxu1 %v12533_v16  ;;  %2058 = vmatpush1.bf16.msra.mxu0 %v12536_v18  ;;  %v12611_v16 = vld [vmem:[%s16941_s3 + $0x2c8] ss:$16 sps:$4 sm:$0xff]   ;;  %v12614_v18 = vld [vmem:[%s16941_s3 + $0x4c0] ss:$16 sps:$4 sm:$0xff]  }
 0x159   :  { %1352 = vmatprep.subr.bf16.mxu1 %v12541_v20  ;;  %2059 = vmatprep.subr.bf16.mxu0 %v12544_v21  ;;  %v12619_v20 = vld [vmem:[%s16941_s3 + $0x2ac] ss:$16 sps:$4 sm:$0xff]   ;;  %v12622_v21 = vld [vmem:[%s16941_s3 + $0x4a4] ss:$16 sps:$4 sm:$0xff]  }
 0x15a   :  { %1374 = vmatprep.mubr.bf16.mxu1 %v13669_v28  ;;  %2081 = vmatprep.mubr.bf16.mxu0 %v13669_v28 }
 0x15c   :  { %1353 = vmatpush1.bf16.msra.mxu1 %v12539_v22  ;;  %2060 = vmatpush1.bf16.msra.mxu0 %v12542_v23  ;;  %v12617_v22 = vld [vmem:[%s16941_s3 + $0x2a8] ss:$16 sps:$4 sm:$0xff]   ;;  %v12625_v23 = vld [vmem:[%s16941_s3 + $0x28c] ss:$16 sps:$4 sm:$0xff]  }
 0x15d   :  { %1354 = vmatprep.subr.bf16.mxu1 %v12547_v31  ;;  %2061 = vmatprep.subr.bf16.mxu0 %v12550_v26  ;;  %v12628_v31 = vld [vmem:[%s16941_s3 + $0x484] ss:$16 sps:$4 sm:$0xff]   ;;  %v12623_v26 = vld [vmem:[%s16941_s3 + $0x288] ss:$16 sps:$4 sm:$0xff]  }
 0x160   :  { %1355 = vmatpush1.bf16.msra.mxu1 %v12545_v33  ;;  %2062 = vmatpush1.bf16.msra.mxu0 %v12548_v25  ;;  %v12626_v33 = vld [vmem:[%s16941_s3 + $0x480] ss:$16 sps:$4 sm:$0xff]   ;;  %v12631_v25 = vld [vmem:[%s16941_s3 + $0x36c] ss:$16 sps:$4 sm:$0xff]  }
 0x161   :  { %1356 = vmatprep.subr.bf16.mxu1 %v12553_v27  ;;  %2063 = vmatprep.subr.bf16.mxu0 %v12556_v36  ;;  %v12634_v27 = vld [vmem:[%s16941_s3 + $0x564] ss:$16 sps:$4 sm:$0xff]   ;;  %v12629_v36 = vld [vmem:[%s16941_s3 + $0x368] ss:$16 sps:$4 sm:$0xff]  }
 0x164   :  { %1357 = vmatpush1.bf16.msra.mxu1 %v12551_v39  ;;  %2064 = vmatpush1.bf16.msra.mxu0 %v12554_v35  ;;  %v12632_v39 = vld [vmem:[%s16941_s3 + $0x560] ss:$16 sps:$4 sm:$0xff]   ;;  %v2526_v35 = vrot.slane %v14099_v56, 1 }
 0x165   :  { %1537 = vmatprep.subr.bf16.mxu1 %v12559_v44  ;;  %2244 = vmatprep.subr.bf16.mxu0 %v12562_v38  ;;  %v12637_v44 = vld [vmem:[%s16941_s3 + $0x34c] ss:$16 sps:$4 sm:$0xff]   ;;  %v12640_v38 = vld [vmem:[%s16941_s3 + $0x544] ss:$16 sps:$4 sm:$0xff]  }
 0x167   :  { %10545 = vmatmul.mubr.msk.bf16.vlgmr.msra.gmra.mxu1 %vm529_vm1, %v1217_v42  ;;  %10680 = vmatmul.mubr.msk.bf16.vlgmr.msra.gmra.mxu0 %vm529_vm1, %v1965_v43  ;;  %v12569_v42 = vld [vmem:[%s16941_s3 + $0x1a8] ss:$16 sps:$4 sm:$0xff]  }
 0x168   :  { %1538 = vmatpush1.bf16.msra.mxu1 %v12557_v40  ;;  %2245 = vmatpush1.bf16.msra.mxu0 %v12560_v41  ;;  %v12635_v40 = vld [vmem:[%s16941_s3 + $0x348] ss:$16 sps:$4 sm:$0xff]   ;;  %v12638_v41 = vld [vmem:[%s16941_s3 + $0x540] ss:$16 sps:$4 sm:$0xff]  }
 0x169   :  { %1539 = vmatprep.subr.bf16.mxu1 %v12565_v45  ;;  %2246 = vmatprep.subr.bf16.mxu0 %v12568_v46  ;;  %v12643_v45 = vld [vmem:[%s16941_s3 + $0x32c] ss:$16 sps:$4 sm:$0xff]   ;;  %v12646_v46 = vld [vmem:[%s16941_s3 + $0x524] ss:$16 sps:$4 sm:$0xff]  }
 0x16a   :  { %1561 = vmatprep.mubr.bf16.mxu1 %v13669_v28  ;;  %2268 = vmatprep.mubr.bf16.mxu0 %v13669_v28 }
 0x16c   :  { %1540 = vmatpush1.bf16.msra.mxu1 %v12563_v47  ;;  %2247 = vmatpush1.bf16.msra.mxu0 %v12566_v50  ;;  %v12644_v47 = vld [vmem:[%s16941_s3 + $0x520] ss:$16 sps:$4 sm:$0xff]   ;;  %v12649_v50 = vld [vmem:[%s16941_s3 + $0x30c] ss:$16 sps:$4 sm:$0xff]  }
 0x16d   :  { %1541 = vmatprep.subr.bf16.mxu1 %v12571_v48  ;;  %2248 = vmatprep.subr.bf16.mxu0 %v12574_v53  ;;  %v12652_v48 = vld [vmem:[%s16941_s3 + $0x504] ss:$16 sps:$4 sm:$0xff]   ;;  %v12647_v53 = vld [vmem:[%s16941_s3 + $0x308] ss:$16 sps:$4 sm:$0xff]  }
 0x170   :  { %1542 = vmatpush1.bf16.msra.mxu1 %v12569_v42  ;;  %2249 = vmatpush1.bf16.msra.mxu0 %v12572_v49  ;;  %v12650_v42 = vld [vmem:[%s16941_s3 + $0x500] ss:$16 sps:$4 sm:$0xff]   ;;  %v12655_v49 = vld [vmem:[%s16941_s3 + $0x3ec] ss:$16 sps:$4 sm:$0xff]  }
 0x171   :  { %1543 = vmatprep.subr.bf16.mxu1 %v12577_v58  ;;  %2250 = vmatprep.subr.bf16.mxu0 %v12580_v52  ;;  %v12658_v58 = vld [vmem:[%s16941_s3 + $0x5e4] ss:$16 sps:$4 sm:$0xff]   ;;  %v12653_v52 = vld [vmem:[%s16941_s3 + $0x3e8] ss:$16 sps:$4 sm:$0xff]  }
 0x174   :  { %1544 = vmatpush1.bf16.msra.mxu1 %v12575_v54  ;;  %2251 = vmatpush1.bf16.msra.mxu0 %v12578_v57  ;;  %v12656_v54 = vld [vmem:[%s16941_s3 + $0x5e0] ss:$16 sps:$4 sm:$0xff]   ;;  %v12661_v57 = vld [vmem:[%s16941_s3 + $0x3cc] ss:$16 sps:$4 sm:$0xff]  }
 0x175   :  { %1724 = vmatprep.subr.bf16.mxu1 %v12583_v59  ;;  %2430 = vmatprep.subr.bf16.mxu0 %v12586_v60  ;;  %v2713_v59 = vrot.slane %v14099_v56, 2  ;;  %v12664_v60 = vld [vmem:[%s16941_s3 + $0x5c4] ss:$16 sps:$4 sm:$0xff]  }
 0x177   :  { %10579 = vmatmul.mubr.msk.bf16.vlgmr.msra.gmra.mxu1 %vm529_vm1, %v1404_v15  ;;  %10714 = vmatmul.mubr.msk.bf16.vlgmr.msra.gmra.mxu0 %vm529_vm1, %v2152_v63  ;;  %v12593_v15 = vld [vmem:[%s16941_s3 + $0x228] ss:$16 sps:$4 sm:$0xff]  }
 0x178   :  { %1725 = vmatpush1.bf16.msra.mxu1 %v12581_v62  ;;  %2431 = vmatpush1.bf16.msra.mxu0 %v12584_v61  ;;  %v12659_v62 = vld [vmem:[%s16941_s3 + $0x3c8] ss:$16 sps:$4 sm:$0xff]   ;;  %v12662_v61 = vld [vmem:[%s16941_s3 + $0x5c0] ss:$16 sps:$4 sm:$0xff]  }
 0x179   :  { %1726 = vmatprep.subr.bf16.mxu1 %v12589_v2  ;;  %2432 = vmatprep.subr.bf16.mxu0 %v12592_v0  ;;  %v12667_v2 = vld [vmem:[%s16941_s3 + $0x3ac] ss:$16 sps:$4 sm:$0xff]   ;;  %v12670_v0 = vld [vmem:[%s16941_s3 + $0x5a4] ss:$16 sps:$4 sm:$0xff]  }
 0x17a   :  { %1748 = vmatprep.mubr.bf16.mxu1 %v13669_v28  ;;  %2454 = vmatprep.mubr.bf16.mxu0 %v13669_v28 }
 0x17c   :  { %1727 = vmatpush1.bf16.msra.mxu1 %v12587_v1  ;;  %2433 = vmatpush1.bf16.msra.mxu0 %v12590_v9  ;;  %v12668_v1 = vld [vmem:[%s16941_s3 + $0x5a0] ss:$16 sps:$4 sm:$0xff]   ;;  %v12673_v9 = vld [vmem:[%s16941_s3 + $0x38c] ss:$16 sps:$4 sm:$0xff]  }
 0x17d   :  { %1728 = vmatprep.subr.bf16.mxu1 %v12595_v3  ;;  %2434 = vmatprep.subr.bf16.mxu0 %v12598_v4  ;;  %v12676_v3 = vld [vmem:[%s16941_s3 + $0x584] ss:$16 sps:$4 sm:$0xff]   ;;  %v2900_v4 = vrot.slane %v14099_v56, 3 }
 0x180   :  { %1729 = vmatpush1.bf16.msra.mxu1 %v12593_v15  ;;  %2435 = vmatpush1.bf16.msra.mxu0 %v12596_v7  ;;  %v12671_v15 = vld [vmem:[%s16941_s3 + $0x388] ss:$16 sps:$4 sm:$0xff]   ;;  %v12674_v7 = vld [vmem:[%s16941_s3 + $0x580] ss:$16 sps:$4 sm:$0xff]  }
 0x181   :  { %1730 = vmatprep.subr.bf16.mxu1 %v12601_v8  ;;  %2436 = vmatprep.subr.bf16.mxu0 %v12604_v11  ;;  %v12679_v8 = vld [vmem:[%s16941_s3 + $0x46c] ss:$16 sps:$4 sm:$0xff]   ;;  %v12682_v11 = vld [vmem:[%s16941_s3 + $0x664] ss:$16 sps:$4 sm:$0xff]  }
 0x184   :  { %1731 = vmatpush1.bf16.msra.mxu1 %v12599_v10  ;;  %2437 = vmatpush1.bf16.msra.mxu0 %v12602_v17  ;;  %v12677_v10 = vld [vmem:[%s16941_s3 + $0x468] ss:$16 sps:$4 sm:$0xff]   ;;  %v12680_v17 = vld [vmem:[%s16941_s3 + $0x660] ss:$16 sps:$4 sm:$0xff]  }
 0x185   :  { %1911 = vmatprep.subr.bf16.mxu1 %v12607_v12  ;;  %2618 = vmatprep.subr.bf16.mxu0 %v12610_v29  ;;  %v12685_v12 = vld [vmem:[%s16941_s3 + $0x44c] ss:$16 sps:$4 sm:$0xff]   ;;  %v12688_v29 = vld [vmem:[%s16941_s3 + $0x644] ss:$16 sps:$4 sm:$0xff]  }
 0x187   :  { %10613 = vmatmul.mubr.msk.bf16.vlgmr.msra.gmra.mxu1 %vm529_vm1, %v1591_v55  ;;  %10748 = vmatmul.mubr.msk.bf16.vlgmr.msra.gmra.mxu0 %vm529_vm1, %v14099_v56  ;;  %v12620_v55 = vld [vmem:[%s16941_s3 + $0x4a0] ss:$16 sps:$4 sm:$0xff]  }
 0x188   :  { %1912 = vmatpush1.bf16.msra.mxu1 %v12605_v13  ;;  %2619 = vmatpush1.bf16.msra.mxu0 %v12608_v14  ;;  %v12683_v13 = vld [vmem:[%s16941_s3 + $0x448] ss:$16 sps:$4 sm:$0xff]   ;;  %v12686_v14 = vld [vmem:[%s16941_s3 + $0x640] ss:$16 sps:$4 sm:$0xff]  }
 0x189   :  { %1913 = vmatprep.subr.bf16.mxu1 %v12613_v32  ;;  %2620 = vmatprep.subr.bf16.mxu0 %v12616_v34  ;;  %v12691_v32 = vld [vmem:[%s16941_s3 + $0x42c] ss:$16 sps:$4 sm:$0xff]   ;;  %v12694_v34 = vld [vmem:[%s16941_s3 + $0x624] ss:$16 sps:$4 sm:$0xff]  }
 0x18a   :  { %1935 = vmatprep.mubr.bf16.mxu1 %v13669_v28  ;;  %2642 = vmatprep.mubr.bf16.mxu0 %v13669_v28 }
 0x18c   :  { %1914 = vmatpush1.bf16.msra.mxu1 %v12611_v16  ;;  %2621 = vmatpush1.bf16.msra.mxu0 %v12614_v18 }
 0x18d   :  { %1915 = vmatprep.subr.bf16.mxu1 %v12619_v20  ;;  %2622 = vmatprep.subr.bf16.mxu0 %v12622_v21 }
 0x190   :  { %1916 = vmatpush1.bf16.msra.mxu1 %v12617_v22  ;;  %2623 = vmatpush1.bf16.msra.mxu0 %v12620_v55 }
 0x191   :  { %1917 = vmatprep.subr.bf16.mxu1 %v12625_v23  ;;  %2624 = vmatprep.subr.bf16.mxu0 %v12628_v31 }
 0x194   :  { %1918 = vmatpush1.bf16.msra.mxu1 %v12623_v26  ;;  %2625 = vmatpush1.bf16.msra.mxu0 %v12626_v33 }
 0x195   :  { %2098 = vmatprep.subr.bf16.mxu1 %v12631_v25  ;;  %2805 = vmatprep.subr.bf16.mxu0 %v12634_v27 }
 0x197   :  { %10647 = vmatmul.mubr.msk.bf16.vlgmr.msra.gmra.mxu1 %vm529_vm1, %v1778_v19  ;;  %10782 = vmatmul.mubr.msk.bf16.vlgmr.msra.gmra.mxu0 %vm529_vm1, %v2526_v35  ;;  %v12641_v19 = vld [vmem:[%s16941_s3 + $0x328] ss:$16 sps:$4 sm:$0xff]  }
 0x198   :  { %2099 = vmatpush1.bf16.msra.mxu1 %v12629_v36  ;;  %2806 = vmatpush1.bf16.msra.mxu0 %v12632_v39 }
 0x199   :  { %2100 = vmatprep.subr.bf16.mxu1 %v12637_v44  ;;  %2807 = vmatprep.subr.bf16.mxu0 %v12640_v38 }
 0x19a   :  { %2122 = vmatprep.mubr.bf16.mxu1 %v13669_v28  ;;  %2829 = vmatprep.mubr.bf16.mxu0 %v13669_v28 }
 0x19c   :  { %2101 = vmatpush1.bf16.msra.mxu1 %v12635_v40  ;;  %2808 = vmatpush1.bf16.msra.mxu0 %v12638_v41 }
 0x19d   :  { %2102 = vmatprep.subr.bf16.mxu1 %v12643_v45  ;;  %2809 = vmatprep.subr.bf16.mxu0 %v12646_v46 }
 0x1a0   :  { %2103 = vmatpush1.bf16.msra.mxu1 %v12641_v19  ;;  %2810 = vmatpush1.bf16.msra.mxu0 %v12644_v47 }
 0x1a1   :  { %2104 = vmatprep.subr.bf16.mxu1 %v12649_v50  ;;  %2811 = vmatprep.subr.bf16.mxu0 %v12652_v48 }
 0x1a4   :  { %2105 = vmatpush1.bf16.msra.mxu1 %v12647_v53  ;;  %2812 = vmatpush1.bf16.msra.mxu0 %v12650_v42 }
 0x1a5   :  { %2285 = vmatprep.subr.bf16.mxu1 %v12655_v49  ;;  %2992 = vmatprep.subr.bf16.mxu0 %v12658_v58 }
 0x1a7   :  { %10681 = vmatmul.mubr.msk.bf16.vlgmr.msra.gmra.mxu1 %vm529_vm1, %v1965_v43  ;;  %10816 = vmatmul.mubr.msk.bf16.vlgmr.msra.gmra.mxu0 %vm529_vm1, %v2713_v59  ;;  %v12665_v43 = vld [vmem:[%s16941_s3 + $0x3a8] ss:$16 sps:$4 sm:$0xff]  }
 0x1a8   :  { %2286 = vmatpush1.bf16.msra.mxu1 %v12653_v52  ;;  %2993 = vmatpush1.bf16.msra.mxu0 %v12656_v54 }
 0x1a9   :  { %2287 = vmatprep.subr.bf16.mxu1 %v12661_v57  ;;  %2994 = vmatprep.subr.bf16.mxu0 %v12664_v60 }
 0x1aa   :  { %2309 = vmatprep.mubr.bf16.mxu1 %v13669_v28  ;;  %3016 = vmatprep.mubr.bf16.mxu0 %v13669_v28 }
 0x1ac   :  { %2288 = vmatpush1.bf16.msra.mxu1 %v12659_v62  ;;  %2995 = vmatpush1.bf16.msra.mxu0 %v12662_v61 }
 0x1ad   :  { %2289 = vmatprep.subr.bf16.mxu1 %v12667_v2  ;;  %2996 = vmatprep.subr.bf16.mxu0 %v12670_v0 }
 0x1b0   :  { %2290 = vmatpush1.bf16.msra.mxu1 %v12665_v43  ;;  %2997 = vmatpush1.bf16.msra.mxu0 %v12668_v1 }
 0x1b1   :  { %2291 = vmatprep.subr.bf16.mxu1 %v12673_v9  ;;  %2998 = vmatprep.subr.bf16.mxu0 %v12676_v3 }
 0x1b4   :  { %2292 = vmatpush1.bf16.msra.mxu1 %v12671_v15  ;;  %2999 = vmatpush1.bf16.msra.mxu0 %v12674_v7 }
 0x1b5   :  { %2471 = vmatprep.subr.bf16.mxu1 %v12679_v8  ;;  %3179 = vmatprep.subr.bf16.mxu0 %v12682_v11 }
 0x1b7   :  { %10715 = vmatmul.mubr.msk.bf16.vlgmr.msra.gmra.mxu1 %vm529_vm1, %v2152_v63  ;;  %10850 = vmatmul.mubr.msk.bf16.vlgmr.msra.gmra.mxu0 %vm529_vm1, %v2900_v4  ;;  %v12692_v63 = vld [vmem:[%s16941_s3 + $0x620] ss:$16 sps:$4 sm:$0xff]  }
 0x1b8   :  { %2472 = vmatpush1.bf16.msra.mxu1 %v12677_v10  ;;  %3180 = vmatpush1.bf16.msra.mxu0 %v12680_v17 }
 0x1b9   :  { %2473 = vmatprep.subr.bf16.mxu1 %v12685_v12  ;;  %3181 = vmatprep.subr.bf16.mxu0 %v12688_v29 }
 0x1ba   :  { %2495 = vmatprep.mubr.bf16.mxu1 %v13669_v28  ;;  %3203 = vmatprep.mubr.bf16.mxu0 %v13669_v28 }
 0x1bc   :  { %2474 = vmatpush1.bf16.msra.mxu1 %v12683_v13  ;;  %3182 = vmatpush1.bf16.msra.mxu0 %v12686_v14 }
 0x1bd   :  { %12 = vsyncpa [#allocation3], 0  ;;  %2475 = vmatprep.subr.bf16.mxu1 %v12691_v32  ;;  %3183 = vmatprep.subr.bf16.mxu0 %v12694_v34  ;;  %v12697_v16 = vld [vmem:[%s16941_s3 + $0x40c] ss:$16 sps:$4 sm:$0xff]   ;;  %v12700_v18 = vld [vmem:[%s16941_s3 + $0x604] ss:$16 sps:$4 sm:$0xff]  }
 0x1be   :  { %v12695_v20 = vld [vmem:[%s16941_s3 + $0x408] ss:$16 sps:$4 sm:$0xff]   ;;  %v12698_v21 = vld [vmem:[%s16941_s3 + $0x600] ss:$16 sps:$4 sm:$0xff]   ;;  %v12703_v22 = vld [vmem:[%s16941_s3 + $0x4ec] ss:$16 sps:$4 sm:$0xff]  }
 0x1bf   :  { %v12706_v55 = vld [vmem:[%s16941_s3 + $0x6e4] ss:$16 sps:$4 sm:$0xff]   ;;  %v12701_v23 = vld [vmem:[%s16941_s3 + $0x4e8] ss:$16 sps:$4 sm:$0xff]   ;;  %v12704_v31 = vld [vmem:[%s16941_s3 + $0x6e0] ss:$16 sps:$4 sm:$0xff]  }
 0x1c0   :  { %2476 = vmatpush1.bf16.msra.mxu1 %v12689_v37  ;;  %3184 = vmatpush1.bf16.msra.mxu0 %v12692_v63  ;;  %v3087_v26 = vrot.slane %v14099_v56, 4  ;;  %v12709_v33 = vld [vmem:[%s16941_s3 + $0x4cc] ss:$16 sps:$4 sm:$0xff]   ;;  %v12712_v25 = vld [vmem:[%s16941_s3 + $0x6c4] ss:$16 sps:$4 sm:$0xff]   ;;  %v3274_v42 = vrot.slane %v14099_v56, 5 }
 0x1c1   :  { %2477 = vmatprep.subr.bf16.mxu1 %v12697_v16  ;;  %3185 = vmatprep.subr.bf16.mxu0 %v12700_v18  ;;  %v12707_v27 = vld [vmem:[%s16941_s3 + $0x4c8] ss:$16 sps:$4 sm:$0xff]   ;;  %v12710_v36 = vld [vmem:[%s16941_s3 + $0x6c0] ss:$16 sps:$4 sm:$0xff]   ;;  %v12715_v39 = vld [vmem:[%s16941_s3 + $0x4ac] ss:$16 sps:$4 sm:$0xff]  }
 0x1c2   :  { %v12718_v44 = vld [vmem:[%s16941_s3 + $0x6a4] ss:$16 sps:$4 sm:$0xff]   ;;  %v12713_v38 = vld [vmem:[%s16941_s3 + $0x4a8] ss:$16 sps:$4 sm:$0xff]   ;;  %v12716_v40 = vld [vmem:[%s16941_s3 + $0x6a0] ss:$16 sps:$4 sm:$0xff]  }
 0x1c3   :  { %v12721_v41 = vld [vmem:[%s16941_s3 + $0x48c] ss:$16 sps:$4 sm:$0xff]   ;;  %v12724_v45 = vld [vmem:[%s16941_s3 + $0x684] ss:$16 sps:$4 sm:$0xff]   ;;  %v12719_v46 = vld [vmem:[%s16941_s3 + $0x488] ss:$16 sps:$4 sm:$0xff]  }
 0x1c4   :  { %2478 = vmatpush1.bf16.msra.mxu1 %v12695_v20  ;;  %3186 = vmatpush1.bf16.msra.mxu0 %v12698_v21  ;;  %v12722_v19 = vld [vmem:[%s16941_s3 + $0x680] ss:$16 sps:$4 sm:$0xff]   ;;  %v12727_v47 = vld [vmem:[%s16941_s3 + $0x56c] ss:$16 sps:$4 sm:$0xff]   ;;  %v12730_v50 = vld [vmem:[%s16941_s3 + $0x764] ss:$16 sps:$4 sm:$0xff]  }
 0x1c5   :  { %2659 = vmatprep.subr.bf16.mxu1 %v12703_v22  ;;  %3366 = vmatprep.subr.bf16.mxu0 %v12706_v55  ;;  %v12725_v48 = vld [vmem:[%s16941_s3 + $0x568] ss:$16 sps:$4 sm:$0xff]   ;;  %v12728_v53 = vld [vmem:[%s16941_s3 + $0x760] ss:$16 sps:$4 sm:$0xff]   ;;  %v12733_v49 = vld [vmem:[%s16941_s3 + $0x54c] ss:$16 sps:$4 sm:$0xff]  }
 0x1c6   :  { %v12736_v58 = vld [vmem:[%s16941_s3 + $0x744] ss:$16 sps:$4 sm:$0xff]   ;;  %v12731_v52 = vld [vmem:[%s16941_s3 + $0x548] ss:$16 sps:$4 sm:$0xff]   ;;  %v12734_v54 = vld [vmem:[%s16941_s3 + $0x740] ss:$16 sps:$4 sm:$0xff]  }
 0x1c7   :  { %10749 = vmatmul.mubr.msk.bf16.vlgmr.msra.gmra.mxu1 %vm529_vm1, %v14099_v56  ;;  %10884 = vmatmul.mubr.msk.bf16.vlgmr.msra.gmra.mxu0 %vm529_vm1, %v3087_v26  ;;  %v12742_v57 = vld [vmem:[%s16941_s3 + $0x724] ss:$16 sps:$4 sm:$0xff]   ;;  %v12737_v60 = vld [vmem:[%s16941_s3 + $0x528] ss:$16 sps:$4 sm:$0xff]   ;;  %v12740_v62 = vld [vmem:[%s16941_s3 + $0x720] ss:$16 sps:$4 sm:$0xff]  }
 0x1c8   :  { %2660 = vmatpush1.bf16.msra.mxu1 %v12701_v23  ;;  %3367 = vmatpush1.bf16.msra.mxu0 %v12704_v31  ;;  %v12745_v61 = vld [vmem:[%s16941_s3 + $0x50c] ss:$16 sps:$4 sm:$0xff]   ;;  %v12748_v2 = vld [vmem:[%s16941_s3 + $0x704] ss:$16 sps:$4 sm:$0xff]   ;;  %v12743_v0 = vld [vmem:[%s16941_s3 + $0x508] ss:$16 sps:$4 sm:$0xff]  }
 0x1c9   :  { %2661 = vmatprep.subr.bf16.mxu1 %v12709_v33  ;;  %3368 = vmatprep.subr.bf16.mxu0 %v12712_v25  ;;  %v12746_v43 = vld [vmem:[%s16941_s3 + $0x700] ss:$16 sps:$4 sm:$0xff]   ;;  %v12751_v1 = vld [vmem:[%s16941_s3 + $0x5ec] ss:$16 sps:$4 sm:$0xff]   ;;  %v12754_v9 = vld [vmem:[%s16941_s3 + $0x7e4] ss:$16 sps:$4 sm:$0xff]  }
 0x1ca   :  { %2683 = vmatprep.mubr.bf16.mxu1 %v13669_v28  ;;  %3390 = vmatprep.mubr.bf16.mxu0 %v13669_v28  ;;  %v12749_v3 = vld [vmem:[%s16941_s3 + $0x5e8] ss:$16 sps:$4 sm:$0xff]   ;;  %v12752_v15 = vld [vmem:[%s16941_s3 + $0x7e0] ss:$16 sps:$4 sm:$0xff]   ;;  %v3461_v7 = vrot.slane %v14099_v56, 6  ;;  %s13670_s19 = smov [#allocation2]  }
 0x1cb   :  { %v12757_v8 = vld [vmem:[%s16941_s3 + $0x5cc] ss:$16 sps:$4 sm:$0xff]   ;;  %v12760_v11 = vld [vmem:[%s16941_s3 + $0x7c4] ss:$16 sps:$4 sm:$0xff]   ;;  %v12755_v12 = vld [vmem:[%s16941_s3 + $0x5c8] ss:$16 sps:$4 sm:$0xff]  }
 0x1cc   :  { %2662 = vmatpush1.bf16.msra.mxu1 %v12707_v27  ;;  %3369 = vmatpush1.bf16.msra.mxu0 %v12710_v36  ;;  %v12758_v29 = vld [vmem:[%s16941_s3 + $0x7c0] ss:$16 sps:$4 sm:$0xff]   ;;  %v12763_v14 = vld [vmem:[%s16941_s3 + $0x5ac] ss:$16 sps:$4 sm:$0xff]   ;;  %v12766_v32 = vld [vmem:[%s16941_s3 + $0x7a4] ss:$16 sps:$4 sm:$0xff]  }
 0x1cd   :  { %2663 = vmatprep.subr.bf16.mxu1 %v12715_v39  ;;  %3370 = vmatprep.subr.bf16.mxu0 %v12718_v44  ;;  %v12761_v63 = vld [vmem:[%s16941_s3 + $0x5a8] ss:$16 sps:$4 sm:$0xff]   ;;  %v12764_v16 = vld [vmem:[%s16941_s3 + $0x7a0] ss:$16 sps:$4 sm:$0xff]   ;;  %v12769_v21 = vld [vmem:[%s16941_s3 + $0x58c] ss:$16 sps:$4 sm:$0xff]  }
 0x1ce   :  { %v12772_v22 = vld [vmem:[%s16941_s3 + $0x784] ss:$16 sps:$4 sm:$0xff]   ;;  %v12767_v55 = vld [vmem:[%s16941_s3 + $0x588] ss:$16 sps:$4 sm:$0xff]   ;;  %v12770_v23 = vld [vmem:[%s16941_s3 + $0x780] ss:$16 sps:$4 sm:$0xff]  }
 0x1cf   :  { %v12775_v31 = vld [vmem:[%s16941_s3 + $0x66c] ss:$16 sps:$4 sm:$0xff]   ;;  %v12778_v33 = vld [vmem:[%s16941_s3 + $0x864] ss:$16 sps:$4 sm:$0xff]   ;;  %v12773_v25 = vld [vmem:[%s16941_s3 + $0x668] ss:$16 sps:$4 sm:$0xff]  }
 0x1d0   :  { %2664 = vmatpush1.bf16.msra.mxu1 %v12713_v38  ;;  %3371 = vmatpush1.bf16.msra.mxu0 %v12716_v40  ;;  %v12776_v27 = vld [vmem:[%s16941_s3 + $0x860] ss:$16 sps:$4 sm:$0xff]   ;;  %v3648_v36 = vrot.slane %v14099_v56, 7  ;;  %v12781_v39 = vld [vmem:[%s16941_s3 + $0x64c] ss:$16 sps:$4 sm:$0xff]   ;;  %s10373_s20 = sshll.u32 %s13670_s19, 4  ;;  %s10374_s20 = int_to_ptr.vmem [resolvable:$true] %s10373_s20 }
 0x1d1   :  { %2665 = vmatprep.subr.bf16.mxu1 %v12721_v41  ;;  %3372 = vmatprep.subr.bf16.mxu0 %v12724_v45  ;;  %v12784_v44 = vld [vmem:[%s16941_s3 + $0x844] ss:$16 sps:$4 sm:$0xff]   ;;  %v12779_v41 = vld [vmem:[%s16941_s3 + $0x648] ss:$16 sps:$4 sm:$0xff]   ;;  %v12782_v45 = vld [vmem:[%s16941_s3 + $0x840] ss:$16 sps:$4 sm:$0xff]   ;;  %p13650_p1 = scmp.lt.s32.totalorder %s10374_s20, %s10374_s20 }
 0x1d2   :  { %vm10365_vm2 = vcmask 25600   ;;  %s13645_s21 = scalar_lea.vmem %s10374_s20, 32 }
 0x1d3   :  { %p13646_p0 = scmp.ne.s32.totalorder %s10374_s20, %s13645_s21  ;;  %p13651_p2 = scmp.lt.s32.totalorder %s13645_s21, %s13645_s21 }
 0x1d4   :  { %2666 = vmatpush1.bf16.msra.mxu1 %v12719_v46  ;;  %3373 = vmatpush1.bf16.msra.mxu0 %v12722_v19 }
 0x1d5   :  { %2846 = vmatprep.subr.bf16.mxu1 %v12727_v47  ;;  %3553 = vmatprep.subr.bf16.mxu0 %v12730_v50  ;;  %v12790_v47 = vld [vmem:[%s16941_s3 + $0x824] ss:$16 sps:$4 sm:$0xff]   ;;  %p13652_p3 = por %p13651_p2, %p13650_p1 }
 0x1d7   :  { %10783 = vmatmul.mubr.msk.bf16.vlgmr.msra.gmra.mxu1 %vm529_vm1, %v2526_v35  ;;  %10918 = vmatmul.mubr.msk.bf16.vlgmr.msra.gmra.mxu0 %vm529_vm1, %v3274_v42  ;;  %v12739_v35 = vld [vmem:[%s16941_s3 + $0x52c] ss:$16 sps:$4 sm:$0xff]   ;;  %p13653_p4 = pnand %p13652_p3, %p13646_p0 }
 0x1d8   :  { %2847 = vmatpush1.bf16.msra.mxu1 %v12725_v48  ;;  %3554 = vmatpush1.bf16.msra.mxu0 %v12728_v53  ;;  %v12785_v53 = vld [vmem:[%s16941_s3 + $0x628] ss:$16 sps:$4 sm:$0xff]  }
 0x1d9   :  { %2848 = vmatprep.subr.bf16.mxu1 %v12733_v49  ;;  %3555 = vmatprep.subr.bf16.mxu0 %v12736_v58  ;;  %v12788_v49 = vld [vmem:[%s16941_s3 + $0x820] ss:$16 sps:$4 sm:$0xff]  }
 0x1da   :  { %2870 = vmatprep.mubr.bf16.mxu1 %v13669_v28  ;;  %3577 = vmatprep.mubr.bf16.mxu0 %v13669_v28 }
 0x1dc   :  { %2849 = vmatpush1.bf16.msra.mxu1 %v12731_v52  ;;  %3556 = vmatpush1.bf16.msra.mxu0 %v12734_v54  ;;  %v12793_v54 = vld [vmem:[%s16941_s3 + $0x60c] ss:$16 sps:$4 sm:$0xff]  }
 0x1dd   :  { %2850 = vmatprep.subr.bf16.mxu1 %v12739_v35  ;;  %3557 = vmatprep.subr.bf16.mxu0 %v12742_v57  ;;  %v12796_v35 = vld [vmem:[%s16941_s3 + $0x804] ss:$16 sps:$4 sm:$0xff]   ;;  %v12791_v57 = vld [vmem:[%s16941_s3 + $0x608] ss:$16 sps:$4 sm:$0xff]  }
 0x1e0   :  { %2851 = vmatpush1.bf16.msra.mxu1 %v12737_v60  ;;  %3558 = vmatpush1.bf16.msra.mxu0 %v12740_v62  ;;  %v12794_v60 = vld [vmem:[%s16941_s3 + $0x800] ss:$16 sps:$4 sm:$0xff]   ;;  %v12799_v62 = vld [vmem:[%s16941_s3 + $0x6ec] ss:$16 sps:$4 sm:$0xff]  }
 0x1e1   :  { %2852 = vmatprep.subr.bf16.mxu1 %v12745_v61  ;;  %3559 = vmatprep.subr.bf16.mxu0 %v12748_v2  ;;  %v12802_v61 = vld [vmem:[%s16941_s3 + $0x8e4] ss:$16 sps:$4 sm:$0xff]   ;;  %v12797_v2 = vld [vmem:[%s16941_s3 + $0x6e8] ss:$16 sps:$4 sm:$0xff]  }
 0x1e4   :  { %2853 = vmatpush1.bf16.msra.mxu1 %v12743_v0  ;;  %3560 = vmatpush1.bf16.msra.mxu0 %v12746_v43  ;;  %v12800_v0 = vld [vmem:[%s16941_s3 + $0x8e0] ss:$16 sps:$4 sm:$0xff]   ;;  %v12805_v43 = vld [vmem:[%s16941_s3 + $0x6cc] ss:$16 sps:$4 sm:$0xff]  }
 0x1e5   :  { %3033 = vmatprep.subr.bf16.mxu1 %v12751_v1  ;;  %3740 = vmatprep.subr.bf16.mxu0 %v12754_v9  ;;  %v12808_v1 = vld [vmem:[%s16941_s3 + $0x8c4] ss:$16 sps:$4 sm:$0xff]  }
 0x1e7   :  { %10817 = vmatmul.mubr.msk.bf16.vlgmr.msra.gmra.mxu1 %vm529_vm1, %v2713_v59  ;;  %10952 = vmatmul.mubr.msk.bf16.vlgmr.msra.gmra.mxu0 %vm529_vm1, %v3461_v7  ;;  %v14783_v10 = vpop.f32.mrf.mxu1  ;;  %v14785_v17 = vpop.f32.mrf.mxu0 }
 0x1e8   :  { %3034 = vmatpush1.bf16.msra.mxu1 %v12749_v3  ;;  %3741 = vmatpush1.bf16.msra.mxu0 %v12752_v15 }
 0x1e9   :  { %v14793_v13 = vpop.f32.mrf.mxu1  ;;  %v14795_v59 = vpop.f32.mrf.mxu0  ;;  %3035 = vmatprep.subr.bf16.mxu1 %v12757_v8  ;;  %3742 = vmatprep.subr.bf16.mxu0 %v12760_v11  ;;  %v12803_v8 = vld [vmem:[%s16941_s3 + $0x6c8] ss:$16 sps:$4 sm:$0xff]   ;;  %v12806_v11 = vld [vmem:[%s16941_s3 + $0x8c0] ss:$16 sps:$4 sm:$0xff]  }
 0x1ea   :  { %3057 = vmatprep.mubr.bf16.mxu1 %v13669_v28  ;;  %3764 = vmatprep.mubr.bf16.mxu0 %v13669_v28 }
 0x1eb   :  { %v991_v34 = vpop.f32.mrf.mxu1  ;;  %v1339_v37 = vpop.f32.mrf.mxu0 }
 0x1ec   :  { %3036 = vmatpush1.bf16.msra.mxu1 %v12755_v12  ;;  %3743 = vmatpush1.bf16.msra.mxu0 %v12758_v29 }
 0x1ed   :  { %v992_v18 = vpop.f32.mrf.mxu1  ;;  %v1340_v20 = vpop.f32.mrf.mxu0  ;;  %3037 = vmatprep.subr.bf16.mxu1 %v12763_v14  ;;  %3744 = vmatprep.subr.bf16.mxu0 %v12766_v32 }
 0x1ee   :  { %v12809_v18 = vld [vmem:[%s16941_s3 + $0x6a8] ss:$16 sps:$4 sm:$0xff]  }
 0x1f0   :  { %3038 = vmatpush1.bf16.msra.mxu1 %v12761_v63  ;;  %3745 = vmatpush1.bf16.msra.mxu0 %v12764_v16 }
 0x1f1   :  { %3039 = vmatprep.subr.bf16.mxu1 %v12769_v21  ;;  %3746 = vmatprep.subr.bf16.mxu0 %v12772_v22  ;;  %v12817_v21 = vld [vmem:[%s16941_s3 + $0x68c] ss:$16 sps:$4 sm:$0xff]  }
 0x1f4   :  { %3040 = vmatpush1.bf16.msra.mxu1 %v12767_v55  ;;  %3747 = vmatpush1.bf16.msra.mxu0 %v12770_v23 }
 0x1f5   :  { %3220 = vmatprep.subr.bf16.mxu1 %v12775_v31  ;;  %3926 = vmatprep.subr.bf16.mxu0 %v12778_v33  ;;  %v12815_v31 = vld [vmem:[%s16941_s3 + $0x688] ss:$16 sps:$4 sm:$0xff]   ;;  %v12818_v33 = vld [vmem:[%s16941_s3 + $0x880] ss:$16 sps:$4 sm:$0xff]  }
 0x1f7   :  { %v14842_v38 = vpop.f32.mrf.mxu1  ;;  %v14844_v40 = vpop.f32.mrf.mxu0  ;;  %10851 = vmatmul.mubr.msk.bf16.vlgmr.msra.gmra.mxu1 %vm529_vm1, %v2900_v4  ;;  %10986 = vmatmul.mubr.msk.bf16.vlgmr.msra.gmra.mxu0 %vm529_vm1, %v3648_v36  ;;  %v12787_v4 = vld [vmem:[%s16941_s3 + $0x62c] ss:$16 sps:$4 sm:$0xff]  }
 0x1f8   :  { %3221 = vmatpush1.bf16.msra.mxu1 %v12773_v25  ;;  %3927 = vmatpush1.bf16.msra.mxu0 %v12776_v27  ;;  %v12823_v25 = vld [vmem:[%s16941_s3 + $0x76c] ss:$16 sps:$4 sm:$0xff]   ;;  %v12826_v27 = vld [vmem:[%s16941_s3 + $0x964] ss:$16 sps:$4 sm:$0xff]  }
 0x1f9   :  { %v14858_v46 = vpop.f32.mrf.mxu1  ;;  %v14860_v19 = vpop.f32.mrf.mxu0  ;;  %3222 = vmatprep.subr.bf16.mxu1 %v12781_v39  ;;  %3928 = vmatprep.subr.bf16.mxu0 %v12784_v44  ;;  %v12821_v39 = vld [vmem:[%s16941_s3 + $0x768] ss:$16 sps:$4 sm:$0xff]   ;;  %v12824_v44 = vld [vmem:[%s16941_s3 + $0x960] ss:$16 sps:$4 sm:$0xff]  }
 0x1fa   :  { %3244 = vmatprep.mubr.bf16.mxu1 %v13669_v28  ;;  %3950 = vmatprep.mubr.bf16.mxu0 %v13669_v28 }
 0x1fb   :  { %v1032_v50 = vpop.f32.mrf.mxu1  ;;  %v1526_v48 = vpop.f32.mrf.mxu0 }
 0x1fc   :  { %3223 = vmatpush1.bf16.msra.mxu1 %v12779_v41  ;;  %3929 = vmatpush1.bf16.msra.mxu0 %v12782_v45  ;;  %v12829_v41 = vld [vmem:[%s16941_s3 + $0x74c] ss:$16 sps:$4 sm:$0xff]   ;;  %v12832_v45 = vld [vmem:[%s16941_s3 + $0x944] ss:$16 sps:$4 sm:$0xff]   ;;  %v12827_v48 = vld [vmem:[%s16941_s3 + $0x748] ss:$16 sps:$4 sm:$0xff]  }
 0x1fd   :  { %v1033_v58 = vpop.f32.mrf.mxu1  ;;  %v1527_v52 = vpop.f32.mrf.mxu0  ;;  %3224 = vmatprep.subr.bf16.mxu1 %v12787_v4  ;;  %3930 = vmatprep.subr.bf16.mxu0 %v12790_v47 }
 0x200   :  { %3225 = vmatpush1.bf16.msra.mxu1 %v12785_v53  ;;  %3931 = vmatpush1.bf16.msra.mxu0 %v12788_v49  ;;  %v12830_v53 = vld [vmem:[%s16941_s3 + $0x940] ss:$16 sps:$4 sm:$0xff]  }
 0x201   :  { %3226 = vmatprep.subr.bf16.mxu1 %v12793_v54  ;;  %3932 = vmatprep.subr.bf16.mxu0 %v12796_v35 }
 0x204   :  { %3227 = vmatpush1.bf16.msra.mxu1 %v12791_v57  ;;  %3933 = vmatpush1.bf16.msra.mxu0 %v12794_v60  ;;  %v12833_v60 = vld [vmem:[%s16941_s3 + $0x728] ss:$16 sps:$4 sm:$0xff]  }
 0x205   :  { %3407 = vmatprep.subr.bf16.mxu1 %v12799_v62  ;;  %4114 = vmatprep.subr.bf16.mxu0 %v12802_v61  ;;  %v12836_v62 = vld [vmem:[%s16941_s3 + $0x920] ss:$16 sps:$4 sm:$0xff]  }
 0x207   :  { %v1152_v9 = vpop.f32.mrf.mxu1  ;;  %v1709_v3 = vpop.f32.mrf.mxu0  ;;  %10885 = vmatmul.mubr.msk.bf16.vlgmr.msra.gmra.mxu1 %vm529_vm1, %v3087_v26  ;;  %11020 = vmatmul.mubr.msk.bf16.vlgmr.msra.gmra.mxu0 %vm529_vm1, %v14133_v30  ;;  %v12811_v26 = vld [vmem:[%s16941_s3 + $0x6ac] ss:$16 sps:$4 sm:$0xff]  }
 0x208   :  { %v1153_v15 = vadd.f32 %v1152_v9, %v14783_v10  ;;  %3408 = vmatpush1.bf16.msra.mxu1 %v12797_v2  ;;  %4115 = vmatpush1.bf16.msra.mxu0 %v12800_v0  ;;  %v12814_v10 = vld [vmem:[%s16941_s3 + $0x8a4] ss:$16 sps:$4 sm:$0xff]   ;;  %v12847_v9 = vld [vmem:[%s16941_s3 + $0x7ec] ss:$16 sps:$4 sm:$0xff]  }
 0x209   :  { %v1154_v12 = vpop.f32.mrf.mxu1  ;;  %v1711_v29 = vpop.f32.mrf.mxu0  ;;  %3409 = vmatprep.subr.bf16.mxu1 %v12805_v43  ;;  %4116 = vmatprep.subr.bf16.mxu0 %v12808_v1  ;;  %v12844_v0 = vld [vmem:[%s16941_s3 + $0x904] ss:$16 sps:$4 sm:$0xff]   ;;  %v12839_v43 = vld [vmem:[%s16941_s3 + $0x708] ss:$16 sps:$4 sm:$0xff]   ;;  %v12842_v1 = vld [vmem:[%s16941_s3 + $0x900] ss:$16 sps:$4 sm:$0xff]  }
 0x20a   :  { %v1383_v14 = vadd.f32 %v14785_v17, %v1153_v15  ;;  %v1155_v32 = vadd.f32 %v1154_v12, %v14793_v13  ;;  %3431 = vmatprep.mubr.bf16.mxu1 %v13669_v28  ;;  %4138 = vmatprep.mubr.bf16.mxu0 %v13669_v28  ;;  %v12812_v17 = vld [vmem:[%s16941_s3 + $0x8a0] ss:$16 sps:$4 sm:$0xff]   ;;  %v12845_v15 = vld [vmem:[%s16941_s3 + $0x7e8] ss:$16 sps:$4 sm:$0xff]   ;;  %v12853_v12 = vld [vmem:[%s16941_s3 + $0x7cc] ss:$16 sps:$4 sm:$0xff]  }
 0x20b   :  { %v1156_v34 = vpop.f32.mrf.mxu1  ;;  %v1713_v37 = vpop.f32.mrf.mxu0 }
 0x20c   :  { %v1570_v63 = vadd.f32 %v14844_v40, %v1383_v14  ;;  %v1384_v16 = vadd.f32 %v14795_v59, %v1155_v32  ;;  %3410 = vmatpush1.bf16.msra.mxu1 %v12803_v8  ;;  %4117 = vmatpush1.bf16.msra.mxu0 %v12806_v11  ;;  %v12820_v59 = vld [vmem:[%s16941_s3 + $0x884] ss:$16 sps:$4 sm:$0xff]   ;;  %v4022_v40 = vrot.slane %v14133_v30, 1  ;;  %v12848_v8 = vld [vmem:[%s16941_s3 + $0x9e0] ss:$16 sps:$4 sm:$0xff]   ;;  %v4209_v11 = vrot.slane %v14133_v30, 2 }
 0x20d   :  { %v1157_v13 = vpop.f32.mrf.mxu1  ;;  %v1714_v20 = vpop.f32.mrf.mxu0  ;;  %3411 = vmatprep.subr.bf16.mxu1 %v12811_v26  ;;  %4118 = vmatprep.subr.bf16.mxu0 %v12814_v10  ;;  %v12851_v34 = vld [vmem:[%s16941_s3 + $0x7c8] ss:$16 sps:$4 sm:$0xff]   ;;  %v12854_v37 = vld [vmem:[%s16941_s3 + $0x9c0] ss:$16 sps:$4 sm:$0xff]  }
 0x20e   :  { %v1757_v22 = vadd.f32 %v1709_v3, %v1570_v63  ;;  %v1571_v55 = vadd.f32 %v14860_v19, %v1384_v16  ;;  %v12850_v3 = vld [vmem:[%s16941_s3 + $0x9e4] ss:$16 sps:$4 sm:$0xff]  }
 0x210   :  { %v1758_v23 = vadd.f32 %v1711_v29, %v1571_v55  ;;  %3412 = vmatpush1.bf16.msra.mxu1 %v12809_v18  ;;  %4119 = vmatpush1.bf16.msra.mxu0 %v12812_v17  ;;  %v12856_v29 = vld [vmem:[%s16941_s3 + $0x9c4] ss:$16 sps:$4 sm:$0xff]  }
 0x211   :  { %3413 = vmatprep.subr.bf16.mxu1 %v12817_v21  ;;  %4120 = vmatprep.subr.bf16.mxu0 %v12820_v59  ;;  %v12862_v18 = vld [vmem:[%s16941_s3 + $0x9a4] ss:$16 sps:$4 sm:$0xff]   ;;  %v12857_v59 = vld [vmem:[%s16941_s3 + $0x7a8] ss:$16 sps:$4 sm:$0xff]  }
 0x214   :  { %3414 = vmatpush1.bf16.msra.mxu1 %v12815_v31  ;;  %4121 = vmatpush1.bf16.msra.mxu0 %v12818_v33  ;;  %v12865_v31 = vld [vmem:[%s16941_s3 + $0x78c] ss:$16 sps:$4 sm:$0xff]   ;;  %v12868_v33 = vld [vmem:[%s16941_s3 + $0x984] ss:$16 sps:$4 sm:$0xff]  }
 0x215   :  { %3594 = vmatprep.subr.bf16.mxu1 %v12823_v25  ;;  %4301 = vmatprep.subr.bf16.mxu0 %v12826_v27  ;;  %v12863_v25 = vld [vmem:[%s16941_s3 + $0x788] ss:$16 sps:$4 sm:$0xff]   ;;  %v12866_v27 = vld [vmem:[%s16941_s3 + $0x980] ss:$16 sps:$4 sm:$0xff]  }
 0x217   :  { %v1193_v19 = vpop.f32.mrf.mxu1  ;;  %v1896_v4 = vpop.f32.mrf.mxu0  ;;  %10919 = vmatmul.mubr.msk.bf16.vlgmr.msra.gmra.mxu1 %vm529_vm1, %v3274_v42  ;;  %11054 = vmatmul.mubr.msk.bf16.vlgmr.msra.gmra.mxu0 %vm529_vm1, %v4022_v40  ;;  %v12835_v42 = vld [vmem:[%s16941_s3 + $0x72c] ss:$16 sps:$4 sm:$0xff]  }
 0x218   :  { %v1194_v47 = vadd.f32 %v1193_v19, %v14842_v38  ;;  %v1944_v50 = vadd.f32 %v1896_v4, %v1757_v22  ;;  %3595 = vmatpush1.bf16.msra.mxu1 %v12821_v39  ;;  %4302 = vmatpush1.bf16.msra.mxu0 %v12824_v44  ;;  %v12838_v38 = vld [vmem:[%s16941_s3 + $0x924] ss:$16 sps:$4 sm:$0xff]   ;;  %v12860_v22 = vld [vmem:[%s16941_s3 + $0x9a0] ss:$16 sps:$4 sm:$0xff]   ;;  %v12871_v39 = vld [vmem:[%s16941_s3 + $0x86c] ss:$16 sps:$4 sm:$0xff]  }
 0x219   :  { %v1195_v49 = vpop.f32.mrf.mxu1  ;;  %v1898_v58 = vpop.f32.mrf.mxu0  ;;  %3596 = vmatprep.subr.bf16.mxu1 %v12829_v41  ;;  %4303 = vmatprep.subr.bf16.mxu0 %v12832_v45  ;;  %v12874_v44 = vld [vmem:[%s16941_s3 + $0xa64] ss:$16 sps:$4 sm:$0xff]   ;;  %v12869_v41 = vld [vmem:[%s16941_s3 + $0x868] ss:$16 sps:$4 sm:$0xff]   ;;  %v12872_v45 = vld [vmem:[%s16941_s3 + $0xa60] ss:$16 sps:$4 sm:$0xff]  }
 0x21a   :  { %v1196_v52 = vadd.f32 %v1195_v49, %v14858_v46  ;;  %v1945_v54 = vadd.f32 %v1898_v58, %v1758_v23  ;;  %3618 = vmatprep.mubr.bf16.mxu1 %v13669_v28  ;;  %4325 = vmatprep.mubr.bf16.mxu0 %v13669_v28  ;;  %v12841_v46 = vld [vmem:[%s16941_s3 + $0x70c] ss:$16 sps:$4 sm:$0xff]   ;;  %v4396_v19 = vrot.slane %v14133_v30, 3  ;;  %v12875_v58 = vld [vmem:[%s16941_s3 + $0x848] ss:$16 sps:$4 sm:$0xff]  }
 0x21b   :  { %v1197_v35 = vpop.f32.mrf.mxu1  ;;  %v1900_v57 = vpop.f32.mrf.mxu0  ;;  %v12877_v4 = vld [vmem:[%s16941_s3 + $0x84c] ss:$16 sps:$4 sm:$0xff]  }
 0x21c   :  { %3597 = vmatpush1.bf16.msra.mxu1 %v12827_v48  ;;  %4304 = vmatpush1.bf16.msra.mxu0 %v12830_v53 }
 0x21d   :  { %v1198_v61 = vpop.f32.mrf.mxu1  ;;  %v1901_v2 = vpop.f32.mrf.mxu0  ;;  %3598 = vmatprep.subr.bf16.mxu1 %v12835_v42  ;;  %4305 = vmatprep.subr.bf16.mxu0 %v12838_v38  ;;  %v12878_v42 = vld [vmem:[%s16941_s3 + $0xa40] ss:$16 sps:$4 sm:$0xff]  }
 0x21e   :  { %v12884_v61 = vld [vmem:[%s16941_s3 + $0xa20] ss:$16 sps:$4 sm:$0xff]  }
 0x220   :  { %3599 = vmatpush1.bf16.msra.mxu1 %v12833_v60  ;;  %4306 = vmatpush1.bf16.msra.mxu0 %v12836_v62  ;;  %v12881_v62 = vld [vmem:[%s16941_s3 + $0x828] ss:$16 sps:$4 sm:$0xff]  }
 0x221   :  { %3600 = vmatprep.subr.bf16.mxu1 %v12841_v46  ;;  %4307 = vmatprep.subr.bf16.mxu0 %v12844_v0  ;;  %v12889_v0 = vld [vmem:[%s16941_s3 + $0x80c] ss:$16 sps:$4 sm:$0xff]  }
 0x224   :  { %3601 = vmatpush1.bf16.msra.mxu1 %v12839_v43  ;;  %4308 = vmatpush1.bf16.msra.mxu0 %v12842_v1  ;;  %v12892_v43 = vld [vmem:[%s16941_s3 + $0xa04] ss:$16 sps:$4 sm:$0xff]   ;;  %v12887_v1 = vld [vmem:[%s16941_s3 + $0x808] ss:$16 sps:$4 sm:$0xff]  }
 0x225   :  { %3781 = vmatprep.subr.bf16.mxu1 %v12847_v9  ;;  %4488 = vmatprep.subr.bf16.mxu0 %v12850_v3  ;;  %v12890_v9 = vld [vmem:[%s16941_s3 + $0xa00] ss:$16 sps:$4 sm:$0xff]   ;;  %v12895_v3 = vld [vmem:[%s16941_s3 + $0x8ec] ss:$16 sps:$4 sm:$0xff]  }
 0x227   :  { %v1376_v26 = vpop.f32.mrf.mxu1  ;;  %v2083_v10 = vpop.f32.mrf.mxu0  ;;  %10953 = vmatmul.mubr.msk.bf16.vlgmr.msra.gmra.mxu1 %vm529_vm1, %v3461_v7  ;;  %11088 = vmatmul.mubr.msk.bf16.vlgmr.msra.gmra.mxu0 %vm529_vm1, %v4209_v11  ;;  %v12859_v7 = vld [vmem:[%s16941_s3 + $0x7ac] ss:$16 sps:$4 sm:$0xff]  }
 0x228   :  { %v1385_v14 = vadd.f32 %v1376_v26, %v1194_v47  ;;  %v2131_v32 = vadd.f32 %v2083_v10, %v1944_v50  ;;  %3782 = vmatpush1.bf16.msra.mxu1 %v12845_v15  ;;  %4489 = vmatpush1.bf16.msra.mxu0 %v12848_v8  ;;  %v12880_v47 = vld [vmem:[%s16941_s3 + $0xa44] ss:$16 sps:$4 sm:$0xff]   ;;  %v12893_v8 = vld [vmem:[%s16941_s3 + $0x8e8] ss:$16 sps:$4 sm:$0xff]   ;;  %v12901_v26 = vld [vmem:[%s16941_s3 + $0x8cc] ss:$16 sps:$4 sm:$0xff]  }
 0x229   :  { %v1378_v63 = vpop.f32.mrf.mxu1  ;;  %v2085_v16 = vpop.f32.mrf.mxu0  ;;  %3783 = vmatprep.subr.bf16.mxu1 %v12853_v12  ;;  %4490 = vmatprep.subr.bf16.mxu0 %v12856_v29  ;;  %v12898_v15 = vld [vmem:[%s16941_s3 + $0xae4] ss:$16 sps:$4 sm:$0xff]   ;;  %v12896_v12 = vld [vmem:[%s16941_s3 + $0xae0] ss:$16 sps:$4 sm:$0xff]   ;;  %v4583_v29 = vrot.slane %v14133_v30, 4 }
 0x22a   :  { %v1386_v17 = vadd.f32 %v1378_v63, %v1196_v52  ;;  %v2132_v13 = vadd.f32 %v2085_v16, %v1945_v54  ;;  %3805 = vmatprep.mubr.bf16.mxu1 %v13669_v28  ;;  %4512 = vmatprep.mubr.bf16.mxu0 %v13669_v28  ;;  %v12886_v52 = vld [vmem:[%s16941_s3 + $0xa24] ss:$16 sps:$4 sm:$0xff]   ;;  %v12899_v63 = vld [vmem:[%s16941_s3 + $0x8c8] ss:$16 sps:$4 sm:$0xff]   ;;  %v12902_v16 = vld [vmem:[%s16941_s3 + $0xac0] ss:$16 sps:$4 sm:$0xff]  }
 0x22b   :  { %v1380_v20 = vpop.f32.mrf.mxu1  ;;  %v2087_v21 = vpop.f32.mrf.mxu0  ;;  %v12904_v10 = vld [vmem:[%s16941_s3 + $0xac4] ss:$16 sps:$4 sm:$0xff]  }
 0x22c   :  { %3784 = vmatpush1.bf16.msra.mxu1 %v12851_v34  ;;  %4491 = vmatpush1.bf16.msra.mxu0 %v12854_v37 }
 0x22d   :  { %v1381_v55 = vpop.f32.mrf.mxu1  ;;  %v2088_v23 = vpop.f32.mrf.mxu0  ;;  %3785 = vmatprep.subr.bf16.mxu1 %v12859_v7  ;;  %4492 = vmatprep.subr.bf16.mxu0 %v12862_v18 }
 0x22e   :  { %v12905_v55 = vld [vmem:[%s16941_s3 + $0x8a8] ss:$16 sps:$4 sm:$0xff]   ;;  %v12908_v23 = vld [vmem:[%s16941_s3 + $0xaa0] ss:$16 sps:$4 sm:$0xff]  }
 0x230   :  { %3786 = vmatpush1.bf16.msra.mxu1 %v12857_v59  ;;  %4493 = vmatpush1.bf16.msra.mxu0 %v12860_v22 }
 0x231   :  { %3787 = vmatprep.subr.bf16.mxu1 %v12865_v31  ;;  %4494 = vmatprep.subr.bf16.mxu0 %v12868_v33 }
 0x234   :  { %3788 = vmatpush1.bf16.msra.mxu1 %v12863_v25  ;;  %4495 = vmatpush1.bf16.msra.mxu0 %v12866_v27  ;;  %v12913_v25 = vld [vmem:[%s16941_s3 + $0x88c] ss:$16 sps:$4 sm:$0xff]   ;;  %v12916_v27 = vld [vmem:[%s16941_s3 + $0xa84] ss:$16 sps:$4 sm:$0xff]  }
 0x235   :  { %3967 = vmatprep.subr.bf16.mxu1 %v12871_v39  ;;  %4675 = vmatprep.subr.bf16.mxu0 %v12874_v44  ;;  %v12911_v39 = vld [vmem:[%s16941_s3 + $0x888] ss:$16 sps:$4 sm:$0xff]   ;;  %v12914_v44 = vld [vmem:[%s16941_s3 + $0xa80] ss:$16 sps:$4 sm:$0xff]  }
 0x237   :  { %v1563_v50 = vpop.f32.mrf.mxu1  ;;  %v2270_v48 = vpop.f32.mrf.mxu0  ;;  %10987 = vmatmul.mubr.msk.bf16.vlgmr.msra.gmra.mxu1 %vm529_vm1, %v3648_v36  ;;  %11122 = vmatmul.mubr.msk.bf16.vlgmr.msra.gmra.mxu0 %vm529_vm1, %v4396_v19  ;;  %v12883_v36 = vld [vmem:[%s16941_s3 + $0x82c] ss:$16 sps:$4 sm:$0xff]  }
 0x238   :  { %v1572_v53 = vadd.f32 %v1563_v50, %v1385_v14  ;;  %v2318_v49 = vadd.f32 %v2270_v48, %v2131_v32  ;;  %3968 = vmatpush1.bf16.msra.mxu1 %v12869_v41  ;;  %4676 = vmatpush1.bf16.msra.mxu0 %v12872_v45  ;;  %v12919_v41 = vld [vmem:[%s16941_s3 + $0x96c] ss:$16 sps:$4 sm:$0xff]   ;;  %v12922_v45 = vld [vmem:[%s16941_s3 + $0xb64] ss:$16 sps:$4 sm:$0xff]   ;;  %v4770_v50 = vrot.slane %v14133_v30, 5 }
 0x239   :  { %v1565_v38 = vpop.f32.mrf.mxu1  ;;  %v2272_v56 = vpop.f32.mrf.mxu0  ;;  %3969 = vmatprep.subr.bf16.mxu1 %v12877_v4  ;;  %4677 = vmatprep.subr.bf16.mxu0 %v12880_v47  ;;  %v12917_v4 = vld [vmem:[%s16941_s3 + $0x968] ss:$16 sps:$4 sm:$0xff]   ;;  %v12920_v47 = vld [vmem:[%s16941_s3 + $0xb60] ss:$16 sps:$4 sm:$0xff]   ;;  %v12925_v48 = vld [vmem:[%s16941_s3 + $0x94c] ss:$16 sps:$4 sm:$0xff]  }
 0x23a   :  { %v1573_v54 = vadd.f32 %v1565_v38, %v1386_v17  ;;  %v2319_v35 = vadd.f32 %v2272_v56, %v2132_v13  ;;  %3991 = vmatprep.mubr.bf16.mxu1 %v13669_v28  ;;  %4699 = vmatprep.mubr.bf16.mxu0 %v13669_v28  ;;  %v12907_v17 = vld [vmem:[%s16941_s3 + $0x8ac] ss:$16 sps:$4 sm:$0xff]   ;;  %v12910_v13 = vld [vmem:[%s16941_s3 + $0xaa4] ss:$16 sps:$4 sm:$0xff]   ;;  %v12923_v56 = vld [vmem:[%s16941_s3 + $0x948] ss:$16 sps:$4 sm:$0xff]  }
 0x23b   :  { %v1567_v57 = vpop.f32.mrf.mxu1  ;;  %v2274_v60 = vpop.f32.mrf.mxu0 }
 0x23c   :  { %3970 = vmatpush1.bf16.msra.mxu1 %v12875_v58  ;;  %4678 = vmatpush1.bf16.msra.mxu0 %v12878_v42 }
 0x23d   :  { %v1568_v2 = vpop.f32.mrf.mxu1  ;;  %v2275_v46 = vpop.f32.mrf.mxu0  ;;  %3971 = vmatprep.subr.bf16.mxu1 %v12883_v36  ;;  %4679 = vmatprep.subr.bf16.mxu0 %v12886_v52  ;;  %v12926_v36 = vld [vmem:[%s16941_s3 + $0xb40] ss:$16 sps:$4 sm:$0xff]  }
 0x23e   :  { %v12929_v2 = vld [vmem:[%s16941_s3 + $0x928] ss:$16 sps:$4 sm:$0xff]   ;;  %v12932_v46 = vld [vmem:[%s16941_s3 + $0xb20] ss:$16 sps:$4 sm:$0xff]  }
 0x240   :  { %3972 = vmatpush1.bf16.msra.mxu1 %v12881_v62  ;;  %4680 = vmatpush1.bf16.msra.mxu0 %v12884_v61 }
 0x241   :  { %3973 = vmatprep.subr.bf16.mxu1 %v12889_v0  ;;  %4681 = vmatprep.subr.bf16.mxu0 %v12892_v43 }
 0x244   :  { %3974 = vmatpush1.bf16.msra.mxu1 %v12887_v1  ;;  %4682 = vmatpush1.bf16.msra.mxu0 %v12890_v9  ;;  %v12937_v1 = vld [vmem:[%s16941_s3 + $0x90c] ss:$16 sps:$4 sm:$0xff]   ;;  %v12940_v9 = vld [vmem:[%s16941_s3 + $0xb04] ss:$16 sps:$4 sm:$0xff]  }
 0x245   :  { %4155 = vmatprep.subr.bf16.mxu1 %v12895_v3  ;;  %4862 = vmatprep.subr.bf16.mxu0 %v12898_v15  ;;  %v12935_v3 = vld [vmem:[%s16941_s3 + $0x908] ss:$16 sps:$4 sm:$0xff]   ;;  %v12938_v15 = vld [vmem:[%s16941_s3 + $0xb00] ss:$16 sps:$4 sm:$0xff]  }
 0x247   :  { %v1750_v14 = vpop.f32.mrf.mxu1  ;;  %v2456_v32 = vpop.f32.mrf.mxu0  ;;  %11021 = vmatmul.mubr.msk.bf16.vlgmr.msra.gmra.mxu1 %vm529_vm1, %v14133_v30  ;;  %11156 = vmatmul.mubr.msk.bf16.vlgmr.msra.gmra.mxu0 %vm529_vm1, %v4583_v29 }
 0x248   :  { %v1759_v34 = vadd.f32 %v1750_v14, %v1572_v53  ;;  %v2504_v37 = vadd.f32 %v2456_v32, %v2318_v49  ;;  %4156 = vmatpush1.bf16.msra.mxu1 %v12893_v8  ;;  %4863 = vmatpush1.bf16.msra.mxu0 %v12896_v12  ;;  %v12928_v53 = vld [vmem:[%s16941_s3 + $0xb44] ss:$16 sps:$4 sm:$0xff]   ;;  %v12943_v8 = vld [vmem:[%s16941_s3 + $0x9ec] ss:$16 sps:$4 sm:$0xff]   ;;  %v4957_v14 = vrot.slane %v14133_v30, 6 }
 0x249   :  { %v1752_v7 = vpop.f32.mrf.mxu1  ;;  %v2458_v18 = vpop.f32.mrf.mxu0  ;;  %4157 = vmatprep.subr.bf16.mxu1 %v12901_v26  ;;  %4864 = vmatprep.subr.bf16.mxu0 %v12904_v10  ;;  %v12946_v12 = vld [vmem:[%s16941_s3 + $0xbe4] ss:$16 sps:$4 sm:$0xff]   ;;  %v12941_v26 = vld [vmem:[%s16941_s3 + $0x9e8] ss:$16 sps:$4 sm:$0xff]   ;;  %v12944_v10 = vld [vmem:[%s16941_s3 + $0xbe0] ss:$16 sps:$4 sm:$0xff]  }
 0x24a   :  { %v1760_v20 = vadd.f32 %v1752_v7, %v1573_v54  ;;  %v2505_v21 = vadd.f32 %v2458_v18, %v2319_v35  ;;  %4179 = vmatprep.mubr.bf16.mxu1 %v13669_v28  ;;  %4886 = vmatprep.mubr.bf16.mxu0 %v13669_v28  ;;  %v12934_v35 = vld [vmem:[%s16941_s3 + $0xb24] ss:$16 sps:$4 sm:$0xff]   ;;  %v12949_v32 = vld [vmem:[%s16941_s3 + $0x9cc] ss:$16 sps:$4 sm:$0xff]   ;;  %v12947_v18 = vld [vmem:[%s16941_s3 + $0x9c8] ss:$16 sps:$4 sm:$0xff]  }
 0x24b   :  { %v1754_v59 = vpop.f32.mrf.mxu1  ;;  %v2460_v22 = vpop.f32.mrf.mxu0 }
 0x24c   :  { %4158 = vmatpush1.bf16.msra.mxu1 %v12899_v63  ;;  %4865 = vmatpush1.bf16.msra.mxu0 %v12902_v16 }
 0x24d   :  { %v1755_v31 = vpop.f32.mrf.mxu1  ;;  %v2461_v33 = vpop.f32.mrf.mxu0  ;;  %4159 = vmatprep.subr.bf16.mxu1 %v12907_v17  ;;  %4866 = vmatprep.subr.bf16.mxu0 %v12910_v13  ;;  %v12950_v17 = vld [vmem:[%s16941_s3 + $0xbc0] ss:$16 sps:$4 sm:$0xff]  }
 0x24e   :  { %v12953_v31 = vld [vmem:[%s16941_s3 + $0x9a8] ss:$16 sps:$4 sm:$0xff]   ;;  %v12956_v33 = vld [vmem:[%s16941_s3 + $0xba0] ss:$16 sps:$4 sm:$0xff]  }
 0x250   :  { %4160 = vmatpush1.bf16.msra.mxu1 %v12905_v55  ;;  %4867 = vmatpush1.bf16.msra.mxu0 %v12908_v23 }
 0x251   :  { %4161 = vmatprep.subr.bf16.mxu1 %v12913_v25  ;;  %4868 = vmatprep.subr.bf16.mxu0 %v12916_v27 }
 0x254   :  { %4162 = vmatpush1.bf16.msra.mxu1 %v12911_v39  ;;  %4869 = vmatpush1.bf16.msra.mxu0 %v12914_v44  ;;  %v12961_v39 = vld [vmem:[%s16941_s3 + $0x98c] ss:$16 sps:$4 sm:$0xff]   ;;  %v12964_v44 = vld [vmem:[%s16941_s3 + $0xb84] ss:$16 sps:$4 sm:$0xff]  }
 0x255   :  { %4342 = vmatprep.subr.bf16.mxu1 %v12919_v41  ;;  %5049 = vmatprep.subr.bf16.mxu0 %v12922_v45  ;;  %v12959_v41 = vld [vmem:[%s16941_s3 + $0x988] ss:$16 sps:$4 sm:$0xff]   ;;  %v12962_v45 = vld [vmem:[%s16941_s3 + $0xb80] ss:$16 sps:$4 sm:$0xff]  }
 0x257   :  { %v1937_v49 = vpop.f32.mrf.mxu1  ;;  %v2644_v58 = vpop.f32.mrf.mxu0  ;;  %11055 = vmatmul.mubr.msk.bf16.vlgmr.msra.gmra.mxu1 %vm529_vm1, %v4022_v40  ;;  %11190 = vmatmul.mubr.msk.bf16.vlgmr.msra.gmra.mxu0 %vm529_vm1, %v4770_v50  ;;  %v12931_v40 = vld [vmem:[%s16941_s3 + $0x92c] ss:$16 sps:$4 sm:$0xff]  }
 0x258   :  { %v1946_v42 = vadd.f32 %v1937_v49, %v1759_v34  ;;  %v2692_v38 = vadd.f32 %v2644_v58, %v2504_v37  ;;  %4343 = vmatpush1.bf16.msra.mxu1 %v12917_v4  ;;  %5050 = vmatpush1.bf16.msra.mxu0 %v12920_v47  ;;  %v12952_v34 = vld [vmem:[%s16941_s3 + $0xbc4] ss:$16 sps:$4 sm:$0xff]   ;;  %v12967_v4 = vld [vmem:[%s16941_s3 + $0xa6c] ss:$16 sps:$4 sm:$0xff]   ;;  %v5144_v49 = vrot.slane %v14133_v30, 7 }
 0x259   :  { %v1939_v52 = vpop.f32.mrf.mxu1  ;;  %v2646_v54 = vpop.f32.mrf.mxu0  ;;  %4344 = vmatprep.subr.bf16.mxu1 %v12925_v48  ;;  %5051 = vmatprep.subr.bf16.mxu0 %v12928_v53  ;;  %v12970_v47 = vld [vmem:[%s16941_s3 + $0xc64] ss:$16 sps:$4 sm:$0xff]   ;;  %v12965_v48 = vld [vmem:[%s16941_s3 + $0xa68] ss:$16 sps:$4 sm:$0xff]   ;;  %v12968_v53 = vld [vmem:[%s16941_s3 + $0xc60] ss:$16 sps:$4 sm:$0xff]  }
 0x25a   :  { %v1947_v57 = vadd.f32 %v1939_v52, %v1760_v20  ;;  %v2693_v60 = vadd.f32 %v2646_v54, %v2505_v21  ;;  %4366 = vmatprep.mubr.bf16.mxu1 %v13669_v28  ;;  %5073 = vmatprep.mubr.bf16.mxu0 %v13669_v28  ;;  %v12958_v21 = vld [vmem:[%s16941_s3 + $0xba4] ss:$16 sps:$4 sm:$0xff]   ;;  %v12973_v58 = vld [vmem:[%s16941_s3 + $0xa4c] ss:$16 sps:$4 sm:$0xff]   ;;  %v12971_v54 = vld [vmem:[%s16941_s3 + $0xa48] ss:$16 sps:$4 sm:$0xff]  }
 0x25b   :  { %v1941_v62 = vpop.f32.mrf.mxu1  ;;  %v2648_v61 = vpop.f32.mrf.mxu0 }
 0x25c   :  { %4345 = vmatpush1.bf16.msra.mxu1 %v12923_v56  ;;  %5052 = vmatpush1.bf16.msra.mxu0 %v12926_v36 }
 0x25d   :  { %v1942_v0 = vpop.f32.mrf.mxu1  ;;  %v2649_v43 = vpop.f32.mrf.mxu0  ;;  %4346 = vmatprep.subr.bf16.mxu1 %v12931_v40  ;;  %5053 = vmatprep.subr.bf16.mxu0 %v12934_v35  ;;  %v12974_v40 = vld [vmem:[%s16941_s3 + $0xc40] ss:$16 sps:$4 sm:$0xff]  }
 0x25e   :  { %v12977_v0 = vld [vmem:[%s16941_s3 + $0xa28] ss:$16 sps:$4 sm:$0xff]   ;;  %v12980_v43 = vld [vmem:[%s16941_s3 + $0xc20] ss:$16 sps:$4 sm:$0xff]  }
 0x260   :  { %4347 = vmatpush1.bf16.msra.mxu1 %v12929_v2  ;;  %5054 = vmatpush1.bf16.msra.mxu0 %v12932_v46 }
 0x261   :  { %4348 = vmatprep.subr.bf16.mxu1 %v12937_v1  ;;  %5055 = vmatprep.subr.bf16.mxu0 %v12940_v9 }
 0x264   :  { %4349 = vmatpush1.bf16.msra.mxu1 %v12935_v3  ;;  %5056 = vmatpush1.bf16.msra.mxu0 %v12938_v15  ;;  %v12985_v3 = vld [vmem:[%s16941_s3 + $0xa0c] ss:$16 sps:$4 sm:$0xff]   ;;  %v12988_v15 = vld [vmem:[%s16941_s3 + $0xc04] ss:$16 sps:$4 sm:$0xff]  }
 0x265   :  { %4529 = vmatprep.subr.bf16.mxu1 %v12943_v8  ;;  %5236 = vmatprep.subr.bf16.mxu0 %v12946_v12  ;;  %v12983_v8 = vld [vmem:[%s16941_s3 + $0xa08] ss:$16 sps:$4 sm:$0xff]   ;;  %v12986_v12 = vld [vmem:[%s16941_s3 + $0xc00] ss:$16 sps:$4 sm:$0xff]  }
 0x267   :  { %v2124_v37 = vpop.f32.mrf.mxu1  ;;  %v2831_v63 = vpop.f32.mrf.mxu0  ;;  %11089 = vmatmul.mubr.msk.bf16.vlgmr.msra.gmra.mxu1 %vm529_vm1, %v4209_v11  ;;  %11224 = vmatmul.mubr.msk.bf16.vlgmr.msra.gmra.mxu0 %vm529_vm1, %v4957_v14  ;;  %v12955_v11 = vld [vmem:[%s16941_s3 + $0x9ac] ss:$16 sps:$4 sm:$0xff]  }
 0x268   :  { %v2133_v16 = vadd.f32 %v2124_v37, %v1946_v42  ;;  %v2879_v7 = vadd.f32 %v2831_v63, %v2692_v38  ;;  %4530 = vmatpush1.bf16.msra.mxu1 %v12941_v26  ;;  %5237 = vmatpush1.bf16.msra.mxu0 %v12944_v10  ;;  %v12976_v42 = vld [vmem:[%s16941_s3 + $0xc44] ss:$16 sps:$4 sm:$0xff]   ;;  %v12991_v26 = vld [vmem:[%s16941_s3 + $0xaec] ss:$16 sps:$4 sm:$0xff]  }
 0x269   :  { %v2126_v13 = vpop.f32.mrf.mxu1  ;;  %v2833_v20 = vpop.f32.mrf.mxu0  ;;  %4531 = vmatprep.subr.bf16.mxu1 %v12949_v32  ;;  %5238 = vmatprep.subr.bf16.mxu0 %v12952_v34  ;;  %v12994_v10 = vld [vmem:[%s16941_s3 + $0xce4] ss:$16 sps:$4 sm:$0xff]   ;;  %v12989_v32 = vld [vmem:[%s16941_s3 + $0xae8] ss:$16 sps:$4 sm:$0xff]   ;;  %v12992_v34 = vld [vmem:[%s16941_s3 + $0xce0] ss:$16 sps:$4 sm:$0xff]  }
 0x26a   :  { %v2134_v59 = vadd.f32 %v2126_v13, %v1947_v57  ;;  %v2880_v22 = vadd.f32 %v2833_v20, %v2693_v60  ;;  %4553 = vmatprep.mubr.bf16.mxu1 %v13669_v28  ;;  %5260 = vmatprep.mubr.bf16.mxu0 %v13669_v28  ;;  %v12982_v60 = vld [vmem:[%s16941_s3 + $0xc24] ss:$16 sps:$4 sm:$0xff]   ;;  %v12997_v37 = vld [vmem:[%s16941_s3 + $0xacc] ss:$16 sps:$4 sm:$0xff]   ;;  %v12995_v13 = vld [vmem:[%s16941_s3 + $0xac8] ss:$16 sps:$4 sm:$0xff]  }
 0x26b   :  { %v2128_v55 = vpop.f32.mrf.mxu1  ;;  %v2835_v23 = vpop.f32.mrf.mxu0  ;;  %v13000_v63 = vld [vmem:[%s16941_s3 + $0xcc4] ss:$16 sps:$4 sm:$0xff]   ;;  %v12998_v20 = vld [vmem:[%s16941_s3 + $0xcc0] ss:$16 sps:$4 sm:$0xff]  }
 0x26c   :  { %4532 = vmatpush1.bf16.msra.mxu1 %v12947_v18  ;;  %5239 = vmatpush1.bf16.msra.mxu0 %v12950_v17 }
 0x26d   :  { %v2129_v25 = vpop.f32.mrf.mxu1  ;;  %v2836_v27 = vpop.f32.mrf.mxu0  ;;  %4533 = vmatprep.subr.bf16.mxu1 %v12955_v11  ;;  %5240 = vmatprep.subr.bf16.mxu0 %v12958_v21 }
 0x26e   :  { %v13004_v25 = vld [vmem:[%s16941_s3 + $0xca0] ss:$16 sps:$4 sm:$0xff]  }
 0x270   :  { %4534 = vmatpush1.bf16.msra.mxu1 %v12953_v31  ;;  %5241 = vmatpush1.bf16.msra.mxu0 %v12956_v33  ;;  %v13001_v33 = vld [vmem:[%s16941_s3 + $0xaa8] ss:$16 sps:$4 sm:$0xff]  }
 0x271   :  { %4535 = vmatprep.subr.bf16.mxu1 %v12961_v39  ;;  %5242 = vmatprep.subr.bf16.mxu0 %v12964_v44  ;;  %v13009_v44 = vld [vmem:[%s16941_s3 + $0xa8c] ss:$16 sps:$4 sm:$0xff]  }
 0x274   :  { %4536 = vmatpush1.bf16.msra.mxu1 %v12959_v41  ;;  %5243 = vmatpush1.bf16.msra.mxu0 %v12962_v45  ;;  %v13012_v41 = vld [vmem:[%s16941_s3 + $0xc84] ss:$16 sps:$4 sm:$0xff]   ;;  %v13007_v45 = vld [vmem:[%s16941_s3 + $0xa88] ss:$16 sps:$4 sm:$0xff]  }
 0x275   :  { %4716 = vmatprep.subr.bf16.mxu1 %v12967_v4  ;;  %5422 = vmatprep.subr.bf16.mxu0 %v12970_v47  ;;  %v13010_v4 = vld [vmem:[%s16941_s3 + $0xc80] ss:$16 sps:$4 sm:$0xff]   ;;  %v13015_v47 = vld [vmem:[%s16941_s3 + $0xb6c] ss:$16 sps:$4 sm:$0xff]  }
 0x277   :  { %v2311_v38 = vpop.f32.mrf.mxu1  ;;  %v3018_v56 = vpop.f32.mrf.mxu0  ;;  %11123 = vmatmul.mubr.msk.bf16.vlgmr.msra.gmra.mxu1 %vm529_vm1, %v4396_v19  ;;  %11258 = vmatmul.mubr.msk.bf16.vlgmr.msra.gmra.mxu0 %vm529_vm1, %v5144_v49  ;;  %v12979_v19 = vld [vmem:[%s16941_s3 + $0xa2c] ss:$16 sps:$4 sm:$0xff]  }
 0x278   :  { %v2320_v36 = vadd.f32 %v2311_v38, %v2133_v16  ;;  %v3066_v52 = vadd.f32 %v3018_v56, %v2879_v7  ;;  %4717 = vmatpush1.bf16.msra.mxu1 %v12965_v48  ;;  %5423 = vmatpush1.bf16.msra.mxu0 %v12968_v53  ;;  %v13018_v48 = vld [vmem:[%s16941_s3 + $0xd64] ss:$16 sps:$4 sm:$0xff]   ;;  %v13013_v53 = vld [vmem:[%s16941_s3 + $0xb68] ss:$16 sps:$4 sm:$0xff]   ;;  %v13021_v38 = vld [vmem:[%s16941_s3 + $0xb4c] ss:$16 sps:$4 sm:$0xff]  }
 0x279   :  { %v2313_v35 = vpop.f32.mrf.mxu1  ;;  %v3020_v57 = vpop.f32.mrf.mxu0  ;;  %4718 = vmatprep.subr.bf16.mxu1 %v12973_v58  ;;  %5424 = vmatprep.subr.bf16.mxu0 %v12976_v42  ;;  %v13016_v58 = vld [vmem:[%s16941_s3 + $0xd60] ss:$16 sps:$4 sm:$0xff]   ;;  %v5518_v42 = vrot.slane %v14162_v24, 1  ;;  %v13024_v56 = vld [vmem:[%s16941_s3 + $0xd44] ss:$16 sps:$4 sm:$0xff]  }
 0x27a   :  { %v2321_v62 = vadd.f32 %v2313_v35, %v2134_v59  ;;  %v3067_v61 = vadd.f32 %v3020_v57, %v2880_v22  ;;  %4740 = vmatprep.mubr.bf16.mxu1 %v13669_v28  ;;  %5446 = vmatprep.mubr.bf16.mxu0 %v13669_v28  ;;  %v13006_v59 = vld [vmem:[%s16941_s3 + $0xca4] ss:$16 sps:$4 sm:$0xff]   ;;  %v13019_v35 = vld [vmem:[%s16941_s3 + $0xb48] ss:$16 sps:$4 sm:$0xff]   ;;  %v13022_v57 = vld [vmem:[%s16941_s3 + $0xd40] ss:$16 sps:$4 sm:$0xff]  }
 0x27b   :  { %v2315_v2 = vpop.f32.mrf.mxu1  ;;  %v3022_v46 = vpop.f32.mrf.mxu0 }
 0x27c   :  { %4719 = vmatpush1.bf16.msra.mxu1 %v12971_v54  ;;  %5425 = vmatpush1.bf16.msra.mxu0 %v12974_v40 }
 0x27d   :  { %v2316_v1 = vpop.f32.mrf.mxu1  ;;  %v3023_v9 = vpop.f32.mrf.mxu0  ;;  %4720 = vmatprep.subr.bf16.mxu1 %v12979_v19  ;;  %5426 = vmatprep.subr.bf16.mxu0 %v12982_v60 }
 0x27e   :  { %v13028_v1 = vld [vmem:[%s16941_s3 + $0xd20] ss:$16 sps:$4 sm:$0xff]  }
 0x280   :  { %4721 = vmatpush1.bf16.msra.mxu1 %v12977_v0  ;;  %5427 = vmatpush1.bf16.msra.mxu0 %v12980_v43  ;;  %v13025_v43 = vld [vmem:[%s16941_s3 + $0xb28] ss:$16 sps:$4 sm:$0xff]  }
 0x281   :  { %4722 = vmatprep.subr.bf16.mxu1 %v12985_v3  ;;  %5428 = vmatprep.subr.bf16.mxu0 %v12988_v15  ;;  %v13033_v15 = vld [vmem:[%s16941_s3 + $0xb0c] ss:$16 sps:$4 sm:$0xff]  }
 0x284   :  { %4723 = vmatpush1.bf16.msra.mxu1 %v12983_v8  ;;  %5429 = vmatpush1.bf16.msra.mxu0 %v12986_v12  ;;  %v13036_v8 = vld [vmem:[%s16941_s3 + $0xd04] ss:$16 sps:$4 sm:$0xff]   ;;  %v13031_v12 = vld [vmem:[%s16941_s3 + $0xb08] ss:$16 sps:$4 sm:$0xff]  }
 0x285   :  { %4903 = vmatprep.subr.bf16.mxu1 %v12991_v26  ;;  %5610 = vmatprep.subr.bf16.mxu0 %v12994_v10  ;;  %v13034_v26 = vld [vmem:[%s16941_s3 + $0xd00] ss:$16 sps:$4 sm:$0xff]   ;;  %v13039_v10 = vld [vmem:[%s16941_s3 + $0xbec] ss:$16 sps:$4 sm:$0xff]  }
 0x287   :  { %v2497_v16 = vpop.f32.mrf.mxu1  ;;  %v3205_v7 = vpop.f32.mrf.mxu0  ;;  %11157 = vmatmul.mubr.msk.bf16.vlgmr.msra.gmra.mxu1 %vm529_vm1, %v4583_v29  ;;  %11292 = vmatmul.mubr.msk.bf16.vlgmr.msra.gmra.mxu0 %vm529_vm1, %v14162_v24  ;;  %v13003_v29 = vld [vmem:[%s16941_s3 + $0xaac] ss:$16 sps:$4 sm:$0xff]  }
 0x288   :  { %v2506_v18 = vadd.f32 %v2497_v16, %v2320_v36  ;;  %v3253_v17 = vadd.f32 %v3205_v7, %v3066_v52  ;;  %4904 = vmatpush1.bf16.msra.mxu1 %v12989_v32  ;;  %5611 = vmatpush1.bf16.msra.mxu0 %v12992_v34  ;;  %v13042_v32 = vld [vmem:[%s16941_s3 + $0xde4] ss:$16 sps:$4 sm:$0xff]   ;;  %v13037_v34 = vld [vmem:[%s16941_s3 + $0xbe8] ss:$16 sps:$4 sm:$0xff]   ;;  %v13045_v16 = vld [vmem:[%s16941_s3 + $0xbcc] ss:$16 sps:$4 sm:$0xff]  }
 0x289   :  { %v2499_v11 = vpop.f32.mrf.mxu1  ;;  %v3207_v21 = vpop.f32.mrf.mxu0  ;;  %4905 = vmatprep.subr.bf16.mxu1 %v12997_v37  ;;  %5612 = vmatprep.subr.bf16.mxu0 %v13000_v63  ;;  %v13040_v37 = vld [vmem:[%s16941_s3 + $0xde0] ss:$16 sps:$4 sm:$0xff]   ;;  %v5705_v63 = vrot.slane %v14162_v24, 2  ;;  %v13048_v7 = vld [vmem:[%s16941_s3 + $0xdc4] ss:$16 sps:$4 sm:$0xff]  }
 0x28a   :  { %v2507_v22 = vadd.f32 %v2499_v11, %v2321_v62  ;;  %v3254_v55 = vadd.f32 %v3207_v21, %v3067_v61  ;;  %4927 = vmatprep.mubr.bf16.mxu1 %v13669_v28  ;;  %5634 = vmatprep.mubr.bf16.mxu0 %v13669_v28  ;;  %v13030_v62 = vld [vmem:[%s16941_s3 + $0xd24] ss:$16 sps:$4 sm:$0xff]   ;;  %v13043_v11 = vld [vmem:[%s16941_s3 + $0xbc8] ss:$16 sps:$4 sm:$0xff]   ;;  %v13046_v21 = vld [vmem:[%s16941_s3 + $0xdc0] ss:$16 sps:$4 sm:$0xff]  }
 0x28b   :  { %v2501_v23 = vpop.f32.mrf.mxu1  ;;  %v3209_v31 = vpop.f32.mrf.mxu0 }
 0x28c   :  { %4906 = vmatpush1.bf16.msra.mxu1 %v12995_v13  ;;  %5613 = vmatpush1.bf16.msra.mxu0 %v12998_v20 }
 0x28d   :  { %v2502_v27 = vpop.f32.mrf.mxu1  ;;  %v3210_v39 = vpop.f32.mrf.mxu0  ;;  %4907 = vmatprep.subr.bf16.mxu1 %v13003_v29  ;;  %5614 = vmatprep.subr.bf16.mxu0 %v13006_v59 }
 0x28e   :  { %v13052_v27 = vld [vmem:[%s16941_s3 + $0xda0] ss:$16 sps:$4 sm:$0xff]  }
 0x290   :  { %4908 = vmatpush1.bf16.msra.mxu1 %v13001_v33  ;;  %5615 = vmatpush1.bf16.msra.mxu0 %v13004_v25  ;;  %v13049_v25 = vld [vmem:[%s16941_s3 + $0xba8] ss:$16 sps:$4 sm:$0xff]  }
 0x291   :  { %4909 = vmatprep.subr.bf16.mxu1 %v13009_v44  ;;  %5616 = vmatprep.subr.bf16.mxu0 %v13012_v41  ;;  %v13057_v41 = vld [vmem:[%s16941_s3 + $0xb8c] ss:$16 sps:$4 sm:$0xff]  }
 0x294   :  { %4910 = vmatpush1.bf16.msra.mxu1 %v13007_v45  ;;  %5617 = vmatpush1.bf16.msra.mxu0 %v13010_v4  ;;  %v13060_v45 = vld [vmem:[%s16941_s3 + $0xd84] ss:$16 sps:$4 sm:$0xff]   ;;  %v13055_v4 = vld [vmem:[%s16941_s3 + $0xb88] ss:$16 sps:$4 sm:$0xff]  }
 0x295   :  { %5090 = vmatprep.subr.bf16.mxu1 %v13015_v47  ;;  %5797 = vmatprep.subr.bf16.mxu0 %v13018_v48  ;;  %v13058_v47 = vld [vmem:[%s16941_s3 + $0xd80] ss:$16 sps:$4 sm:$0xff]   ;;  %v13063_v48 = vld [vmem:[%s16941_s3 + $0xc6c] ss:$16 sps:$4 sm:$0xff]  }
 0x297   :  { %v2685_v36 = vpop.f32.mrf.mxu1  ;;  %v3392_v52 = vpop.f32.mrf.mxu0  ;;  %11191 = vmatmul.mubr.msk.bf16.vlgmr.msra.gmra.mxu1 %vm529_vm1, %v4770_v50  ;;  %11326 = vmatmul.mubr.msk.bf16.vlgmr.msra.gmra.mxu0 %vm529_vm1, %v5518_v42  ;;  %v13027_v50 = vld [vmem:[%s16941_s3 + $0xb2c] ss:$16 sps:$4 sm:$0xff]  }
 0x298   :  { %v2694_v54 = vadd.f32 %v2685_v36, %v2506_v18  ;;  %v3440_v40 = vadd.f32 %v3392_v52, %v3253_v17  ;;  %5091 = vmatpush1.bf16.msra.mxu1 %v13013_v53  ;;  %5798 = vmatpush1.bf16.msra.mxu0 %v13016_v58  ;;  %v13066_v53 = vld [vmem:[%s16941_s3 + $0xe64] ss:$16 sps:$4 sm:$0xff]   ;;  %v13061_v58 = vld [vmem:[%s16941_s3 + $0xc68] ss:$16 sps:$4 sm:$0xff]   ;;  %v13069_v36 = vld [vmem:[%s16941_s3 + $0xc4c] ss:$16 sps:$4 sm:$0xff]  }
 0x299   :  { %v2687_v19 = vpop.f32.mrf.mxu1  ;;  %v3394_v60 = vpop.f32.mrf.mxu0  ;;  %5092 = vmatprep.subr.bf16.mxu1 %v13021_v38  ;;  %5799 = vmatprep.subr.bf16.mxu0 %v13024_v56  ;;  %v13064_v38 = vld [vmem:[%s16941_s3 + $0xe60] ss:$16 sps:$4 sm:$0xff]   ;;  %v5892_v56 = vrot.slane %v14162_v24, 3  ;;  %v13072_v52 = vld [vmem:[%s16941_s3 + $0xe44] ss:$16 sps:$4 sm:$0xff]  }
 0x29a   :  { %v2695_v61 = vadd.f32 %v2687_v19, %v2507_v22  ;;  %v3441_v2 = vadd.f32 %v3394_v60, %v3254_v55  ;;  %5114 = vmatprep.mubr.bf16.mxu1 %v13669_v28  ;;  %5821 = vmatprep.mubr.bf16.mxu0 %v13669_v28  ;;  %v13054_v22 = vld [vmem:[%s16941_s3 + $0xda4] ss:$16 sps:$4 sm:$0xff]   ;;  %v13067_v19 = vld [vmem:[%s16941_s3 + $0xc48] ss:$16 sps:$4 sm:$0xff]   ;;  %v13070_v60 = vld [vmem:[%s16941_s3 + $0xe40] ss:$16 sps:$4 sm:$0xff]  }
 0x29b   :  { %v2689_v46 = vpop.f32.mrf.mxu1  ;;  %v3396_v0 = vpop.f32.mrf.mxu0 }
 0x29c   :  { %5093 = vmatpush1.bf16.msra.mxu1 %v13019_v35  ;;  %5800 = vmatpush1.bf16.msra.mxu0 %v13022_v57 }
 0x29d   :  { %v2690_v9 = vpop.f32.mrf.mxu1  ;;  %v3397_v3 = vpop.f32.mrf.mxu0  ;;  %5094 = vmatprep.subr.bf16.mxu1 %v13027_v50  ;;  %5801 = vmatprep.subr.bf16.mxu0 %v13030_v62  ;;  %v13078_v62 = vld [vmem:[%s16941_s3 + $0xe24] ss:$16 sps:$4 sm:$0xff]  }
 0x2a0   :  { %5095 = vmatpush1.bf16.msra.mxu1 %v13025_v43  ;;  %5802 = vmatpush1.bf16.msra.mxu0 %v13028_v1  ;;  %v13073_v43 = vld [vmem:[%s16941_s3 + $0xc28] ss:$16 sps:$4 sm:$0xff]   ;;  %v13076_v1 = vld [vmem:[%s16941_s3 + $0xe20] ss:$16 sps:$4 sm:$0xff]  }
 0x2a1   :  { %5096 = vmatprep.subr.bf16.mxu1 %v13033_v15  ;;  %5803 = vmatprep.subr.bf16.mxu0 %v13036_v8  ;;  %v13081_v15 = vld [vmem:[%s16941_s3 + $0xc0c] ss:$16 sps:$4 sm:$0xff]   ;;  %v13084_v8 = vld [vmem:[%s16941_s3 + $0xe04] ss:$16 sps:$4 sm:$0xff]  }
 0x2a4   :  { %5097 = vmatpush1.bf16.msra.mxu1 %v13031_v12  ;;  %5804 = vmatpush1.bf16.msra.mxu0 %v13034_v26  ;;  %v13079_v12 = vld [vmem:[%s16941_s3 + $0xc08] ss:$16 sps:$4 sm:$0xff]   ;;  %v13082_v26 = vld [vmem:[%s16941_s3 + $0xe00] ss:$16 sps:$4 sm:$0xff]  }
 0x2a5   :  { %5277 = vmatprep.subr.bf16.mxu1 %v13039_v10  ;;  %5984 = vmatprep.subr.bf16.mxu0 %v13042_v32  ;;  %v13087_v10 = vld [vmem:[%s16941_s3 + $0xcec] ss:$16 sps:$4 sm:$0xff]   ;;  %v13090_v32 = vld [vmem:[%s16941_s3 + $0xee4] ss:$16 sps:$4 sm:$0xff]  }
 0x2a7   :  { %v2872_v18 = vpop.f32.mrf.mxu1  ;;  %v3579_v17 = vpop.f32.mrf.mxu0  ;;  %11225 = vmatmul.mubr.msk.bf16.vlgmr.msra.gmra.mxu1 %vm529_vm1, %v4957_v14  ;;  %11360 = vmatmul.mubr.msk.bf16.vlgmr.msra.gmra.mxu0 %vm529_vm1, %v5705_v63  ;;  %v13051_v14 = vld [vmem:[%s16941_s3 + $0xbac] ss:$16 sps:$4 sm:$0xff]  }
 0x2a8   :  { %v2881_v13 = vadd.f32 %v2872_v18, %v2694_v54  ;;  %v3627_v20 = vadd.f32 %v3579_v17, %v3440_v40  ;;  %5278 = vmatpush1.bf16.msra.mxu1 %v13037_v34  ;;  %5985 = vmatpush1.bf16.msra.mxu0 %v13040_v37  ;;  %v13085_v34 = vld [vmem:[%s16941_s3 + $0xce8] ss:$16 sps:$4 sm:$0xff]   ;;  %v13088_v37 = vld [vmem:[%s16941_s3 + $0xee0] ss:$16 sps:$4 sm:$0xff]   ;;  %v13096_v18 = vld [vmem:[%s16941_s3 + $0xec4] ss:$16 sps:$4 sm:$0xff]  }
 0x2a9   :  { %v2874_v29 = vpop.f32.mrf.mxu1  ;;  %v3581_v59 = vpop.f32.mrf.mxu0  ;;  %5279 = vmatprep.subr.bf16.mxu1 %v13045_v16  ;;  %5986 = vmatprep.subr.bf16.mxu0 %v13048_v7  ;;  %v6079_v16 = vrot.slane %v14162_v24, 4  ;;  %v13093_v7 = vld [vmem:[%s16941_s3 + $0xccc] ss:$16 sps:$4 sm:$0xff]  }
 0x2aa   :  { %v2882_v55 = vadd.f32 %v2874_v29, %v2695_v61  ;;  %v3628_v23 = vadd.f32 %v3581_v59, %v3441_v2  ;;  %5301 = vmatprep.mubr.bf16.mxu1 %v13669_v28  ;;  %6008 = vmatprep.mubr.bf16.mxu0 %v13669_v28  ;;  %v13094_v29 = vld [vmem:[%s16941_s3 + $0xec0] ss:$16 sps:$4 sm:$0xff]  }
 0x2ab   :  { %v2876_v31 = vpop.f32.mrf.mxu1  ;;  %v3583_v33 = vpop.f32.mrf.mxu0 }
 0x2ac   :  { %5280 = vmatpush1.bf16.msra.mxu1 %v13043_v11  ;;  %5987 = vmatpush1.bf16.msra.mxu0 %v13046_v21  ;;  %v13091_v21 = vld [vmem:[%s16941_s3 + $0xcc8] ss:$16 sps:$4 sm:$0xff]  }
 0x2ad   :  { %v2877_v39 = vpop.f32.mrf.mxu1  ;;  %v3584_v44 = vpop.f32.mrf.mxu0  ;;  %5281 = vmatprep.subr.bf16.mxu1 %v13051_v14  ;;  %5988 = vmatprep.subr.bf16.mxu0 %v13054_v22  ;;  %v13099_v22 = vld [vmem:[%s16941_s3 + $0xcac] ss:$16 sps:$4 sm:$0xff]  }
 0x2ae   :  { %v13100_v39 = vld [vmem:[%s16941_s3 + $0xea0] ss:$16 sps:$4 sm:$0xff]  }
 0x2b0   :  { %5282 = vmatpush1.bf16.msra.mxu1 %v13049_v25  ;;  %5989 = vmatpush1.bf16.msra.mxu0 %v13052_v27  ;;  %v13097_v27 = vld [vmem:[%s16941_s3 + $0xca8] ss:$16 sps:$4 sm:$0xff]  }
 0x2b1   :  { %5283 = vmatprep.subr.bf16.mxu1 %v13057_v41  ;;  %5990 = vmatprep.subr.bf16.mxu0 %v13060_v45  ;;  %v13105_v45 = vld [vmem:[%s16941_s3 + $0xc8c] ss:$16 sps:$4 sm:$0xff]  }
 0x2b4   :  { %5284 = vmatpush1.bf16.msra.mxu1 %v13055_v4  ;;  %5991 = vmatpush1.bf16.msra.mxu0 %v13058_v47  ;;  %v13108_v4 = vld [vmem:[%s16941_s3 + $0xe84] ss:$16 sps:$4 sm:$0xff]   ;;  %v13103_v47 = vld [vmem:[%s16941_s3 + $0xc88] ss:$16 sps:$4 sm:$0xff]  }
 0x2b5   :  { %5463 = vmatprep.subr.bf16.mxu1 %v13063_v48  ;;  %6171 = vmatprep.subr.bf16.mxu0 %v13066_v53  ;;  %v13106_v48 = vld [vmem:[%s16941_s3 + $0xe80] ss:$16 sps:$4 sm:$0xff]   ;;  %v13111_v53 = vld [vmem:[%s16941_s3 + $0xd6c] ss:$16 sps:$4 sm:$0xff]  }
 0x2b7   :  { %v3059_v54 = vpop.f32.mrf.mxu1  ;;  %v3766_v40 = vpop.f32.mrf.mxu0  ;;  %11259 = vmatmul.mubr.msk.bf16.vlgmr.msra.gmra.mxu1 %vm529_vm1, %v5144_v49  ;;  %11394 = vmatmul.mubr.msk.bf16.vlgmr.msra.gmra.mxu0 %vm529_vm1, %v5892_v56  ;;  %v13075_v49 = vld [vmem:[%s16941_s3 + $0xc2c] ss:$16 sps:$4 sm:$0xff]  }
 0x2b8   :  { %v3068_v35 = vadd.f32 %v3059_v54, %v2881_v13  ;;  %v3814_v57 = vadd.f32 %v3766_v40, %v3627_v20  ;;  %5464 = vmatpush1.bf16.msra.mxu1 %v13061_v58  ;;  %6172 = vmatpush1.bf16.msra.mxu0 %v13064_v38  ;;  %v13114_v58 = vld [vmem:[%s16941_s3 + $0xf64] ss:$16 sps:$4 sm:$0xff]   ;;  %v13109_v38 = vld [vmem:[%s16941_s3 + $0xd68] ss:$16 sps:$4 sm:$0xff]   ;;  %v13117_v54 = vld [vmem:[%s16941_s3 + $0xd4c] ss:$16 sps:$4 sm:$0xff]  }
 0x2b9   :  { %v3061_v50 = vpop.f32.mrf.mxu1  ;;  %v3768_v30 = vpop.f32.mrf.mxu0  ;;  %5465 = vmatprep.subr.bf16.mxu1 %v13069_v36  ;;  %6173 = vmatprep.subr.bf16.mxu0 %v13072_v52  ;;  %v13112_v36 = vld [vmem:[%s16941_s3 + $0xf60] ss:$16 sps:$4 sm:$0xff]   ;;  %v6266_v52 = vrot.slane %v14162_v24, 5  ;;  %v13120_v40 = vld [vmem:[%s16941_s3 + $0xf44] ss:$16 sps:$4 sm:$0xff]  }
 0x2ba   :  { %v3069_v61 = vadd.f32 %v3061_v50, %v2882_v55  ;;  %v3815_v2 = vadd.f32 %v3768_v30, %v3628_v23  ;;  %5487 = vmatprep.mubr.bf16.mxu1 %v13669_v28  ;;  %6195 = vmatprep.mubr.bf16.mxu0 %v13669_v28  ;;  %v13102_v55 = vld [vmem:[%s16941_s3 + $0xea4] ss:$16 sps:$4 sm:$0xff]   ;;  %v13115_v50 = vld [vmem:[%s16941_s3 + $0xd48] ss:$16 sps:$4 sm:$0xff]   ;;  %v13118_v30 = vld [vmem:[%s16941_s3 + $0xf40] ss:$16 sps:$4 sm:$0xff]  }
 0x2bb   :  { %v3063_v46 = vpop.f32.mrf.mxu1  ;;  %v3770_v0 = vpop.f32.mrf.mxu0 }
 0x2bc   :  { %5466 = vmatpush1.bf16.msra.mxu1 %v13067_v19  ;;  %6174 = vmatpush1.bf16.msra.mxu0 %v13070_v60 }
 0x2bd   :  { %v3064_v9 = vpop.f32.mrf.mxu1  ;;  %v3771_v3 = vpop.f32.mrf.mxu0  ;;  %5467 = vmatprep.subr.bf16.mxu1 %v13075_v49  ;;  %6175 = vmatprep.subr.bf16.mxu0 %v13078_v62 }
 0x2be   :  { %v13124_v9 = vld [vmem:[%s16941_s3 + $0xf20] ss:$16 sps:$4 sm:$0xff]  }
 0x2c0   :  { %5468 = vmatpush1.bf16.msra.mxu1 %v13073_v43  ;;  %6176 = vmatpush1.bf16.msra.mxu0 %v13076_v1  ;;  %v13121_v1 = vld [vmem:[%s16941_s3 + $0xd28] ss:$16 sps:$4 sm:$0xff]  }
 0x2c1   :  { %5469 = vmatprep.subr.bf16.mxu1 %v13081_v15  ;;  %6177 = vmatprep.subr.bf16.mxu0 %v13084_v8  ;;  %v13129_v8 = vld [vmem:[%s16941_s3 + $0xd0c] ss:$16 sps:$4 sm:$0xff]  }
 0x2c4   :  { %5470 = vmatpush1.bf16.msra.mxu1 %v13079_v12  ;;  %6178 = vmatpush1.bf16.msra.mxu0 %v13082_v26  ;;  %v13132_v12 = vld [vmem:[%s16941_s3 + $0xf04] ss:$16 sps:$4 sm:$0xff]   ;;  %v13127_v26 = vld [vmem:[%s16941_s3 + $0xd08] ss:$16 sps:$4 sm:$0xff]  }
 0x2c5   :  { %5651 = vmatprep.subr.bf16.mxu1 %v13087_v10  ;;  %6358 = vmatprep.subr.bf16.mxu0 %v13090_v32  ;;  %v13130_v10 = vld [vmem:[%s16941_s3 + $0xf00] ss:$16 sps:$4 sm:$0xff]   ;;  %v13135_v32 = vld [vmem:[%s16941_s3 + $0xdec] ss:$16 sps:$4 sm:$0xff]  }
 0x2c7   :  { %v3246_v17 = vpop.f32.mrf.mxu1  ;;  %v3952_v13 = vpop.f32.mrf.mxu0  ;;  %11293 = vmatmul.mubr.msk.bf16.vlgmr.msra.gmra.mxu1 %vm529_vm1, %v14162_v24  ;;  %11428 = vmatmul.mubr.msk.bf16.vlgmr.msra.gmra.mxu0 %vm529_vm1, %v6079_v16 }
 0x2c8   :  { %v3255_v20 = vadd.f32 %v3246_v17, %v3068_v35  ;;  %v4000_v11 = vadd.f32 %v3952_v13, %v3814_v57  ;;  %5652 = vmatpush1.bf16.msra.mxu1 %v13085_v34  ;;  %6359 = vmatpush1.bf16.msra.mxu0 %v13088_v37  ;;  %v13138_v34 = vld [vmem:[%s16941_s3 + $0xfe4] ss:$16 sps:$4 sm:$0xff]   ;;  %v13133_v37 = vld [vmem:[%s16941_s3 + $0xde8] ss:$16 sps:$4 sm:$0xff]   ;;  %v13141_v17 = vld [vmem:[%s16941_s3 + $0xdcc] ss:$16 sps:$4 sm:$0xff]  }
 0x2c9   :  { %v3248_v59 = vpop.f32.mrf.mxu1  ;;  %v3954_v14 = vpop.f32.mrf.mxu0  ;;  %5653 = vmatprep.subr.bf16.mxu1 %v13093_v7  ;;  %6360 = vmatprep.subr.bf16.mxu0 %v13096_v18  ;;  %v13136_v7 = vld [vmem:[%s16941_s3 + $0xfe0] ss:$16 sps:$4 sm:$0xff]   ;;  %v6453_v18 = vrot.slane %v14162_v24, 6  ;;  %v13144_v13 = vld [vmem:[%s16941_s3 + $0xfc4] ss:$16 sps:$4 sm:$0xff]  }
 0x2ca   :  { %v3256_v23 = vadd.f32 %v3248_v59, %v3069_v61  ;;  %v4001_v31 = vadd.f32 %v3954_v14, %v3815_v2  ;;  %5675 = vmatprep.mubr.bf16.mxu1 %v13669_v28  ;;  %6382 = vmatprep.mubr.bf16.mxu0 %v13669_v28  ;;  %v13126_v61 = vld [vmem:[%s16941_s3 + $0xf24] ss:$16 sps:$4 sm:$0xff]   ;;  %v13139_v59 = vld [vmem:[%s16941_s3 + $0xdc8] ss:$16 sps:$4 sm:$0xff]   ;;  %v13142_v14 = vld [vmem:[%s16941_s3 + $0xfc0] ss:$16 sps:$4 sm:$0xff]  }
 0x2cb   :  { %v3250_v33 = vpop.f32.mrf.mxu1  ;;  %v3956_v25 = vpop.f32.mrf.mxu0 }
 0x2cc   :  { %5654 = vmatpush1.bf16.msra.mxu1 %v13091_v21  ;;  %6361 = vmatpush1.bf16.msra.mxu0 %v13094_v29 }
 0x2cd   :  { %v3251_v44 = vpop.f32.mrf.mxu1  ;;  %v3957_v41 = vpop.f32.mrf.mxu0  ;;  %5655 = vmatprep.subr.bf16.mxu1 %v13099_v22  ;;  %6362 = vmatprep.subr.bf16.mxu0 %v13102_v55 }
 0x2ce   :  { %v13148_v44 = vld [vmem:[%s16941_s3 + $0xfa0] ss:$16 sps:$4 sm:$0xff]  }
 0x2d0   :  { %5656 = vmatpush1.bf16.msra.mxu1 %v13097_v27  ;;  %6363 = vmatpush1.bf16.msra.mxu0 %v13100_v39  ;;  %v13145_v39 = vld [vmem:[%s16941_s3 + $0xda8] ss:$16 sps:$4 sm:$0xff]  }
 0x2d1   :  { %5657 = vmatprep.subr.bf16.mxu1 %v13105_v45  ;;  %6364 = vmatprep.subr.bf16.mxu0 %v13108_v4  ;;  %v13153_v4 = vld [vmem:[%s16941_s3 + $0xd8c] ss:$16 sps:$4 sm:$0xff]  }
 0x2d4   :  { %5658 = vmatpush1.bf16.msra.mxu1 %v13103_v47  ;;  %6365 = vmatpush1.bf16.msra.mxu0 %v13106_v48  ;;  %v13156_v47 = vld [vmem:[%s16941_s3 + $0xf84] ss:$16 sps:$4 sm:$0xff]   ;;  %v13151_v48 = vld [vmem:[%s16941_s3 + $0xd88] ss:$16 sps:$4 sm:$0xff]  }
 0x2d5   :  { %5838 = vmatprep.subr.bf16.mxu1 %v13111_v53  ;;  %6545 = vmatprep.subr.bf16.mxu0 %v13114_v58  ;;  %v13154_v53 = vld [vmem:[%s16941_s3 + $0xf80] ss:$16 sps:$4 sm:$0xff]   ;;  %v13159_v58 = vld [vmem:[%s16941_s3 + $0xe6c] ss:$16 sps:$4 sm:$0xff]  }
 0x2d7   :  { %v3433_v35 = vpop.f32.mrf.mxu1  ;;  %v4140_v57 = vpop.f32.mrf.mxu0  ;;  %11327 = vmatmul.mubr.msk.bf16.vlgmr.msra.gmra.mxu1 %vm529_vm1, %v5518_v42  ;;  %11462 = vmatmul.mubr.msk.bf16.vlgmr.msra.gmra.mxu0 %vm529_vm1, %v6266_v52  ;;  %v13123_v42 = vld [vmem:[%s16941_s3 + $0xd2c] ss:$16 sps:$4 sm:$0xff]  }
 0x2d8   :  { %v3442_v19 = vadd.f32 %v3433_v35, %v3255_v20  ;;  %v4188_v60 = vadd.f32 %v4140_v57, %v4000_v11  ;;  %5839 = vmatpush1.bf16.msra.mxu1 %v13109_v38  ;;  %6546 = vmatpush1.bf16.msra.mxu0 %v13112_v36  ;;  %v13162_v38 = vld [vmem:[%s16941_s3 + $0x1064] ss:$16 sps:$4 sm:$0xff]   ;;  %v13157_v36 = vld [vmem:[%s16941_s3 + $0xe68] ss:$16 sps:$4 sm:$0xff]   ;;  %v13165_v35 = vld [vmem:[%s16941_s3 + $0xe4c] ss:$16 sps:$4 sm:$0xff]  }
 0x2d9   :  { %v3435_v49 = vpop.f32.mrf.mxu1  ;;  %v4142_v62 = vpop.f32.mrf.mxu0  ;;  %5840 = vmatprep.subr.bf16.mxu1 %v13117_v54  ;;  %6547 = vmatprep.subr.bf16.mxu0 %v13120_v40  ;;  %v13160_v54 = vld [vmem:[%s16941_s3 + $0x1060] ss:$16 sps:$4 sm:$0xff]   ;;  %v6640_v40 = vrot.slane %v14162_v24, 7  ;;  %v13168_v57 = vld [vmem:[%s16941_s3 + $0x1044] ss:$16 sps:$4 sm:$0xff]  }
 0x2da   :  { %v3443_v2 = vadd.f32 %v3435_v49, %v3256_v23  ;;  %v4189_v46 = vadd.f32 %v4142_v62, %v4001_v31  ;;  %5862 = vmatprep.mubr.bf16.mxu1 %v13669_v28  ;;  %6569 = vmatprep.mubr.bf16.mxu0 %v13669_v28  ;;  %v13150_v23 = vld [vmem:[%s16941_s3 + $0xfa4] ss:$16 sps:$4 sm:$0xff]   ;;  %v13163_v49 = vld [vmem:[%s16941_s3 + $0xe48] ss:$16 sps:$4 sm:$0xff]   ;;  %v13166_v62 = vld [vmem:[%s16941_s3 + $0x1040] ss:$16 sps:$4 sm:$0xff]  }
 0x2db   :  { %v3437_v0 = vpop.f32.mrf.mxu1  ;;  %v4144_v43 = vpop.f32.mrf.mxu0 }
 0x2dc   :  { %5841 = vmatpush1.bf16.msra.mxu1 %v13115_v50  ;;  %6548 = vmatpush1.bf16.msra.mxu0 %v13118_v30 }
 0x2dd   :  { %v3438_v3 = vpop.f32.mrf.mxu1  ;;  %v4145_v15 = vpop.f32.mrf.mxu0  ;;  %5842 = vmatprep.subr.bf16.mxu1 %v13123_v42  ;;  %6549 = vmatprep.subr.bf16.mxu0 %v13126_v61 }
 0x2de   :  { %v13172_v3 = vld [vmem:[%s16941_s3 + $0x1020] ss:$16 sps:$4 sm:$0xff]  }
 0x2e0   :  { %5843 = vmatpush1.bf16.msra.mxu1 %v13121_v1  ;;  %6550 = vmatpush1.bf16.msra.mxu0 %v13124_v9  ;;  %v13169_v9 = vld [vmem:[%s16941_s3 + $0xe28] ss:$16 sps:$4 sm:$0xff]  }
 0x2e1   :  { %5844 = vmatprep.subr.bf16.mxu1 %v13129_v8  ;;  %6551 = vmatprep.subr.bf16.mxu0 %v13132_v12  ;;  %v13177_v12 = vld [vmem:[%s16941_s3 + $0xe0c] ss:$16 sps:$4 sm:$0xff]  }
 0x2e4   :  { %5845 = vmatpush1.bf16.msra.mxu1 %v13127_v26  ;;  %6552 = vmatpush1.bf16.msra.mxu0 %v13130_v10  ;;  %v13180_v26 = vld [vmem:[%s16941_s3 + $0x1004] ss:$16 sps:$4 sm:$0xff]   ;;  %v13175_v10 = vld [vmem:[%s16941_s3 + $0xe08] ss:$16 sps:$4 sm:$0xff]  }
 0x2e5   :  { %6025 = vmatprep.subr.bf16.mxu1 %v13135_v32  ;;  %6732 = vmatprep.subr.bf16.mxu0 %v13138_v34  ;;  %v13178_v32 = vld [vmem:[%s16941_s3 + $0x1000] ss:$16 sps:$4 sm:$0xff]   ;;  %v13183_v34 = vld [vmem:[%s16941_s3 + $0xeec] ss:$16 sps:$4 sm:$0xff]  }
 0x2e7   :  { %v3620_v20 = vpop.f32.mrf.mxu1  ;;  %v4327_v11 = vpop.f32.mrf.mxu0  ;;  %11361 = vmatmul.mubr.msk.bf16.vlgmr.msra.gmra.mxu1 %vm529_vm1, %v5705_v63  ;;  %11496 = vmatmul.mubr.msk.bf16.vlgmr.msra.gmra.mxu0 %vm529_vm1, %v6453_v18  ;;  %v13147_v63 = vld [vmem:[%s16941_s3 + $0xdac] ss:$16 sps:$4 sm:$0xff]  }
 0x2e8   :  { %v3629_v21 = vadd.f32 %v3620_v20, %v3442_v19  ;;  %v4375_v29 = vadd.f32 %v4327_v11, %v4188_v60  ;;  %6026 = vmatpush1.bf16.msra.mxu1 %v13133_v37  ;;  %6733 = vmatpush1.bf16.msra.mxu0 %v13136_v7  ;;  %v13186_v37 = vld [vmem:[%s16941_s3 + $0x10e4] ss:$16 sps:$4 sm:$0xff]   ;;  %v13181_v7 = vld [vmem:[%s16941_s3 + $0xee8] ss:$16 sps:$4 sm:$0xff]  }
 0x2e9   :  { %v3622_v22 = vpop.f32.mrf.mxu1  ;;  %v4329_v55 = vpop.f32.mrf.mxu0  ;;  %6027 = vmatprep.subr.bf16.mxu1 %v13141_v17  ;;  %6734 = vmatprep.subr.bf16.mxu0 %v13144_v13  ;;  %v13184_v17 = vld [vmem:[%s16941_s3 + $0x10e0] ss:$16 sps:$4 sm:$0xff]   ;;  %v13189_v13 = vld [vmem:[%s16941_s3 + $0xecc] ss:$16 sps:$4 sm:$0xff]   ;;  %v13192_v20 = vld [vmem:[%s16941_s3 + $0x10c4] ss:$16 sps:$4 sm:$0xff]  }
 0x2ea   :  { %v3630_v31 = vadd.f32 %v3622_v22, %v3443_v2  ;;  %v4376_v33 = vadd.f32 %v4329_v55, %v4189_v46  ;;  %6049 = vmatprep.mubr.bf16.mxu1 %v13669_v28  ;;  %6756 = vmatprep.mubr.bf16.mxu0 %v13669_v28  ;;  %v13174_v2 = vld [vmem:[%s16941_s3 + $0x1024] ss:$16 sps:$4 sm:$0xff]   ;;  %v13190_v22 = vld [vmem:[%s16941_s3 + $0x10c0] ss:$16 sps:$4 sm:$0xff]  }
 0x2eb   :  { %v3624_v25 = vpop.f32.mrf.mxu1  ;;  %v4331_v27 = vpop.f32.mrf.mxu0 }
 0x2ec   :  { %6028 = vmatpush1.bf16.msra.mxu1 %v13139_v59  ;;  %6735 = vmatpush1.bf16.msra.mxu0 %v13142_v14  ;;  %v13187_v14 = vld [vmem:[%s16941_s3 + $0xec8] ss:$16 sps:$4 sm:$0xff]  }
 0x2ed   :  { %v3625_v41 = vpop.f32.mrf.mxu1  ;;  %v4332_v45 = vpop.f32.mrf.mxu0  ;;  %6029 = vmatprep.subr.bf16.mxu1 %v13147_v63  ;;  %6736 = vmatprep.subr.bf16.mxu0 %v13150_v23  ;;  %v13198_v23 = vld [vmem:[%s16941_s3 + $0x10a4] ss:$16 sps:$4 sm:$0xff]  }
 0x2f0   :  { %6030 = vmatpush1.bf16.msra.mxu1 %v13145_v39  ;;  %6737 = vmatpush1.bf16.msra.mxu0 %v13148_v44  ;;  %v13193_v39 = vld [vmem:[%s16941_s3 + $0xea8] ss:$16 sps:$4 sm:$0xff]   ;;  %v13196_v44 = vld [vmem:[%s16941_s3 + $0x10a0] ss:$16 sps:$4 sm:$0xff]  }
 0x2f1   :  { %6031 = vmatprep.subr.bf16.mxu1 %v13153_v4  ;;  %6738 = vmatprep.subr.bf16.mxu0 %v13156_v47  ;;  %v13201_v4 = vld [vmem:[%s16941_s3 + $0xe8c] ss:$16 sps:$4 sm:$0xff]   ;;  %v13204_v47 = vld [vmem:[%s16941_s3 + $0x1084] ss:$16 sps:$4 sm:$0xff]  }
 0x2f4   :  { %6032 = vmatpush1.bf16.msra.mxu1 %v13151_v48  ;;  %6739 = vmatpush1.bf16.msra.mxu0 %v13154_v53  ;;  %v13199_v48 = vld [vmem:[%s16941_s3 + $0xe88] ss:$16 sps:$4 sm:$0xff]   ;;  %v13202_v53 = vld [vmem:[%s16941_s3 + $0x1080] ss:$16 sps:$4 sm:$0xff]  }
 0x2f5   :  { %6212 = vmatprep.subr.bf16.mxu1 %v13159_v58  ;;  %6918 = vmatprep.subr.bf16.mxu0 %v13162_v38  ;;  %v13207_v58 = vld [vmem:[%s16941_s3 + $0xf6c] ss:$16 sps:$4 sm:$0xff]   ;;  %v13210_v38 = vld [vmem:[%s16941_s3 + $0x1164] ss:$16 sps:$4 sm:$0xff]  }
 0x2f7   :  { %v3807_v19 = vpop.f32.mrf.mxu1  ;;  %v4514_v60 = vpop.f32.mrf.mxu0  ;;  %11395 = vmatmul.mubr.msk.bf16.vlgmr.msra.gmra.mxu1 %vm529_vm1, %v5892_v56  ;;  %11530 = vmatmul.mubr.msk.bf16.vlgmr.msra.gmra.mxu0 %vm529_vm1, %v6640_v40  ;;  %v13171_v56 = vld [vmem:[%s16941_s3 + $0xe2c] ss:$16 sps:$4 sm:$0xff]  }
 0x2f8   :  { %v3816_v50 = vadd.f32 %v3807_v19, %v3629_v21  ;;  %v4562_v30 = vadd.f32 %v4514_v60, %v4375_v29  ;;  %6213 = vmatpush1.bf16.msra.mxu1 %v13157_v36  ;;  %6919 = vmatpush1.bf16.msra.mxu0 %v13160_v54  ;;  %v13205_v36 = vld [vmem:[%s16941_s3 + $0xf68] ss:$16 sps:$4 sm:$0xff]   ;;  %v13208_v54 = vld [vmem:[%s16941_s3 + $0x1160] ss:$16 sps:$4 sm:$0xff]   ;;  %v13216_v19 = vld [vmem:[%s16941_s3 + $0x1144] ss:$16 sps:$4 sm:$0xff]  }
 0x2f9   :  { %v3809_v42 = vpop.f32.mrf.mxu1  ;;  %v4516_v61 = vpop.f32.mrf.mxu0  ;;  %6214 = vmatprep.subr.bf16.mxu1 %v13165_v35  ;;  %6920 = vmatprep.subr.bf16.mxu0 %v13168_v57  ;;  %v7014_v35 = vrot.slane %v14196_v51, 1  ;;  %v13213_v57 = vld [vmem:[%s16941_s3 + $0xf4c] ss:$16 sps:$4 sm:$0xff]  }
 0x2fa   :  { %v3817_v46 = vadd.f32 %v3809_v42, %v3630_v31  ;;  %v4563_v0 = vadd.f32 %v4516_v61, %v4376_v33  ;;  %6236 = vmatprep.mubr.bf16.mxu1 %v13669_v28  ;;  %6942 = vmatprep.mubr.bf16.mxu0 %v13669_v28  ;;  %v13214_v42 = vld [vmem:[%s16941_s3 + $0x1140] ss:$16 sps:$4 sm:$0xff]  }
 0x2fb   :  { %v3811_v43 = vpop.f32.mrf.mxu1  ;;  %v4518_v1 = vpop.f32.mrf.mxu0 }
 0x2fc   :  { %6215 = vmatpush1.bf16.msra.mxu1 %v13163_v49  ;;  %6921 = vmatpush1.bf16.msra.mxu0 %v13166_v62  ;;  %v13211_v62 = vld [vmem:[%s16941_s3 + $0xf48] ss:$16 sps:$4 sm:$0xff]  }
 0x2fd   :  { %v3812_v15 = vpop.f32.mrf.mxu1  ;;  %v4519_v8 = vpop.f32.mrf.mxu0  ;;  %6216 = vmatprep.subr.bf16.mxu1 %v13171_v56  ;;  %6922 = vmatprep.subr.bf16.mxu0 %v13174_v2  ;;  %v13222_v2 = vld [vmem:[%s16941_s3 + $0x1124] ss:$16 sps:$4 sm:$0xff]  }
 0x300   :  { %6217 = vmatpush1.bf16.msra.mxu1 %v13169_v9  ;;  %6923 = vmatpush1.bf16.msra.mxu0 %v13172_v3  ;;  %v13217_v9 = vld [vmem:[%s16941_s3 + $0xf28] ss:$16 sps:$4 sm:$0xff]   ;;  %v13220_v3 = vld [vmem:[%s16941_s3 + $0x1120] ss:$16 sps:$4 sm:$0xff]  }
 0x301   :  { %6218 = vmatprep.subr.bf16.mxu1 %v13177_v12  ;;  %6924 = vmatprep.subr.bf16.mxu0 %v13180_v26  ;;  %v13225_v12 = vld [vmem:[%s16941_s3 + $0xf0c] ss:$16 sps:$4 sm:$0xff]   ;;  %v13228_v26 = vld [vmem:[%s16941_s3 + $0x1104] ss:$16 sps:$4 sm:$0xff]  }
 0x304   :  { %6219 = vmatpush1.bf16.msra.mxu1 %v13175_v10  ;;  %6925 = vmatpush1.bf16.msra.mxu0 %v13178_v32  ;;  %v13223_v10 = vld [vmem:[%s16941_s3 + $0xf08] ss:$16 sps:$4 sm:$0xff]   ;;  %v13226_v32 = vld [vmem:[%s16941_s3 + $0x1100] ss:$16 sps:$4 sm:$0xff]  }
 0x305   :  { %6399 = vmatprep.subr.bf16.mxu1 %v13183_v34  ;;  %7106 = vmatprep.subr.bf16.mxu0 %v13186_v37  ;;  %v13231_v34 = vld [vmem:[%s16941_s3 + $0xfec] ss:$16 sps:$4 sm:$0xff]   ;;  %v13234_v37 = vld [vmem:[%s16941_s3 + $0x11e4] ss:$16 sps:$4 sm:$0xff]  }
 0x307   :  { %v3993_v11 = vpop.f32.mrf.mxu1  ;;  %v4701_v21 = vpop.f32.mrf.mxu0  ;;  %11429 = vmatmul.mubr.msk.bf16.vlgmr.msra.gmra.mxu1 %vm529_vm1, %v6079_v16  ;;  %11564 = vmatmul.mubr.msk.bf16.vlgmr.msra.gmra.mxu0 %vm529_vm1, %v14196_v51  ;;  %v13195_v16 = vld [vmem:[%s16941_s3 + $0xeac] ss:$16 sps:$4 sm:$0xff]  }
 0x308   :  { %v4002_v29 = vadd.f32 %v3993_v11, %v3816_v50  ;;  %v4749_v59 = vadd.f32 %v4701_v21, %v4562_v30  ;;  %6400 = vmatpush1.bf16.msra.mxu1 %v13181_v7  ;;  %7107 = vmatpush1.bf16.msra.mxu0 %v13184_v17  ;;  %v13229_v7 = vld [vmem:[%s16941_s3 + $0xfe8] ss:$16 sps:$4 sm:$0xff]   ;;  %v13232_v17 = vld [vmem:[%s16941_s3 + $0x11e0] ss:$16 sps:$4 sm:$0xff]   ;;  %v13240_v11 = vld [vmem:[%s16941_s3 + $0x11c4] ss:$16 sps:$4 sm:$0xff]  }
 0x309   :  { %v3995_v55 = vpop.f32.mrf.mxu1  ;;  %v4703_v63 = vpop.f32.mrf.mxu0  ;;  %6401 = vmatprep.subr.bf16.mxu1 %v13189_v13  ;;  %7108 = vmatprep.subr.bf16.mxu0 %v13192_v20  ;;  %v7201_v13 = vrot.slane %v14196_v51, 2  ;;  %v13237_v20 = vld [vmem:[%s16941_s3 + $0xfcc] ss:$16 sps:$4 sm:$0xff]  }
 0x30a   :  { %v4003_v31 = vadd.f32 %v3995_v55, %v3817_v46  ;;  %v4750_v33 = vadd.f32 %v4703_v63, %v4563_v0  ;;  %6423 = vmatprep.mubr.bf16.mxu1 %v13669_v28  ;;  %7130 = vmatprep.mubr.bf16.mxu0 %v13669_v28  ;;  %v13238_v55 = vld [vmem:[%s16941_s3 + $0x11c0] ss:$16 sps:$4 sm:$0xff]  }
 0x30b   :  { %v3997_v25 = vpop.f32.mrf.mxu1  ;;  %v4705_v27 = vpop.f32.mrf.mxu0 }
 0x30c   :  { %6402 = vmatpush1.bf16.msra.mxu1 %v13187_v14  ;;  %7109 = vmatpush1.bf16.msra.mxu0 %v13190_v22  ;;  %v13235_v22 = vld [vmem:[%s16941_s3 + $0xfc8] ss:$16 sps:$4 sm:$0xff]  }
 0x30d   :  { %v3998_v41 = vpop.f32.mrf.mxu1  ;;  %v4706_v45 = vpop.f32.mrf.mxu0  ;;  %6403 = vmatprep.subr.bf16.mxu1 %v13195_v16  ;;  %7110 = vmatprep.subr.bf16.mxu0 %v13198_v23  ;;  %v13246_v23 = vld [vmem:[%s16941_s3 + $0x11a4] ss:$16 sps:$4 sm:$0xff]  }
 0x310   :  { %6404 = vmatpush1.bf16.msra.mxu1 %v13193_v39  ;;  %7111 = vmatpush1.bf16.msra.mxu0 %v13196_v44  ;;  %v13241_v39 = vld [vmem:[%s16941_s3 + $0xfa8] ss:$16 sps:$4 sm:$0xff]   ;;  %v13244_v44 = vld [vmem:[%s16941_s3 + $0x11a0] ss:$16 sps:$4 sm:$0xff]  }
 0x311   :  { %6405 = vmatprep.subr.bf16.mxu1 %v13201_v4  ;;  %7112 = vmatprep.subr.bf16.mxu0 %v13204_v47  ;;  %v13249_v4 = vld [vmem:[%s16941_s3 + $0xf8c] ss:$16 sps:$4 sm:$0xff]   ;;  %v13252_v47 = vld [vmem:[%s16941_s3 + $0x1184] ss:$16 sps:$4 sm:$0xff]  }
 0x314   :  { %6406 = vmatpush1.bf16.msra.mxu1 %v13199_v48  ;;  %7113 = vmatpush1.bf16.msra.mxu0 %v13202_v53  ;;  %v13247_v48 = vld [vmem:[%s16941_s3 + $0xf88] ss:$16 sps:$4 sm:$0xff]   ;;  %v13250_v53 = vld [vmem:[%s16941_s3 + $0x1180] ss:$16 sps:$4 sm:$0xff]  }
 0x315   :  { %6586 = vmatprep.subr.bf16.mxu1 %v13207_v58  ;;  %7293 = vmatprep.subr.bf16.mxu0 %v13210_v38  ;;  %v13255_v58 = vld [vmem:[%s16941_s3 + $0x106c] ss:$16 sps:$4 sm:$0xff]   ;;  %v13258_v38 = vld [vmem:[%s16941_s3 + $0x1264] ss:$16 sps:$4 sm:$0xff]  }
 0x317   :  { %v4181_v60 = vpop.f32.mrf.mxu1  ;;  %v4888_v50 = vpop.f32.mrf.mxu0  ;;  %11463 = vmatmul.mubr.msk.bf16.vlgmr.msra.gmra.mxu1 %vm529_vm1, %v6266_v52  ;;  %11598 = vmatmul.mubr.msk.bf16.vlgmr.msra.gmra.mxu0 %vm529_vm1, %v7014_v35  ;;  %v13219_v52 = vld [vmem:[%s16941_s3 + $0xf2c] ss:$16 sps:$4 sm:$0xff]  }
 0x318   :  { %v4190_v30 = vadd.f32 %v4181_v60, %v4002_v29  ;;  %v4936_v49 = vadd.f32 %v4888_v50, %v4749_v59  ;;  %6587 = vmatpush1.bf16.msra.mxu1 %v13205_v36  ;;  %7294 = vmatpush1.bf16.msra.mxu0 %v13208_v54  ;;  %v13253_v36 = vld [vmem:[%s16941_s3 + $0x1068] ss:$16 sps:$4 sm:$0xff]   ;;  %v13256_v54 = vld [vmem:[%s16941_s3 + $0x1260] ss:$16 sps:$4 sm:$0xff]   ;;  %v13264_v60 = vld [vmem:[%s16941_s3 + $0x1244] ss:$16 sps:$4 sm:$0xff]  }
 0x319   :  { %v4183_v61 = vpop.f32.mrf.mxu1  ;;  %v4890_v56 = vpop.f32.mrf.mxu0  ;;  %6588 = vmatprep.subr.bf16.mxu1 %v13213_v57  ;;  %7295 = vmatprep.subr.bf16.mxu0 %v13216_v19  ;;  %v7388_v57 = vrot.slane %v14196_v51, 3  ;;  %v13261_v19 = vld [vmem:[%s16941_s3 + $0x104c] ss:$16 sps:$4 sm:$0xff]  }
 0x31a   :  { %v4191_v46 = vadd.f32 %v4183_v61, %v4003_v31  ;;  %v4937_v0 = vadd.f32 %v4890_v56, %v4750_v33  ;;  %6610 = vmatprep.mubr.bf16.mxu1 %v13669_v28  ;;  %7317 = vmatprep.mubr.bf16.mxu0 %v13669_v28  ;;  %v13262_v61 = vld [vmem:[%s16941_s3 + $0x1240] ss:$16 sps:$4 sm:$0xff]  }
 0x31b   :  { %v4185_v43 = vpop.f32.mrf.mxu1  ;;  %v4892_v1 = vpop.f32.mrf.mxu0 }
 0x31c   :  { %6589 = vmatpush1.bf16.msra.mxu1 %v13211_v62  ;;  %7296 = vmatpush1.bf16.msra.mxu0 %v13214_v42  ;;  %v13259_v42 = vld [vmem:[%s16941_s3 + $0x1048] ss:$16 sps:$4 sm:$0xff]  }
 0x31d   :  { %v4186_v15 = vpop.f32.mrf.mxu1  ;;  %v4893_v8 = vpop.f32.mrf.mxu0  ;;  %6590 = vmatprep.subr.bf16.mxu1 %v13219_v52  ;;  %7297 = vmatprep.subr.bf16.mxu0 %v13222_v2  ;;  %v13270_v52 = vld [vmem:[%s16941_s3 + $0x1224] ss:$16 sps:$4 sm:$0xff]   ;;  %v13265_v1 = vld [vmem:[%s16941_s3 + $0x1028] ss:$16 sps:$4 sm:$0xff]  }
 0x31e   :  { %v13273_v8 = vld [vmem:[%s16941_s3 + $0x100c] ss:$16 sps:$4 sm:$0xff]  }
 0x320   :  { %6591 = vmatpush1.bf16.msra.mxu1 %v13217_v9  ;;  %7298 = vmatpush1.bf16.msra.mxu0 %v13220_v3  ;;  %v13268_v9 = vld [vmem:[%s16941_s3 + $0x1220] ss:$16 sps:$4 sm:$0xff]  }
 0x321   :  { %6592 = vmatprep.subr.bf16.mxu1 %v13225_v12  ;;  %7299 = vmatprep.subr.bf16.mxu0 %v13228_v26  ;;  %v13276_v12 = vld [vmem:[%s16941_s3 + $0x1204] ss:$16 sps:$4 sm:$0xff]   ;;  %v13271_v26 = vld [vmem:[%s16941_s3 + $0x1008] ss:$16 sps:$4 sm:$0xff]  }
 0x324   :  { %6593 = vmatpush1.bf16.msra.mxu1 %v13223_v10  ;;  %7300 = vmatpush1.bf16.msra.mxu0 %v13226_v32  ;;  %v13274_v10 = vld [vmem:[%s16941_s3 + $0x1200] ss:$16 sps:$4 sm:$0xff]   ;;  %v13279_v32 = vld [vmem:[%s16941_s3 + $0x10ec] ss:$16 sps:$4 sm:$0xff]  }
 0x325   :  { %6773 = vmatprep.subr.bf16.mxu1 %v13231_v34  ;;  %7480 = vmatprep.subr.bf16.mxu0 %v13234_v37  ;;  %v13282_v34 = vld [vmem:[%s16941_s3 + $0x12e4] ss:$16 sps:$4 sm:$0xff]   ;;  %v13277_v37 = vld [vmem:[%s16941_s3 + $0x10e8] ss:$16 sps:$4 sm:$0xff]  }
 0x327   :  { %v4368_v21 = vpop.f32.mrf.mxu1  ;;  %v5075_v29 = vpop.f32.mrf.mxu0  ;;  %11497 = vmatmul.mubr.msk.bf16.vlgmr.msra.gmra.mxu1 %vm529_vm1, %v6453_v18  ;;  %11632 = vmatmul.mubr.msk.bf16.vlgmr.msra.gmra.mxu0 %vm529_vm1, %v7201_v13  ;;  %v13243_v18 = vld [vmem:[%s16941_s3 + $0xfac] ss:$16 sps:$4 sm:$0xff]  }
 0x328   :  { %v4377_v59 = vadd.f32 %v4368_v21, %v4190_v30  ;;  %v5123_v14 = vadd.f32 %v5075_v29, %v4936_v49  ;;  %6774 = vmatpush1.bf16.msra.mxu1 %v13229_v7  ;;  %7481 = vmatpush1.bf16.msra.mxu0 %v13232_v17  ;;  %v13280_v7 = vld [vmem:[%s16941_s3 + $0x12e0] ss:$16 sps:$4 sm:$0xff]   ;;  %v7575_v17 = vrot.slane %v14196_v51, 4 }
 0x329   :  { %v4370_v63 = vpop.f32.mrf.mxu1  ;;  %v5077_v16 = vpop.f32.mrf.mxu0  ;;  %6775 = vmatprep.subr.bf16.mxu1 %v13237_v20  ;;  %7482 = vmatprep.subr.bf16.mxu0 %v13240_v11  ;;  %v13285_v20 = vld [vmem:[%s16941_s3 + $0x10cc] ss:$16 sps:$4 sm:$0xff]   ;;  %v13288_v11 = vld [vmem:[%s16941_s3 + $0x12c4] ss:$16 sps:$4 sm:$0xff]  }
 0x32a   :  { %v4378_v31 = vadd.f32 %v4370_v63, %v4191_v46  ;;  %v5124_v33 = vadd.f32 %v5077_v16, %v4937_v0  ;;  %6797 = vmatprep.mubr.bf16.mxu1 %v13669_v28  ;;  %7504 = vmatprep.mubr.bf16.mxu0 %v13669_v28 }
 0x32b   :  { %v4372_v25 = vpop.f32.mrf.mxu1  ;;  %v5079_v27 = vpop.f32.mrf.mxu0 }
 0x32c   :  { %6776 = vmatpush1.bf16.msra.mxu1 %v13235_v22  ;;  %7483 = vmatpush1.bf16.msra.mxu0 %v13238_v55  ;;  %v13283_v22 = vld [vmem:[%s16941_s3 + $0x10c8] ss:$16 sps:$4 sm:$0xff]   ;;  %v13286_v55 = vld [vmem:[%s16941_s3 + $0x12c0] ss:$16 sps:$4 sm:$0xff]  }
 0x32d   :  { %v4373_v41 = vpop.f32.mrf.mxu1  ;;  %v5080_v45 = vpop.f32.mrf.mxu0  ;;  %6777 = vmatprep.subr.bf16.mxu1 %v13243_v18  ;;  %7484 = vmatprep.subr.bf16.mxu0 %v13246_v23  ;;  %v13291_v18 = vld [vmem:[%s16941_s3 + $0x10ac] ss:$16 sps:$4 sm:$0xff]   ;;  %v13294_v23 = vld [vmem:[%s16941_s3 + $0x12a4] ss:$16 sps:$4 sm:$0xff]  }
 0x330   :  { %6778 = vmatpush1.bf16.msra.mxu1 %v13241_v39  ;;  %7485 = vmatpush1.bf16.msra.mxu0 %v13244_v44  ;;  %v13289_v39 = vld [vmem:[%s16941_s3 + $0x10a8] ss:$16 sps:$4 sm:$0xff]   ;;  %v13292_v44 = vld [vmem:[%s16941_s3 + $0x12a0] ss:$16 sps:$4 sm:$0xff]  }
 0x331   :  { %6779 = vmatprep.subr.bf16.mxu1 %v13249_v4  ;;  %7486 = vmatprep.subr.bf16.mxu0 %v13252_v47  ;;  %v13297_v4 = vld [vmem:[%s16941_s3 + $0x108c] ss:$16 sps:$4 sm:$0xff]   ;;  %v13300_v47 = vld [vmem:[%s16941_s3 + $0x1284] ss:$16 sps:$4 sm:$0xff]  }
 0x334   :  { %6780 = vmatpush1.bf16.msra.mxu1 %v13247_v48  ;;  %7487 = vmatpush1.bf16.msra.mxu0 %v13250_v53  ;;  %v13295_v48 = vld [vmem:[%s16941_s3 + $0x1088] ss:$16 sps:$4 sm:$0xff]   ;;  %v13298_v53 = vld [vmem:[%s16941_s3 + $0x1280] ss:$16 sps:$4 sm:$0xff]  }
 0x335   :  { %6959 = vmatprep.subr.bf16.mxu1 %v13255_v58  ;;  %7667 = vmatprep.subr.bf16.mxu0 %v13258_v38  ;;  %v13303_v58 = vld [vmem:[%s16941_s3 + $0x116c] ss:$16 sps:$4 sm:$0xff]   ;;  %v13306_v38 = vld [vmem:[%s16941_s3 + $0x1364] ss:$16 sps:$4 sm:$0xff]  }
 0x337   :  { %v4555_v50 = vpop.f32.mrf.mxu1  ;;  %v5262_v30 = vpop.f32.mrf.mxu0  ;;  %11531 = vmatmul.mubr.msk.bf16.vlgmr.msra.gmra.mxu1 %vm529_vm1, %v6640_v40  ;;  %11666 = vmatmul.mubr.msk.bf16.vlgmr.msra.gmra.mxu0 %vm529_vm1, %v7388_v57  ;;  %v13267_v40 = vld [vmem:[%s16941_s3 + $0x102c] ss:$16 sps:$4 sm:$0xff]  }
 0x338   :  { %v4564_v49 = vadd.f32 %v4555_v50, %v4377_v59  ;;  %v5310_v62 = vadd.f32 %v5262_v30, %v5123_v14  ;;  %6960 = vmatpush1.bf16.msra.mxu1 %v13253_v36  ;;  %7668 = vmatpush1.bf16.msra.mxu0 %v13256_v54  ;;  %v13301_v36 = vld [vmem:[%s16941_s3 + $0x1168] ss:$16 sps:$4 sm:$0xff]   ;;  %v13304_v54 = vld [vmem:[%s16941_s3 + $0x1360] ss:$16 sps:$4 sm:$0xff]   ;;  %v13312_v50 = vld [vmem:[%s16941_s3 + $0x1344] ss:$16 sps:$4 sm:$0xff]  }
 0x339   :  { %v4557_v56 = vpop.f32.mrf.mxu1  ;;  %v5264_v24 = vpop.f32.mrf.mxu0  ;;  %6961 = vmatprep.subr.bf16.mxu1 %v13261_v19  ;;  %7669 = vmatprep.subr.bf16.mxu0 %v13264_v60  ;;  %v7762_v19 = vrot.slane %v14196_v51, 5  ;;  %v13309_v60 = vld [vmem:[%s16941_s3 + $0x114c] ss:$16 sps:$4 sm:$0xff]  }
 0x33a   :  { %v4565_v2 = vadd.f32 %v4557_v56, %v4378_v31  ;;  %v5311_v46 = vadd.f32 %v5264_v24, %v5124_v33  ;;  %6983 = vmatprep.mubr.bf16.mxu1 %v13669_v28  ;;  %7691 = vmatprep.mubr.bf16.mxu0 %v13669_v28  ;;  %v13310_v56 = vld [vmem:[%s16941_s3 + $0x1340] ss:$16 sps:$4 sm:$0xff]  }
 0x33b   :  { %v4559_v0 = vpop.f32.mrf.mxu1  ;;  %v5266_v43 = vpop.f32.mrf.mxu0 }
 0x33c   :  { %6962 = vmatpush1.bf16.msra.mxu1 %v13259_v42  ;;  %7670 = vmatpush1.bf16.msra.mxu0 %v13262_v61  ;;  %v13307_v61 = vld [vmem:[%s16941_s3 + $0x1148] ss:$16 sps:$4 sm:$0xff]  }
 0x33d   :  { %v4560_v3 = vpop.f32.mrf.mxu1  ;;  %v5267_v15 = vpop.f32.mrf.mxu0  ;;  %6963 = vmatprep.subr.bf16.mxu1 %v13267_v40  ;;  %7671 = vmatprep.subr.bf16.mxu0 %v13270_v52  ;;  %v13318_v52 = vld [vmem:[%s16941_s3 + $0x1324] ss:$16 sps:$4 sm:$0xff]  }
 0x340   :  { %6964 = vmatpush1.bf16.msra.mxu1 %v13265_v1  ;;  %7672 = vmatpush1.bf16.msra.mxu0 %v13268_v9  ;;  %v13313_v1 = vld [vmem:[%s16941_s3 + $0x1128] ss:$16 sps:$4 sm:$0xff]   ;;  %v13316_v9 = vld [vmem:[%s16941_s3 + $0x1320] ss:$16 sps:$4 sm:$0xff]  }
 0x341   :  { %6965 = vmatprep.subr.bf16.mxu1 %v13273_v8  ;;  %7673 = vmatprep.subr.bf16.mxu0 %v13276_v12  ;;  %v13321_v8 = vld [vmem:[%s16941_s3 + $0x110c] ss:$16 sps:$4 sm:$0xff]   ;;  %v13324_v12 = vld [vmem:[%s16941_s3 + $0x1304] ss:$16 sps:$4 sm:$0xff]  }
 0x344   :  { %6966 = vmatpush1.bf16.msra.mxu1 %v13271_v26  ;;  %7674 = vmatpush1.bf16.msra.mxu0 %v13274_v10  ;;  %v13319_v26 = vld [vmem:[%s16941_s3 + $0x1108] ss:$16 sps:$4 sm:$0xff]   ;;  %v13322_v10 = vld [vmem:[%s16941_s3 + $0x1300] ss:$16 sps:$4 sm:$0xff]  }
 0x345   :  { %7147 = vmatprep.subr.bf16.mxu1 %v13279_v32  ;;  %7854 = vmatprep.subr.bf16.mxu0 %v13282_v34  ;;  %v13327_v32 = vld [vmem:[%s16941_s3 + $0x11ec] ss:$16 sps:$4 sm:$0xff]   ;;  %v13330_v34 = vld [vmem:[%s16941_s3 + $0x13e4] ss:$16 sps:$4 sm:$0xff]  }
 0x347   :  { %v4742_v21 = vpop.f32.mrf.mxu1  ;;  %v5448_v29 = vpop.f32.mrf.mxu0  ;;  %11565 = vmatmul.mubr.msk.bf16.vlgmr.msra.gmra.mxu1 %vm529_vm1, %v14196_v51  ;;  %11700 = vmatmul.mubr.msk.bf16.vlgmr.msra.gmra.mxu0 %vm529_vm1, %v7575_v17 }
 0x348   :  { %v4751_v59 = vadd.f32 %v4742_v21, %v4564_v49  ;;  %v5496_v14 = vadd.f32 %v5448_v29, %v5310_v62  ;;  %7148 = vmatpush1.bf16.msra.mxu1 %v13277_v37  ;;  %7855 = vmatpush1.bf16.msra.mxu0 %v13280_v7  ;;  %v13325_v37 = vld [vmem:[%s16941_s3 + $0x11e8] ss:$16 sps:$4 sm:$0xff]   ;;  %v13328_v7 = vld [vmem:[%s16941_s3 + $0x13e0] ss:$16 sps:$4 sm:$0xff]   ;;  %v13336_v21 = vld [vmem:[%s16941_s3 + $0x13c4] ss:$16 sps:$4 sm:$0xff]  }
 0x349   :  { %v4744_v63 = vpop.f32.mrf.mxu1  ;;  %v5450_v16 = vpop.f32.mrf.mxu0  ;;  %7149 = vmatprep.subr.bf16.mxu1 %v13285_v20  ;;  %7856 = vmatprep.subr.bf16.mxu0 %v13288_v11  ;;  %v7949_v20 = vrot.slane %v14196_v51, 6  ;;  %v13333_v11 = vld [vmem:[%s16941_s3 + $0x11cc] ss:$16 sps:$4 sm:$0xff]  }
 0x34a   :  { %v4752_v31 = vadd.f32 %v4744_v63, %v4565_v2  ;;  %v5497_v33 = vadd.f32 %v5450_v16, %v5311_v46  ;;  %7171 = vmatprep.mubr.bf16.mxu1 %v13669_v28  ;;  %7878 = vmatprep.mubr.bf16.mxu0 %v13669_v28  ;;  %v13334_v63 = vld [vmem:[%s16941_s3 + $0x13c0] ss:$16 sps:$4 sm:$0xff]  }
 0x34b   :  { %v4746_v25 = vpop.f32.mrf.mxu1  ;;  %v5452_v27 = vpop.f32.mrf.mxu0 }
 0x34c   :  { %7150 = vmatpush1.bf16.msra.mxu1 %v13283_v22  ;;  %7857 = vmatpush1.bf16.msra.mxu0 %v13286_v55  ;;  %v13331_v55 = vld [vmem:[%s16941_s3 + $0x11c8] ss:$16 sps:$4 sm:$0xff]  }
 0x34d   :  { %v4747_v41 = vpop.f32.mrf.mxu1  ;;  %v5453_v45 = vpop.f32.mrf.mxu0  ;;  %7151 = vmatprep.subr.bf16.mxu1 %v13291_v18  ;;  %7858 = vmatprep.subr.bf16.mxu0 %v13294_v23  ;;  %v13342_v23 = vld [vmem:[%s16941_s3 + $0x13a4] ss:$16 sps:$4 sm:$0xff]  }
 0x350   :  { %7152 = vmatpush1.bf16.msra.mxu1 %v13289_v39  ;;  %7859 = vmatpush1.bf16.msra.mxu0 %v13292_v44  ;;  %v13337_v39 = vld [vmem:[%s16941_s3 + $0x11a8] ss:$16 sps:$4 sm:$0xff]   ;;  %v13340_v44 = vld [vmem:[%s16941_s3 + $0x13a0] ss:$16 sps:$4 sm:$0xff]  }
 0x351   :  { %7153 = vmatprep.subr.bf16.mxu1 %v13297_v4  ;;  %7860 = vmatprep.subr.bf16.mxu0 %v13300_v47  ;;  %v13345_v4 = vld [vmem:[%s16941_s3 + $0x118c] ss:$16 sps:$4 sm:$0xff]   ;;  %v13348_v47 = vld [vmem:[%s16941_s3 + $0x1384] ss:$16 sps:$4 sm:$0xff]  }
 0x354   :  { %7154 = vmatpush1.bf16.msra.mxu1 %v13295_v48  ;;  %7861 = vmatpush1.bf16.msra.mxu0 %v13298_v53  ;;  %v13343_v48 = vld [vmem:[%s16941_s3 + $0x1188] ss:$16 sps:$4 sm:$0xff]   ;;  %v13346_v53 = vld [vmem:[%s16941_s3 + $0x1380] ss:$16 sps:$4 sm:$0xff]  }
 0x355   :  { %7334 = vmatprep.subr.bf16.mxu1 %v13303_v58  ;;  %8041 = vmatprep.subr.bf16.mxu0 %v13306_v38  ;;  %v13351_v58 = vld [vmem:[%s16941_s3 + $0x126c] ss:$16 sps:$4 sm:$0xff]   ;;  %v13354_v38 = vld [vmem:[%s16941_s3 + $0x1464] ss:$16 sps:$4 sm:$0xff]  }
 0x357   :  { %v4929_v30 = vpop.f32.mrf.mxu1  ;;  %v5636_v49 = vpop.f32.mrf.mxu0  ;;  %11599 = vmatmul.mubr.msk.bf16.vlgmr.msra.gmra.mxu1 %vm529_vm1, %v7014_v35  ;;  %11734 = vmatmul.mubr.msk.bf16.vlgmr.msra.gmra.mxu0 %vm529_vm1, %v7762_v19  ;;  %v13315_v35 = vld [vmem:[%s16941_s3 + $0x112c] ss:$16 sps:$4 sm:$0xff]  }
 0x358   :  { %v4938_v62 = vadd.f32 %v4929_v30, %v4751_v59  ;;  %v5684_v42 = vadd.f32 %v5636_v49, %v5496_v14  ;;  %7335 = vmatpush1.bf16.msra.mxu1 %v13301_v36  ;;  %8042 = vmatpush1.bf16.msra.mxu0 %v13304_v54  ;;  %v13349_v36 = vld [vmem:[%s16941_s3 + $0x1268] ss:$16 sps:$4 sm:$0xff]   ;;  %v13352_v54 = vld [vmem:[%s16941_s3 + $0x1460] ss:$16 sps:$4 sm:$0xff]   ;;  %v13360_v30 = vld [vmem:[%s16941_s3 + $0x1444] ss:$16 sps:$4 sm:$0xff]  }
 0x359   :  { %v4931_v24 = vpop.f32.mrf.mxu1  ;;  %v5638_v40 = vpop.f32.mrf.mxu0  ;;  %7336 = vmatprep.subr.bf16.mxu1 %v13309_v60  ;;  %8043 = vmatprep.subr.bf16.mxu0 %v13312_v50  ;;  %v8136_v60 = vrot.slane %v14196_v51, 7  ;;  %v13357_v50 = vld [vmem:[%s16941_s3 + $0x124c] ss:$16 sps:$4 sm:$0xff]  }
 0x35a   :  { %v4939_v2 = vadd.f32 %v4931_v24, %v4752_v31  ;;  %v5685_v46 = vadd.f32 %v5638_v40, %v5497_v33  ;;  %7358 = vmatprep.mubr.bf16.mxu1 %v13669_v28  ;;  %8065 = vmatprep.mubr.bf16.mxu0 %v13669_v28  ;;  %v13358_v24 = vld [vmem:[%s16941_s3 + $0x1440] ss:$16 sps:$4 sm:$0xff]  }
 0x35b   :  { %v4933_v0 = vpop.f32.mrf.mxu1  ;;  %v5640_v43 = vpop.f32.mrf.mxu0 }
 0x35c   :  { %7337 = vmatpush1.bf16.msra.mxu1 %v13307_v61  ;;  %8044 = vmatpush1.bf16.msra.mxu0 %v13310_v56  ;;  %v13355_v56 = vld [vmem:[%s16941_s3 + $0x1248] ss:$16 sps:$4 sm:$0xff]  }
 0x35d   :  { %v4934_v3 = vpop.f32.mrf.mxu1  ;;  %v5641_v15 = vpop.f32.mrf.mxu0  ;;  %7338 = vmatprep.subr.bf16.mxu1 %v13315_v35  ;;  %8045 = vmatprep.subr.bf16.mxu0 %v13318_v52  ;;  %v13366_v52 = vld [vmem:[%s16941_s3 + $0x1424] ss:$16 sps:$4 sm:$0xff]  }
 0x360   :  { %7339 = vmatpush1.bf16.msra.mxu1 %v13313_v1  ;;  %8046 = vmatpush1.bf16.msra.mxu0 %v13316_v9  ;;  %v13361_v1 = vld [vmem:[%s16941_s3 + $0x1228] ss:$16 sps:$4 sm:$0xff]   ;;  %v13364_v9 = vld [vmem:[%s16941_s3 + $0x1420] ss:$16 sps:$4 sm:$0xff]  }
 0x361   :  { %7340 = vmatprep.subr.bf16.mxu1 %v13321_v8  ;;  %8047 = vmatprep.subr.bf16.mxu0 %v13324_v12  ;;  %v13369_v8 = vld [vmem:[%s16941_s3 + $0x120c] ss:$16 sps:$4 sm:$0xff]   ;;  %v13372_v12 = vld [vmem:[%s16941_s3 + $0x1404] ss:$16 sps:$4 sm:$0xff]  }
 0x364   :  { %7341 = vmatpush1.bf16.msra.mxu1 %v13319_v26  ;;  %8048 = vmatpush1.bf16.msra.mxu0 %v13322_v10  ;;  %v13367_v26 = vld [vmem:[%s16941_s3 + $0x1208] ss:$16 sps:$4 sm:$0xff]   ;;  %v13370_v10 = vld [vmem:[%s16941_s3 + $0x1400] ss:$16 sps:$4 sm:$0xff]  }
 0x365   :  { %7521 = vmatprep.subr.bf16.mxu1 %v13327_v32  ;;  %8228 = vmatprep.subr.bf16.mxu0 %v13330_v34  ;;  %v13375_v32 = vld [vmem:[%s16941_s3 + $0x12ec] ss:$16 sps:$4 sm:$0xff]   ;;  %v13378_v34 = vld [vmem:[%s16941_s3 + $0x14e4] ss:$16 sps:$4 sm:$0xff]  }
 0x367   :  { %v5116_v29 = vpop.f32.mrf.mxu1  ;;  %v5823_v59 = vpop.f32.mrf.mxu0  ;;  %11633 = vmatmul.mubr.msk.bf16.vlgmr.msra.gmra.mxu1 %vm529_vm1, %v7201_v13  ;;  %11768 = vmatmul.mubr.msk.bf16.vlgmr.msra.gmra.mxu0 %vm529_vm1, %v7949_v20  ;;  %v13339_v13 = vld [vmem:[%s16941_s3 + $0x11ac] ss:$16 sps:$4 sm:$0xff]  }
 0x368   :  { %v5125_v14 = vadd.f32 %v5116_v29, %v4938_v62  ;;  %v5871_v22 = vadd.f32 %v5823_v59, %v5684_v42  ;;  %7522 = vmatpush1.bf16.msra.mxu1 %v13325_v37  ;;  %8229 = vmatpush1.bf16.msra.mxu0 %v13328_v7  ;;  %v13373_v37 = vld [vmem:[%s16941_s3 + $0x12e8] ss:$16 sps:$4 sm:$0xff]   ;;  %v13376_v7 = vld [vmem:[%s16941_s3 + $0x14e0] ss:$16 sps:$4 sm:$0xff]  }
 0x369   :  { %v5118_v16 = vpop.f32.mrf.mxu1  ;;  %v5825_v18 = vpop.f32.mrf.mxu0  ;;  %7523 = vmatprep.subr.bf16.mxu1 %v13333_v11  ;;  %8230 = vmatprep.subr.bf16.mxu0 %v13336_v21  ;;  %v13381_v11 = vld [vmem:[%s16941_s3 + $0x12cc] ss:$16 sps:$4 sm:$0xff]   ;;  %v13384_v21 = vld [vmem:[%s16941_s3 + $0x14c4] ss:$16 sps:$4 sm:$0xff]  }
 0x36a   :  { %v5126_v31 = vadd.f32 %v5118_v16, %v4939_v2  ;;  %v5872_v33 = vadd.f32 %v5825_v18, %v5685_v46  ;;  %7545 = vmatprep.mubr.bf16.mxu1 %v13669_v28  ;;  %8252 = vmatprep.mubr.bf16.mxu0 %v13669_v28 }
 0x36b   :  { %v5120_v25 = vpop.f32.mrf.mxu1  ;;  %v5827_v27 = vpop.f32.mrf.mxu0 }
 0x36c   :  { %7524 = vmatpush1.bf16.msra.mxu1 %v13331_v55  ;;  %8231 = vmatpush1.bf16.msra.mxu0 %v13334_v63  ;;  %v13379_v55 = vld [vmem:[%s16941_s3 + $0x12c8] ss:$16 sps:$4 sm:$0xff]   ;;  %v13382_v63 = vld [vmem:[%s16941_s3 + $0x14c0] ss:$16 sps:$4 sm:$0xff]  }
 0x36d   :  { %v5121_v41 = vpop.f32.mrf.mxu1  ;;  %v5828_v45 = vpop.f32.mrf.mxu0  ;;  %7525 = vmatprep.subr.bf16.mxu1 %v13339_v13  ;;  %8232 = vmatprep.subr.bf16.mxu0 %v13342_v23  ;;  %v13390_v13 = vld [vmem:[%s16941_s3 + $0x14a4] ss:$16 sps:$4 sm:$0xff]   ;;  %v13385_v27 = vld [vmem:[%s16941_s3 + $0x12a8] ss:$16 sps:$4 sm:$0xff]  }
 0x36e   :  { %v13393_v45 = vld [vmem:[%s16941_s3 + $0x128c] ss:$16 sps:$4 sm:$0xff]  }
 0x370   :  { %7526 = vmatpush1.bf16.msra.mxu1 %v13337_v39  ;;  %8233 = vmatpush1.bf16.msra.mxu0 %v13340_v44  ;;  %v13388_v39 = vld [vmem:[%s16941_s3 + $0x14a0] ss:$16 sps:$4 sm:$0xff]  }
 0x371   :  { %7527 = vmatprep.subr.bf16.mxu1 %v13345_v4  ;;  %8234 = vmatprep.subr.bf16.mxu0 %v13348_v47  ;;  %v13396_v4 = vld [vmem:[%s16941_s3 + $0x1484] ss:$16 sps:$4 sm:$0xff]   ;;  %v13391_v47 = vld [vmem:[%s16941_s3 + $0x1288] ss:$16 sps:$4 sm:$0xff]  }
 0x374   :  { %7528 = vmatpush1.bf16.msra.mxu1 %v13343_v48  ;;  %8235 = vmatpush1.bf16.msra.mxu0 %v13346_v53  ;;  %v13394_v48 = vld [vmem:[%s16941_s3 + $0x1480] ss:$16 sps:$4 sm:$0xff]   ;;  %v13399_v53 = vld [vmem:[%s16941_s3 + $0x136c] ss:$16 sps:$4 sm:$0xff]  }
 0x375   :  { %7708 = vmatprep.subr.bf16.mxu1 %v13351_v58  ;;  %8414 = vmatprep.subr.bf16.mxu0 %v13354_v38  ;;  %v13402_v58 = vld [vmem:[%s16941_s3 + $0x1564] ss:$16 sps:$4 sm:$0xff]   ;;  %v13397_v38 = vld [vmem:[%s16941_s3 + $0x1368] ss:$16 sps:$4 sm:$0xff]  }
 0x377   :  { %v5303_v49 = vpop.f32.mrf.mxu1  ;;  %v6010_v62 = vpop.f32.mrf.mxu0  ;;  %11667 = vmatmul.mubr.msk.bf16.vlgmr.msra.gmra.mxu1 %vm529_vm1, %v7388_v57  ;;  %11802 = vmatmul.mubr.msk.bf16.vlgmr.msra.gmra.mxu0 %vm529_vm1, %v8136_v60  ;;  %v13363_v57 = vld [vmem:[%s16941_s3 + $0x122c] ss:$16 sps:$4 sm:$0xff]  }
 0x378   :  { %v5312_v42 = vadd.f32 %v5303_v49, %v5125_v14  ;;  %v6058_v61 = vadd.f32 %v6010_v62, %v5871_v22  ;;  %7709 = vmatpush1.bf16.msra.mxu1 %v13349_v36  ;;  %8415 = vmatpush1.bf16.msra.mxu0 %v13352_v54  ;;  %v13400_v36 = vld [vmem:[%s16941_s3 + $0x1560] ss:$16 sps:$4 sm:$0xff]   ;;  %v8510_v54 = vrot.slane %v14226_v5, 1 }
 0x379   :  { %v5305_v40 = vpop.f32.mrf.mxu1  ;;  %v6012_v35 = vpop.f32.mrf.mxu0  ;;  %7710 = vmatprep.subr.bf16.mxu1 %v13357_v50  ;;  %8416 = vmatprep.subr.bf16.mxu0 %v13360_v30  ;;  %v13405_v50 = vld [vmem:[%s16941_s3 + $0x134c] ss:$16 sps:$4 sm:$0xff]   ;;  %v13408_v30 = vld [vmem:[%s16941_s3 + $0x1544] ss:$16 sps:$4 sm:$0xff]  }
 0x37a   :  { %v5313_v2 = vadd.f32 %v5305_v40, %v5126_v31  ;;  %v6059_v46 = vadd.f32 %v6012_v35, %v5872_v33  ;;  %7732 = vmatprep.mubr.bf16.mxu1 %v13669_v28  ;;  %8438 = vmatprep.mubr.bf16.mxu0 %v13669_v28 }
 0x37b   :  { %v5307_v0 = vpop.f32.mrf.mxu1  ;;  %v6014_v43 = vpop.f32.mrf.mxu0 }
 0x37c   :  { %7711 = vmatpush1.bf16.msra.mxu1 %v13355_v56  ;;  %8417 = vmatpush1.bf16.msra.mxu0 %v13358_v24  ;;  %v13403_v56 = vld [vmem:[%s16941_s3 + $0x1348] ss:$16 sps:$4 sm:$0xff]   ;;  %v13406_v24 = vld [vmem:[%s16941_s3 + $0x1540] ss:$16 sps:$4 sm:$0xff]  }
 0x37d   :  { %v5308_v3 = vpop.f32.mrf.mxu1  ;;  %v6015_v15 = vpop.f32.mrf.mxu0  ;;  %7712 = vmatprep.subr.bf16.mxu1 %v13363_v57  ;;  %8418 = vmatprep.subr.bf16.mxu0 %v13366_v52  ;;  %v13414_v57 = vld [vmem:[%s16941_s3 + $0x1524] ss:$16 sps:$4 sm:$0xff]   ;;  %v13409_v43 = vld [vmem:[%s16941_s3 + $0x1328] ss:$16 sps:$4 sm:$0xff]  }
 0x37e   :  { %v13417_v15 = vld [vmem:[%s16941_s3 + $0x130c] ss:$16 sps:$4 sm:$0xff]  }
 0x380   :  { %7713 = vmatpush1.bf16.msra.mxu1 %v13361_v1  ;;  %8419 = vmatpush1.bf16.msra.mxu0 %v13364_v9  ;;  %v13412_v1 = vld [vmem:[%s16941_s3 + $0x1520] ss:$16 sps:$4 sm:$0xff]  }
 0x381   :  { %7714 = vmatprep.subr.bf16.mxu1 %v13369_v8  ;;  %8420 = vmatprep.subr.bf16.mxu0 %v13372_v12  ;;  %v13420_v8 = vld [vmem:[%s16941_s3 + $0x1504] ss:$16 sps:$4 sm:$0xff]   ;;  %v13415_v12 = vld [vmem:[%s16941_s3 + $0x1308] ss:$16 sps:$4 sm:$0xff]  }
 0x384   :  { %7715 = vmatpush1.bf16.msra.mxu1 %v13367_v26  ;;  %8421 = vmatpush1.bf16.msra.mxu0 %v13370_v10  ;;  %v13418_v26 = vld [vmem:[%s16941_s3 + $0x1500] ss:$16 sps:$4 sm:$0xff]   ;;  %v13423_v10 = vld [vmem:[%s16941_s3 + $0x13ec] ss:$16 sps:$4 sm:$0xff]  }
 0x385   :  { %7895 = vmatprep.subr.bf16.mxu1 %v13375_v32  ;;  %8602 = vmatprep.subr.bf16.mxu0 %v13378_v34  ;;  %v13426_v32 = vld [vmem:[%s16941_s3 + $0x15e4] ss:$16 sps:$4 sm:$0xff]   ;;  %v13421_v34 = vld [vmem:[%s16941_s3 + $0x13e8] ss:$16 sps:$4 sm:$0xff]  }
 0x387   :  { %v5489_v29 = vpop.f32.mrf.mxu1  ;;  %v6197_v59 = vpop.f32.mrf.mxu0  ;;  %11701 = vmatmul.mubr.msk.bf16.vlgmr.msra.gmra.mxu1 %vm529_vm1, %v7575_v17  ;;  %11836 = vmatmul.mubr.msk.bf16.vlgmr.msra.gmra.mxu0 %vm529_vm1, %v14226_v5  ;;  %v13387_v17 = vld [vmem:[%s16941_s3 + $0x12ac] ss:$16 sps:$4 sm:$0xff]  }
 0x388   :  { %v5498_v14 = vadd.f32 %v5489_v29, %v5312_v42  ;;  %v6245_v22 = vadd.f32 %v6197_v59, %v6058_v61  ;;  %7896 = vmatpush1.bf16.msra.mxu1 %v13373_v37  ;;  %8603 = vmatpush1.bf16.msra.mxu0 %v13376_v7  ;;  %v13424_v37 = vld [vmem:[%s16941_s3 + $0x15e0] ss:$16 sps:$4 sm:$0xff]   ;;  %v8697_v7 = vrot.slane %v14226_v5, 2 }
 0x389   :  { %v5491_v16 = vpop.f32.mrf.mxu1  ;;  %v6199_v18 = vpop.f32.mrf.mxu0  ;;  %7897 = vmatprep.subr.bf16.mxu1 %v13381_v11  ;;  %8604 = vmatprep.subr.bf16.mxu0 %v13384_v21  ;;  %v13429_v11 = vld [vmem:[%s16941_s3 + $0x13cc] ss:$16 sps:$4 sm:$0xff]   ;;  %v13432_v21 = vld [vmem:[%s16941_s3 + $0x15c4] ss:$16 sps:$4 sm:$0xff]  }
 0x38a   :  { %v5499_v23 = vadd.f32 %v5491_v16, %v5313_v2  ;;  %v6246_v31 = vadd.f32 %v6199_v18, %v6059_v46  ;;  %7919 = vmatprep.mubr.bf16.mxu1 %v13669_v28  ;;  %8626 = vmatprep.mubr.bf16.mxu0 %v13669_v28 }
 0x38b   :  { %v5493_v33 = vpop.f32.mrf.mxu1  ;;  %v6201_v25 = vpop.f32.mrf.mxu0 }
 0x38c   :  { %7898 = vmatpush1.bf16.msra.mxu1 %v13379_v55  ;;  %8605 = vmatpush1.bf16.msra.mxu0 %v13382_v63  ;;  %v13427_v55 = vld [vmem:[%s16941_s3 + $0x13c8] ss:$16 sps:$4 sm:$0xff]   ;;  %v13430_v63 = vld [vmem:[%s16941_s3 + $0x15c0] ss:$16 sps:$4 sm:$0xff]  }
 0x38d   :  { %v5494_v44 = vpop.f32.mrf.mxu1  ;;  %v6202_v41 = vpop.f32.mrf.mxu0  ;;  %7899 = vmatprep.subr.bf16.mxu1 %v13387_v17  ;;  %8606 = vmatprep.subr.bf16.mxu0 %v13390_v13  ;;  %v13438_v17 = vld [vmem:[%s16941_s3 + $0x15a4] ss:$16 sps:$4 sm:$0xff]   ;;  %v13433_v25 = vld [vmem:[%s16941_s3 + $0x13a8] ss:$16 sps:$4 sm:$0xff]  }
 0x38e   :  { %v13441_v41 = vld [vmem:[%s16941_s3 + $0x138c] ss:$16 sps:$4 sm:$0xff]  }
 0x390   :  { %7900 = vmatpush1.bf16.msra.mxu1 %v13385_v27  ;;  %8607 = vmatpush1.bf16.msra.mxu0 %v13388_v39  ;;  %v13436_v27 = vld [vmem:[%s16941_s3 + $0x15a0] ss:$16 sps:$4 sm:$0xff]  }
 0x391   :  { %7901 = vmatprep.subr.bf16.mxu1 %v13393_v45  ;;  %8608 = vmatprep.subr.bf16.mxu0 %v13396_v4  ;;  %v13444_v45 = vld [vmem:[%s16941_s3 + $0x1584] ss:$16 sps:$4 sm:$0xff]   ;;  %v13439_v4 = vld [vmem:[%s16941_s3 + $0x1388] ss:$16 sps:$4 sm:$0xff]  }
 0x394   :  { %7902 = vmatpush1.bf16.msra.mxu1 %v13391_v47  ;;  %8609 = vmatpush1.bf16.msra.mxu0 %v13394_v48  ;;  %v13442_v47 = vld [vmem:[%s16941_s3 + $0x1580] ss:$16 sps:$4 sm:$0xff]   ;;  %v13447_v48 = vld [vmem:[%s16941_s3 + $0x146c] ss:$16 sps:$4 sm:$0xff]  }
 0x395   :  { %8082 = vmatprep.subr.bf16.mxu1 %v13399_v53  ;;  %8789 = vmatprep.subr.bf16.mxu0 %v13402_v58  ;;  %v13450_v53 = vld [vmem:[%s16941_s3 + $0x1664] ss:$16 sps:$4 sm:$0xff]   ;;  %v13445_v58 = vld [vmem:[%s16941_s3 + $0x1468] ss:$16 sps:$4 sm:$0xff]  }
 0x397   :  { %v5677_v49 = vpop.f32.mrf.mxu1  ;;  %v6384_v62 = vpop.f32.mrf.mxu0  ;;  %11735 = vmatmul.mubr.msk.bf16.vlgmr.msra.gmra.mxu1 %vm529_vm1, %v7762_v19  ;;  %11870 = vmatmul.mubr.msk.bf16.vlgmr.msra.gmra.mxu0 %vm529_vm1, %v8510_v54  ;;  %v13411_v19 = vld [vmem:[%s16941_s3 + $0x132c] ss:$16 sps:$4 sm:$0xff]  }
 0x398   :  { %v5686_v42 = vadd.f32 %v5677_v49, %v5498_v14  ;;  %v6432_v61 = vadd.f32 %v6384_v62, %v6245_v22  ;;  %8083 = vmatpush1.bf16.msra.mxu1 %v13397_v38  ;;  %8790 = vmatpush1.bf16.msra.mxu0 %v13400_v36  ;;  %v13448_v38 = vld [vmem:[%s16941_s3 + $0x1660] ss:$16 sps:$4 sm:$0xff]   ;;  %v8884_v36 = vrot.slane %v14226_v5, 3 }
 0x399   :  { %v5679_v40 = vpop.f32.mrf.mxu1  ;;  %v6386_v35 = vpop.f32.mrf.mxu0  ;;  %8084 = vmatprep.subr.bf16.mxu1 %v13405_v50  ;;  %8791 = vmatprep.subr.bf16.mxu0 %v13408_v30  ;;  %v13453_v50 = vld [vmem:[%s16941_s3 + $0x144c] ss:$16 sps:$4 sm:$0xff]   ;;  %v13456_v30 = vld [vmem:[%s16941_s3 + $0x1644] ss:$16 sps:$4 sm:$0xff]  }
 0x39a   :  { %v5687_v52 = vadd.f32 %v5679_v40, %v5499_v23  ;;  %v6433_v2 = vadd.f32 %v6386_v35, %v6246_v31  ;;  %8106 = vmatprep.mubr.bf16.mxu1 %v13669_v28  ;;  %8813 = vmatprep.mubr.bf16.mxu0 %v13669_v28  ;;  %v13462_v35 = vld [vmem:[%s16941_s3 + $0x1624] ss:$16 sps:$4 sm:$0xff]  }
 0x39b   :  { %v5681_v46 = vpop.f32.mrf.mxu1  ;;  %v6388_v0 = vpop.f32.mrf.mxu0 }
 0x39c   :  { %8085 = vmatpush1.bf16.msra.mxu1 %v13403_v56  ;;  %8792 = vmatpush1.bf16.msra.mxu0 %v13406_v24  ;;  %v13451_v56 = vld [vmem:[%s16941_s3 + $0x1448] ss:$16 sps:$4 sm:$0xff]   ;;  %v13454_v24 = vld [vmem:[%s16941_s3 + $0x1640] ss:$16 sps:$4 sm:$0xff]  }
 0x39d   :  { %v5682_v9 = vpop.f32.mrf.mxu1  ;;  %v6389_v3 = vpop.f32.mrf.mxu0  ;;  %8086 = vmatprep.subr.bf16.mxu1 %v13411_v19  ;;  %8793 = vmatprep.subr.bf16.mxu0 %v13414_v57  ;;  %v13457_v46 = vld [vmem:[%s16941_s3 + $0x1428] ss:$16 sps:$4 sm:$0xff]   ;;  %v13460_v0 = vld [vmem:[%s16941_s3 + $0x1620] ss:$16 sps:$4 sm:$0xff]  }
 0x39e   :  { %v13465_v9 = vld [vmem:[%s16941_s3 + $0x140c] ss:$16 sps:$4 sm:$0xff]   ;;  %v13468_v3 = vld [vmem:[%s16941_s3 + $0x1604] ss:$16 sps:$4 sm:$0xff]  }
 0x3a0   :  { %8087 = vmatpush1.bf16.msra.mxu1 %v13409_v43  ;;  %8794 = vmatpush1.bf16.msra.mxu0 %v13412_v1 }
 0x3a1   :  { %8088 = vmatprep.subr.bf16.mxu1 %v13417_v15  ;;  %8795 = vmatprep.subr.bf16.mxu0 %v13420_v8  ;;  %v13463_v15 = vld [vmem:[%s16941_s3 + $0x1408] ss:$16 sps:$4 sm:$0xff]   ;;  %v13466_v8 = vld [vmem:[%s16941_s3 + $0x1600] ss:$16 sps:$4 sm:$0xff]  }
 0x3a4   :  { %8089 = vmatpush1.bf16.msra.mxu1 %v13415_v12  ;;  %8796 = vmatpush1.bf16.msra.mxu0 %v13418_v26  ;;  %v13471_v12 = vld [vmem:[%s16941_s3 + $0x14ec] ss:$16 sps:$4 sm:$0xff]   ;;  %v13474_v26 = vld [vmem:[%s16941_s3 + $0x16e4] ss:$16 sps:$4 sm:$0xff]  }
 0x3a5   :  { %8269 = vmatprep.subr.bf16.mxu1 %v13423_v10  ;;  %8976 = vmatprep.subr.bf16.mxu0 %v13426_v32  ;;  %v13469_v10 = vld [vmem:[%s16941_s3 + $0x14e8] ss:$16 sps:$4 sm:$0xff]   ;;  %v13472_v32 = vld [vmem:[%s16941_s3 + $0x16e0] ss:$16 sps:$4 sm:$0xff]  }
 0x3a7   :  { %v5864_v29 = vpop.f32.mrf.mxu1  ;;  %v6571_v59 = vpop.f32.mrf.mxu0  ;;  %11769 = vmatmul.mubr.msk.bf16.vlgmr.msra.gmra.mxu1 %vm529_vm1, %v7949_v20  ;;  %11904 = vmatmul.mubr.msk.bf16.vlgmr.msra.gmra.mxu0 %vm529_vm1, %v8697_v7  ;;  %v13435_v20 = vld [vmem:[%s16941_s3 + $0x13ac] ss:$16 sps:$4 sm:$0xff]  }
 0x3a8   :  { %v5873_v14 = vadd.f32 %v5864_v29, %v5686_v42  ;;  %v6619_v22 = vadd.f32 %v6571_v59, %v6432_v61  ;;  %8270 = vmatpush1.bf16.msra.mxu1 %v13421_v34  ;;  %8977 = vmatpush1.bf16.msra.mxu0 %v13424_v37  ;;  %v9071_v34 = vrot.slane %v14226_v5, 4  ;;  %v13477_v37 = vld [vmem:[%s16941_s3 + $0x14cc] ss:$16 sps:$4 sm:$0xff]  }
 0x3a9   :  { %v5866_v16 = vpop.f32.mrf.mxu1  ;;  %v6573_v18 = vpop.f32.mrf.mxu0  ;;  %8271 = vmatprep.subr.bf16.mxu1 %v13429_v11  ;;  %8978 = vmatprep.subr.bf16.mxu0 %v13432_v21  ;;  %v13480_v11 = vld [vmem:[%s16941_s3 + $0x16c4] ss:$16 sps:$4 sm:$0xff]  }
 0x3aa   :  { %v5874_v13 = vadd.f32 %v5866_v16, %v5687_v52  ;;  %v6620_v23 = vadd.f32 %v6573_v18, %v6433_v2  ;;  %8293 = vmatprep.mubr.bf16.mxu1 %v13669_v28  ;;  %9000 = vmatprep.mubr.bf16.mxu0 %v13669_v28  ;;  %v13483_v18 = vld [vmem:[%s16941_s3 + $0x14ac] ss:$16 sps:$4 sm:$0xff]  }
 0x3ab   :  { %v5868_v31 = vpop.f32.mrf.mxu1  ;;  %v6575_v33 = vpop.f32.mrf.mxu0 }
 0x3ac   :  { %8272 = vmatpush1.bf16.msra.mxu1 %v13427_v55  ;;  %8979 = vmatpush1.bf16.msra.mxu0 %v13430_v63  ;;  %v13478_v55 = vld [vmem:[%s16941_s3 + $0x16c0] ss:$16 sps:$4 sm:$0xff]   ;;  %v13481_v33 = vld [vmem:[%s16941_s3 + $0x14a8] ss:$16 sps:$4 sm:$0xff]  }
 0x3ad   :  { %v5869_v39 = vpop.f32.mrf.mxu1  ;;  %v6576_v44 = vpop.f32.mrf.mxu0  ;;  %8273 = vmatprep.subr.bf16.mxu1 %v13435_v20  ;;  %8980 = vmatprep.subr.bf16.mxu0 %v13438_v17  ;;  %v13486_v20 = vld [vmem:[%s16941_s3 + $0x16a4] ss:$16 sps:$4 sm:$0xff]  }
 0x3ae   :  { %v13489_v44 = vld [vmem:[%s16941_s3 + $0x148c] ss:$16 sps:$4 sm:$0xff]  }
 0x3b0   :  { %8274 = vmatpush1.bf16.msra.mxu1 %v13433_v25  ;;  %8981 = vmatpush1.bf16.msra.mxu0 %v13436_v27  ;;  %v13484_v25 = vld [vmem:[%s16941_s3 + $0x16a0] ss:$16 sps:$4 sm:$0xff]  }
 0x3b1   :  { %8275 = vmatprep.subr.bf16.mxu1 %v13441_v41  ;;  %8982 = vmatprep.subr.bf16.mxu0 %v13444_v45  ;;  %v13492_v41 = vld [vmem:[%s16941_s3 + $0x1684] ss:$16 sps:$4 sm:$0xff]   ;;  %v13487_v45 = vld [vmem:[%s16941_s3 + $0x1488] ss:$16 sps:$4 sm:$0xff]  }
 0x3b4   :  { %8276 = vmatpush1.bf16.msra.mxu1 %v13439_v4  ;;  %8983 = vmatpush1.bf16.msra.mxu0 %v13442_v47  ;;  %v13490_v4 = vld [vmem:[%s16941_s3 + $0x1680] ss:$16 sps:$4 sm:$0xff]   ;;  %v13495_v47 = vld [vmem:[%s16941_s3 + $0x156c] ss:$16 sps:$4 sm:$0xff]  }
 0x3b5   :  { %8455 = vmatprep.subr.bf16.mxu1 %v13447_v48  ;;  %9163 = vmatprep.subr.bf16.mxu0 %v13450_v53  ;;  %v13498_v48 = vld [vmem:[%s16941_s3 + $0x1764] ss:$16 sps:$4 sm:$0xff]   ;;  %v13493_v53 = vld [vmem:[%s16941_s3 + $0x1568] ss:$16 sps:$4 sm:$0xff]  }
 0x3b7   :  { %v6051_v49 = vpop.f32.mrf.mxu1  ;;  %v6758_v62 = vpop.f32.mrf.mxu0  ;;  %11803 = vmatmul.mubr.msk.bf16.vlgmr.msra.gmra.mxu1 %vm529_vm1, %v8136_v60  ;;  %11938 = vmatmul.mubr.msk.bf16.vlgmr.msra.gmra.mxu0 %vm529_vm1, %v8884_v36  ;;  %v13459_v60 = vld [vmem:[%s16941_s3 + $0x142c] ss:$16 sps:$4 sm:$0xff]  }
 0x3b8   :  { %v6060_v42 = vadd.f32 %v6051_v49, %v5873_v14  ;;  %v6806_v61 = vadd.f32 %v6758_v62, %v6619_v22  ;;  %8456 = vmatpush1.bf16.msra.mxu1 %v13445_v58  ;;  %9164 = vmatpush1.bf16.msra.mxu0 %v13448_v38  ;;  %v13475_v22 = vld [vmem:[%s16941_s3 + $0x14c8] ss:$16 sps:$4 sm:$0xff]   ;;  %v13496_v58 = vld [vmem:[%s16941_s3 + $0x1760] ss:$16 sps:$4 sm:$0xff]   ;;  %v9258_v38 = vrot.slane %v14226_v5, 5 }
 0x3b9   :  { %v6053_v40 = vpop.f32.mrf.mxu1  ;;  %v6760_v51 = vpop.f32.mrf.mxu0  ;;  %8457 = vmatprep.subr.bf16.mxu1 %v13453_v50  ;;  %9165 = vmatprep.subr.bf16.mxu0 %v13456_v30  ;;  %v13501_v50 = vld [vmem:[%s16941_s3 + $0x154c] ss:$16 sps:$4 sm:$0xff]   ;;  %v13504_v30 = vld [vmem:[%s16941_s3 + $0x1744] ss:$16 sps:$4 sm:$0xff]  }
 0x3ba   :  { %v6061_v19 = vadd.f32 %v6053_v40, %v5874_v13  ;;  %v6807_v57 = vadd.f32 %v6760_v51, %v6620_v23  ;;  %8479 = vmatprep.mubr.bf16.mxu1 %v13669_v28  ;;  %9187 = vmatprep.mubr.bf16.mxu0 %v13669_v28 }
 0x3bb   :  { %v6055_v52 = vpop.f32.mrf.mxu1  ;;  %v6762_v2 = vpop.f32.mrf.mxu0 }
 0x3bc   :  { %8458 = vmatpush1.bf16.msra.mxu1 %v13451_v56  ;;  %9166 = vmatpush1.bf16.msra.mxu0 %v13454_v24  ;;  %v13499_v56 = vld [vmem:[%s16941_s3 + $0x1548] ss:$16 sps:$4 sm:$0xff]   ;;  %v13502_v24 = vld [vmem:[%s16941_s3 + $0x1740] ss:$16 sps:$4 sm:$0xff]  }
 0x3bd   :  { %v6056_v43 = vpop.f32.mrf.mxu1  ;;  %v6763_v1 = vpop.f32.mrf.mxu0  ;;  %8459 = vmatprep.subr.bf16.mxu1 %v13459_v60  ;;  %9167 = vmatprep.subr.bf16.mxu0 %v13462_v35  ;;  %v13510_v60 = vld [vmem:[%s16941_s3 + $0x1724] ss:$16 sps:$4 sm:$0xff]   ;;  %v13505_v2 = vld [vmem:[%s16941_s3 + $0x1528] ss:$16 sps:$4 sm:$0xff]  }
 0x3be   :  { %v13513_v1 = vld [vmem:[%s16941_s3 + $0x150c] ss:$16 sps:$4 sm:$0xff]  }
 0x3c0   :  { %8460 = vmatpush1.bf16.msra.mxu1 %v13457_v46  ;;  %9168 = vmatpush1.bf16.msra.mxu0 %v13460_v0  ;;  %v13508_v46 = vld [vmem:[%s16941_s3 + $0x1720] ss:$16 sps:$4 sm:$0xff]  }
 0x3c1   :  { %8461 = vmatprep.subr.bf16.mxu1 %v13465_v9  ;;  %9169 = vmatprep.subr.bf16.mxu0 %v13468_v3  ;;  %v13516_v9 = vld [vmem:[%s16941_s3 + $0x1704] ss:$16 sps:$4 sm:$0xff]   ;;  %v13511_v3 = vld [vmem:[%s16941_s3 + $0x1508] ss:$16 sps:$4 sm:$0xff]  }
 0x3c4   :  { %8462 = vmatpush1.bf16.msra.mxu1 %v13463_v15  ;;  %9170 = vmatpush1.bf16.msra.mxu0 %v13466_v8  ;;  %v13514_v15 = vld [vmem:[%s16941_s3 + $0x1700] ss:$16 sps:$4 sm:$0xff]   ;;  %v13519_v8 = vld [vmem:[%s16941_s3 + $0x15ec] ss:$16 sps:$4 sm:$0xff]  }
 0x3c5   :  { %8643 = vmatprep.subr.bf16.mxu1 %v13471_v12  ;;  %9350 = vmatprep.subr.bf16.mxu0 %v13474_v26  ;;  %v13522_v12 = vld [vmem:[%s16941_s3 + $0x17e4] ss:$16 sps:$4 sm:$0xff]   ;;  %v13517_v26 = vld [vmem:[%s16941_s3 + $0x15e8] ss:$16 sps:$4 sm:$0xff]  }
 0x3c7   :  { %v6238_v21 = vpop.f32.mrf.mxu1  ;;  %v6944_v29 = vpop.f32.mrf.mxu0  ;;  %11837 = vmatmul.mubr.msk.bf16.vlgmr.msra.gmra.mxu1 %vm529_vm1, %v14226_v5  ;;  %11972 = vmatmul.mubr.msk.bf16.vlgmr.msra.gmra.mxu0 %vm529_vm1, %v9071_v34 }
 0x3c8   :  { %v6247_v59 = vadd.f32 %v6238_v21, %v6060_v42  ;;  %v6992_v14 = vadd.f32 %v6944_v29, %v6806_v61  ;;  %8644 = vmatpush1.bf16.msra.mxu1 %v13469_v10  ;;  %9351 = vmatpush1.bf16.msra.mxu0 %v13472_v32  ;;  %v13520_v10 = vld [vmem:[%s16941_s3 + $0x17e0] ss:$16 sps:$4 sm:$0xff]   ;;  %v9445_v32 = vrot.slane %v14226_v5, 6 }
 0x3c9   :  { %v6240_v63 = vpop.f32.mrf.mxu1  ;;  %v6946_v16 = vpop.f32.mrf.mxu0  ;;  %8645 = vmatprep.subr.bf16.mxu1 %v13477_v37  ;;  %9352 = vmatprep.subr.bf16.mxu0 %v13480_v11  ;;  %v13525_v37 = vld [vmem:[%s16941_s3 + $0x15cc] ss:$16 sps:$4 sm:$0xff]   ;;  %v13528_v11 = vld [vmem:[%s16941_s3 + $0x17c4] ss:$16 sps:$4 sm:$0xff]  }
 0x3ca   :  { %v6248_v17 = vadd.f32 %v6240_v63, %v6061_v19  ;;  %v6993_v13 = vadd.f32 %v6946_v16, %v6807_v57  ;;  %8667 = vmatprep.mubr.bf16.mxu1 %v13669_v28  ;;  %9374 = vmatprep.mubr.bf16.mxu0 %v13669_v28 }
 0x3cb   :  { %v6242_v23 = vpop.f32.mrf.mxu1  ;;  %v6948_v31 = vpop.f32.mrf.mxu0 }
 0x3cc   :  { %8646 = vmatpush1.bf16.msra.mxu1 %v13475_v22  ;;  %9353 = vmatpush1.bf16.msra.mxu0 %v13478_v55  ;;  %v13523_v22 = vld [vmem:[%s16941_s3 + $0x15c8] ss:$16 sps:$4 sm:$0xff]   ;;  %v13526_v55 = vld [vmem:[%s16941_s3 + $0x17c0] ss:$16 sps:$4 sm:$0xff]  }
 0x3cd   :  { %v6243_v27 = vpop.f32.mrf.mxu1  ;;  %v6949_v39 = vpop.f32.mrf.mxu0  ;;  %8647 = vmatprep.subr.bf16.mxu1 %v13483_v18  ;;  %9354 = vmatprep.subr.bf16.mxu0 %v13486_v20  ;;  %v13534_v18 = vld [vmem:[%s16941_s3 + $0x17a4] ss:$16 sps:$4 sm:$0xff]   ;;  %v13529_v31 = vld [vmem:[%s16941_s3 + $0x15a8] ss:$16 sps:$4 sm:$0xff]  }
 0x3ce   :  { %v13537_v39 = vld [vmem:[%s16941_s3 + $0x158c] ss:$16 sps:$4 sm:$0xff]  }
 0x3d0   :  { %8648 = vmatpush1.bf16.msra.mxu1 %v13481_v33  ;;  %9355 = vmatpush1.bf16.msra.mxu0 %v13484_v25  ;;  %v13532_v33 = vld [vmem:[%s16941_s3 + $0x17a0] ss:$16 sps:$4 sm:$0xff]  }
 0x3d1   :  { %8649 = vmatprep.subr.bf16.mxu1 %v13489_v44  ;;  %9356 = vmatprep.subr.bf16.mxu0 %v13492_v41  ;;  %v13540_v44 = vld [vmem:[%s16941_s3 + $0x1784] ss:$16 sps:$4 sm:$0xff]   ;;  %v13535_v41 = vld [vmem:[%s16941_s3 + $0x1588] ss:$16 sps:$4 sm:$0xff]  }
 0x3d4   :  { %8650 = vmatpush1.bf16.msra.mxu1 %v13487_v45  ;;  %9357 = vmatpush1.bf16.msra.mxu0 %v13490_v4  ;;  %v13538_v45 = vld [vmem:[%s16941_s3 + $0x1780] ss:$16 sps:$4 sm:$0xff]   ;;  %v13543_v4 = vld [vmem:[%s16941_s3 + $0x166c] ss:$16 sps:$4 sm:$0xff]  }
 0x3d5   :  { %8830 = vmatprep.subr.bf16.mxu1 %v13495_v47  ;;  %9537 = vmatprep.subr.bf16.mxu0 %v13498_v48  ;;  %v13546_v47 = vld [vmem:[%s16941_s3 + $0x1864] ss:$16 sps:$4 sm:$0xff]   ;;  %v13541_v48 = vld [vmem:[%s16941_s3 + $0x1668] ss:$16 sps:$4 sm:$0xff]  }
 0x3d7   :  { %v6425_v49 = vpop.f32.mrf.mxu1  ;;  %v7132_v62 = vpop.f32.mrf.mxu0  ;;  %11871 = vmatmul.mubr.msk.bf16.vlgmr.msra.gmra.mxu1 %vm529_vm1, %v8510_v54  ;;  %12006 = vmatmul.mubr.msk.bf16.vlgmr.msra.gmra.mxu0 %vm529_vm1, %v9258_v38  ;;  %v13507_v54 = vld [vmem:[%s16941_s3 + $0x152c] ss:$16 sps:$4 sm:$0xff]  }
 0x3d8   :  { %v6434_v42 = vadd.f32 %v6425_v49, %v6247_v59  ;;  %v7180_v61 = vadd.f32 %v7132_v62, %v6992_v14  ;;  %8831 = vmatpush1.bf16.msra.mxu1 %v13493_v53  ;;  %9538 = vmatpush1.bf16.msra.mxu0 %v13496_v58  ;;  %v13544_v53 = vld [vmem:[%s16941_s3 + $0x1860] ss:$16 sps:$4 sm:$0xff]   ;;  %v9632_v58 = vrot.slane %v14226_v5, 7 }
 0x3d9   :  { %v6427_v40 = vpop.f32.mrf.mxu1  ;;  %v7134_v51 = vpop.f32.mrf.mxu0  ;;  %8832 = vmatprep.subr.bf16.mxu1 %v13501_v50  ;;  %9539 = vmatprep.subr.bf16.mxu0 %v13504_v30  ;;  %v13549_v50 = vld [vmem:[%s16941_s3 + $0x164c] ss:$16 sps:$4 sm:$0xff]   ;;  %v13552_v30 = vld [vmem:[%s16941_s3 + $0x1844] ss:$16 sps:$4 sm:$0xff]  }
 0x3da   :  { %v6435_v35 = vadd.f32 %v6427_v40, %v6248_v17  ;;  %v7181_v19 = vadd.f32 %v7134_v51, %v6993_v13  ;;  %8854 = vmatprep.mubr.bf16.mxu1 %v13669_v28  ;;  %9561 = vmatprep.mubr.bf16.mxu0 %v13669_v28 }
 0x3db   :  { %v6429_v57 = vpop.f32.mrf.mxu1  ;;  %v7136_v52 = vpop.f32.mrf.mxu0 }
 0x3dc   :  { %8833 = vmatpush1.bf16.msra.mxu1 %v13499_v56  ;;  %9540 = vmatpush1.bf16.msra.mxu0 %v13502_v24  ;;  %v13547_v56 = vld [vmem:[%s16941_s3 + $0x1648] ss:$16 sps:$4 sm:$0xff]   ;;  %v13550_v24 = vld [vmem:[%s16941_s3 + $0x1840] ss:$16 sps:$4 sm:$0xff]  }
 0x3dd   :  { %v6430_v0 = vpop.f32.mrf.mxu1  ;;  %v7137_v43 = vpop.f32.mrf.mxu0  ;;  %8834 = vmatprep.subr.bf16.mxu1 %v13507_v54  ;;  %9541 = vmatprep.subr.bf16.mxu0 %v13510_v60  ;;  %v13558_v54 = vld [vmem:[%s16941_s3 + $0x1824] ss:$16 sps:$4 sm:$0xff]   ;;  %v13553_v52 = vld [vmem:[%s16941_s3 + $0x1628] ss:$16 sps:$4 sm:$0xff]  }
 0x3de   :  { %v13561_v43 = vld [vmem:[%s16941_s3 + $0x160c] ss:$16 sps:$4 sm:$0xff]  }
 0x3e0   :  { %8835 = vmatpush1.bf16.msra.mxu1 %v13505_v2  ;;  %9542 = vmatpush1.bf16.msra.mxu0 %v13508_v46  ;;  %v13556_v2 = vld [vmem:[%s16941_s3 + $0x1820] ss:$16 sps:$4 sm:$0xff]  }
 0x3e1   :  { %8836 = vmatprep.subr.bf16.mxu1 %v13513_v1  ;;  %9543 = vmatprep.subr.bf16.mxu0 %v13516_v9  ;;  %v13564_v1 = vld [vmem:[%s16941_s3 + $0x1804] ss:$16 sps:$4 sm:$0xff]   ;;  %v13559_v9 = vld [vmem:[%s16941_s3 + $0x1608] ss:$16 sps:$4 sm:$0xff]  }
 0x3e4   :  { %8837 = vmatpush1.bf16.msra.mxu1 %v13511_v3  ;;  %9544 = vmatpush1.bf16.msra.mxu0 %v13514_v15  ;;  %v13562_v3 = vld [vmem:[%s16941_s3 + $0x1800] ss:$16 sps:$4 sm:$0xff]   ;;  %v827_v15 = vmax.f32 %v14229_v6, 0.0 }
 0x3e5   :  { %9017 = vmatprep.subr.bf16.mxu1 %v13519_v8  ;;  %9724 = vmatprep.subr.bf16.mxu0 %v13522_v12  ;;  %v13567_v8 = vld [vmem:[%s16941_s3 + $0x16ec] ss:$16 sps:$4 sm:$0xff]   ;;  %v13565_v12 = vld [vmem:[%s16941_s3 + $0x16e8] ss:$16 sps:$4 sm:$0xff]  }
 0x3e7   :  { %v6612_v21 = vpop.f32.mrf.mxu1  ;;  %v7319_v29 = vpop.f32.mrf.mxu0  ;;  %11905 = vmatmul.mubr.msk.bf16.vlgmr.msra.gmra.mxu1 %vm529_vm1, %v8697_v7  ;;  %12040 = vmatmul.mubr.msk.bf16.vlgmr.msra.gmra.mxu0 %vm529_vm1, %v9445_v32  ;;  %v13531_v7 = vld [vmem:[%s16941_s3 + $0x15ac] ss:$16 sps:$4 sm:$0xff]  }
 0x3e8   :  { %v6621_v59 = vadd.f32 %v6612_v21, %v6434_v42  ;;  %v7367_v14 = vadd.f32 %v7319_v29, %v7180_v61  ;;  %9018 = vmatpush1.bf16.msra.mxu1 %v13517_v26  ;;  %9725 = vmatpush1.bf16.msra.mxu0 %v13520_v10  ;;  %v16715_v26 = vpack.c.bf16 %v827_v15, %v827_v15  ;;  %v13570_v10 = vld [vmem:[%s16941_s3 + $0x16cc] ss:$16 sps:$4 sm:$0xff]   ;;  %v13568_v29 = vld [vmem:[%s16941_s3 + $0x16c8] ss:$16 sps:$4 sm:$0xff]  }
 0x3e9   :  { %v6614_v63 = vpop.f32.mrf.mxu1  ;;  %v7321_v16 = vpop.f32.mrf.mxu0  ;;  %9019 = vmatprep.subr.bf16.mxu1 %v13525_v37  ;;  %9726 = vmatprep.subr.bf16.mxu0 %v13528_v11  ;;  %v13613_v15 = vld [vmem:[%s16943_s5 + $0x78] sm:$0xff]  }
 0x3ea   :  { %v6622_v20 = vadd.f32 %v6614_v63, %v6435_v35  ;;  %v7368_v17 = vadd.f32 %v7321_v16, %v7181_v19  ;;  %9041 = vmatprep.mubr.bf16.mxu1 %v13669_v28  ;;  %9748 = vmatprep.mubr.bf16.mxu0 %v13669_v28 }
 0x3eb   :  { %v6616_v13 = vpop.f32.mrf.mxu1  ;;  %v7323_v23 = vpop.f32.mrf.mxu0 }
 0x3ec   :  { %9020 = vmatpush1.bf16.msra.mxu1 %v13523_v22  ;;  %9727 = vmatpush1.bf16.msra.mxu0 %v13526_v55  ;;  %v13573_v22 = vld [vmem:[%s16941_s3 + $0x16ac] ss:$16 sps:$4 sm:$0xff]   ;;  %v13574_v13 = vld [vmem:[%s16941_s3 + $0x1688] ss:$16 sps:$4 sm:$0xff]  }
 0x3ed   :  { %v6617_v25 = vpop.f32.mrf.mxu1  ;;  %v7324_v27 = vpop.f32.mrf.mxu0  ;;  %9021 = vmatprep.subr.bf16.mxu1 %v13531_v7  ;;  %9728 = vmatprep.subr.bf16.mxu0 %v13534_v18  ;;  %v13571_v7 = vld [vmem:[%s16941_s3 + $0x16a8] ss:$16 sps:$4 sm:$0xff]   ;;  %v13579_v23 = vld [vmem:[%s16941_s3 + $0x176c] ss:$16 sps:$4 sm:$0xff]  }
 0x3f0   :  { %9022 = vmatpush1.bf16.msra.mxu1 %v13529_v31  ;;  %9729 = vmatpush1.bf16.msra.mxu0 %v13532_v33  ;;  %v13577_v31 = vld [vmem:[%s16941_s3 + $0x1768] ss:$16 sps:$4 sm:$0xff]   ;;  %v13582_v33 = vld [vmem:[%s16941_s3 + $0x174c] ss:$16 sps:$4 sm:$0xff]  }
 0x3f1   :  { %9023 = vmatprep.subr.bf16.mxu1 %v13537_v39  ;;  %9730 = vmatprep.subr.bf16.mxu0 %v13540_v44 }
 0x3f4   :  { %9024 = vmatpush1.bf16.msra.mxu1 %v13535_v41  ;;  %9731 = vmatpush1.bf16.msra.mxu0 %v13538_v45  ;;  %v13580_v41 = vld [vmem:[%s16941_s3 + $0x1748] ss:$16 sps:$4 sm:$0xff]  }
 0x3f5   :  { %9204 = vmatprep.subr.bf16.mxu1 %v13543_v4  ;;  %9910 = vmatprep.subr.bf16.mxu0 %v13546_v47  ;;  %v13585_v47 = vld [vmem:[%s16941_s3 + $0x172c] ss:$16 sps:$4 sm:$0xff]  }
 0x3f7   :  { %v6799_v49 = vpop.f32.mrf.mxu1  ;;  %v7506_v62 = vpop.f32.mrf.mxu0  ;;  %11939 = vmatmul.mubr.msk.bf16.vlgmr.msra.gmra.mxu1 %vm529_vm1, %v8884_v36  ;;  %12074 = vmatmul.mubr.msk.bf16.vlgmr.msra.gmra.mxu0 %vm529_vm1, %v9632_v58  ;;  %v13555_v36 = vld [vmem:[%s16941_s3 + $0x162c] ss:$16 sps:$4 sm:$0xff]  }
 0x3f8   :  { %v6808_v42 = vadd.f32 %v6799_v49, %v6621_v59  ;;  %v7554_v61 = vadd.f32 %v7506_v62, %v7367_v14  ;;  %9205 = vmatpush1.bf16.msra.mxu1 %v13541_v48  ;;  %9911 = vmatpush1.bf16.msra.mxu0 %v13544_v53 }
 0x3f9   :  { %v6801_v40 = vpop.f32.mrf.mxu1  ;;  %v7508_v51 = vpop.f32.mrf.mxu0  ;;  %9206 = vmatprep.subr.bf16.mxu1 %v13549_v50  ;;  %9912 = vmatprep.subr.bf16.mxu0 %v13552_v30  ;;  %v13583_v30 = vld [vmem:[%s16941_s3 + $0x1728] ss:$16 sps:$4 sm:$0xff]  }
 0x3fa   :  { %v6809_v60 = vadd.f32 %v6801_v40, %v6622_v20  ;;  %v7555_v35 = vadd.f32 %v7508_v51, %v7368_v17  ;;  %9228 = vmatprep.mubr.bf16.mxu1 %v13669_v28  ;;  %9934 = vmatprep.mubr.bf16.mxu0 %v13669_v28  ;;  %v13576_v17 = vld [vmem:[%s16941_s3 + $0x168c] ss:$16 sps:$4 sm:$0xff]  }
 0x3fb   :  { %v6803_v19 = vpop.f32.mrf.mxu1  ;;  %v7510_v57 = vpop.f32.mrf.mxu0  ;;  %v13594_v40 = vld [vmem:[%s16941_s3 + $0x17cc] ss:$16 sps:$4 sm:$0xff]  }
 0x3fc   :  { %9207 = vmatpush1.bf16.msra.mxu1 %v13547_v56  ;;  %9913 = vmatpush1.bf16.msra.mxu0 %v13550_v24  ;;  %v13591_v56 = vld [vmem:[%s16941_s3 + $0x17ec] ss:$16 sps:$4 sm:$0xff]   ;;  %v13589_v24 = vld [vmem:[%s16941_s3 + $0x17e8] ss:$16 sps:$4 sm:$0xff]  }
 0x3fd   :  { %v6804_v46 = vpop.f32.mrf.mxu1  ;;  %v7511_v0 = vpop.f32.mrf.mxu0  ;;  %9208 = vmatprep.subr.bf16.mxu1 %v13555_v36  ;;  %9914 = vmatprep.subr.bf16.mxu0 %v13558_v54 }
 0x400   :  { %9209 = vmatpush1.bf16.msra.mxu1 %v13553_v52  ;;  %9915 = vmatpush1.bf16.msra.mxu0 %v13556_v2  ;;  %v13597_v52 = vld [vmem:[%s16941_s3 + $0x17ac] ss:$16 sps:$4 sm:$0xff]  }
 0x401   :  { %9210 = vmatprep.subr.bf16.mxu1 %v13561_v43  ;;  %9916 = vmatprep.subr.bf16.mxu0 %v13564_v1  ;;  %v13595_v43 = vld [vmem:[%s16941_s3 + $0x17a8] ss:$16 sps:$4 sm:$0xff]  }
 0x404   :  { %9211 = vmatpush1.bf16.msra.mxu1 %v13559_v9  ;;  %9917 = vmatpush1.bf16.msra.mxu0 %v13562_v3  ;;  %v13600_v3 = vld [vmem:[%s16941_s3 + $0x178c] ss:$16 sps:$4 sm:$0xff]  }
 0x405   :  { %9391 = vmatprep.subr.bf16.mxu1 %v13567_v8  ;;  %v13614_v8 = vld [vmem:[%s16943_s5 + $0x38] sm:$0xff]   ;;  %12270 = vmatprep.subr.bf16.mxu0 %v13613_v15 }
 0x407   :  { %v6985_v6 = vpop.f32.mrf.mxu1  ;;  %v7693_v37 = vpop.f32.mrf.mxu0  ;;  %11973 = vmatmul.mubr.msk.bf16.vlgmr.msra.gmra.mxu1 %vm529_vm1, %v9071_v34  ;;  %12108 = vmatmul.mubr.msk.bf16.vlgmr.msra.gmra.mxu0 %vm529_vm1, %v16715_v26 }
 0x408   :  { %v6994_v11 = vadd.f32 %v6985_v6, %v6808_v42  ;;  %v7741_v21 = vadd.f32 %v7693_v37, %v7554_v61  ;;  %9392 = vmatpush1.bf16.msra.mxu1 %v13565_v12  ;;  %9415 = vmatprep.mubr.bf16.mxu1 %v13669_v28  ;;  %v13588_v42 = vld [vmem:[%s16941_s3 + $0x170c] ss:$16 sps:$4 sm:$0xff]   ;;  %v13586_v61 = vld [vmem:[%s16941_s3 + $0x1708] ss:$16 sps:$4 sm:$0xff]  }
 0x409   :  { %v6987_v59 = vpop.f32.mrf.mxu1  ;;  %v7695_v14 = vpop.f32.mrf.mxu0  ;;  %9393 = vmatprep.subr.bf16.mxu1 %v13570_v10  ;;  %v13598_v12 = vld [vmem:[%s16941_s3 + $0x1788] ss:$16 sps:$4 sm:$0xff]   ;;  %12271 = vmatpush3.bf16.msra.mxu0 %v13614_v8  ;;  %v13603_v10 = vld [vmem:[%s16941_s3 + $0x186c] ss:$16 sps:$4 sm:$0xff]  }
 0x40a   :  { %v6995_v34 = vadd.f32 %v6987_v59, %v6809_v60  ;;  %v7742_v55 = vadd.f32 %v7695_v14, %v7555_v35  ;;  %v13592_v35 = vld [vmem:[%s16941_s3 + $0x17c8] ss:$16 sps:$4 sm:$0xff]   ;;  %v13606_v37 = vld [vmem:[%s16941_s3 + $0x184c] ss:$16 sps:$4 sm:$0xff]  }
 0x40b   :  { %v6989_v63 = vpop.f32.mrf.mxu1  ;;  %v7697_v16 = vpop.f32.mrf.mxu0  ;;  %v13601_v6 = vld [vmem:[%s16941_s3 + $0x1868] ss:$16 sps:$4 sm:$0xff]  }
 0x40c   :  { %9394 = vmatpush1.bf16.msra.mxu1 %v13568_v29  ;;  %v13615_v29 = vld [vmem:[%s16943_s5 + $0x70] sm:$0xff]  }
 0x40d   :  { %v6990_v18 = vpop.f32.mrf.mxu1  ;;  %v7698_v20 = vpop.f32.mrf.mxu0  ;;  %9395 = vmatprep.subr.bf16.mxu1 %v13573_v22  ;;  %v13604_v22 = vld [vmem:[%s16941_s3 + $0x1848] ss:$16 sps:$4 sm:$0xff]   ;;  %12272 = vmatprep.subr.bf16.mxu0 %v13615_v29 }
 0x40e   :  { %v13618_v20 = vld [vmem:[%s16943_s5 + $0x28] sm:$0xff]  }
 0x410   :  { %9396 = vmatpush1.bf16.msra.mxu1 %v13571_v7 }
 0x411   :  { %9397 = vmatprep.subr.bf16.mxu1 %v13576_v17  ;;  %v13607_v17 = vld [vmem:[%s16941_s3 + $0x1828] ss:$16 sps:$4 sm:$0xff]  }
 0x414   :  { %9398 = vmatpush1.bf16.msra.mxu1 %v13574_v13 }
 0x415   :  { %9578 = vmatprep.subr.bf16.mxu1 %v13579_v23 }
 0x417   :  { %v7173_v25 = vpop.f32.mrf.mxu1  ;;  %v7880_v27 = vpop.f32.mrf.mxu0  ;;  %12007 = vmatmul.mubr.msk.bf16.vlgmr.msra.gmra.mxu1 %vm529_vm1, %v9258_v38 }
 0x418   :  { %v7182_v39 = vadd.f32 %v7173_v25, %v6994_v11  ;;  %v7928_v44 = vadd.f32 %v7880_v27, %v7741_v21  ;;  %9579 = vmatpush1.bf16.msra.mxu1 %v13577_v31  ;;  %9602 = vmatprep.mubr.bf16.mxu1 %v13669_v28  ;;  %v13612_v31 = vld [vmem:[%s16941_s3 + $0x180c] ss:$16 sps:$4 sm:$0xff]   ;;  %v13620_v25 = vld [vmem:[%s16943_s5 + $0x20] sm:$0xff]  }
 0x419   :  { %v7175_v45 = vpop.f32.mrf.mxu1  ;;  %v7882_v4 = vpop.f32.mrf.mxu0  ;;  %9580 = vmatprep.subr.bf16.mxu1 %v13582_v33  ;;  %v13619_v33 = vld [vmem:[%s16943_s5 + $0x60] sm:$0xff]   ;;  %v13621_v27 = vld [vmem:[%s16943_s5 + $0x58] sm:$0xff]  }
 0x41a   :  { %v7183_v48 = vadd.f32 %v7175_v45, %v6995_v34  ;;  %v7929_v53 = vadd.f32 %v7882_v4, %v7742_v55  ;;  %v13616_v34 = vld [vmem:[%s16943_s5 + $0x30] sm:$0xff]  }
 0x41b   :  { %v7177_v50 = vpop.f32.mrf.mxu1  ;;  %v7884_v38 = vpop.f32.mrf.mxu0  ;;  %12273 = vmatpush3.bf16.msra.mxu0 %v13616_v34  ;;  %v13623_v4 = vld [vmem:[%s16943_s5 + $0x50] sm:$0xff]  }
 0x41c   :  { %9581 = vmatpush1.bf16.msra.mxu1 %v13580_v41 }
 0x41d   :  { %v7178_v49 = vpop.f32.mrf.mxu1  ;;  %v7885_v62 = vpop.f32.mrf.mxu0  ;;  %9582 = vmatprep.subr.bf16.mxu1 %v13585_v47 }
 0x420   :  { %9583 = vmatpush1.bf16.msra.mxu1 %v13583_v30 }
 0x421   :  { %9584 = vmatprep.subr.bf16.mxu1 %v13588_v42 }
 0x424   :  { %9585 = vmatpush1.bf16.msra.mxu1 %v13586_v61  ;;  %v13626_v61 = vld [vmem:[%s16943_s5 + $0x8] sm:$0xff]  }
 0x425   :  { %9765 = vmatprep.subr.bf16.mxu1 %v13591_v56 }
 0x427   :  { %v7360_v51 = vpop.f32.mrf.mxu1  ;;  %v8067_v36 = vpop.f32.mrf.mxu0  ;;  %12041 = vmatmul.mubr.msk.bf16.vlgmr.msra.gmra.mxu1 %vm529_vm1, %v9445_v32 }
 0x428   :  { %v7369_v54 = vadd.f32 %v7360_v51, %v7182_v39  ;;  %v8115_v60 = vadd.f32 %v8067_v36, %v7928_v44  ;;  %9766 = vmatpush1.bf16.msra.mxu1 %v13589_v24  ;;  %9789 = vmatprep.mubr.bf16.mxu1 %v13669_v28  ;;  %v13610_v39 = vld [vmem:[%s16941_s3 + $0x1808] ss:$16 sps:$4 sm:$0xff]   ;;  %v13628_v51 = vld [vmem:[%s16943_s5] sm:$0xff]  }
 0x429   :  { %v7362_v19 = vpop.f32.mrf.mxu1  ;;  %v8069_v57 = vpop.f32.mrf.mxu0  ;;  %9767 = vmatprep.subr.bf16.mxu1 %v13594_v40  ;;  %v13622_v44 = vld [vmem:[%s16943_s5 + $0x18] sm:$0xff]   ;;  %v13627_v40 = vld [vmem:[%s16943_s5 + $0x40] sm:$0xff]  }
 0x42a   :  { %v7370_v2 = vadd.f32 %v7362_v19, %v7183_v48  ;;  %v8116_v46 = vadd.f32 %v8069_v57, %v7929_v53  ;;  %v13624_v53 = vld [vmem:[%s16943_s5 + $0x10] sm:$0xff]  }
 0x42b   :  { %v7364_v0 = vpop.f32.mrf.mxu1  ;;  %v8071_v32 = vpop.f32.mrf.mxu0 }
 0x42c   :  { %9768 = vmatpush1.bf16.msra.mxu1 %v13592_v35 }
 0x42d   :  { %v7365_v1 = vpop.f32.mrf.mxu1  ;;  %v8072_v9 = vpop.f32.mrf.mxu0  ;;  %9769 = vmatprep.subr.bf16.mxu1 %v13597_v52 }
 0x430   :  { %9770 = vmatpush1.bf16.msra.mxu1 %v13595_v43 }
 0x431   :  { %9771 = vmatprep.subr.bf16.mxu1 %v13600_v3 }
 0x434   :  { %9772 = vmatpush1.bf16.msra.mxu1 %v13598_v12 }
 0x435   :  { %9951 = vmatprep.subr.bf16.mxu1 %v13603_v10 }
 0x437   :  { %v7547_v11 = vpop.f32.mrf.mxu1  ;;  %v8254_v21 = vpop.f32.mrf.mxu0  ;;  %12075 = vmatmul.mubr.msk.bf16.vlgmr.msra.gmra.mxu1 %vm529_vm1, %v9632_v58  ;;  %v13609_v58 = vld [vmem:[%s16941_s3 + $0x182c] ss:$16 sps:$4 sm:$0xff]  }
 0x438   :  { %v7556_v59 = vadd.f32 %v7547_v11, %v7369_v54  ;;  %v8302_v14 = vadd.f32 %v8254_v21, %v8115_v60  ;;  %9952 = vmatpush1.bf16.msra.mxu1 %v13601_v6  ;;  %9975 = vmatprep.mubr.bf16.mxu1 %v13669_v28  ;;  %v13617_v28 = vld [vmem:[%s16943_s5 + $0x68] sm:$0xff]  }
 0x439   :  { %v7549_v5 = vpop.f32.mrf.mxu1  ;;  %v8256_v55 = vpop.f32.mrf.mxu0  ;;  %9953 = vmatprep.subr.bf16.mxu1 %v13606_v37  ;;  %12274 = vmatprep.subr.bf16.mxu0 %v13617_v28 }
 0x43a   :  { %v7557_v63 = vadd.f32 %v7549_v5, %v7370_v2  ;;  %v8303_v16 = vadd.f32 %v8256_v55, %v8116_v46  ;;  %12275 = vmatpush3.bf16.msra.mxu0 %v13618_v20  ;;  %v13631_v5 = vld [vmem:[%s16943_s5 + $0xf0] sm:$0xff]  }
 0x43b   :  { %v7551_v7 = vpop.f32.mrf.mxu1  ;;  %v8258_v18 = vpop.f32.mrf.mxu0  ;;  %12276 = vmatprep.subr.bf16.mxu0 %v13619_v33 }
 0x43c   :  { %9954 = vmatpush1.bf16.msra.mxu1 %v13604_v22 }
 0x43d   :  { %v7552_v13 = vpop.f32.mrf.mxu1  ;;  %v8259_v23 = vpop.f32.mrf.mxu0  ;;  %9955 = vmatprep.subr.bf16.mxu1 %v13609_v58 }
 0x43e   :  { %12277 = vmatpush3.bf16.msra.mxu0 %v13620_v25  ;;  %v13633_v13 = vld [vmem:[%s16943_s5 + $0xe8] sm:$0xff]   ;;  %v13635_v25 = vld [vmem:[%s16943_s5 + $0xe0] sm:$0xff]  }
 0x43f   :  { %12278 = vmatprep.subr.bf16.mxu0 %v13621_v27  ;;  %v13634_v23 = vld [vmem:[%s16943_s5 + $0xa8] sm:$0xff]   ;;  %v13636_v27 = vld [vmem:[%s16943_s5 + $0xa0] sm:$0xff]  }
 0x440   :  { %9956 = vmatpush1.bf16.msra.mxu1 %v13607_v17 }
 0x441   :  { %9957 = vmatprep.subr.bf16.mxu1 %v13612_v31 }
 0x442   :  { %12279 = vmatpush3.bf16.msra.mxu0 %v13622_v44  ;;  %v13638_v44 = vld [vmem:[%s16943_s5 + $0x98] sm:$0xff]  }
 0x443   :  { %12280 = vmatprep.subr.bf16.mxu0 %v13623_v4  ;;  %v13639_v4 = vld [vmem:[%s16943_s5 + $0xd0] sm:$0xff]  }
 0x444   :  { %9958 = vmatpush1.bf16.msra.mxu1 %v13610_v39  ;;  %v13637_v39 = vld [vmem:[%s16943_s5 + $0xd8] sm:$0xff]  }
 0x446   :  { %12281 = vmatpush3.bf16.msra.mxu0 %v13624_v53 }
 0x447   :  { %v7734_v41 = vpop.f32.mrf.mxu1  ;;  %v8440_v45 = vpop.f32.mrf.mxu0  ;;  %12109 = vmatmul.mubr.msk.bf16.vlgmr.msra.gmra.mxu1 %vm529_vm1, %v16715_v26  ;;  %v13625_v26 = vld [vmem:[%s16943_s5 + $0x48] sm:$0xff]  }
 0x448   :  { %v7743_v47 = vadd.f32 %v7734_v41, %v7556_v59  ;;  %v8488_v48 = vadd.f32 %v8440_v45, %v8302_v14  ;;  %12282 = vmatprep.subr.bf16.mxu0 %v13625_v26  ;;  %v13629_v59 = vld [vmem:[%s16943_s5 + $0xf8] sm:$0xff]  }
 0x449   :  { %v7736_v50 = vpop.f32.mrf.mxu1  ;;  %v8442_v38 = vpop.f32.mrf.mxu0  ;;  %v13630_v14 = vld [vmem:[%s16943_s5 + $0xb8] sm:$0xff]   ;;  %12292 = vmatprep.subr.bf16.mxu1 %v13629_v59  ;;  %v9990_v59 = vlaneseq }
 0x44a   :  { %v7744_v30 = vadd.f32 %v7736_v50, %v7557_v63  ;;  %v8489_v49 = vadd.f32 %v8442_v38, %v8303_v16  ;;  %12283 = vmatpush3.bf16.msra.mxu0 %v13626_v61  ;;  %12293 = vmatpush3.bf16.msra.mxu1 %v13630_v14  ;;  %v13632_v63 = vld [vmem:[%s16943_s5 + $0xb0] sm:$0xff]  }
 0x44b   :  { %v7738_v62 = vpop.f32.mrf.mxu1  ;;  %v8444_v42 = vpop.f32.mrf.mxu0  ;;  %12284 = vmatprep.subr.bf16.mxu0 %v13627_v40  ;;  %12294 = vmatprep.subr.bf16.mxu1 %v13631_v5 }
 0x44c   :  { %v13641_v62 = vld [vmem:[%s16943_s5 + $0xc8] sm:$0xff]  }
 0x44d   :  { %v7739_v56 = vpop.f32.mrf.mxu1  ;;  %v8445_v24 = vpop.f32.mrf.mxu0  ;;  %v13642_v42 = vld [vmem:[%s16943_s5 + $0x88] sm:$0xff]  }
 0x44e   :  { %12285 = vmatpush3.bf16.msra.mxu0 %v13628_v51  ;;  %12295 = vmatpush3.bf16.msra.mxu1 %v13632_v63  ;;  %v13643_v56 = vld [vmem:[%s16943_s5 + $0xc0] sm:$0xff]  }
 0x44f   :  { %12296 = vmatprep.subr.bf16.mxu1 %v13633_v13  ;;  %v13644_v24 = vld [vmem:[%s16943_s5 + $0x80] sm:$0xff]  }
 0x452   :  { %12297 = vmatpush3.bf16.msra.mxu1 %v13634_v23 }
 0x453   :  { %12298 = vmatprep.subr.bf16.mxu1 %v13635_v25 }
 0x456   :  { %12299 = vmatpush3.bf16.msra.mxu1 %v13636_v27 }
 0x457   :  { %v7921_v36 = vpop.f32.mrf.mxu1  ;;  %v8628_v54 = vpop.f32.mrf.mxu0  ;;  %12300 = vmatprep.subr.bf16.mxu1 %v13637_v39 }
 0x458   :  { %v7930_v60 = vadd.f32 %v7921_v36, %v7743_v47  ;;  %v8676_v35 = vadd.f32 %v8628_v54, %v8488_v48  ;;  %v13640_v48 = vld [vmem:[%s16943_s5 + $0x90] sm:$0xff]  }
 0x459   :  { %v7923_v19 = vpop.f32.mrf.mxu1  ;;  %v8630_v57 = vpop.f32.mrf.mxu0 }
 0x45a   :  { %v7931_v52 = vadd.f32 %v7923_v19, %v7744_v30  ;;  %v8677_v2 = vadd.f32 %v8630_v57, %v8489_v49  ;;  %12301 = vmatpush3.bf16.msra.mxu1 %v13638_v44 }
 0x45b   :  { %v7925_v46 = vpop.f32.mrf.mxu1  ;;  %v8632_v0 = vpop.f32.mrf.mxu0  ;;  %12302 = vmatprep.subr.bf16.mxu1 %v13639_v4 }
 0x45d   :  { %v7926_v32 = vpop.f32.mrf.mxu1  ;;  %v8633_v43 = vpop.f32.mrf.mxu0 }
 0x45e   :  { %12303 = vmatpush3.bf16.msra.mxu1 %v13640_v48 }
 0x45f   :  { %12304 = vmatprep.subr.bf16.mxu1 %v13641_v62 }
 0x462   :  { %12305 = vmatpush3.bf16.msra.mxu1 %v13642_v42 }
 0x463   :  { %12306 = vmatprep.subr.bf16.mxu1 %v13643_v56 }
 0x466   :  { %12307 = vmatpush3.bf16.msra.mxu1 %v13644_v24 }
 0x467   :  { %v8108_v1 = vpop.f32.mrf.mxu1  ;;  %v8815_v9 = vpop.f32.mrf.mxu0 }
 0x468   :  { %v8117_v3 = vadd.f32 %v8108_v1, %v7930_v60  ;;  %v8863_v15 = vadd.f32 %v8815_v9, %v8676_v35 }
 0x469   :  { %v8110_v8 = vpop.f32.mrf.mxu1  ;;  %v8817_v12 = vpop.f32.mrf.mxu0 }
 0x46a   :  { %v8118_v10 = vadd.f32 %v8110_v8, %v7931_v52  ;;  %v8864_v6 = vadd.f32 %v8817_v12, %v8677_v2 }
 0x46b   :  { %v8112_v37 = vpop.f32.mrf.mxu1  ;;  %v8819_v11 = vpop.f32.mrf.mxu0 }
 0x46d   :  { %v8113_v21 = vpop.f32.mrf.mxu1  ;;  %v8820_v29 = vpop.f32.mrf.mxu0 }
 0x477   :  { %v8295_v22 = vpop.f32.mrf.mxu1  ;;  %v9002_v34 = vpop.f32.mrf.mxu0 }
 0x478   :  { %v8304_v55 = vadd.f32 %v8295_v22, %v8117_v3  ;;  %v16884_v58 = vadd.f32 %v9002_v34, %v8863_v15 }
 0x479   :  { %v8297_v16 = vpop.f32.mrf.mxu1  ;;  %v9004_v7 = vpop.f32.mrf.mxu0 }
 0x47a   :  { %v8305_v18 = vadd.f32 %v8297_v16, %v8118_v10  ;;  %v16889_v28 = vadd.f32 %v9004_v7, %v8864_v6 }
 0x47b   :  { %v8299_v20 = vpop.f32.mrf.mxu1  ;;  %v9006_v17 = vpop.f32.mrf.mxu0 }
 0x47c   :  { %v9988_v20 = vld [vmem:[%s16942_s4] sm:$0xf] }
 0x47d   :  { %v8300_v31 = vpop.f32.mrf.mxu1  ;;  %v9007_v33 = vpop.f32.mrf.mxu0 }
 0x487   :  { %v8481_v41 = vpop.f32.mrf.mxu1  ;;  %v9189_v45 = vpop.f32.mrf.mxu0 }
 0x488   :  { %v8490_v47 = vadd.f32 %v8481_v41, %v8304_v55  ;;  %v9991_v55 = vshrl.u32 %v9990_v59, 7  ;;  %v9237_v63 = vadd.f32 %v9189_v45, %v16884_v58 }
 0x489   :  { %v8483_v53 = vpop.f32.mrf.mxu1  ;;  %v9191_v50 = vpop.f32.mrf.mxu0 }
 0x48a   :  { %v8491_v38 = vadd.f32 %v8483_v53, %v8305_v18  ;;  %v9238_v16 = vadd.f32 %v9191_v50, %v16889_v28  ;;  %v9992_v18 = vsub.s32 0, %v9991_v55  ;;  %v9996_v23 = vsub.s32 1, %v9991_v55 }
 0x48b   :  { %v8485_v30 = vpop.f32.mrf.mxu1  ;;  %v9193_v49 = vpop.f32.mrf.mxu0 }
 0x48c   :  { %v9993_v25 = vrot.slane %v9988_v20, %v9992_v18  ;;  %v9997_v4 = vrot.slane %v9988_v20, %v9996_v23 }
 0x48d   :  { %v8486_v26 = vpop.f32.mrf.mxu1  ;;  %v9194_v61 = vpop.f32.mrf.mxu0 }
 0x497   :  { %v8669_v40 = vpop.f32.mrf.mxu1  ;;  %v9376_v51 = vpop.f32.mrf.mxu0 }
 0x498   :  { %v8678_v36 = vadd.f32 %v8669_v40, %v8490_v47  ;;  %v9424_v7 = vadd.f32 %v9376_v51, %v9237_v63 }
 0x499   :  { %v8671_v54 = vpop.f32.mrf.mxu1  ;;  %v9378_v60 = vpop.f32.mrf.mxu0 }
 0x49a   :  { %v8679_v35 = vadd.f32 %v8671_v54, %v8491_v38  ;;  %v9425_v17 = vadd.f32 %v9378_v60, %v9238_v16 }
 0x49b   :  { %v8673_v19 = vpop.f32.mrf.mxu1  ;;  %v9380_v57 = vpop.f32.mrf.mxu0 }
 0x49d   :  { %v8674_v52 = vpop.f32.mrf.mxu1  ;;  %v9381_v2 = vpop.f32.mrf.mxu0 }
 0x4a7   :  { %v8856_v46 = vpop.f32.mrf.mxu1  ;;  %v9563_v0 = vpop.f32.mrf.mxu0 }
 0x4a8   :  { %v8865_v32 = vadd.f32 %v8856_v46, %v8678_v36  ;;  %v9611_v13 = vadd.f32 %v9563_v0, %v9424_v7 }
 0x4a9   :  { %v8858_v43 = vpop.f32.mrf.mxu1  ;;  %v9565_v1 = vpop.f32.mrf.mxu0 }
 0x4aa   :  { %v8866_v9 = vadd.f32 %v8858_v43, %v8679_v35  ;;  %v9612_v31 = vadd.f32 %v9565_v1, %v9425_v17 }
 0x4ab   :  { %v8860_v3 = vpop.f32.mrf.mxu1  ;;  %v9567_v15 = vpop.f32.mrf.mxu0 }
 0x4ad   :  { %v8861_v8 = vpop.f32.mrf.mxu1  ;;  %v9568_v12 = vpop.f32.mrf.mxu0 }
 0x4b7   :  { %v9043_v10 = vpop.f32.mrf.mxu1  ;;  %v9750_v6 = vpop.f32.mrf.mxu0 }
 0x4b8   :  { %v9052_v37 = vadd.f32 %v9043_v10, %v8865_v32  ;;  %v9798_v33 = vadd.f32 %v9750_v6, %v9611_v13  ;;  %v10000_v32 = vsub.s32 2, %v9991_v55 }
 0x4b9   :  { %v9045_v11 = vpop.f32.mrf.mxu1  ;;  %v9752_v21 = vpop.f32.mrf.mxu0 }
 0x4ba   :  { %v9053_v29 = vadd.f32 %v9045_v11, %v8866_v9  ;;  %v9799_v44 = vadd.f32 %v9752_v21, %v9612_v31  ;;  %v10004_v9 = vsub.s32 3, %v9991_v55  ;;  %v10001_v8 = vrot.slane %v9988_v20, %v10000_v32 }
 0x4bb   :  { %v9047_v14 = vpop.f32.mrf.mxu1  ;;  %v9754_v22 = vpop.f32.mrf.mxu0 }
 0x4bc   :  { %v10005_v11 = vrot.slane %v9988_v20, %v10004_v9  ;;  %v12110_v20 = vld [vmem:[%s16944_s6] ss:$0 sm:$0xff] }
 0x4bd   :  { %v9048_v34 = vpop.f32.mrf.mxu1  ;;  %v9755_v5 = vpop.f32.mrf.mxu0 }
 0x4c7   :  { %v9230_v27 = vpop.f32.mrf.mxu1  ;;  %v9936_v39 = vpop.f32.mrf.mxu0 }
 0x4c8   :  { %v9984_v41 = vadd.f32 %v9936_v39, %v9798_v33  ;;  %v9239_v2 = vadd.f32 %v9230_v27, %v9052_v37 }
 0x4c9   :  { %v9232_v58 = vpop.f32.mrf.mxu1  ;;  %v9938_v45 = vpop.f32.mrf.mxu0 }
 0x4ca   :  { %v10010_v28 = vadd.f32 %v9993_v25, %v9984_v41  ;;  %v9985_v47 = vadd.f32 %v9938_v45, %v9799_v44  ;;  %v9240_v46 = vadd.f32 %v9232_v58, %v9053_v29 }
 0x4cb   :  { %v9234_v48 = vpop.f32.mrf.mxu1  ;;  %v9940_v53 = vpop.f32.mrf.mxu0 }
 0x4cc   :  { %v10011_v50 = vadd.f32 %v9997_v4, %v9985_v47  ;;  %v10014_v38 = vmax.f32 %v10010_v28, 0.0 }
 0x4cd   :  { %v9235_v30 = vpop.f32.mrf.mxu1  ;;  %v9941_v49 = vpop.f32.mrf.mxu0 }
 0x4ce   :  { %v10015_v62 = vmax.f32 %v10011_v50, 0.0  ;;  %v10018_v26 = vpack.c.bf16 %v10014_v38, %v10014_v38 }
 0x4d0   :  { %v10019_v42 = vpack.c.bf16 %v10015_v62, %v10015_v62 }
 0x4d2   :  { %10317 = vmatprep.mubr.bf16.mxu0 %v10019_v42 }
 0x4d3   :  { %10318 = vmatmul.mubr.bf16.vlgmr.msra.gmra.mxu0 %v10018_v26 }
 0x4d7   :  { %v9417_v61 = vpop.f32.mrf.mxu1 }
 0x4d8   :  { %v9426_v0 = vadd.f32 %v9417_v61, %v9239_v2 }
 0x4d9   :  { %v9419_v56 = vpop.f32.mrf.mxu1 }
 0x4da   :  { %v9427_v43 = vadd.f32 %v9419_v56, %v9240_v46 }
 0x4db   :  { %v9421_v24 = vpop.f32.mrf.mxu1 }
 0x4dd   :  { %v9422_v40 = vpop.f32.mrf.mxu1 }
 0x4e7   :  { %v9604_v51 = vpop.f32.mrf.mxu1 }
 0x4e8   :  { %v9613_v1 = vadd.f32 %v9604_v51, %v9426_v0 }
 0x4e9   :  { %v9606_v36 = vpop.f32.mrf.mxu1 }
 0x4ea   :  { %v9614_v3 = vadd.f32 %v9606_v36, %v9427_v43 }
 0x4eb   :  { %v9608_v54 = vpop.f32.mrf.mxu1 }
 0x4ed   :  { %v9609_v60 = vpop.f32.mrf.mxu1 }
 0x4f7   :  { %v9791_v35 = vpop.f32.mrf.mxu1 }
 0x4f8   :  { %v9800_v15 = vadd.f32 %v9791_v35, %v9613_v1 }
 0x4f9   :  { %v9793_v19 = vpop.f32.mrf.mxu1 }
 0x4fa   :  { %v9801_v10 = vadd.f32 %v9793_v19, %v9614_v3 }
 0x4fb   :  { %v9795_v57 = vpop.f32.mrf.mxu1 }
 0x4fd   :  { %v9796_v52 = vpop.f32.mrf.mxu1 }
 0x507   :  { %v9977_v12 = vpop.f32.mrf.mxu1 }
 0x508   :  { %v9986_v6 = vadd.f32 %v9977_v12, %v9800_v15 }
 0x509   :  { %v9979_v21 = vpop.f32.mrf.mxu1 }
 0x50a   :  { %v10012_v59 = vadd.f32 %v10001_v8, %v9986_v6  ;;  %v9987_v14 = vadd.f32 %v9979_v21, %v9801_v10 }
 0x50b   :  { %v9981_v22 = vpop.f32.mrf.mxu1 }
 0x50c   :  { %v10013_v34 = vadd.f32 %v10005_v11, %v9987_v14  ;;  %v10016_v5 = vmax.f32 %v10012_v59, 0.0 }
 0x50d   :  { %v9982_v37 = vpop.f32.mrf.mxu1 }
 0x50e   :  { %v10017_v29 = vmax.f32 %v10013_v34, 0.0  ;;  %v10020_v16 = vpack.c.bf16 %v10016_v5, %v10016_v5 }
 0x510   :  { %v10021_v63 = vpack.c.bf16 %v10017_v29, %v10017_v29 }
 0x512   :  { %10357 = vmatprep.mubr.bf16.mxu1 %v10021_v63 }
 0x513   :  { %10358 = vmatmul.mubr.bf16.vlgmr.msra.gmra.mxu1 %v10020_v16 }
 0x593   :  { %v12286_v55 = vpop.f32.mrf.mxu0 }
 0x595   :  { %v12287_v7 = vpop.f32.mrf.mxu0 }
 0x596   :  { %v12288_v13 = vadd.f32 %v12287_v7, %v12286_v55 }
 0x597   :  { %v12289_v18 = vpop.f32.mrf.mxu0 }
 0x598   :  { %v10320_v33 = vadd.f32 %v12288_v13, %v12110_v20 }
 0x599   :  { %v12290_v17 = vpop.f32.mrf.mxu0 }
 0x5d3   :  { %v12308_v23 = vpop.f32.mrf.mxu1 }
 0x5d5   :  { %v12309_v31 = vpop.f32.mrf.mxu1 }
 0x5d6   :  { %v12310_v25 = vadd.f32 %v12309_v31, %v12308_v23 }
 0x5d7   :  { %v12311_v27 = vpop.f32.mrf.mxu1 }
 0x5d8   :  { %v10360_v39 = vadd.f32 %v12310_v25, %v10320_v33 }
 0x5d9   :  { %v12312_v44 = vpop.f32.mrf.mxu1 }
 0x5da   :  { %10366 = vst.msk [vmem:[#allocation2] sm:$0x3] %vm10365_vm2, %v10360_v39 }
 0x5db   :  { %13656 = shalt.err (!%p13653_p4)
}
 0x5dc   :  { %10376 = dma.vmem_to_hbm [thread:$0]  %s10374_s20, 32, %s16945_s7, [#allocation3]  }
 0x5dd   :  { %13665 = dma.done.wait [#allocation3], 32  }
 0x5de   :  { %13666 = vsyncadd [#allocation3], 4294967264 }
 0x5df   :  { %10380 = vsyncpa [#allocation3], 1 }

</bundles_post_ra>
